<compile_context>
chip_gen: v7x
topology: tpu7x:2x2x1
jax: 0.10.0
libtpu: 0.0.40
codegen_flags: <defaults>
</compile_context>

<pallas_src>
import numpy as np
import jax
import jax.numpy as jnp
from jax.experimental import pallas as pl
from jax.experimental.pallas import tpu as pltpu

NUM_CLASSES = 10            # hparams['num_classes'] for Fashion-MNIST

# ---- static network geometry ------------------------------------------------
H_IN = W_IN = 28            # input image
H1 = W1 = 14                # conv1 output (3x3, stride 2, pad (0,1,0,1))
H2 = W2 = 7                 # conv2 output
C1, C2 = 10, 32             # conv channel counts
Q1 = H1 * W1                # 196 conv1 spatial positions
Q2 = H2 * W2                # 49  conv2 spatial positions
K1 = H_IN * W_IN            # 784 flattened input pixels
N1 = C1 * Q1                # 1960 conv1 activation width  (lanes: c1-major)
N2 = C2 * Q2                # 1568 conv2 activation width == NCHW flatten order
FC1 = 128                   # fc1 hidden width
NCLSP = 128                 # classifier width padded to a full 128-lane vreg
MAX_BT = 128                # max images per grid step (MXU M tile on v5e)


# -------------------- constant "conv as one GEMM" matrices --------------------

def _conv_selection(h_in, w_in, h_out, w_out):
    """sel[p, t, q] = 1 iff input pixel p feeds output pixel q through tap t.

    Encodes F.pad(x, (0,1,0,1)) + 3x3 / stride-2 patch extraction: taps that
    land on the (right/bottom) zero pad simply have no entry."""
    sel = np.zeros((h_in * w_in, 9, h_out * w_out), np.float32)
    for i in range(3):
        for j in range(3):
            for oh in range(h_out):
                for ow in range(w_out):
                    h, w = 2 * oh + i, 2 * ow + j
                    if h < h_in and w < w_in:          # else: hits the zero pad
                        sel[h * w_in + w, i * 3 + j, oh * w_out + ow] = 1.0
    return sel


# -------------------------------- fused kernel --------------------------------

def _bignet_fused_kernel(x_ref, t1_ref, b1_ref, t2_ref, b2_ref,
                         wfc1_ref, bfc1_ref, wfc2_ref, bfc2_ref, out_ref):
    f32, bf16 = jnp.float32, jnp.bfloat16

    # conv1: pad + im2col + weights folded into t1 -> ONE GEMM
    # (BT, 784) @ (784, C1*196) -> (BT, 1960); lanes = (channel, 14x14 spatial)
    a1 = jnp.dot(x_ref[...], t1_ref[...], preferred_element_type=f32)
    a1 = jnp.maximum(a1 + b1_ref[...], 0.0)                     # bias + ReLU, f32

    # conv2, same trick: (BT, 1960) @ (1960, C2*49) -> (BT, 1568).
    # The lane order (c2-major, then 7x7 spatial) IS the PyTorch NCHW flatten.
    a2 = jnp.dot(a1.astype(bf16), t2_ref[...], preferred_element_type=f32)
    a2 = jnp.maximum(a2 + b2_ref[...], 0.0)

    # fc1 + ReLU: single (BT, 1568) @ (1568, 128) GEMM (was a 32-matmul loop).
    h = jnp.dot(a2.astype(bf16), wfc1_ref[...], preferred_element_type=f32)
    h = jnp.maximum(h + bfc1_ref[...], 0.0)

    # fc2 + log-softmax over the 10 real classes (lanes 10..127 are padding).
    logits = jnp.dot(h.astype(bf16), wfc2_ref[...], preferred_element_type=f32)
    logits = logits + bfc2_ref[...]
    valid = jax.lax.broadcasted_iota(jnp.int32, logits.shape, 1) < NUM_CLASSES
    neg_inf = jnp.full_like(logits, -jnp.inf)
    m = jnp.max(jnp.where(valid, logits, neg_inf), axis=-1, keepdims=True)
    z = logits - m
    denom = jnp.sum(jnp.exp(jnp.where(valid, z, neg_inf)), axis=-1, keepdims=True)
    out_ref[...] = jnp.where(valid, z - jnp.log(denom), 0.0)    # padded lanes -> 0


# --------------------------- parameters & repacking ---------------------------

def init_params(key, num_classes=NUM_CLASSES):
    ks = jax.random.split(key, 8)

    def u(k, shape, fan_in):
        bound = 1.0 / jnp.sqrt(jnp.float32(fan_in))
        return jax.random.uniform(k, shape, jnp.float32, -bound, bound)

    return {
        "conv1_w": u(ks[0], (C1, 1, 3, 3), 1 * 9),
        "conv1_b": u(ks[1], (C1,), 1 * 9),
        "conv2_w": u(ks[2], (C2, C1, 3, 3), C1 * 9),
        "conv2_b": u(ks[3], (C2,), C1 * 9),
        "fc1_w": u(ks[4], (FC1, C2 * Q2), C2 * Q2),
        "fc1_b": u(ks[5], (FC1,), C2 * Q2),
        "fc2_w": u(ks[6], (num_classes, FC1), FC1),
        "fc2_b": u(ks[7], (num_classes,), FC1),
    }


def prepare_params(params):
    """One-time repack: fold each conv (pad + stride-2 im2col + weights) into a
    single constant GEMM matrix and lay every weight out lane-dense."""
    f32, bf16 = jnp.float32, jnp.bfloat16

    w1 = np.asarray(params["conv1_w"], np.float32).reshape(C1, 9)
    w2 = np.asarray(params["conv2_w"], np.float32).reshape(C2, C1, 9)

    sel1 = _conv_selection(H_IN, W_IN, H1, W1)          # (784, 9, 196)
    sel2 = _conv_selection(H1, W1, H2, W2)              # (196, 9, 49)

    # t1[p, c*Q1 + q]        = conv1_w[c, 0, i, j]   for the tap mapping p -> q
    t1 = np.einsum("ptq,ct->pcq", sel1, w1).reshape(K1, N1)
    # t2[c1*Q1 + p, c2*Q2+q] = conv2_w[c2, c1, i, j] for the tap mapping p -> q
    t2 = np.einsum("ptq,dct->cpdq", sel2, w2).reshape(N1, N2)

    b1_row = np.repeat(np.asarray(params["conv1_b"], np.float32), Q1)[None, :]
    b2_row = np.repeat(np.asarray(params["conv2_b"], np.float32), Q2)[None, :]

    wfc1 = jnp.asarray(params["fc1_w"]).T               # (1568, 128); NCHW order
    bfc1 = jnp.asarray(params["fc1_b"]).reshape(1, FC1)
    wfc2 = jnp.zeros((FC1, NCLSP), f32).at[:, :NUM_CLASSES].set(
        jnp.asarray(params["fc2_w"]).T)
    bfc2 = jnp.zeros((1, NCLSP), f32).at[0, :NUM_CLASSES].set(
        jnp.asarray(params["fc2_b"]))

    return {
        "t1": jnp.asarray(t1, bf16),
        "b1": jnp.asarray(b1_row, f32),
        "t2": jnp.asarray(t2, bf16),
        "b2": jnp.asarray(b2_row, f32),
        "wfc1": wfc1.astype(bf16),
        "bfc1": bfc1.astype(f32),
        "wfc2": wfc2.astype(bf16),
        "bfc2": bfc2,
    }


# ----------------------------------- forward -----------------------------------

def _choose_batch_tile(batch):
    """Sublane-aligned batch tile, capped at MAX_BT; aims for >= 2 grid steps
    when the batch is big enough (v7x has 2 TensorCores)."""
    target = max(8, (batch + 1) // 2)
    bt = min(MAX_BT, ((target + 7) // 8) * 8)
    padded = bt * ((batch + bt - 1) // bt)
    return bt, padded


@jax.jit
def bignet_dropout_forward(prep, x_nchw):
    # drop1 / drop2 / mlp dropout are identity in eval mode.
    # TODO(synk): training-mode dropout (pltpu.prng_random_bits mask) not implemented.
    batch = x_nchw.shape[0]
    bt, padded = _choose_batch_tile(batch)

    x_rows = x_nchw.reshape(batch, K1).astype(jnp.bfloat16)
    if padded != batch:
        x_rows = jnp.pad(x_rows, ((0, padded - batch), (0, 0)))

    c2d = lambda b: (0, 0)   # grid-invariant constants (no re-DMA across steps)

    out = pl.pallas_call(
        _bignet_fused_kernel,
        out_shape=jax.ShapeDtypeStruct((padded, NCLSP), jnp.float32),
        grid_spec=pltpu.PrefetchScalarGridSpec(
            num_scalar_prefetch=0,
            grid=(padded // bt,),
            in_specs=[
                pl.BlockSpec((bt, K1), lambda b: (b, 0)),   # image rows
                pl.BlockSpec((K1, N1), c2d),                # conv1 fused matrix
                pl.BlockSpec((1, N1), c2d),                 # conv1 bias row
                pl.BlockSpec((N1, N2), c2d),                # conv2 fused matrix
                pl.BlockSpec((1, N2), c2d),                 # conv2 bias row
                pl.BlockSpec((N2, FC1), c2d),               # fc1 weights
                pl.BlockSpec((1, FC1), c2d),                # fc1 bias
                pl.BlockSpec((FC1, NCLSP), c2d),            # fc2 weights (padded)
                pl.BlockSpec((1, NCLSP), c2d),              # fc2 bias (padded)
            ],
            out_specs=pl.BlockSpec((bt, NCLSP), lambda b: (b, 0)),
        ),
        compiler_params=pltpu.CompilerParams(
            dimension_semantics=("parallel",),
            vmem_limit_bytes=32 * 1024 * 1024,
        ),
    )(x_rows, prep["t1"], prep["b1"], prep["t2"], prep["b2"],
      prep["wfc1"], prep["bfc1"], prep["wfc2"], prep["bfc2"])
    return out[:batch, :NUM_CLASSES]


# ---------------------------- pure-JAX reference ------------------------------

def _reference_forward(params, x_nchw):
    """Reference matching the PyTorch module (operands the kernel feeds to the
    MXU in bf16 are rounded to bf16 here too)."""
    f32 = jnp.float32
    hi = jax.lax.Precision.HIGHEST
    bf = lambda a: a.astype(jnp.bfloat16).astype(f32)

    def conv_block(x, w, b):
        xp = jnp.pad(x, ((0, 0), (0, 0), (0, 1), (0, 1)))   # F.pad (0,1,0,1)
        y = jax.lax.conv_general_dilated(
            xp, w, (2, 2), "VALID",
            dimension_numbers=("NCHW", "OIHW", "NCHW"), precision=hi)
        return jax.nn.relu(y + b[None, :, None, None])

    h = conv_block(bf(x_nchw), bf(params["conv1_w"]), params["conv1_b"])
    h = conv_block(h, bf(params["conv2_w"]), params["conv2_b"])
    h = h.reshape(h.shape[0], -1)                            # NCHW flatten
    h = jax.nn.relu(jnp.dot(h, bf(params["fc1_w"]).T, precision=hi)
                    + params["fc1_b"])
    logits = jnp.dot(h, bf(params["fc2_w"]).T, precision=hi) + params["fc2_b"]
    return jax.nn.log_softmax(logits, axis=-1)


# ------------------------------------ main -------------------------------------

if __name__ == "__main__":
    key = jax.random.PRNGKey(0)
    k_param, k_x = jax.random.split(key)

    params = init_params(k_param)
    prep = prepare_params(params)
    # 28x28 mono-channel input is implied by Linear(32*7*7, 128); batch = 2.
    x = jax.random.normal(k_x, (2, 1, 28, 28), dtype=jnp.float32)

    out = jax.block_until_ready(bignet_dropout_forward(prep, x))

    assert out.shape == (2, NUM_CLASSES), out.shape
    # log-softmax sanity: rows exponentiate-and-sum to ~1
    row_sums = jnp.exp(out).sum(axis=-1)
    assert bool(jnp.all(jnp.abs(row_sums - 1.0) < 1e-4)), row_sums
    # numerical check against a pure-JAX reference of the PyTorch module
    ref = _reference_forward(params, x)
    max_err = float(jnp.max(jnp.abs(out - ref)))
    assert max_err < 3e-2, f"max |kernel - reference| = {max_err}"

    print("KERNEL_OK")
</pallas_src>

<mosaic_0001>
module attributes {stable_mosaic.version = 11 : i64} {
  func.func @_bignet_fused_kernel(%arg0: i32, %arg1: memref<8x784xbf16, #tpu.memory_space<vmem>>, %arg2: memref<784x1960xbf16, #tpu.memory_space<vmem>>, %arg3: memref<1x1960xf32, #tpu.memory_space<vmem>>, %arg4: memref<1960x1568xbf16, #tpu.memory_space<vmem>>, %arg5: memref<1x1568xf32, #tpu.memory_space<vmem>>, %arg6: memref<1568x128xbf16, #tpu.memory_space<vmem>>, %arg7: memref<1x128xf32, #tpu.memory_space<vmem>>, %arg8: memref<128x128xbf16, #tpu.memory_space<vmem>>, %arg9: memref<1x128xf32, #tpu.memory_space<vmem>>, %arg10: memref<8x128xf32, #tpu.memory_space<vmem>>) attributes {dimension_semantics = [#tpu.dimension_semantics<parallel>], iteration_bounds = array<i64: 1>, scalar_prefetch = 0 : i64, scratch_operands = 0 : i64, tpu.core_type = #tpu.core_type<tc>, window_params = [{transform_indices = @transform_0, window_bounds = array<i64: 8, 784>}, {pipeline_mode = #tpu.pipeline_mode<synchronous>, transform_indices = @transform_1, window_bounds = array<i64: 784, 1960>}, {pipeline_mode = #tpu.pipeline_mode<synchronous>, transform_indices = @transform_2, window_bounds = array<i64: 1, 1960>}, {pipeline_mode = #tpu.pipeline_mode<synchronous>, transform_indices = @transform_3, window_bounds = array<i64: 1960, 1568>}, {pipeline_mode = #tpu.pipeline_mode<synchronous>, transform_indices = @transform_4, window_bounds = array<i64: 1, 1568>}, {pipeline_mode = #tpu.pipeline_mode<synchronous>, transform_indices = @transform_5, window_bounds = array<i64: 1568, 128>}, {pipeline_mode = #tpu.pipeline_mode<synchronous>, transform_indices = @transform_6, window_bounds = array<i64: 1, 128>}, {pipeline_mode = #tpu.pipeline_mode<synchronous>, transform_indices = @transform_7, window_bounds = array<i64: 128, 128>}, {pipeline_mode = #tpu.pipeline_mode<synchronous>, transform_indices = @transform_8, window_bounds = array<i64: 1, 128>}, {transform_indices = @transform_9, window_bounds = array<i64: 8, 128>}]} {
    %c0 = arith.constant 0 : index
    %c0_0 = arith.constant 0 : index
    %0 = vector.load %arg1[%c0, %c0_0] : memref<8x784xbf16, #tpu.memory_space<vmem>>, vector<8x784xbf16>
    %c0_1 = arith.constant 0 : index
    %c0_2 = arith.constant 0 : index
    %1 = vector.load %arg2[%c0_1, %c0_2] : memref<784x1960xbf16, #tpu.memory_space<vmem>>, vector<784x1960xbf16>
    %cst = arith.constant dense<0.000000e+00> : vector<8x1960xf32>
    %2 = tpu.matmul %0, %1, %cst {dimension_numbers = #tpu.dot_dimension_numbers<[1], [0], [0], [1], [0, 0, 1, 1], [], []>} : vector<8x784xbf16>, vector<784x1960xbf16>, vector<8x1960xf32> -> vector<8x1960xf32>
    %c0_3 = arith.constant 0 : index
    %c0_4 = arith.constant 0 : index
    %3 = vector.load %arg3[%c0_3, %c0_4] : memref<1x1960xf32, #tpu.memory_space<vmem>>, vector<1x1960xf32>
    %4 = vector.broadcast %3 : vector<1x1960xf32> to vector<8x1960xf32>
    %5 = arith.addf %2, %4 : vector<8x1960xf32>
    %cst_5 = arith.constant 0.000000e+00 : f32
    %6 = vector.broadcast %cst_5 : f32 to vector<8x1960xf32>
    %7 = arith.maximumf %5, %6 : vector<8x1960xf32>
    %8 = arith.truncf %7 : vector<8x1960xf32> to vector<8x1960xbf16>
    %c0_6 = arith.constant 0 : index
    %c0_7 = arith.constant 0 : index
    %9 = vector.load %arg4[%c0_6, %c0_7] : memref<1960x1568xbf16, #tpu.memory_space<vmem>>, vector<1960x1568xbf16>
    %cst_8 = arith.constant dense<0.000000e+00> : vector<8x1568xf32>
    %10 = tpu.matmul %8, %9, %cst_8 {dimension_numbers = #tpu.dot_dimension_numbers<[1], [0], [0], [1], [0, 0, 1, 1], [], []>} : vector<8x1960xbf16>, vector<1960x1568xbf16>, vector<8x1568xf32> -> vector<8x1568xf32>
    %c0_9 = arith.constant 0 : index
    %c0_10 = arith.constant 0 : index
    %11 = vector.load %arg5[%c0_9, %c0_10] : memref<1x1568xf32, #tpu.memory_space<vmem>>, vector<1x1568xf32>
    %12 = vector.broadcast %11 : vector<1x1568xf32> to vector<8x1568xf32>
    %13 = arith.addf %10, %12 : vector<8x1568xf32>
    %cst_11 = arith.constant 0.000000e+00 : f32
    %14 = vector.broadcast %cst_11 : f32 to vector<8x1568xf32>
    %15 = arith.maximumf %13, %14 : vector<8x1568xf32>
    %16 = arith.truncf %15 : vector<8x1568xf32> to vector<8x1568xbf16>
    %c0_12 = arith.constant 0 : index
    %c0_13 = arith.constant 0 : index
    %17 = vector.load %arg6[%c0_12, %c0_13] : memref<1568x128xbf16, #tpu.memory_space<vmem>>, vector<1568x128xbf16>
    %cst_14 = arith.constant dense<0.000000e+00> : vector<8x128xf32>
    %18 = tpu.matmul %16, %17, %cst_14 {dimension_numbers = #tpu.dot_dimension_numbers<[1], [0], [0], [1], [0, 0, 1, 1], [], []>} : vector<8x1568xbf16>, vector<1568x128xbf16>, vector<8x128xf32> -> vector<8x128xf32>
    %c0_15 = arith.constant 0 : index
    %c0_16 = arith.constant 0 : index
    %19 = vector.load %arg7[%c0_15, %c0_16] : memref<1x128xf32, #tpu.memory_space<vmem>>, vector<1x128xf32>
    %20 = vector.broadcast %19 : vector<1x128xf32> to vector<8x128xf32>
    %21 = arith.addf %18, %20 : vector<8x128xf32>
    %cst_17 = arith.constant 0.000000e+00 : f32
    %22 = vector.broadcast %cst_17 : f32 to vector<8x128xf32>
    %23 = arith.maximumf %21, %22 : vector<8x128xf32>
    %24 = arith.truncf %23 : vector<8x128xf32> to vector<8x128xbf16>
    %c0_18 = arith.constant 0 : index
    %c0_19 = arith.constant 0 : index
    %25 = vector.load %arg8[%c0_18, %c0_19] : memref<128x128xbf16, #tpu.memory_space<vmem>>, vector<128x128xbf16>
    %cst_20 = arith.constant dense<0.000000e+00> : vector<8x128xf32>
    %26 = tpu.matmul %24, %25, %cst_20 {dimension_numbers = #tpu.dot_dimension_numbers<[1], [0], [0], [1], [0, 0, 1, 1], [], []>} : vector<8x128xbf16>, vector<128x128xbf16>, vector<8x128xf32> -> vector<8x128xf32>
    %c0_21 = arith.constant 0 : index
    %c0_22 = arith.constant 0 : index
    %27 = vector.load %arg9[%c0_21, %c0_22] : memref<1x128xf32, #tpu.memory_space<vmem>>, vector<1x128xf32>
    %28 = vector.broadcast %27 : vector<1x128xf32> to vector<8x128xf32>
    %29 = arith.addf %26, %28 : vector<8x128xf32>
    %30 = tpu.iota {dimensions = array<i32: 1>} : vector<8x128xi32>
    %c10_i32 = arith.constant 10 : i32
    %31 = vector.broadcast %c10_i32 : i32 to vector<8x128xi32>
    %32 = arith.cmpi slt, %30, %31 : vector<8x128xi32>
    %cst_23 = arith.constant 0xFF800000 : f32
    %33 = vector.broadcast %cst_23 : f32 to vector<8x128xf32>
    %34 = arith.select %32, %29, %33 : vector<8x128xi1>, vector<8x128xf32>
    %cst_24 = arith.constant dense<0xFF800000> : vector<8xf32>
    %35 = vector.multi_reduction <maximumf>, %34, %cst_24 [1] : vector<8x128xf32> to vector<8xf32>
    %36 = vector.shape_cast %35 : vector<8xf32> to vector<8x1xf32>
    %37 = vector.broadcast %36 : vector<8x1xf32> to vector<8x128xf32>
    %38 = arith.subf %29, %37 : vector<8x128xf32>
    %39 = arith.select %32, %38, %33 : vector<8x128xi1>, vector<8x128xf32>
    %40 = math.exp %39 : vector<8x128xf32>
    %cst_25 = arith.constant dense<0.000000e+00> : vector<8xf32>
    %41 = vector.multi_reduction <add>, %40, %cst_25 [1] : vector<8x128xf32> to vector<8xf32>
    %42 = vector.shape_cast %41 : vector<8xf32> to vector<8x1xf32>
    %43 = math.log %42 : vector<8x1xf32>
    %44 = vector.broadcast %43 : vector<8x1xf32> to vector<8x128xf32>
    %45 = arith.subf %38, %44 : vector<8x128xf32>
    %cst_26 = arith.constant 0.000000e+00 : f32
    %46 = vector.broadcast %cst_26 : f32 to vector<8x128xf32>
    %47 = arith.select %32, %45, %46 : vector<8x128xi1>, vector<8x128xf32>
    %c0_27 = arith.constant 0 : index
    %c0_28 = arith.constant 0 : index
    %48 = vector.load %arg10[%c0_27, %c0_28] : memref<8x128xf32, #tpu.memory_space<vmem>>, vector<8x128xf32>
    tpu.vector_store %arg10[%c0_27, %c0_28], %47 {strides = array<i32>} : memref<8x128xf32, #tpu.memory_space<vmem>>, vector<8x128xf32>,
    return
  }
  func.func @transform_0(%arg0: i32) -> (i32, i32) {
    %c0_i32 = arith.constant 0 : i32
    %c0_i32_0 = arith.constant 0 : i32
    return %arg0, %c0_i32 : i32, i32
  }
  func.func @transform_1(%arg0: i32) -> (i32, i32) {
    %c0_i32 = arith.constant 0 : i32
    %c0_i32_0 = arith.constant 0 : i32
    %c0_i32_1 = arith.constant 0 : i32
    return %c0_i32, %c0_i32_0 : i32, i32
  }
  func.func @transform_2(%arg0: i32) -> (i32, i32) {
    %c0_i32 = arith.constant 0 : i32
    %c0_i32_0 = arith.constant 0 : i32
    %c0_i32_1 = arith.constant 0 : i32
    return %c0_i32, %c0_i32_0 : i32, i32
  }
  func.func @transform_3(%arg0: i32) -> (i32, i32) {
    %c0_i32 = arith.constant 0 : i32
    %c0_i32_0 = arith.constant 0 : i32
    %c0_i32_1 = arith.constant 0 : i32
    return %c0_i32, %c0_i32_0 : i32, i32
  }
  func.func @transform_4(%arg0: i32) -> (i32, i32) {
    %c0_i32 = arith.constant 0 : i32
    %c0_i32_0 = arith.constant 0 : i32
    %c0_i32_1 = arith.constant 0 : i32
    return %c0_i32, %c0_i32_0 : i32, i32
  }
  func.func @transform_5(%arg0: i32) -> (i32, i32) {
    %c0_i32 = arith.constant 0 : i32
    %c0_i32_0 = arith.constant 0 : i32
    %c0_i32_1 = arith.constant 0 : i32
    return %c0_i32, %c0_i32_0 : i32, i32
  }
  func.func @transform_6(%arg0: i32) -> (i32, i32) {
    %c0_i32 = arith.constant 0 : i32
    %c0_i32_0 = arith.constant 0 : i32
    %c0_i32_1 = arith.constant 0 : i32
    return %c0_i32, %c0_i32_0 : i32, i32
  }
  func.func @transform_7(%arg0: i32) -> (i32, i32) {
    %c0_i32 = arith.constant 0 : i32
    %c0_i32_0 = arith.constant 0 : i32
    %c0_i32_1 = arith.constant 0 : i32
    return %c0_i32, %c0_i32_0 : i32, i32
  }
  func.func @transform_8(%arg0: i32) -> (i32, i32) {
    %c0_i32 = arith.constant 0 : i32
    %c0_i32_0 = arith.constant 0 : i32
    %c0_i32_1 = arith.constant 0 : i32
    return %c0_i32, %c0_i32_0 : i32, i32
  }
  func.func @transform_9(%arg0: i32) -> (i32, i32) {
    %c0_i32 = arith.constant 0 : i32
    %c0_i32_0 = arith.constant 0 : i32
    return %arg0, %c0_i32 : i32, i32
  }
}

</mosaic_0001>

<bundles_post_ra>
// kernel: bignet_dropout_forward.1
= control target key start
LH: loop header
LB: loop body
LE: loop exit
PB: predicated region body
PF: predicated region fallthrough
CT: control target
= control target key end

     0   :  { %v25226_v3 = vmov 0   ;;  %vm4849_vm0 = vcmask 130048   ;;  %vm16066_vm1 = vcmask 326656   ;;  %vm16070_vm2 = vcmask 1043456   ;;  %s33257_s1 = inlined_call_operand.vmem [shape: bf16[784,1960], index: 1, kind: input, shape index: {}]   ;;  %s33258_s0 = inlined_call_operand.vmem [shape: bf16[8,784], index: 0, kind: input, shape index: {}]   ;;  %s33259_s2 = inlined_call_operand.vmem [shape: f32[1,1960], index: 2, kind: input, shape index: {}]   ;;  %s33260_s3 = inlined_call_operand.vmem [shape: bf16[1960,1568], index: 3, kind: input, shape index: {}]   ;;  %s33261_s5 = inlined_call_operand.vmem [shape: bf16[1568,128], index: 5, kind: input, shape index: {}]   ;;  %s33262_s4 = inlined_call_operand.vmem [shape: f32[1,1568], index: 4, kind: input, shape index: {}]   ;;  %s33263_s7 = inlined_call_operand.vmem [shape: bf16[128,128], index: 7, kind: input, shape index: {}]   ;;  %s33264_s6 = inlined_call_operand.vmem [shape: f32[1,128], index: 6, kind: input, shape index: {}]   ;;  %s33265_s8 = inlined_call_operand.vmem [shape: f32[1,128], index: 8, kind: input, shape index: {}]   ;;  %s33266_s9 = inlined_call_operand.vmem [shape: f32[8,128], index: 9, kind: output, shape index: {}]  }
   0x1   :  { %v37_v0 = vld [vmem:[%s33257_s1] sm:$0xff]  ;;  %5008 = vmatprep.mubr.bf16.mxu1 %v25226_v3  ;;  %v38_v12 = vld [vmem:[%s33257_s1 + $0x8] sm:$0xff]  ;;  %v22770_v16 = vld [vmem:[%s33258_s0 + $0x18] ss:$0 sps:$4 sm:$0xff]   ;;  %vm25228_vm3 = vmmov 0   ;;  %vm19215_vm4 = vcmask 261120  }
   0x2   :  { %v45_v1 = vld [vmem:[%s33257_s1 + $0x40] sm:$0xff]  ;;  %v46_v13 = vld [vmem:[%s33257_s1 + $0x48] sm:$0xff] }
   0x3   :  { %v805_v2 = vld [vmem:[%s33257_s1 + $0x1800] sm:$0xff]  ;;  %v19641_v4 = vcombine.high %v37_v0, %v45_v1  ;;  %v19640_v6 = vcombine.low %v37_v0, %v45_v1  ;;  %v19643_v17 = vcombine.high %v38_v12, %v46_v13  ;;  %v54_v19 = vld [vmem:[%s33257_s1 + $0x88] sm:$0xff]  ;;  %v19642_v21 = vcombine.low %v38_v12, %v46_v13 }
   0x4   :  { %v813_v5 = vld [vmem:[%s33257_s1 + $0x1840] sm:$0xff]  ;;  %v62_v20 = vld [vmem:[%s33257_s1 + $0xc8] sm:$0xff] }
   0x5   :  { %v53_v7 = vld [vmem:[%s33257_s1 + $0x80] sm:$0xff]  ;;  %v20409_v9 = vcombine.high %v805_v2, %v813_v5  ;;  %v20408_v10 = vcombine.low %v805_v2, %v813_v5  ;;  %4853 = vmatprep.subr.bf16.mxu0 %v19641_v4  ;;  %v19659_v23 = vcombine.high %v54_v19, %v62_v20  ;;  %v70_v26 = vld [vmem:[%s33257_s1 + $0x108] sm:$0xff]  ;;  %v19658_v29 = vcombine.low %v54_v19, %v62_v20 }
   0x6   :  { %v61_v8 = vld [vmem:[%s33257_s1 + $0xc0] sm:$0xff]  ;;  %4854 = vmatpush1.bf16.msra.mxu0 %v19640_v6  ;;  %v78_v27 = vld [vmem:[%s33257_s1 + $0x148] sm:$0xff] }
   0x7   :  { %v19657_v11 = vcombine.high %v53_v7, %v61_v8  ;;  %v69_v14 = vld [vmem:[%s33257_s1 + $0x100] sm:$0xff]  ;;  %4976 = vmatprep.subr.bf16.mxu1 %v20409_v9  ;;  %v19656_v18 = vcombine.low %v53_v7, %v61_v8  ;;  %v19675_v31 = vcombine.high %v70_v26, %v78_v27  ;;  %v86_v34 = vld [vmem:[%s33257_s1 + $0x188] sm:$0xff]  ;;  %v19674_v37 = vcombine.low %v70_v26, %v78_v27 }
   0x8   :  { %v77_v15 = vld [vmem:[%s33257_s1 + $0x140] sm:$0xff]  ;;  %4977 = vmatpush1.bf16.msra.mxu1 %v20408_v10  ;;  %v94_v35 = vld [vmem:[%s33257_s1 + $0x1c8] sm:$0xff] }
   0x9   :  { %4855 = vmatprep.subr.bf16.mxu0 %v19657_v11  ;;  %v19673_v22 = vcombine.high %v69_v14, %v77_v15  ;;  %5017 = vmatprep.subr.bf16.mxu1 %v19643_v17  ;;  %v85_v24 = vld [vmem:[%s33257_s1 + $0x180] sm:$0xff]  ;;  %v19672_v28 = vcombine.low %v69_v14, %v77_v15  ;;  %v19691_v39 = vcombine.high %v86_v34, %v94_v35  ;;  %v102_v42 = vld [vmem:[%s33257_s1 + $0x208] sm:$0xff] }
   0xa   :  { %v93_v25 = vld [vmem:[%s33257_s1 + $0x1c0] sm:$0xff]  ;;  %4856 = vmatpush1.bf16.msra.mxu0 %v19656_v18  ;;  %v110_v43 = vld [vmem:[%s33257_s1 + $0x248] sm:$0xff]  ;;  %v19690_v45 = vcombine.low %v86_v34, %v94_v35 }
   0xb   :  { %20424 = vmatmul.mubr.msk.bf16.vlgmr.msra.gmra.mrb[0].mxu1 %vm4849_vm0, %v22770_v16  ;;  %4857 = vmatprep.subr.bf16.mxu0 %v19673_v22  ;;  %v19689_v30 = vcombine.high %v85_v24, %v93_v25  ;;  %v101_v32 = vld [vmem:[%s33257_s1 + $0x200] sm:$0xff]  ;;  %v19688_v36 = vcombine.low %v85_v24, %v93_v25  ;;  %v19707_v47 = vcombine.high %v102_v42, %v110_v43  ;;  %v118_v50 = vld [vmem:[%s33257_s1 + $0x288] sm:$0xff] }
   0xc   :  { %5018 = vmatpush1.bf16.msra.mxu1 %v19642_v21  ;;  %v109_v33 = vld [vmem:[%s33257_s1 + $0x240] sm:$0xff]  ;;  %v126_v51 = vld [vmem:[%s33257_s1 + $0x2c8] sm:$0xff]  ;;  %v19706_v53 = vcombine.low %v102_v42, %v110_v43 }
   0xd   :  { %5019 = vmatprep.subr.bf16.mxu1 %v19659_v23  ;;  %v19705_v38 = vcombine.high %v101_v32, %v109_v33  ;;  %v117_v40 = vld [vmem:[%s33257_s1 + $0x280] sm:$0xff]  ;;  %v19704_v44 = vcombine.low %v101_v32, %v109_v33  ;;  %v19723_v55 = vcombine.high %v118_v50, %v126_v51  ;;  %v134_v59 = vld [vmem:[%s33257_s1 + $0x308] sm:$0xff]  ;;  %v19722_v63 = vcombine.low %v118_v50, %v126_v51 }
   0xe   :  { %4858 = vmatpush1.bf16.msra.mxu0 %v19672_v28  ;;  %v125_v41 = vld [vmem:[%s33257_s1 + $0x2c0] sm:$0xff]  ;;  %v142_v60 = vld [vmem:[%s33257_s1 + $0x348] sm:$0xff] }
   0xf   :  { %4859 = vmatprep.subr.bf16.mxu0 %v19689_v30  ;;  %v19721_v46 = vcombine.high %v117_v40, %v125_v41  ;;  %v133_v48 = vld [vmem:[%s33257_s1 + $0x300] sm:$0xff]  ;;  %v19720_v52 = vcombine.low %v117_v40, %v125_v41  ;;  %v19739_v1 = vcombine.high %v134_v59, %v142_v60  ;;  %v150_v5 = vld [vmem:[%s33257_s1 + $0x388] sm:$0xff]  ;;  %v19738_v8 = vcombine.low %v134_v59, %v142_v60 }
  0x10   :  { %5020 = vmatpush1.bf16.msra.mxu1 %v19658_v29  ;;  %v141_v49 = vld [vmem:[%s33257_s1 + $0x340] sm:$0xff]  ;;  %v158_v6 = vld [vmem:[%s33257_s1 + $0x3c8] sm:$0xff] }
  0x11   :  { %5021 = vmatprep.subr.bf16.mxu1 %v19675_v31  ;;  %v19737_v54 = vcombine.high %v133_v48, %v141_v49  ;;  %v149_v56 = vld [vmem:[%s33257_s1 + $0x380] sm:$0xff]  ;;  %v19736_v62 = vcombine.low %v133_v48, %v141_v49  ;;  %v19755_v10 = vcombine.high %v150_v5, %v158_v6  ;;  %v166_v13 = vld [vmem:[%s33257_s1 + $0x408] sm:$0xff]  ;;  %v19754_v16 = vcombine.low %v150_v5, %v158_v6 }
  0x12   :  { %4860 = vmatpush1.bf16.msra.mxu0 %v19688_v36  ;;  %v157_v57 = vld [vmem:[%s33257_s1 + $0x3c0] sm:$0xff]  ;;  %v174_v14 = vld [vmem:[%s33257_s1 + $0x448] sm:$0xff] }
  0x13   :  { %4861 = vmatprep.subr.bf16.mxu0 %v19705_v38  ;;  %v25377_v58 = vld [vmem:[%s33258_s0] sm:$0xff]  ;;  %v19753_v0 = vcombine.high %v149_v56, %v157_v57  ;;  %v19752_v7 = vcombine.low %v149_v56, %v157_v57  ;;  %v19771_v18 = vcombine.high %v166_v13, %v174_v14  ;;  %v182_v21 = vld [vmem:[%s33257_s1 + $0x488] sm:$0xff]  ;;  %v19770_v24 = vcombine.low %v166_v13, %v174_v14 }
  0x14   :  { %5022 = vmatpush1.bf16.msra.mxu1 %v19674_v37  ;;  %v25387_v61 = vcombine.high %v25377_v58, %v25377_v58  ;;  %v165_v2 = vld [vmem:[%s33257_s1 + $0x400] sm:$0xff]  ;;  %v190_v22 = vld [vmem:[%s33257_s1 + $0x4c8] sm:$0xff] }
  0x15   :  { %5023 = vmatprep.subr.bf16.mxu1 %v19691_v39  ;;  %v173_v4 = vld [vmem:[%s33257_s1 + $0x440] sm:$0xff]  ;;  %v19787_v26 = vcombine.high %v182_v21, %v190_v22  ;;  %v198_v29 = vld [vmem:[%s33257_s1 + $0x508] sm:$0xff]  ;;  %v19786_v32 = vcombine.low %v182_v21, %v190_v22 }
  0x16   :  { %4862 = vmatpush1.bf16.msra.mxu0 %v19704_v44  ;;  %4885 = vmatprep.mubr.bf16.mxu0 %v25387_v61  ;;  %v19769_v9 = vcombine.high %v165_v2, %v173_v4  ;;  %v181_v11 = vld [vmem:[%s33257_s1 + $0x480] sm:$0xff]  ;;  %v19768_v15 = vcombine.low %v165_v2, %v173_v4  ;;  %v206_v30 = vld [vmem:[%s33257_s1 + $0x548] sm:$0xff] }
  0x17   :  { %4863 = vmatprep.subr.bf16.mxu0 %v19721_v46  ;;  %5049 = vmatprep.mubr.bf16.mxu1 %v25387_v61  ;;  %v189_v12 = vld [vmem:[%s33257_s1 + $0x4c0] sm:$0xff]  ;;  %v19803_v34 = vcombine.high %v198_v29, %v206_v30  ;;  %v214_v37 = vld [vmem:[%s33257_s1 + $0x588] sm:$0xff]  ;;  %v19802_v40 = vcombine.low %v198_v29, %v206_v30 }
  0x18   :  { %5024 = vmatpush1.bf16.msra.mxu1 %v19690_v45  ;;  %v19785_v17 = vcombine.high %v181_v11, %v189_v12  ;;  %v197_v19 = vld [vmem:[%s33257_s1 + $0x500] sm:$0xff]  ;;  %v19784_v23 = vcombine.low %v181_v11, %v189_v12  ;;  %v222_v38 = vld [vmem:[%s33257_s1 + $0x5c8] sm:$0xff] }
  0x19   :  { %5025 = vmatprep.subr.bf16.mxu1 %v19707_v47  ;;  %v205_v20 = vld [vmem:[%s33257_s1 + $0x540] sm:$0xff]  ;;  %v19819_v42 = vcombine.high %v214_v37, %v222_v38  ;;  %v230_v45 = vld [vmem:[%s33257_s1 + $0x608] sm:$0xff]  ;;  %v19818_v48 = vcombine.low %v214_v37, %v222_v38 }
  0x1a   :  { %4864 = vmatpush1.bf16.msra.mxu0 %v19720_v52  ;;  %v19801_v25 = vcombine.high %v197_v19, %v205_v20  ;;  %v213_v27 = vld [vmem:[%s33257_s1 + $0x580] sm:$0xff]  ;;  %v19800_v31 = vcombine.low %v197_v19, %v205_v20  ;;  %v238_v46 = vld [vmem:[%s33257_s1 + $0x648] sm:$0xff] }
  0x1b   :  { %4865 = vmatprep.subr.bf16.mxu0 %v19737_v54  ;;  %v221_v28 = vld [vmem:[%s33257_s1 + $0x5c0] sm:$0xff]  ;;  %v19835_v50 = vcombine.high %v230_v45, %v238_v46  ;;  %v254_v54 = vld [vmem:[%s33257_s1 + $0x6c8] sm:$0xff]  ;;  %v19834_v56 = vcombine.low %v230_v45, %v238_v46 }
  0x1c   :  { %5026 = vmatpush1.bf16.msra.mxu1 %v19706_v53  ;;  %v19817_v33 = vcombine.high %v213_v27, %v221_v28  ;;  %v229_v35 = vld [vmem:[%s33257_s1 + $0x600] sm:$0xff]  ;;  %v19816_v39 = vcombine.low %v213_v27, %v221_v28  ;;  %v246_v53 = vld [vmem:[%s33257_s1 + $0x688] sm:$0xff] }
  0x1d   :  { %5027 = vmatprep.subr.bf16.mxu1 %v19723_v55  ;;  %v237_v36 = vld [vmem:[%s33257_s1 + $0x640] sm:$0xff]  ;;  %v19851_v59 = vcombine.high %v246_v53, %v254_v54  ;;  %v19850_v2 = vcombine.low %v246_v53, %v254_v54  ;;  %v25502_v13 = vld [vmem:[%s33258_s0 + $0x8] sm:$0xff] }
  0x1e   :  { %4866 = vmatpush1.bf16.msra.mxu0 %v19736_v62  ;;  %v19833_v41 = vcombine.high %v229_v35, %v237_v36  ;;  %v245_v43 = vld [vmem:[%s33257_s1 + $0x680] sm:$0xff]  ;;  %v19832_v47 = vcombine.low %v229_v35, %v237_v36  ;;  %v302_v19 = vld [vmem:[%s33257_s1 + $0x848] sm:$0xff]  ;;  %v25522_v21 = vcombine.high %v25502_v13, %v25502_v13 }
  0x1f   :  { %4867 = vmatprep.subr.bf16.mxu0 %v19753_v0  ;;  %v253_v44 = vld [vmem:[%s33257_s1 + $0x6c0] sm:$0xff]  ;;  %v270_v0 = vld [vmem:[%s33257_s1 + $0x748] sm:$0xff] }
  0x20   :  { %5028 = vmatpush1.bf16.msra.mxu1 %v19722_v63  ;;  %v19849_v49 = vcombine.high %v245_v43, %v253_v44  ;;  %v261_v51 = vld [vmem:[%s33257_s1 + $0x700] sm:$0xff]  ;;  %v19848_v55 = vcombine.low %v245_v43, %v253_v44  ;;  %v262_v63 = vld [vmem:[%s33257_s1 + $0x708] sm:$0xff] }
  0x21   :  { %5029 = vmatprep.subr.bf16.mxu1 %v19739_v1  ;;  %v269_v52 = vld [vmem:[%s33257_s1 + $0x740] sm:$0xff]  ;;  %v19867_v5 = vcombine.high %v262_v63, %v270_v0  ;;  %v19866_v11 = vcombine.low %v262_v63, %v270_v0  ;;  %v318_v27 = vld [vmem:[%s33257_s1 + $0x8c8] sm:$0xff] }
  0x22   :  { %4868 = vmatpush1.bf16.msra.mxu0 %v19752_v7  ;;  %v19865_v57 = vcombine.high %v261_v51, %v269_v52  ;;  %v277_v60 = vld [vmem:[%s33257_s1 + $0x780] sm:$0xff]  ;;  %v19864_v1 = vcombine.low %v261_v51, %v269_v52  ;;  %v334_v35 = vld [vmem:[%s33257_s1 + $0x948] sm:$0xff] }
  0x23   :  { %4869 = vmatprep.subr.bf16.mxu0 %v19769_v9  ;;  %v285_v62 = vld [vmem:[%s33257_s1 + $0x7c0] sm:$0xff]  ;;  %v286_v9 = vld [vmem:[%s33257_s1 + $0x7c8] sm:$0xff] }
  0x24   :  { %5030 = vmatpush1.bf16.msra.mxu1 %v19738_v8  ;;  %v19881_v4 = vcombine.high %v277_v60, %v285_v62  ;;  %v293_v6 = vld [vmem:[%s33257_s1 + $0x800] sm:$0xff]  ;;  %v278_v8 = vld [vmem:[%s33257_s1 + $0x788] sm:$0xff] }
  0x25   :  { %5031 = vmatprep.subr.bf16.mxu1 %v19755_v10  ;;  %v301_v7 = vld [vmem:[%s33257_s1 + $0x840] sm:$0xff]  ;;  %v19880_v10 = vcombine.low %v277_v60, %v285_v62  ;;  %v19883_v14 = vcombine.high %v278_v8, %v286_v9  ;;  %v19882_v22 = vcombine.low %v278_v8, %v286_v9  ;;  %v350_v43 = vld [vmem:[%s33257_s1 + $0x9c8] sm:$0xff] }
  0x26   :  { %4870 = vmatpush1.bf16.msra.mxu0 %v19768_v15  ;;  %v19897_v12 = vcombine.high %v293_v6, %v301_v7  ;;  %v309_v15 = vld [vmem:[%s33257_s1 + $0x880] sm:$0xff]  ;;  %v19896_v20 = vcombine.low %v293_v6, %v301_v7  ;;  %v366_v51 = vld [vmem:[%s33257_s1 + $0xa48] sm:$0xff] }
  0x27   :  { %4871 = vmatprep.subr.bf16.mxu0 %v19785_v17  ;;  %v25512_v17 = vcombine.low %v25377_v58, %v25377_v58  ;;  %v382_v60 = vld [vmem:[%s33257_s1 + $0xac8] sm:$0xff] }
  0x28   :  { %5032 = vmatpush1.bf16.msra.mxu1 %v19754_v16  ;;  %v317_v16 = vld [vmem:[%s33257_s1 + $0x8c0] sm:$0xff]  ;;  %v398_v6 = vld [vmem:[%s33257_s1 + $0xb48] sm:$0xff] }
  0x29   :  { %5033 = vmatprep.subr.bf16.mxu1 %v19771_v18  ;;  %v294_v18 = vld [vmem:[%s33257_s1 + $0x808] sm:$0xff]  ;;  %v19912_v28 = vcombine.low %v309_v15, %v317_v16 }
  0x2a   :  { %4872 = vmatpush1.bf16.msra.mxu0 %v19784_v23  ;;  %v19913_v23 = vcombine.high %v309_v15, %v317_v16  ;;  %v19899_v58 = vcombine.high %v294_v18, %v302_v19  ;;  %v19898_v29 = vcombine.low %v294_v18, %v302_v19  ;;  %v414_v15 = vld [vmem:[%s33257_s1 + $0xbc8] sm:$0xff] }
  0x2b   :  { %4873 = vmatprep.subr.bf16.mxu0 %v19801_v25  ;;  %v333_v25 = vld [vmem:[%s33257_s1 + $0x940] sm:$0xff] }
  0x2c   :  { %5034 = vmatpush1.bf16.msra.mxu1 %v19770_v24  ;;  %v325_v24 = vld [vmem:[%s33257_s1 + $0x900] sm:$0xff] }
  0x2d   :  { %5035 = vmatprep.subr.bf16.mxu1 %v19787_v26  ;;  %v310_v26 = vld [vmem:[%s33257_s1 + $0x888] sm:$0xff]  ;;  %v19929_v30 = vcombine.high %v325_v24, %v333_v25  ;;  %v19928_v36 = vcombine.low %v325_v24, %v333_v25 }
  0x2e   :  { %4874 = vmatpush1.bf16.msra.mxu0 %v19800_v31  ;;  %v19915_v31 = vcombine.high %v310_v26, %v318_v27  ;;  %v19914_v37 = vcombine.low %v310_v26, %v318_v27  ;;  %v430_v24 = vld [vmem:[%s33257_s1 + $0xc48] sm:$0xff] }
  0x2f   :  { %4875 = vmatprep.subr.bf16.mxu0 %v19817_v33  ;;  %v349_v33 = vld [vmem:[%s33257_s1 + $0x9c0] sm:$0xff] }
  0x30   :  { %5036 = vmatpush1.bf16.msra.mxu1 %v19786_v32  ;;  %v341_v32 = vld [vmem:[%s33257_s1 + $0x980] sm:$0xff] }
  0x31   :  { %5037 = vmatprep.subr.bf16.mxu1 %v19803_v34  ;;  %v326_v34 = vld [vmem:[%s33257_s1 + $0x908] sm:$0xff]  ;;  %v19945_v38 = vcombine.high %v341_v32, %v349_v33  ;;  %v19944_v44 = vcombine.low %v341_v32, %v349_v33 }
  0x32   :  { %4876 = vmatpush1.bf16.msra.mxu0 %v19816_v39  ;;  %v19931_v39 = vcombine.high %v326_v34, %v334_v35  ;;  %v19930_v45 = vcombine.low %v326_v34, %v334_v35  ;;  %v446_v32 = vld [vmem:[%s33257_s1 + $0xcc8] sm:$0xff] }
  0x33   :  { %4877 = vmatprep.subr.bf16.mxu0 %v19833_v41  ;;  %v365_v41 = vld [vmem:[%s33257_s1 + $0xa40] sm:$0xff] }
  0x34   :  { %5038 = vmatpush1.bf16.msra.mxu1 %v19802_v40  ;;  %v357_v40 = vld [vmem:[%s33257_s1 + $0xa00] sm:$0xff] }
  0x35   :  { %5039 = vmatprep.subr.bf16.mxu1 %v19819_v42  ;;  %v342_v42 = vld [vmem:[%s33257_s1 + $0x988] sm:$0xff]  ;;  %v19961_v46 = vcombine.high %v357_v40, %v365_v41  ;;  %v19960_v52 = vcombine.low %v357_v40, %v365_v41 }
  0x36   :  { %4878 = vmatpush1.bf16.msra.mxu0 %v19832_v47  ;;  %v19947_v47 = vcombine.high %v342_v42, %v350_v43  ;;  %v19946_v53 = vcombine.low %v342_v42, %v350_v43  ;;  %v462_v40 = vld [vmem:[%s33257_s1 + $0xd48] sm:$0xff] }
  0x37   :  { %4879 = vmatprep.subr.bf16.mxu0 %v19849_v49  ;;  %v381_v49 = vld [vmem:[%s33257_s1 + $0xac0] sm:$0xff] }
  0x38   :  { %5040 = vmatpush1.bf16.msra.mxu1 %v19818_v48  ;;  %v373_v48 = vld [vmem:[%s33257_s1 + $0xa80] sm:$0xff] }
  0x39   :  { %5041 = vmatprep.subr.bf16.mxu1 %v19835_v50  ;;  %v358_v50 = vld [vmem:[%s33257_s1 + $0xa08] sm:$0xff]  ;;  %v19977_v54 = vcombine.high %v373_v48, %v381_v49  ;;  %v19976_v62 = vcombine.low %v373_v48, %v381_v49 }
  0x3a   :  { %4880 = vmatpush1.bf16.msra.mxu0 %v19848_v55  ;;  %v19963_v55 = vcombine.high %v358_v50, %v366_v51  ;;  %v19962_v63 = vcombine.low %v358_v50, %v366_v51  ;;  %v478_v48 = vld [vmem:[%s33257_s1 + $0xdc8] sm:$0xff] }
  0x3b   :  { %4881 = vmatprep.subr.bf16.mxu0 %v19865_v57  ;;  %v397_v57 = vld [vmem:[%s33257_s1 + $0xb40] sm:$0xff] }
  0x3c   :  { %5042 = vmatpush1.bf16.msra.mxu1 %v19834_v56  ;;  %v389_v56 = vld [vmem:[%s33257_s1 + $0xb00] sm:$0xff] }
  0x3d   :  { %5043 = vmatprep.subr.bf16.mxu1 %v19851_v59  ;;  %v374_v59 = vld [vmem:[%s33257_s1 + $0xa88] sm:$0xff]  ;;  %v19993_v0 = vcombine.high %v389_v56, %v397_v57  ;;  %v19992_v7 = vcombine.low %v389_v56, %v397_v57 }
  0x3e   :  { %4882 = vmatpush1.bf16.msra.mxu0 %v19864_v1  ;;  %v19979_v1 = vcombine.high %v374_v59, %v382_v60  ;;  %v19978_v8 = vcombine.low %v374_v59, %v382_v60  ;;  %v494_v56 = vld [vmem:[%s33257_s1 + $0xe48] sm:$0xff] }
  0x3f   :  { %4883 = vmatprep.subr.bf16.mxu0 %v19881_v4  ;;  %v413_v4 = vld [vmem:[%s33257_s1 + $0xbc0] sm:$0xff] }
  0x40   :  { %5044 = vmatpush1.bf16.msra.mxu1 %v19850_v2  ;;  %v405_v2 = vld [vmem:[%s33257_s1 + $0xb80] sm:$0xff] }
  0x41   :  { %5045 = vmatprep.subr.bf16.mxu1 %v19867_v5  ;;  %v390_v5 = vld [vmem:[%s33257_s1 + $0xb08] sm:$0xff]  ;;  %v20009_v9 = vcombine.high %v405_v2, %v413_v4  ;;  %v20008_v16 = vcombine.low %v405_v2, %v413_v4 }
  0x42   :  { %4884 = vmatpush1.bf16.msra.mxu0 %v19880_v10  ;;  %v19995_v10 = vcombine.high %v390_v5, %v398_v6  ;;  %v19994_v18 = vcombine.low %v390_v5, %v398_v6  ;;  %v510_v2 = vld [vmem:[%s33257_s1 + $0xec8] sm:$0xff] }
  0x43   :  { %4894 = vmatprep.subr.bf16.mxu0 %v19897_v12  ;;  %v429_v12 = vld [vmem:[%s33257_s1 + $0xc40] sm:$0xff] }
  0x44   :  { %5046 = vmatpush1.bf16.msra.mxu1 %v19866_v11  ;;  %v421_v11 = vld [vmem:[%s33257_s1 + $0xc00] sm:$0xff] }
  0x45   :  { %5047 = vmatprep.subr.bf16.mxu1 %v19883_v14  ;;  %4886 = vmatmul.mubr.bf16.vlgmr.msra.gmra.mrb[0].mxu0 %v25512_v17  ;;  %v406_v14 = vld [vmem:[%s33257_s1 + $0xb88] sm:$0xff]  ;;  %v20025_v19 = vcombine.high %v421_v11, %v429_v12  ;;  %v20024_v25 = vcombine.low %v421_v11, %v429_v12 }
  0x46   :  { %4895 = vmatpush1.bf16.msra.mxu0 %v19896_v20  ;;  %4926 = vmatprep.mubr.bf16.mxu0 %v25522_v21  ;;  %v20011_v20 = vcombine.high %v406_v14, %v414_v15  ;;  %v20010_v26 = vcombine.low %v406_v14, %v414_v15  ;;  %v526_v11 = vld [vmem:[%s33257_s1 + $0xf48] sm:$0xff] }
  0x47   :  { %4896 = vmatprep.subr.bf16.mxu0 %v19913_v23  ;;  %v445_v23 = vld [vmem:[%s33257_s1 + $0xcc0] sm:$0xff] }
  0x48   :  { %5048 = vmatpush1.bf16.msra.mxu1 %v19882_v22  ;;  %v437_v22 = vld [vmem:[%s33257_s1 + $0xc80] sm:$0xff] }
  0x49   :  { %5058 = vmatprep.subr.bf16.mxu1 %v19899_v58  ;;  %v422_v58 = vld [vmem:[%s33257_s1 + $0xc08] sm:$0xff]  ;;  %v20041_v27 = vcombine.high %v437_v22, %v445_v23  ;;  %v20040_v33 = vcombine.low %v437_v22, %v445_v23 }
  0x4a   :  { %4897 = vmatpush1.bf16.msra.mxu0 %v19912_v28  ;;  %v20027_v28 = vcombine.high %v422_v58, %v430_v24  ;;  %v20026_v34 = vcombine.low %v422_v58, %v430_v24  ;;  %v542_v22 = vld [vmem:[%s33257_s1 + $0xfc8] sm:$0xff] }
  0x4b   :  { %5050 = vmatmul.mubr.bf16.vlgmr.msra.gmra.mrb[4].mxu1 %v25512_v17  ;;  %4898 = vmatprep.subr.bf16.mxu0 %v19929_v30  ;;  %v461_v30 = vld [vmem:[%s33257_s1 + $0xd40] sm:$0xff] }
  0x4c   :  { %5059 = vmatpush1.bf16.msra.mxu1 %v19898_v29  ;;  %5090 = vmatprep.mubr.bf16.mxu1 %v25522_v21  ;;  %v453_v29 = vld [vmem:[%s33257_s1 + $0xd00] sm:$0xff] }
  0x4d   :  { %5060 = vmatprep.subr.bf16.mxu1 %v19915_v31  ;;  %v438_v31 = vld [vmem:[%s33257_s1 + $0xc88] sm:$0xff]  ;;  %v20057_v35 = vcombine.high %v453_v29, %v461_v30  ;;  %v20056_v41 = vcombine.low %v453_v29, %v461_v30  ;;  %v25721_v29 = vcombine.low %v25502_v13, %v25502_v13 }
  0x4e   :  { %4899 = vmatpush1.bf16.msra.mxu0 %v19928_v36  ;;  %v20043_v36 = vcombine.high %v438_v31, %v446_v32  ;;  %v20042_v42 = vcombine.low %v438_v31, %v446_v32  ;;  %v550_v30 = vld [vmem:[%s33257_s1 + $0x1008] sm:$0xff] }
  0x4f   :  { %4900 = vmatprep.subr.bf16.mxu0 %v19945_v38  ;;  %v477_v38 = vld [vmem:[%s33257_s1 + $0xdc0] sm:$0xff]  ;;  %v558_v31 = vld [vmem:[%s33257_s1 + $0x1048] sm:$0xff] }
  0x50   :  { %5061 = vmatpush1.bf16.msra.mxu1 %v19914_v37  ;;  %v469_v37 = vld [vmem:[%s33257_s1 + $0xd80] sm:$0xff]  ;;  %v20155_v13 = vcombine.high %v550_v30, %v558_v31 }
  0x51   :  { %5062 = vmatprep.subr.bf16.mxu1 %v19931_v39  ;;  %v454_v39 = vld [vmem:[%s33257_s1 + $0xd08] sm:$0xff]  ;;  %v20073_v43 = vcombine.high %v469_v37, %v477_v38  ;;  %v20072_v49 = vcombine.low %v469_v37, %v477_v38  ;;  %v589_v37 = vld [vmem:[%s33257_s1 + $0x1140] sm:$0xff] }
  0x52   :  { %4901 = vmatpush1.bf16.msra.mxu0 %v19944_v44  ;;  %v20059_v44 = vcombine.high %v454_v39, %v462_v40  ;;  %v20058_v50 = vcombine.low %v454_v39, %v462_v40  ;;  %v566_v38 = vld [vmem:[%s33257_s1 + $0x1088] sm:$0xff] }
  0x53   :  { %4902 = vmatprep.subr.bf16.mxu0 %v19961_v46  ;;  %v493_v46 = vld [vmem:[%s33257_s1 + $0xe40] sm:$0xff]  ;;  %v574_v39 = vld [vmem:[%s33257_s1 + $0x10c8] sm:$0xff] }
  0x54   :  { %5063 = vmatpush1.bf16.msra.mxu1 %v19930_v45  ;;  %v485_v45 = vld [vmem:[%s33257_s1 + $0xe00] sm:$0xff] }
  0x55   :  { %5064 = vmatprep.subr.bf16.mxu1 %v19947_v47  ;;  %v470_v47 = vld [vmem:[%s33257_s1 + $0xd88] sm:$0xff]  ;;  %v20089_v51 = vcombine.high %v485_v45, %v493_v46  ;;  %v20088_v57 = vcombine.low %v485_v45, %v493_v46  ;;  %v605_v45 = vld [vmem:[%s33257_s1 + $0x11c0] sm:$0xff] }
  0x56   :  { %4903 = vmatpush1.bf16.msra.mxu0 %v19960_v52  ;;  %v20075_v52 = vcombine.high %v470_v47, %v478_v48  ;;  %v20074_v59 = vcombine.low %v470_v47, %v478_v48  ;;  %v582_v46 = vld [vmem:[%s33257_s1 + $0x1108] sm:$0xff] }
  0x57   :  { %4904 = vmatprep.subr.bf16.mxu0 %v19977_v54  ;;  %v509_v54 = vld [vmem:[%s33257_s1 + $0xec0] sm:$0xff]  ;;  %v590_v47 = vld [vmem:[%s33257_s1 + $0x1148] sm:$0xff] }
  0x58   :  { %5065 = vmatpush1.bf16.msra.mxu1 %v19946_v53  ;;  %v501_v53 = vld [vmem:[%s33257_s1 + $0xe80] sm:$0xff] }
  0x59   :  { %5066 = vmatprep.subr.bf16.mxu1 %v19963_v55  ;;  %v486_v55 = vld [vmem:[%s33257_s1 + $0xe08] sm:$0xff]  ;;  %v20105_v60 = vcombine.high %v501_v53, %v509_v54  ;;  %v20104_v4 = vcombine.low %v501_v53, %v509_v54  ;;  %v621_v53 = vld [vmem:[%s33257_s1 + $0x1240] sm:$0xff] }
  0x5a   :  { %4905 = vmatpush1.bf16.msra.mxu0 %v19976_v62  ;;  %v20091_v62 = vcombine.high %v486_v55, %v494_v56  ;;  %v20090_v5 = vcombine.low %v486_v55, %v494_v56  ;;  %v598_v54 = vld [vmem:[%s33257_s1 + $0x1188] sm:$0xff] }
  0x5b   :  { %4906 = vmatprep.subr.bf16.mxu0 %v19993_v0  ;;  %v525_v0 = vld [vmem:[%s33257_s1 + $0xf40] sm:$0xff]  ;;  %v606_v55 = vld [vmem:[%s33257_s1 + $0x11c8] sm:$0xff] }
  0x5c   :  { %5067 = vmatpush1.bf16.msra.mxu1 %v19962_v63  ;;  %v517_v63 = vld [vmem:[%s33257_s1 + $0xf00] sm:$0xff] }
  0x5d   :  { %5068 = vmatprep.subr.bf16.mxu1 %v19979_v1  ;;  %v502_v1 = vld [vmem:[%s33257_s1 + $0xe88] sm:$0xff]  ;;  %v20121_v6 = vcombine.high %v517_v63, %v525_v0  ;;  %v20120_v12 = vcombine.low %v517_v63, %v525_v0  ;;  %v637_v63 = vld [vmem:[%s33257_s1 + $0x12c0] sm:$0xff] }
  0x5e   :  { %4907 = vmatpush1.bf16.msra.mxu0 %v19992_v7  ;;  %v20107_v7 = vcombine.high %v502_v1, %v510_v2  ;;  %v20106_v14 = vcombine.low %v502_v1, %v510_v2  ;;  %v614_v0 = vld [vmem:[%s33257_s1 + $0x1208] sm:$0xff] }
  0x5f   :  { %4908 = vmatprep.subr.bf16.mxu0 %v20009_v9  ;;  %v541_v9 = vld [vmem:[%s33257_s1 + $0xfc0] sm:$0xff]  ;;  %v622_v1 = vld [vmem:[%s33257_s1 + $0x1248] sm:$0xff] }
  0x60   :  { %5069 = vmatpush1.bf16.msra.mxu1 %v19978_v8  ;;  %v533_v8 = vld [vmem:[%s33257_s1 + $0xf80] sm:$0xff] }
  0x61   :  { %5070 = vmatprep.subr.bf16.mxu1 %v19995_v10  ;;  %v518_v10 = vld [vmem:[%s33257_s1 + $0xf08] sm:$0xff]  ;;  %v20137_v15 = vcombine.high %v533_v8, %v541_v9  ;;  %v20136_v23 = vcombine.low %v533_v8, %v541_v9  ;;  %v653_v8 = vld [vmem:[%s33257_s1 + $0x1340] sm:$0xff] }
  0x62   :  { %4909 = vmatpush1.bf16.msra.mxu0 %v20008_v16  ;;  %v20123_v16 = vcombine.high %v518_v10, %v526_v11  ;;  %v20122_v58 = vcombine.low %v518_v10, %v526_v11  ;;  %v630_v9 = vld [vmem:[%s33257_s1 + $0x1288] sm:$0xff] }
  0x63   :  { %4910 = vmatprep.subr.bf16.mxu0 %v20025_v19  ;;  %v557_v19 = vld [vmem:[%s33257_s1 + $0x1040] sm:$0xff]  ;;  %v638_v10 = vld [vmem:[%s33257_s1 + $0x12c8] sm:$0xff] }
  0x64   :  { %5071 = vmatpush1.bf16.msra.mxu1 %v19994_v18  ;;  %v549_v18 = vld [vmem:[%s33257_s1 + $0x1000] sm:$0xff] }
  0x65   :  { %5072 = vmatprep.subr.bf16.mxu1 %v20011_v20  ;;  %v534_v20 = vld [vmem:[%s33257_s1 + $0xf88] sm:$0xff]  ;;  %v20153_v24 = vcombine.high %v549_v18, %v557_v19  ;;  %v20152_v32 = vcombine.low %v549_v18, %v557_v19  ;;  %v669_v18 = vld [vmem:[%s33257_s1 + $0x13c0] sm:$0xff] }
  0x66   :  { %4911 = vmatpush1.bf16.msra.mxu0 %v20024_v25  ;;  %v25711_v25 = vld [vmem:[%s33258_s0 + $0x10] sm:$0xff]  ;;  %v646_v19 = vld [vmem:[%s33257_s1 + $0x1308] sm:$0xff] }
  0x67   :  { %4912 = vmatprep.subr.bf16.mxu0 %v20041_v27  ;;  %v565_v27 = vld [vmem:[%s33257_s1 + $0x1080] sm:$0xff] }
  0x68   :  { %5073 = vmatpush1.bf16.msra.mxu1 %v20010_v26  ;;  %v20139_v26 = vcombine.high %v534_v20, %v542_v22 }
  0x69   :  { %5074 = vmatprep.subr.bf16.mxu1 %v20027_v28  ;;  %v573_v28 = vld [vmem:[%s33257_s1 + $0x10c0] sm:$0xff] }
  0x6a   :  { %4913 = vmatpush1.bf16.msra.mxu0 %v20040_v33  ;;  %v25731_v33 = vcombine.high %v25711_v25, %v25711_v25  ;;  %v20168_v40 = vcombine.low %v565_v27, %v573_v28 }
  0x6b   :  { %4914 = vmatprep.subr.bf16.mxu0 %v20057_v35  ;;  %v20169_v35 = vcombine.high %v565_v27, %v573_v28  ;;  %v685_v27 = vld [vmem:[%s33257_s1 + $0x1440] sm:$0xff]  ;;  %v662_v28 = vld [vmem:[%s33257_s1 + $0x1388] sm:$0xff] }
  0x6c   :  { %5075 = vmatpush1.bf16.msra.mxu1 %v20026_v34  ;;  %v20138_v34 = vcombine.low %v534_v20, %v542_v22  ;;  %v654_v20 = vld [vmem:[%s33257_s1 + $0x1348] sm:$0xff] }
  0x6d   :  { %5076 = vmatprep.subr.bf16.mxu1 %v20043_v36  ;;  %v581_v36 = vld [vmem:[%s33257_s1 + $0x1100] sm:$0xff] }
  0x6e   :  { %4915 = vmatpush1.bf16.msra.mxu0 %v20056_v41  ;;  %v20154_v41 = vcombine.low %v550_v30, %v558_v31  ;;  %v20184_v48 = vcombine.low %v581_v36, %v589_v37  ;;  %v670_v30 = vld [vmem:[%s33257_s1 + $0x13c8] sm:$0xff] }
  0x6f   :  { %4916 = vmatprep.subr.bf16.mxu0 %v20073_v43  ;;  %v20171_v43 = vcombine.high %v566_v38, %v574_v39 }
  0x70   :  { %5077 = vmatpush1.bf16.msra.mxu1 %v20042_v42  ;;  %v20185_v42 = vcombine.high %v581_v36, %v589_v37  ;;  %v701_v36 = vld [vmem:[%s33257_s1 + $0x14c0] sm:$0xff]  ;;  %v678_v37 = vld [vmem:[%s33257_s1 + $0x1408] sm:$0xff] }
  0x71   :  { %5078 = vmatprep.subr.bf16.mxu1 %v20059_v44  ;;  %v597_v44 = vld [vmem:[%s33257_s1 + $0x1180] sm:$0xff] }
  0x72   :  { %4917 = vmatpush1.bf16.msra.mxu0 %v20072_v49  ;;  %v20170_v49 = vcombine.low %v566_v38, %v574_v39  ;;  %v20200_v56 = vcombine.low %v597_v44, %v605_v45  ;;  %v686_v38 = vld [vmem:[%s33257_s1 + $0x1448] sm:$0xff] }
  0x73   :  { %4918 = vmatprep.subr.bf16.mxu0 %v20089_v51  ;;  %v20187_v51 = vcombine.high %v582_v46, %v590_v47 }
  0x74   :  { %5079 = vmatpush1.bf16.msra.mxu1 %v20058_v50  ;;  %v20201_v50 = vcombine.high %v597_v44, %v605_v45  ;;  %v717_v44 = vld [vmem:[%s33257_s1 + $0x1540] sm:$0xff]  ;;  %v694_v45 = vld [vmem:[%s33257_s1 + $0x1488] sm:$0xff] }
  0x75   :  { %5080 = vmatprep.subr.bf16.mxu1 %v20075_v52  ;;  %v613_v52 = vld [vmem:[%s33257_s1 + $0x1200] sm:$0xff] }
  0x76   :  { %4919 = vmatpush1.bf16.msra.mxu0 %v20088_v57  ;;  %v20186_v57 = vcombine.low %v582_v46, %v590_v47  ;;  %v20216_v2 = vcombine.low %v613_v52, %v621_v53  ;;  %v702_v46 = vld [vmem:[%s33257_s1 + $0x14c8] sm:$0xff] }
  0x77   :  { %4920 = vmatprep.subr.bf16.mxu0 %v20105_v60  ;;  %v20203_v60 = vcombine.high %v598_v54, %v606_v55 }
  0x78   :  { %5081 = vmatpush1.bf16.msra.mxu1 %v20074_v59  ;;  %v20217_v59 = vcombine.high %v613_v52, %v621_v53  ;;  %v733_v52 = vld [vmem:[%s33257_s1 + $0x15c0] sm:$0xff]  ;;  %v710_v53 = vld [vmem:[%s33257_s1 + $0x1508] sm:$0xff] }
  0x79   :  { %5082 = vmatprep.subr.bf16.mxu1 %v20091_v62  ;;  %v629_v62 = vld [vmem:[%s33257_s1 + $0x1280] sm:$0xff] }
  0x7a   :  { %4921 = vmatpush1.bf16.msra.mxu0 %v20104_v4  ;;  %v20202_v4 = vcombine.low %v598_v54, %v606_v55  ;;  %v20232_v11 = vcombine.low %v629_v62, %v637_v63  ;;  %v718_v54 = vld [vmem:[%s33257_s1 + $0x1548] sm:$0xff] }
  0x7b   :  { %4922 = vmatprep.subr.bf16.mxu0 %v20121_v6  ;;  %v20219_v6 = vcombine.high %v614_v0, %v622_v1 }
  0x7c   :  { %5083 = vmatpush1.bf16.msra.mxu1 %v20090_v5  ;;  %v20233_v5 = vcombine.high %v629_v62, %v637_v63  ;;  %v749_v62 = vld [vmem:[%s33257_s1 + $0x1640] sm:$0xff]  ;;  %v726_v63 = vld [vmem:[%s33257_s1 + $0x1588] sm:$0xff] }
  0x7d   :  { %5084 = vmatprep.subr.bf16.mxu1 %v20107_v7  ;;  %v645_v7 = vld [vmem:[%s33257_s1 + $0x1300] sm:$0xff] }
  0x7e   :  { %4923 = vmatpush1.bf16.msra.mxu0 %v20120_v12  ;;  %v20218_v12 = vcombine.low %v614_v0, %v622_v1  ;;  %v20248_v22 = vcombine.low %v645_v7, %v653_v8  ;;  %v734_v0 = vld [vmem:[%s33257_s1 + $0x15c8] sm:$0xff] }
  0x7f   :  { %4924 = vmatprep.subr.bf16.mxu0 %v20137_v15  ;;  %v20235_v15 = vcombine.high %v630_v9, %v638_v10 }
  0x80   :  { %5085 = vmatpush1.bf16.msra.mxu1 %v20106_v14  ;;  %v20249_v14 = vcombine.high %v645_v7, %v653_v8  ;;  %v765_v7 = vld [vmem:[%s33257_s1 + $0x16c0] sm:$0xff]  ;;  %v742_v8 = vld [vmem:[%s33257_s1 + $0x1608] sm:$0xff] }
  0x81   :  { %5086 = vmatprep.subr.bf16.mxu1 %v20123_v16  ;;  %v661_v16 = vld [vmem:[%s33257_s1 + $0x1380] sm:$0xff] }
  0x82   :  { %4925 = vmatpush1.bf16.msra.mxu0 %v20136_v23  ;;  %v20234_v23 = vcombine.low %v630_v9, %v638_v10  ;;  %v20264_v31 = vcombine.low %v661_v16, %v669_v18  ;;  %v750_v9 = vld [vmem:[%s33257_s1 + $0x1648] sm:$0xff] }
  0x83   :  { %4935 = vmatprep.subr.bf16.mxu0 %v20153_v24  ;;  %v20251_v24 = vcombine.high %v646_v19, %v654_v20 }
  0x84   :  { %5087 = vmatpush1.bf16.msra.mxu1 %v20122_v58  ;;  %v20265_v58 = vcombine.high %v661_v16, %v669_v18  ;;  %v781_v16 = vld [vmem:[%s33257_s1 + $0x1740] sm:$0xff]  ;;  %v758_v18 = vld [vmem:[%s33257_s1 + $0x1688] sm:$0xff] }
  0x85   :  { %5088 = vmatprep.subr.bf16.mxu1 %v20139_v26  ;;  %4927 = vmatmul.mubr.bf16.vlgmr.msra.gmra.mrb[0].mxu0 %v25721_v29  ;;  %v677_v26 = vld [vmem:[%s33257_s1 + $0x1400] sm:$0xff] }
  0x86   :  { %4936 = vmatpush1.bf16.msra.mxu0 %v20152_v32  ;;  %4967 = vmatprep.mubr.bf16.mxu0 %v25731_v33  ;;  %v20250_v32 = vcombine.low %v646_v19, %v654_v20  ;;  %v20280_v39 = vcombine.low %v677_v26, %v685_v27  ;;  %v766_v19 = vld [vmem:[%s33257_s1 + $0x16c8] sm:$0xff] }
  0x87   :  { %4937 = vmatprep.subr.bf16.mxu0 %v20169_v35  ;;  %v20267_v35 = vcombine.high %v662_v28, %v670_v30 }
  0x88   :  { %5089 = vmatpush1.bf16.msra.mxu1 %v20138_v34  ;;  %v20281_v34 = vcombine.high %v677_v26, %v685_v27  ;;  %v797_v26 = vld [vmem:[%s33257_s1 + $0x17c0] sm:$0xff]  ;;  %v774_v27 = vld [vmem:[%s33257_s1 + $0x1708] sm:$0xff] }
  0x89   :  { %5099 = vmatprep.subr.bf16.mxu1 %v20155_v13  ;;  %v693_v13 = vld [vmem:[%s33257_s1 + $0x1480] sm:$0xff] }
  0x8a   :  { %4938 = vmatpush1.bf16.msra.mxu0 %v20168_v40  ;;  %v20266_v40 = vcombine.low %v662_v28, %v670_v30  ;;  %v20296_v47 = vcombine.low %v693_v13, %v701_v36  ;;  %v782_v28 = vld [vmem:[%s33257_s1 + $0x1748] sm:$0xff] }
  0x8b   :  { %5091 = vmatmul.mubr.bf16.vlgmr.msra.gmra.mrb[4].mxu1 %v25721_v29  ;;  %4939 = vmatprep.subr.bf16.mxu0 %v20185_v42  ;;  %v20283_v42 = vcombine.high %v678_v37, %v686_v38 }
  0x8c   :  { %5100 = vmatpush1.bf16.msra.mxu1 %v20154_v41  ;;  %5131 = vmatprep.mubr.bf16.mxu1 %v25731_v33  ;;  %v20297_v41 = vcombine.high %v693_v13, %v701_v36  ;;  %v47_v13 = vld [vmem:[%s33257_s1 + $0x50] sm:$0xff]  ;;  %v790_v36 = vld [vmem:[%s33257_s1 + $0x1788] sm:$0xff] }
  0x8d   :  { %5101 = vmatprep.subr.bf16.mxu1 %v20171_v43  ;;  %v709_v43 = vld [vmem:[%s33257_s1 + $0x1500] sm:$0xff] }
  0x8e   :  { %4940 = vmatpush1.bf16.msra.mxu0 %v20184_v48  ;;  %v20282_v48 = vcombine.low %v678_v37, %v686_v38  ;;  %v20312_v55 = vcombine.low %v709_v43, %v717_v44  ;;  %v798_v37 = vld [vmem:[%s33257_s1 + $0x17c8] sm:$0xff] }
  0x8f   :  { %4941 = vmatprep.subr.bf16.mxu0 %v20201_v50  ;;  %v20299_v50 = vcombine.high %v694_v45, %v702_v46 }
  0x90   :  { %5102 = vmatpush1.bf16.msra.mxu1 %v20170_v49  ;;  %v20313_v49 = vcombine.high %v709_v43, %v717_v44  ;;  %v63_v43 = vld [vmem:[%s33257_s1 + $0xd0] sm:$0xff]  ;;  %v25925_v44 = vcombine.low %v25711_v25, %v25711_v25 }
  0x91   :  { %5103 = vmatprep.subr.bf16.mxu1 %v20187_v51  ;;  %v725_v51 = vld [vmem:[%s33257_s1 + $0x1580] sm:$0xff]  ;;  %v71_v25 = vld [vmem:[%s33257_s1 + $0x110] sm:$0xff] }
  0x92   :  { %4942 = vmatpush1.bf16.msra.mxu0 %v20200_v56  ;;  %v20298_v56 = vcombine.low %v694_v45, %v702_v46  ;;  %v20328_v1 = vcombine.low %v725_v51, %v733_v52  ;;  %v806_v45 = vld [vmem:[%s33257_s1 + $0x1808] sm:$0xff] }
  0x93   :  { %4943 = vmatprep.subr.bf16.mxu0 %v20217_v59  ;;  %v20315_v59 = vcombine.high %v710_v53, %v718_v54  ;;  %v814_v46 = vld [vmem:[%s33257_s1 + $0x1848] sm:$0xff] }
  0x94   :  { %5104 = vmatpush1.bf16.msra.mxu1 %v20186_v57  ;;  %v20329_v57 = vcombine.high %v725_v51, %v733_v52  ;;  %v79_v51 = vld [vmem:[%s33257_s1 + $0x150] sm:$0xff] }
  0x95   :  { %5105 = vmatprep.subr.bf16.mxu1 %v20203_v60  ;;  %v741_v60 = vld [vmem:[%s33257_s1 + $0x1600] sm:$0xff]  ;;  %v807_v52 = vld [vmem:[%s33257_s1 + $0x1810] sm:$0xff] }
  0x96   :  { %4944 = vmatpush1.bf16.msra.mxu0 %v20216_v2  ;;  %v20314_v2 = vcombine.low %v710_v53, %v718_v54  ;;  %v20344_v10 = vcombine.low %v741_v60, %v749_v62  ;;  %v815_v53 = vld [vmem:[%s33257_s1 + $0x1850] sm:$0xff] }
  0x97   :  { %4945 = vmatprep.subr.bf16.mxu0 %v20233_v5  ;;  %v20331_v5 = vcombine.high %v726_v63, %v734_v0 }
  0x98   :  { %5106 = vmatpush1.bf16.msra.mxu1 %v20202_v4  ;;  %v20345_v4 = vcombine.high %v741_v60, %v749_v62  ;;  %v20413_v60 = vcombine.high %v807_v52, %v815_v53  ;;  %v19676_v62 = vcombine.low %v71_v25, %v79_v51 }
  0x99   :  { %5107 = vmatprep.subr.bf16.mxu1 %v20219_v6  ;;  %v757_v6 = vld [vmem:[%s33257_s1 + $0x1680] sm:$0xff] }
  0x9a   :  { %4946 = vmatpush1.bf16.msra.mxu0 %v20232_v11  ;;  %v20330_v11 = vcombine.low %v726_v63, %v734_v0  ;;  %v20360_v20 = vcombine.low %v757_v6, %v765_v7  ;;  %v103_v0 = vld [vmem:[%s33257_s1 + $0x210] sm:$0xff] }
  0x9b   :  { %4947 = vmatprep.subr.bf16.mxu0 %v20249_v14  ;;  %v20347_v14 = vcombine.high %v742_v8, %v750_v9 }
  0x9c   :  { %5108 = vmatpush1.bf16.msra.mxu1 %v20218_v12  ;;  %v20361_v12 = vcombine.high %v757_v6, %v765_v7  ;;  %v127_v6 = vld [vmem:[%s33257_s1 + $0x2d0] sm:$0xff]  ;;  %v40_v7 = vld [vmem:[%s33257_s1 + $0x18] sm:$0xff] }
  0x9d   :  { %5109 = vmatprep.subr.bf16.mxu1 %v20235_v15  ;;  %v773_v15 = vld [vmem:[%s33257_s1 + $0x1700] sm:$0xff] }
  0x9e   :  { %4948 = vmatpush1.bf16.msra.mxu0 %v20248_v22  ;;  %v20346_v22 = vcombine.low %v742_v8, %v750_v9  ;;  %v20376_v30 = vcombine.low %v773_v15, %v781_v16  ;;  %v48_v8 = vld [vmem:[%s33257_s1 + $0x58] sm:$0xff] }
  0x9f   :  { %4949 = vmatprep.subr.bf16.mxu0 %v20265_v58  ;;  %v20363_v58 = vcombine.high %v758_v18, %v766_v19 }
  0xa0   :  { %5110 = vmatpush1.bf16.msra.mxu1 %v20234_v23  ;;  %v20377_v23 = vcombine.high %v773_v15, %v781_v16  ;;  %v143_v15 = vld [vmem:[%s33257_s1 + $0x350] sm:$0xff]  ;;  %v25218_v16 = vld [vmem:[%s33258_s0 + $0x18] ss:$0 sps:$4 sm:$0xff]  }
  0xa1   :  { %5111 = vmatprep.subr.bf16.mxu1 %v20251_v24  ;;  %v789_v24 = vld [vmem:[%s33257_s1 + $0x1780] sm:$0xff] }
  0xa2   :  { %4950 = vmatpush1.bf16.msra.mxu0 %v20264_v31  ;;  %v20362_v31 = vcombine.low %v758_v18, %v766_v19  ;;  %v20392_v38 = vcombine.low %v789_v24, %v797_v26 }
  0xa3   :  { %4951 = vmatprep.subr.bf16.mxu0 %v20281_v34  ;;  %v20379_v34 = vcombine.high %v774_v27, %v782_v28 }
  0xa4   :  { %5112 = vmatpush1.bf16.msra.mxu1 %v20250_v32  ;;  %v20393_v32 = vcombine.high %v789_v24, %v797_v26  ;;  %v19646_v26 = vcombine.low %v40_v7, %v48_v8 }
  0xa5   :  { %5113 = vmatprep.subr.bf16.mxu1 %v20267_v35  ;;  %v39_v35 = vld [vmem:[%s33257_s1 + $0x10] sm:$0xff] }
  0xa6   :  { %4952 = vmatpush1.bf16.msra.mxu0 %v20280_v39  ;;  %v20378_v39 = vcombine.low %v774_v27, %v782_v28 }
  0xa7   :  { %4953 = vmatprep.subr.bf16.mxu0 %v20297_v41  ;;  %v20395_v41 = vcombine.high %v790_v36, %v798_v37 }
  0xa8   :  { %5114 = vmatpush1.bf16.msra.mxu1 %v20266_v40  ;;  %v19645_v40 = vcombine.high %v39_v35, %v47_v13 }
  0xa9   :  { %5115 = vmatprep.subr.bf16.mxu1 %v20283_v42  ;;  %v55_v42 = vld [vmem:[%s33257_s1 + $0x90] sm:$0xff] }
  0xaa   :  { %4954 = vmatpush1.bf16.msra.mxu0 %v20296_v47  ;;  %v19644_v47 = vcombine.low %v39_v35, %v47_v13  ;;  %v19660_v54 = vcombine.low %v55_v42, %v63_v43  ;;  %v80_v35 = vld [vmem:[%s33257_s1 + $0x158] sm:$0xff] }
  0xab   :  { %4955 = vmatprep.subr.bf16.mxu0 %v20313_v49  ;;  %v19661_v49 = vcombine.high %v55_v42, %v63_v43  ;;  %v183_v42 = vld [vmem:[%s33257_s1 + $0x490] sm:$0xff] }
  0xac   :  { %5116 = vmatpush1.bf16.msra.mxu1 %v20282_v48  ;;  %v20394_v48 = vcombine.low %v790_v36, %v798_v37  ;;  %v191_v43 = vld [vmem:[%s33257_s1 + $0x4d0] sm:$0xff] }
  0xad   :  { %5117 = vmatprep.subr.bf16.mxu1 %v20299_v50  ;;  %v20411_v50 = vcombine.high %v806_v45, %v814_v46 }
  0xae   :  { %4956 = vmatpush1.bf16.msra.mxu0 %v20312_v55  ;;  %v20410_v55 = vcombine.low %v806_v45, %v814_v46  ;;  %v88_v45 = vld [vmem:[%s33257_s1 + $0x198] sm:$0xff] }
  0xaf   :  { %4957 = vmatprep.subr.bf16.mxu0 %v20329_v57  ;;  %v87_v57 = vld [vmem:[%s33257_s1 + $0x190] sm:$0xff]  ;;  %v96_v46 = vld [vmem:[%s33257_s1 + $0x1d8] sm:$0xff] }
  0xb0   :  { %5118 = vmatpush1.bf16.msra.mxu1 %v20298_v56  ;;  %v19677_v56 = vcombine.high %v71_v25, %v79_v51  ;;  %v199_v25 = vld [vmem:[%s33257_s1 + $0x510] sm:$0xff] }
  0xb1   :  { %5119 = vmatprep.subr.bf16.mxu1 %v20315_v59  ;;  %v95_v59 = vld [vmem:[%s33257_s1 + $0x1d0] sm:$0xff] }
  0xb2   :  { %4958 = vmatpush1.bf16.msra.mxu0 %v20328_v1  ;;  %v19693_v63 = vcombine.high %v87_v57, %v95_v59  ;;  %v111_v1 = vld [vmem:[%s33257_s1 + $0x250] sm:$0xff] }
  0xb3   :  { %4959 = vmatprep.subr.bf16.mxu0 %v20345_v4  ;;  %v19709_v4 = vcombine.high %v103_v0, %v111_v1  ;;  %v19708_v9 = vcombine.low %v103_v0, %v111_v1  ;;  %v207_v51 = vld [vmem:[%s33257_s1 + $0x550] sm:$0xff] }
  0xb4   :  { %5120 = vmatpush1.bf16.msra.mxu1 %v20314_v2  ;;  %v19692_v2 = vcombine.low %v87_v57, %v95_v59  ;;  %v215_v59 = vld [vmem:[%s33257_s1 + $0x590] sm:$0xff]  ;;  %v19804_v0 = vcombine.low %v199_v25, %v207_v51 }
  0xb5   :  { %5121 = vmatprep.subr.bf16.mxu1 %v20331_v5  ;;  %v119_v5 = vld [vmem:[%s33257_s1 + $0x290] sm:$0xff] }
  0xb6   :  { %4960 = vmatpush1.bf16.msra.mxu0 %v20344_v10  ;;  %v20412_v10 = vcombine.low %v807_v52, %v815_v53  ;;  %v19724_v18 = vcombine.low %v119_v5, %v127_v6  ;;  %v104_v52 = vld [vmem:[%s33257_s1 + $0x218] sm:$0xff] }
  0xb7   :  { %4961 = vmatprep.subr.bf16.mxu0 %v20361_v12  ;;  %v19647_v12 = vcombine.high %v40_v7, %v48_v8  ;;  %v112_v53 = vld [vmem:[%s33257_s1 + $0x258] sm:$0xff] }
  0xb8   :  { %5122 = vmatpush1.bf16.msra.mxu1 %v20330_v11  ;;  %v19725_v11 = vcombine.high %v119_v5, %v127_v6  ;;  %v19711_v57 = vcombine.high %v104_v52, %v112_v53  ;;  %v19710_v1 = vcombine.low %v104_v52, %v112_v53  ;;  %v231_v5 = vld [vmem:[%s33257_s1 + $0x610] sm:$0xff]  ;;  %v136_v7 = vld [vmem:[%s33257_s1 + $0x318] sm:$0xff] }
  0xb9   :  { %5123 = vmatprep.subr.bf16.mxu1 %v20347_v14  ;;  %v135_v14 = vld [vmem:[%s33257_s1 + $0x310] sm:$0xff]  ;;  %v144_v8 = vld [vmem:[%s33257_s1 + $0x358] sm:$0xff] }
  0xba   :  { %4962 = vmatpush1.bf16.msra.mxu0 %v20360_v20  ;;  %v19741_v19 = vcombine.high %v135_v14, %v143_v15  ;;  %v151_v20 = vld [vmem:[%s33257_s1 + $0x390] sm:$0xff]  ;;  %v19740_v24 = vcombine.low %v135_v14, %v143_v15  ;;  %v216_v53 = vld [vmem:[%s33257_s1 + $0x598] sm:$0xff] }
  0xbb   :  { %4963 = vmatprep.subr.bf16.mxu0 %v20377_v23  ;;  %v56_v23 = vld [vmem:[%s33257_s1 + $0x98] sm:$0xff]  ;;  %v239_v6 = vld [vmem:[%s33257_s1 + $0x650] sm:$0xff] }
  0xbc   :  { %5124 = vmatpush1.bf16.msra.mxu1 %v20346_v22  ;;  %v159_v22 = vld [vmem:[%s33257_s1 + $0x3d0] sm:$0xff] }
  0xbd   :  { %5125 = vmatprep.subr.bf16.mxu1 %v20363_v58  ;;  %v64_v58 = vld [vmem:[%s33257_s1 + $0xd8] sm:$0xff]  ;;  %v19757_v27 = vcombine.high %v151_v20, %v159_v22  ;;  %v19756_v36 = vcombine.low %v151_v20, %v159_v22  ;;  %v247_v14 = vld [vmem:[%s33257_s1 + $0x690] sm:$0xff]  ;;  %v19742_v20 = vcombine.low %v136_v7, %v144_v8 }
  0xbe   :  { %4964 = vmatpush1.bf16.msra.mxu0 %v20376_v30  ;;  %v19663_v28 = vcombine.high %v56_v23, %v64_v58  ;;  %v167_v30 = vld [vmem:[%s33257_s1 + $0x410] sm:$0xff] }
  0xbf   :  { %4965 = vmatprep.subr.bf16.mxu0 %v20393_v32  ;;  %v255_v15 = vld [vmem:[%s33257_s1 + $0x6d0] sm:$0xff] }
  0xc0   :  { %5126 = vmatpush1.bf16.msra.mxu1 %v20362_v31  ;;  %v175_v31 = vld [vmem:[%s33257_s1 + $0x450] sm:$0xff]  ;;  %v19853_v22 = vcombine.high %v247_v14, %v255_v15 }
  0xc1   :  { %5127 = vmatprep.subr.bf16.mxu1 %v20379_v34  ;;  %v72_v34 = vld [vmem:[%s33257_s1 + $0x118] sm:$0xff]  ;;  %v319_v52 = vld [vmem:[%s33257_s1 + $0x8d0] sm:$0xff] }
  0xc2   :  { %4966 = vmatpush1.bf16.msra.mxu0 %v20392_v38  ;;  %v19662_v38 = vcombine.low %v56_v23, %v64_v58  ;;  %v263_v58 = vld [vmem:[%s33257_s1 + $0x710] sm:$0xff] }
  0xc3   :  { %5181 = vmatprep.subr.bf16.mxu0 %v19645_v40 }
  0xc4   :  { %5128 = vmatpush1.bf16.msra.mxu1 %v20378_v39  ;;  %v19773_v39 = vcombine.high %v167_v30, %v175_v31 }
  0xc5   :  { %5129 = vmatprep.subr.bf16.mxu1 %v20395_v41  ;;  %4968 = vmatmul.mubr.bf16.vlgmr.msra.gmra.mrb[0].mxu0 %v25925_v44  ;;  %v19679_v41 = vcombine.high %v72_v34, %v80_v35 }
  0xc6   :  { %5182 = vmatpush1.bf16.msra.mxu0 %v19644_v47  ;;  %5213 = vmatprep.mubr.bf16.mxu0 %v25387_v61  ;;  %v19772_v47 = vcombine.low %v167_v30, %v175_v31 }
  0xc7   :  { %5183 = vmatprep.subr.bf16.mxu0 %v19661_v49  ;;  %v19789_v49 = vcombine.high %v183_v42, %v191_v43 }
  0xc8   :  { %5130 = vmatpush1.bf16.msra.mxu1 %v20394_v48  ;;  %v19678_v48 = vcombine.low %v72_v34, %v80_v35  ;;  %v279_v35 = vld [vmem:[%s33257_s1 + $0x790] sm:$0xff] }
  0xc9   :  { %5140 = vmatprep.subr.bf16.mxu1 %v20411_v50  ;;  %v19695_v50 = vcombine.high %v88_v45, %v96_v46 }
  0xca   :  { %5184 = vmatpush1.bf16.msra.mxu0 %v19660_v54  ;;  %v19788_v54 = vcombine.low %v183_v42, %v191_v43  ;;  %v295_v43 = vld [vmem:[%s33257_s1 + $0x810] sm:$0xff] }
  0xcb   :  { %5132 = vmatmul.mubr.bf16.vlgmr.msra.gmra.mrb[4].mxu1 %v25925_v44  ;;  %5185 = vmatprep.subr.bf16.mxu0 %v19677_v56  ;;  %v19805_v56 = vcombine.high %v199_v25, %v207_v51  ;;  %v311_v51 = vld [vmem:[%s33257_s1 + $0x890] sm:$0xff] }
  0xcc   :  { %5141 = vmatpush1.bf16.msra.mxu1 %v20410_v55  ;;  %5172 = vmatprep.mubr.bf16.mxu1 %v25226_v3  ;;  %v19694_v55 = vcombine.low %v88_v45, %v96_v46  ;;  %v303_v45 = vld [vmem:[%s33257_s1 + $0x850] sm:$0xff]  ;;  %v200_v46 = vld [vmem:[%s33257_s1 + $0x518] sm:$0xff] }
  0xcd   :  { %5304 = vmatprep.subr.bf16.mxu1 %v20413_v60  ;;  %v223_v60 = vld [vmem:[%s33257_s1 + $0x5d0] sm:$0xff] }
  0xce   :  { %5186 = vmatpush1.bf16.msra.mxu0 %v19676_v62  ;;  %v120_v62 = vld [vmem:[%s33257_s1 + $0x298] sm:$0xff] }
  0xcf   :  { %5187 = vmatprep.subr.bf16.mxu0 %v19693_v63  ;;  %v128_v63 = vld [vmem:[%s33257_s1 + $0x2d8] sm:$0xff] }
  0xd2   :  { %5188 = vmatpush1.bf16.msra.mxu0 %v19692_v2  ;;  %v19821_v2 = vcombine.high %v215_v59, %v223_v60 }
  0xd3   :  { %5189 = vmatprep.subr.bf16.mxu0 %v19709_v4  ;;  %v19727_v4 = vcombine.high %v120_v62, %v128_v63 }
  0xd6   :  { %5190 = vmatpush1.bf16.msra.mxu0 %v19708_v9  ;;  %v19820_v9 = vcombine.low %v215_v59, %v223_v60  ;;  %v327_v60 = vld [vmem:[%s33257_s1 + $0x910] sm:$0xff] }
  0xd7   :  { %20425 = vmatmul.mubr.msk.bf16.vlgmr.msra.gmra.mrb[4].mxu1 %vm4849_vm0, %v25218_v16  ;;  %5191 = vmatprep.subr.bf16.mxu0 %v19725_v11  ;;  %v19837_v11 = vcombine.high %v231_v5, %v239_v6 }
  0xd8   :  { %5305 = vmatpush1.bf16.msra.mxu1 %v20412_v10  ;;  %5336 = vmatprep.mubr.bf16.mxu1 %v25226_v3  ;;  %v19726_v10 = vcombine.low %v120_v62, %v128_v63  ;;  %v335_v62 = vld [vmem:[%s33257_s1 + $0x950] sm:$0xff]  ;;  %v232_v63 = vld [vmem:[%s33257_s1 + $0x618] sm:$0xff] }
  0xd9   :  { %5345 = vmatprep.subr.bf16.mxu1 %v19647_v12  ;;  %v19743_v12 = vcombine.high %v136_v7, %v144_v8  ;;  %v351_v7 = vld [vmem:[%s33257_s1 + $0x9d0] sm:$0xff]  ;;  %v248_v8 = vld [vmem:[%s33257_s1 + $0x698] sm:$0xff] }
  0xda   :  { %5192 = vmatpush1.bf16.msra.mxu0 %v19724_v18  ;;  %v160_v18 = vld [vmem:[%s33257_s1 + $0x3d8] sm:$0xff] }
  0xdb   :  { %5193 = vmatprep.subr.bf16.mxu0 %v19741_v19  ;;  %v19836_v19 = vcombine.low %v231_v5, %v239_v6  ;;  %v343_v6 = vld [vmem:[%s33257_s1 + $0x990] sm:$0xff] }
  0xde   :  { %v26002_v32 = vpop.f32.mrb[0].mxu1  ;;  %5194 = vmatpush1.bf16.msra.mxu0 %v19740_v24  ;;  %v271_v24 = vld [vmem:[%s33257_s1 + $0x750] sm:$0xff] }
  0xdf   :  { %v26010_v13 = vpop.f32.mrb[1].mxu1  ;;  %20426 = vmatmul.mubr.msk.bf16.vlgmr.msra.gmra.mrb[8].mxu1 %vm4849_vm0, %v25218_v16  ;;  %5195 = vmatprep.subr.bf16.mxu0 %v19757_v27  ;;  %v152_v16 = vld [vmem:[%s33257_s1 + $0x398] sm:$0xff]  ;;  %v19869_v31 = vcombine.high %v263_v58, %v271_v24 }
  0xe0   :  { %5346 = vmatpush1.bf16.msra.mxu1 %v19646_v26  ;;  %v5014_v37 = vpop.f32.mrb[2].mxu1  ;;  %5377 = vmatprep.mubr.bf16.mxu1 %v25387_v61  ;;  %v19759_v23 = vcombine.high %v152_v16, %v160_v18  ;;  %v168_v26 = vld [vmem:[%s33257_s1 + $0x418] sm:$0xff]  ;;  %v19758_v30 = vcombine.low %v152_v16, %v160_v18  ;;  %v367_v16 = vld [vmem:[%s33257_s1 + $0xa50] sm:$0xff] }
  0xe1   :  { %v5015_v40 = vpop.f32.mrb[3].mxu1  ;;  %5347 = vmatprep.subr.bf16.mxu1 %v19663_v28  ;;  %v176_v27 = vld [vmem:[%s33257_s1 + $0x458] sm:$0xff]  ;;  %v19852_v28 = vcombine.low %v247_v14, %v255_v15  ;;  %v359_v15 = vld [vmem:[%s33257_s1 + $0xa10] sm:$0xff] }
  0xe2   :  { %5196 = vmatpush1.bf16.msra.mxu0 %v19756_v36  ;;  %v19775_v34 = vcombine.high %v168_v26, %v176_v27  ;;  %v287_v36 = vld [vmem:[%s33257_s1 + $0x7d0] sm:$0xff]  ;;  %v184_v37 = vld [vmem:[%s33257_s1 + $0x498] sm:$0xff]  ;;  %v19774_v40 = vcombine.low %v168_v26, %v176_v27 }
  0xe3   :  { %5197 = vmatprep.subr.bf16.mxu0 %v19773_v39  ;;  %v19868_v39 = vcombine.low %v263_v58, %v271_v24  ;;  %v264_v18 = vld [vmem:[%s33257_s1 + $0x718] sm:$0xff]  ;;  %v375_v24 = vld [vmem:[%s33257_s1 + $0xa90] sm:$0xff] }
  0xe4   :  { %5348 = vmatpush1.bf16.msra.mxu1 %v19662_v38  ;;  %v192_v38 = vld [vmem:[%s33257_s1 + $0x4d8] sm:$0xff]  ;;  %v383_v26 = vld [vmem:[%s33257_s1 + $0xad0] sm:$0xff] }
  0xe5   :  { %5349 = vmatprep.subr.bf16.mxu1 %v19679_v41  ;;  %v19885_v41 = vcombine.high %v279_v35, %v287_v36  ;;  %v19791_v42 = vcombine.high %v184_v37, %v192_v38  ;;  %v280_v27 = vld [vmem:[%s33257_s1 + $0x798] sm:$0xff] }
  0xe6   :  { %5198 = vmatpush1.bf16.msra.mxu0 %v19772_v47  ;;  %v208_v47 = vld [vmem:[%s33257_s1 + $0x558] sm:$0xff] }
  0xe7   :  { %5199 = vmatprep.subr.bf16.mxu0 %v19789_v49  ;;  %v19790_v49 = vcombine.low %v184_v37, %v192_v38  ;;  %v19807_v25 = vcombine.high %v200_v46, %v208_v47  ;;  %v399_v37 = vld [vmem:[%s33257_s1 + $0xb50] sm:$0xff]  ;;  %v296_v38 = vld [vmem:[%s33257_s1 + $0x818] sm:$0xff] }
  0xe8   :  { %5350 = vmatpush1.bf16.msra.mxu1 %v19678_v48  ;;  %v19884_v48 = vcombine.low %v279_v35, %v287_v36  ;;  %v391_v36 = vld [vmem:[%s33257_s1 + $0xb10] sm:$0xff] }
  0xe9   :  { %5351 = vmatprep.subr.bf16.mxu1 %v19695_v50  ;;  %v19901_v50 = vcombine.high %v295_v43, %v303_v45 }
  0xea   :  { %5200 = vmatpush1.bf16.msra.mxu0 %v19788_v54  ;;  %v224_v54 = vld [vmem:[%s33257_s1 + $0x5d8] sm:$0xff] }
  0xeb   :  { %5201 = vmatprep.subr.bf16.mxu0 %v19805_v56  ;;  %v19806_v56 = vcombine.low %v200_v46, %v208_v47  ;;  %v19823_v59 = vcombine.high %v216_v53, %v224_v54  ;;  %v415_v46 = vld [vmem:[%s33257_s1 + $0xbd0] sm:$0xff]  ;;  %v312_v47 = vld [vmem:[%s33257_s1 + $0x898] sm:$0xff] }
  0xec   :  { %5352 = vmatpush1.bf16.msra.mxu1 %v19694_v55  ;;  %v19900_v55 = vcombine.low %v295_v43, %v303_v45  ;;  %v407_v45 = vld [vmem:[%s33257_s1 + $0xb90] sm:$0xff] }
  0xed   :  { %5353 = vmatprep.subr.bf16.mxu1 %v19711_v57  ;;  %v19917_v57 = vcombine.high %v311_v51, %v319_v52 }
  0xee   :  { %5202 = vmatpush1.bf16.msra.mxu0 %v19804_v0  ;;  %v240_v0 = vld [vmem:[%s33257_s1 + $0x658] sm:$0xff] }
  0xef   :  { %5203 = vmatprep.subr.bf16.mxu0 %v19821_v2  ;;  %v19822_v2 = vcombine.low %v216_v53, %v224_v54  ;;  %v19839_v5 = vcombine.high %v232_v63, %v240_v0  ;;  %v431_v53 = vld [vmem:[%s33257_s1 + $0xc50] sm:$0xff]  ;;  %v328_v54 = vld [vmem:[%s33257_s1 + $0x918] sm:$0xff] }
  0xf0   :  { %5354 = vmatpush1.bf16.msra.mxu1 %v19710_v1  ;;  %v19916_v1 = vcombine.low %v311_v51, %v319_v52  ;;  %v423_v52 = vld [vmem:[%s33257_s1 + $0xc10] sm:$0xff] }
  0xf1   :  { %5355 = vmatprep.subr.bf16.mxu1 %v19727_v4  ;;  %v19933_v4 = vcombine.high %v327_v60, %v335_v62 }
  0xf2   :  { %5204 = vmatpush1.bf16.msra.mxu0 %v19820_v9  ;;  %v256_v9 = vld [vmem:[%s33257_s1 + $0x6d8] sm:$0xff] }
  0xf3   :  { %5205 = vmatprep.subr.bf16.mxu0 %v19837_v11  ;;  %v19838_v11 = vcombine.low %v232_v63, %v240_v0  ;;  %v19855_v14 = vcombine.high %v248_v8, %v256_v9  ;;  %v447_v63 = vld [vmem:[%s33257_s1 + $0xcd0] sm:$0xff]  ;;  %v344_v0 = vld [vmem:[%s33257_s1 + $0x998] sm:$0xff] }
  0xf4   :  { %5356 = vmatpush1.bf16.msra.mxu1 %v19726_v10  ;;  %v19932_v10 = vcombine.low %v327_v60, %v335_v62  ;;  %v439_v62 = vld [vmem:[%s33257_s1 + $0xc90] sm:$0xff] }
  0xf5   :  { %5357 = vmatprep.subr.bf16.mxu1 %v19743_v12  ;;  %v19949_v12 = vcombine.high %v343_v6, %v351_v7 }
  0xf6   :  { %5206 = vmatpush1.bf16.msra.mxu0 %v19836_v19  ;;  %v272_v19 = vld [vmem:[%s33257_s1 + $0x758] sm:$0xff] }
  0xf7   :  { %5207 = vmatprep.subr.bf16.mxu0 %v19853_v22  ;;  %v19854_v22 = vcombine.low %v248_v8, %v256_v9  ;;  %v19871_v58 = vcombine.high %v264_v18, %v272_v19  ;;  %v463_v8 = vld [vmem:[%s33257_s1 + $0xd50] sm:$0xff]  ;;  %v360_v9 = vld [vmem:[%s33257_s1 + $0xa18] sm:$0xff] }
  0xf8   :  { %5358 = vmatpush1.bf16.msra.mxu1 %v19742_v20  ;;  %v19948_v20 = vcombine.low %v343_v6, %v351_v7  ;;  %v455_v7 = vld [vmem:[%s33257_s1 + $0xd10] sm:$0xff] }
  0xf9   :  { %5359 = vmatprep.subr.bf16.mxu1 %v19759_v23  ;;  %v19965_v23 = vcombine.high %v359_v15, %v367_v16 }
  0xfa   :  { %5208 = vmatpush1.bf16.msra.mxu0 %v19852_v28  ;;  %v288_v28 = vld [vmem:[%s33257_s1 + $0x7d8] sm:$0xff] }
  0xfb   :  { %5209 = vmatprep.subr.bf16.mxu0 %v19869_v31  ;;  %v19870_v31 = vcombine.low %v264_v18, %v272_v19  ;;  %v19887_v35 = vcombine.high %v280_v27, %v288_v28  ;;  %v479_v18 = vld [vmem:[%s33257_s1 + $0xdd0] sm:$0xff]  ;;  %v376_v19 = vld [vmem:[%s33257_s1 + $0xa98] sm:$0xff] }
  0xfc   :  { %5360 = vmatpush1.bf16.msra.mxu1 %v19758_v30  ;;  %v19964_v30 = vcombine.low %v359_v15, %v367_v16  ;;  %v471_v16 = vld [vmem:[%s33257_s1 + $0xd90] sm:$0xff] }
  0xfd   :  { %5361 = vmatprep.subr.bf16.mxu1 %v19775_v34  ;;  %v19981_v34 = vcombine.high %v375_v24, %v383_v26 }
  0xfe   :  { %5210 = vmatpush1.bf16.msra.mxu0 %v19868_v39  ;;  %v304_v39 = vld [vmem:[%s33257_s1 + $0x858] sm:$0xff] }
  0xff   :  { %5211 = vmatprep.subr.bf16.mxu0 %v19885_v41  ;;  %v19886_v41 = vcombine.low %v280_v27, %v288_v28  ;;  %v19903_v43 = vcombine.high %v296_v38, %v304_v39  ;;  %v495_v27 = vld [vmem:[%s33257_s1 + $0xe50] sm:$0xff]  ;;  %v392_v28 = vld [vmem:[%s33257_s1 + $0xb18] sm:$0xff] }
 0x100   :  { %5362 = vmatpush1.bf16.msra.mxu1 %v19774_v40  ;;  %v19980_v40 = vcombine.low %v375_v24, %v383_v26  ;;  %v487_v26 = vld [vmem:[%s33257_s1 + $0xe10] sm:$0xff] }
 0x101   :  { %5363 = vmatprep.subr.bf16.mxu1 %v19791_v42  ;;  %v19997_v42 = vcombine.high %v391_v36, %v399_v37 }
 0x102   :  { %5212 = vmatpush1.bf16.msra.mxu0 %v19884_v48  ;;  %v320_v48 = vld [vmem:[%s33257_s1 + $0x8d8] sm:$0xff] }
 0x103   :  { %5222 = vmatprep.subr.bf16.mxu0 %v19901_v50  ;;  %v19902_v50 = vcombine.low %v296_v38, %v304_v39  ;;  %v19919_v51 = vcombine.high %v312_v47, %v320_v48  ;;  %v511_v38 = vld [vmem:[%s33257_s1 + $0xed0] sm:$0xff]  ;;  %v408_v39 = vld [vmem:[%s33257_s1 + $0xb98] sm:$0xff] }
 0x104   :  { %5364 = vmatpush1.bf16.msra.mxu1 %v19790_v49  ;;  %v19996_v49 = vcombine.low %v391_v36, %v399_v37  ;;  %v503_v37 = vld [vmem:[%s33257_s1 + $0xe90] sm:$0xff] }
 0x105   :  { %5365 = vmatprep.subr.bf16.mxu1 %v19807_v25  ;;  %5214 = vmatmul.mubr.bf16.vlgmr.msra.gmra.mrb[4].mxu0 %v25512_v17  ;;  %v20013_v25 = vcombine.high %v407_v45, %v415_v46 }
 0x106   :  { %5223 = vmatpush1.bf16.msra.mxu0 %v19900_v55  ;;  %5254 = vmatprep.mubr.bf16.mxu0 %v25522_v21  ;;  %v336_v55 = vld [vmem:[%s33257_s1 + $0x958] sm:$0xff] }
 0x107   :  { %5224 = vmatprep.subr.bf16.mxu0 %v19917_v57  ;;  %v19918_v57 = vcombine.low %v312_v47, %v320_v48  ;;  %v19935_v60 = vcombine.high %v328_v54, %v336_v55  ;;  %v527_v47 = vld [vmem:[%s33257_s1 + $0xf50] sm:$0xff]  ;;  %v424_v48 = vld [vmem:[%s33257_s1 + $0xc18] sm:$0xff] }
 0x108   :  { %5366 = vmatpush1.bf16.msra.mxu1 %v19806_v56  ;;  %v20012_v56 = vcombine.low %v407_v45, %v415_v46  ;;  %v519_v46 = vld [vmem:[%s33257_s1 + $0xf10] sm:$0xff] }
 0x109   :  { %5367 = vmatprep.subr.bf16.mxu1 %v19823_v59  ;;  %v20029_v59 = vcombine.high %v423_v52, %v431_v53 }
 0x10a   :  { %5225 = vmatpush1.bf16.msra.mxu0 %v19916_v1  ;;  %v352_v1 = vld [vmem:[%s33257_s1 + $0x9d8] sm:$0xff] }
 0x10b   :  { %5226 = vmatprep.subr.bf16.mxu0 %v19933_v4  ;;  %v19934_v4 = vcombine.low %v328_v54, %v336_v55  ;;  %v19951_v6 = vcombine.high %v344_v0, %v352_v1  ;;  %v543_v54 = vld [vmem:[%s33257_s1 + $0xfd0] sm:$0xff]  ;;  %v440_v55 = vld [vmem:[%s33257_s1 + $0xc98] sm:$0xff] }
 0x10c   :  { %5368 = vmatpush1.bf16.msra.mxu1 %v19822_v2  ;;  %v20028_v2 = vcombine.low %v423_v52, %v431_v53  ;;  %v535_v53 = vld [vmem:[%s33257_s1 + $0xf90] sm:$0xff] }
 0x10d   :  { %5369 = vmatprep.subr.bf16.mxu1 %v19839_v5  ;;  %v20045_v5 = vcombine.high %v439_v62, %v447_v63 }
 0x10e   :  { %5227 = vmatpush1.bf16.msra.mxu0 %v19932_v10  ;;  %v368_v10 = vld [vmem:[%s33257_s1 + $0xa58] sm:$0xff] }
 0x10f   :  { %5228 = vmatprep.subr.bf16.mxu0 %v19949_v12  ;;  %v19950_v12 = vcombine.low %v344_v0, %v352_v1  ;;  %v19967_v15 = vcombine.high %v360_v9, %v368_v10  ;;  %v559_v0 = vld [vmem:[%s33257_s1 + $0x1050] sm:$0xff]  ;;  %v456_v1 = vld [vmem:[%s33257_s1 + $0xd18] sm:$0xff] }
 0x110   :  { %5370 = vmatpush1.bf16.msra.mxu1 %v19838_v11  ;;  %v20044_v11 = vcombine.low %v439_v62, %v447_v63  ;;  %v551_v63 = vld [vmem:[%s33257_s1 + $0x1010] sm:$0xff] }
 0x111   :  { %5371 = vmatprep.subr.bf16.mxu1 %v19855_v14  ;;  %v20061_v14 = vcombine.high %v455_v7, %v463_v8 }
 0x112   :  { %5229 = vmatpush1.bf16.msra.mxu0 %v19948_v20  ;;  %v384_v20 = vld [vmem:[%s33257_s1 + $0xad8] sm:$0xff] }
 0x113   :  { %5230 = vmatprep.subr.bf16.mxu0 %v19965_v23  ;;  %v19966_v23 = vcombine.low %v360_v9, %v368_v10  ;;  %v19983_v24 = vcombine.high %v376_v19, %v384_v20  ;;  %v575_v9 = vld [vmem:[%s33257_s1 + $0x10d0] sm:$0xff]  ;;  %v472_v10 = vld [vmem:[%s33257_s1 + $0xd98] sm:$0xff] }
 0x114   :  { %5372 = vmatpush1.bf16.msra.mxu1 %v19854_v22  ;;  %v20060_v22 = vcombine.low %v455_v7, %v463_v8  ;;  %v567_v8 = vld [vmem:[%s33257_s1 + $0x1090] sm:$0xff] }
 0x115   :  { %5373 = vmatprep.subr.bf16.mxu1 %v19871_v58  ;;  %v20077_v58 = vcombine.high %v471_v16, %v479_v18 }
 0x116   :  { %5231 = vmatpush1.bf16.msra.mxu0 %v19964_v30  ;;  %v400_v30 = vld [vmem:[%s33257_s1 + $0xb58] sm:$0xff] }
 0x117   :  { %5232 = vmatprep.subr.bf16.mxu0 %v19981_v34  ;;  %v19982_v34 = vcombine.low %v376_v19, %v384_v20  ;;  %v19999_v36 = vcombine.high %v392_v28, %v400_v30  ;;  %v591_v19 = vld [vmem:[%s33257_s1 + $0x1150] sm:$0xff]  ;;  %v488_v20 = vld [vmem:[%s33257_s1 + $0xe18] sm:$0xff] }
 0x118   :  { %5374 = vmatpush1.bf16.msra.mxu1 %v19870_v31  ;;  %v20076_v31 = vcombine.low %v471_v16, %v479_v18  ;;  %v583_v18 = vld [vmem:[%s33257_s1 + $0x1110] sm:$0xff] }
 0x119   :  { %5375 = vmatprep.subr.bf16.mxu1 %v19887_v35  ;;  %v20093_v35 = vcombine.high %v487_v26, %v495_v27 }
 0x11a   :  { %5233 = vmatpush1.bf16.msra.mxu0 %v19980_v40  ;;  %v416_v40 = vld [vmem:[%s33257_s1 + $0xbd8] sm:$0xff] }
 0x11b   :  { %5234 = vmatprep.subr.bf16.mxu0 %v19997_v42  ;;  %v19998_v42 = vcombine.low %v392_v28, %v400_v30  ;;  %v20015_v45 = vcombine.high %v408_v39, %v416_v40  ;;  %v607_v28 = vld [vmem:[%s33257_s1 + $0x11d0] sm:$0xff]  ;;  %v504_v30 = vld [vmem:[%s33257_s1 + $0xe98] sm:$0xff] }
 0x11c   :  { %5376 = vmatpush1.bf16.msra.mxu1 %v19886_v41  ;;  %v20092_v41 = vcombine.low %v487_v26, %v495_v27  ;;  %v599_v27 = vld [vmem:[%s33257_s1 + $0x1190] sm:$0xff] }
 0x11d   :  { %5386 = vmatprep.subr.bf16.mxu1 %v19903_v43  ;;  %v20109_v43 = vcombine.high %v503_v37, %v511_v38 }
 0x11e   :  { %5235 = vmatpush1.bf16.msra.mxu0 %v19996_v49  ;;  %v432_v49 = vld [vmem:[%s33257_s1 + $0xc58] sm:$0xff] }
 0x11f   :  { %5378 = vmatmul.mubr.bf16.vlgmr.msra.gmra.mrb[12].mxu1 %v25512_v17  ;;  %5236 = vmatprep.subr.bf16.mxu0 %v20013_v25  ;;  %v20014_v25 = vcombine.low %v408_v39, %v416_v40  ;;  %v20031_v52 = vcombine.high %v424_v48, %v432_v49  ;;  %v623_v39 = vld [vmem:[%s33257_s1 + $0x1250] sm:$0xff]  ;;  %v520_v40 = vld [vmem:[%s33257_s1 + $0xf18] sm:$0xff] }
 0x120   :  { %5387 = vmatpush1.bf16.msra.mxu1 %v19902_v50  ;;  %5418 = vmatprep.mubr.bf16.mxu1 %v25522_v21  ;;  %v20108_v50 = vcombine.low %v503_v37, %v511_v38  ;;  %v615_v38 = vld [vmem:[%s33257_s1 + $0x1210] sm:$0xff] }
 0x121   :  { %5388 = vmatprep.subr.bf16.mxu1 %v19919_v51  ;;  %v20125_v51 = vcombine.high %v519_v46, %v527_v47 }
 0x122   :  { %5237 = vmatpush1.bf16.msra.mxu0 %v20012_v56  ;;  %v448_v56 = vld [vmem:[%s33257_s1 + $0xcd8] sm:$0xff] }
 0x123   :  { %5238 = vmatprep.subr.bf16.mxu0 %v20029_v59  ;;  %v20030_v59 = vcombine.low %v424_v48, %v432_v49  ;;  %v20047_v62 = vcombine.high %v440_v55, %v448_v56  ;;  %v639_v48 = vld [vmem:[%s33257_s1 + $0x12d0] sm:$0xff]  ;;  %v536_v49 = vld [vmem:[%s33257_s1 + $0xf98] sm:$0xff] }
 0x124   :  { %5389 = vmatpush1.bf16.msra.mxu1 %v19918_v57  ;;  %v20124_v57 = vcombine.low %v519_v46, %v527_v47  ;;  %v631_v47 = vld [vmem:[%s33257_s1 + $0x1290] sm:$0xff] }
 0x125   :  { %5390 = vmatprep.subr.bf16.mxu1 %v19935_v60  ;;  %v20141_v60 = vcombine.high %v535_v53, %v543_v54 }
 0x126   :  { %5239 = vmatpush1.bf16.msra.mxu0 %v20028_v2  ;;  %v464_v2 = vld [vmem:[%s33257_s1 + $0xd58] sm:$0xff] }
 0x127   :  { %5240 = vmatprep.subr.bf16.mxu0 %v20045_v5  ;;  %v20046_v5 = vcombine.low %v440_v55, %v448_v56  ;;  %v20063_v7 = vcombine.high %v456_v1, %v464_v2  ;;  %v655_v55 = vld [vmem:[%s33257_s1 + $0x1350] sm:$0xff]  ;;  %v552_v56 = vld [vmem:[%s33257_s1 + $0x1018] sm:$0xff] }
 0x128   :  { %5391 = vmatpush1.bf16.msra.mxu1 %v19934_v4  ;;  %v20140_v4 = vcombine.low %v535_v53, %v543_v54  ;;  %v647_v54 = vld [vmem:[%s33257_s1 + $0x1310] sm:$0xff] }
 0x129   :  { %5392 = vmatprep.subr.bf16.mxu1 %v19951_v6  ;;  %v20157_v6 = vcombine.high %v551_v63, %v559_v0 }
 0x12a   :  { %5241 = vmatpush1.bf16.msra.mxu0 %v20044_v11  ;;  %v480_v11 = vld [vmem:[%s33257_s1 + $0xdd8] sm:$0xff] }
 0x12b   :  { %5242 = vmatprep.subr.bf16.mxu0 %v20061_v14  ;;  %v20062_v14 = vcombine.low %v456_v1, %v464_v2  ;;  %v20079_v16 = vcombine.high %v472_v10, %v480_v11  ;;  %v671_v1 = vld [vmem:[%s33257_s1 + $0x13d0] sm:$0xff]  ;;  %v568_v2 = vld [vmem:[%s33257_s1 + $0x1098] sm:$0xff] }
 0x12c   :  { %5393 = vmatpush1.bf16.msra.mxu1 %v19950_v12  ;;  %v20156_v12 = vcombine.low %v551_v63, %v559_v0  ;;  %v663_v0 = vld [vmem:[%s33257_s1 + $0x1390] sm:$0xff] }
 0x12d   :  { %5394 = vmatprep.subr.bf16.mxu1 %v19967_v15  ;;  %v20173_v15 = vcombine.high %v567_v8, %v575_v9 }
 0x12e   :  { %5243 = vmatpush1.bf16.msra.mxu0 %v20060_v22  ;;  %v496_v22 = vld [vmem:[%s33257_s1 + $0xe58] sm:$0xff] }
 0x12f   :  { %5244 = vmatprep.subr.bf16.mxu0 %v20077_v58  ;;  %v20078_v58 = vcombine.low %v472_v10, %v480_v11  ;;  %v20095_v26 = vcombine.high %v488_v20, %v496_v22  ;;  %v687_v10 = vld [vmem:[%s33257_s1 + $0x1450] sm:$0xff]  ;;  %v584_v11 = vld [vmem:[%s33257_s1 + $0x1118] sm:$0xff] }
 0x130   :  { %5395 = vmatpush1.bf16.msra.mxu1 %v19966_v23  ;;  %v20172_v23 = vcombine.low %v567_v8, %v575_v9  ;;  %v679_v9 = vld [vmem:[%s33257_s1 + $0x1410] sm:$0xff] }
 0x131   :  { %5396 = vmatprep.subr.bf16.mxu1 %v19983_v24  ;;  %v20189_v24 = vcombine.high %v583_v18, %v591_v19 }
 0x132   :  { %5245 = vmatpush1.bf16.msra.mxu0 %v20076_v31  ;;  %v512_v31 = vld [vmem:[%s33257_s1 + $0xed8] sm:$0xff] }
 0x133   :  { %5246 = vmatprep.subr.bf16.mxu0 %v20093_v35  ;;  %v20094_v35 = vcombine.low %v488_v20, %v496_v22  ;;  %v20111_v37 = vcombine.high %v504_v30, %v512_v31  ;;  %v703_v20 = vld [vmem:[%s33257_s1 + $0x14d0] sm:$0xff]  ;;  %v600_v22 = vld [vmem:[%s33257_s1 + $0x1198] sm:$0xff] }
 0x134   :  { %5397 = vmatpush1.bf16.msra.mxu1 %v19982_v34  ;;  %v20188_v34 = vcombine.low %v583_v18, %v591_v19  ;;  %v695_v19 = vld [vmem:[%s33257_s1 + $0x1490] sm:$0xff] }
 0x135   :  { %5398 = vmatprep.subr.bf16.mxu1 %v19999_v36  ;;  %v20205_v36 = vcombine.high %v599_v27, %v607_v28 }
 0x136   :  { %5247 = vmatpush1.bf16.msra.mxu0 %v20092_v41  ;;  %v528_v41 = vld [vmem:[%s33257_s1 + $0xf58] sm:$0xff] }
 0x137   :  { %5248 = vmatprep.subr.bf16.mxu0 %v20109_v43  ;;  %v20110_v43 = vcombine.low %v504_v30, %v512_v31  ;;  %v20127_v46 = vcombine.high %v520_v40, %v528_v41  ;;  %v719_v30 = vld [vmem:[%s33257_s1 + $0x1550] sm:$0xff]  ;;  %v616_v31 = vld [vmem:[%s33257_s1 + $0x1218] sm:$0xff] }
 0x138   :  { %5399 = vmatpush1.bf16.msra.mxu1 %v19998_v42  ;;  %v20204_v42 = vcombine.low %v599_v27, %v607_v28  ;;  %v711_v28 = vld [vmem:[%s33257_s1 + $0x1510] sm:$0xff] }
 0x139   :  { %5400 = vmatprep.subr.bf16.mxu1 %v20015_v45  ;;  %v20221_v45 = vcombine.high %v615_v38, %v623_v39 }
 0x13a   :  { %5249 = vmatpush1.bf16.msra.mxu0 %v20108_v50  ;;  %v544_v50 = vld [vmem:[%s33257_s1 + $0xfd8] sm:$0xff] }
 0x13b   :  { %5250 = vmatprep.subr.bf16.mxu0 %v20125_v51  ;;  %v20126_v51 = vcombine.low %v520_v40, %v528_v41  ;;  %v20143_v53 = vcombine.high %v536_v49, %v544_v50  ;;  %v735_v40 = vld [vmem:[%s33257_s1 + $0x15d0] sm:$0xff]  ;;  %v632_v41 = vld [vmem:[%s33257_s1 + $0x1298] sm:$0xff] }
 0x13c   :  { %5401 = vmatpush1.bf16.msra.mxu1 %v20014_v25  ;;  %v20220_v25 = vcombine.low %v615_v38, %v623_v39  ;;  %v727_v39 = vld [vmem:[%s33257_s1 + $0x1590] sm:$0xff] }
 0x13d   :  { %5402 = vmatprep.subr.bf16.mxu1 %v20031_v52  ;;  %v20237_v52 = vcombine.high %v631_v47, %v639_v48 }
 0x13e   :  { %5251 = vmatpush1.bf16.msra.mxu0 %v20124_v57  ;;  %v560_v57 = vld [vmem:[%s33257_s1 + $0x1058] sm:$0xff] }
 0x13f   :  { %5252 = vmatprep.subr.bf16.mxu0 %v20141_v60  ;;  %v20142_v60 = vcombine.low %v536_v49, %v544_v50  ;;  %v20159_v63 = vcombine.high %v552_v56, %v560_v57  ;;  %v751_v49 = vld [vmem:[%s33257_s1 + $0x1650] sm:$0xff]  ;;  %v648_v50 = vld [vmem:[%s33257_s1 + $0x1318] sm:$0xff] }
 0x140   :  { %5403 = vmatpush1.bf16.msra.mxu1 %v20030_v59  ;;  %v20236_v59 = vcombine.low %v631_v47, %v639_v48  ;;  %v743_v48 = vld [vmem:[%s33257_s1 + $0x1610] sm:$0xff] }
 0x141   :  { %5404 = vmatprep.subr.bf16.mxu1 %v20047_v62  ;;  %v20253_v62 = vcombine.high %v647_v54, %v655_v55 }
 0x142   :  { %5253 = vmatpush1.bf16.msra.mxu0 %v20140_v4  ;;  %v576_v4 = vld [vmem:[%s33257_s1 + $0x10d8] sm:$0xff] }
 0x143   :  { %5263 = vmatprep.subr.bf16.mxu0 %v20157_v6  ;;  %v20158_v6 = vcombine.low %v552_v56, %v560_v57  ;;  %v20175_v8 = vcombine.high %v568_v2, %v576_v4  ;;  %v767_v56 = vld [vmem:[%s33257_s1 + $0x16d0] sm:$0xff]  ;;  %v664_v57 = vld [vmem:[%s33257_s1 + $0x1398] sm:$0xff] }
 0x144   :  { %5405 = vmatpush1.bf16.msra.mxu1 %v20046_v5  ;;  %v20252_v5 = vcombine.low %v647_v54, %v655_v55  ;;  %v759_v55 = vld [vmem:[%s33257_s1 + $0x1690] sm:$0xff] }
 0x145   :  { %5406 = vmatprep.subr.bf16.mxu1 %v20063_v7  ;;  %5255 = vmatmul.mubr.bf16.vlgmr.msra.gmra.mrb[4].mxu0 %v25721_v29  ;;  %v20269_v7 = vcombine.high %v663_v0, %v671_v1 }
 0x146   :  { %5264 = vmatpush1.bf16.msra.mxu0 %v20156_v12  ;;  %5295 = vmatprep.mubr.bf16.mxu0 %v25731_v33  ;;  %v592_v12 = vld [vmem:[%s33257_s1 + $0x1158] sm:$0xff] }
 0x147   :  { %5265 = vmatprep.subr.bf16.mxu0 %v20173_v15  ;;  %v20174_v15 = vcombine.low %v568_v2, %v576_v4  ;;  %v20191_v18 = vcombine.high %v584_v11, %v592_v12  ;;  %v783_v2 = vld [vmem:[%s33257_s1 + $0x1750] sm:$0xff]  ;;  %v680_v4 = vld [vmem:[%s33257_s1 + $0x1418] sm:$0xff] }
 0x148   :  { %5407 = vmatpush1.bf16.msra.mxu1 %v20062_v14  ;;  %v20268_v14 = vcombine.low %v663_v0, %v671_v1  ;;  %v775_v1 = vld [vmem:[%s33257_s1 + $0x1710] sm:$0xff] }
 0x149   :  { %5408 = vmatprep.subr.bf16.mxu1 %v20079_v16  ;;  %v20285_v16 = vcombine.high %v679_v9, %v687_v10 }
 0x14a   :  { %5266 = vmatpush1.bf16.msra.mxu0 %v20172_v23  ;;  %v608_v23 = vld [vmem:[%s33257_s1 + $0x11d8] sm:$0xff] }
 0x14b   :  { %5267 = vmatprep.subr.bf16.mxu0 %v20189_v24  ;;  %v20190_v24 = vcombine.low %v584_v11, %v592_v12  ;;  %v20207_v27 = vcombine.high %v600_v22, %v608_v23  ;;  %v799_v11 = vld [vmem:[%s33257_s1 + $0x17d0] sm:$0xff]  ;;  %v696_v12 = vld [vmem:[%s33257_s1 + $0x1498] sm:$0xff] }
 0x14c   :  { %5409 = vmatpush1.bf16.msra.mxu1 %v20078_v58  ;;  %v20284_v58 = vcombine.low %v679_v9, %v687_v10  ;;  %v791_v10 = vld [vmem:[%s33257_s1 + $0x1790] sm:$0xff] }
 0x14d   :  { %5410 = vmatprep.subr.bf16.mxu1 %v20095_v26  ;;  %v20301_v26 = vcombine.high %v695_v19, %v703_v20 }
 0x14e   :  { %5268 = vmatpush1.bf16.msra.mxu0 %v20188_v34  ;;  %v624_v34 = vld [vmem:[%s33257_s1 + $0x1258] sm:$0xff] }
 0x14f   :  { %5269 = vmatprep.subr.bf16.mxu0 %v20205_v36  ;;  %v20206_v36 = vcombine.low %v600_v22, %v608_v23  ;;  %v20223_v38 = vcombine.high %v616_v31, %v624_v34  ;;  %v49_v22 = vld [vmem:[%s33257_s1 + $0x60] sm:$0xff]  ;;  %v712_v23 = vld [vmem:[%s33257_s1 + $0x1518] sm:$0xff] }
 0x150   :  { %5411 = vmatpush1.bf16.msra.mxu1 %v20094_v35  ;;  %v20300_v35 = vcombine.low %v695_v19, %v703_v20  ;;  %v41_v20 = vld [vmem:[%s33257_s1 + $0x20] sm:$0xff] }
 0x151   :  { %5412 = vmatprep.subr.bf16.mxu1 %v20111_v37  ;;  %v20317_v37 = vcombine.high %v711_v28, %v719_v30 }
 0x152   :  { %5270 = vmatpush1.bf16.msra.mxu0 %v20204_v42  ;;  %v640_v42 = vld [vmem:[%s33257_s1 + $0x12d8] sm:$0xff] }
 0x153   :  { %5271 = vmatprep.subr.bf16.mxu0 %v20221_v45  ;;  %v20222_v45 = vcombine.low %v616_v31, %v624_v34  ;;  %v20239_v47 = vcombine.high %v632_v41, %v640_v42  ;;  %v65_v31 = vld [vmem:[%s33257_s1 + $0xe0] sm:$0xff]  ;;  %v728_v34 = vld [vmem:[%s33257_s1 + $0x1598] sm:$0xff] }
 0x154   :  { %5413 = vmatpush1.bf16.msra.mxu1 %v20110_v43  ;;  %v20316_v43 = vcombine.low %v711_v28, %v719_v30  ;;  %v57_v30 = vld [vmem:[%s33257_s1 + $0xa0] sm:$0xff] }
 0x155   :  { %5414 = vmatprep.subr.bf16.mxu1 %v20127_v46  ;;  %v20333_v46 = vcombine.high %v727_v39, %v735_v40 }
 0x156   :  { %5272 = vmatpush1.bf16.msra.mxu0 %v20220_v25  ;;  %v656_v25 = vld [vmem:[%s33257_s1 + $0x1358] sm:$0xff] }
 0x157   :  { %5273 = vmatprep.subr.bf16.mxu0 %v20237_v52  ;;  %v20238_v52 = vcombine.low %v632_v41, %v640_v42  ;;  %v20255_v54 = vcombine.high %v648_v50, %v656_v25  ;;  %v81_v41 = vld [vmem:[%s33257_s1 + $0x160] sm:$0xff]  ;;  %v744_v42 = vld [vmem:[%s33257_s1 + $0x1618] sm:$0xff] }
 0x158   :  { %5415 = vmatpush1.bf16.msra.mxu1 %v20126_v51  ;;  %v20332_v51 = vcombine.low %v727_v39, %v735_v40  ;;  %v73_v40 = vld [vmem:[%s33257_s1 + $0x120] sm:$0xff] }
 0x159   :  { %5416 = vmatprep.subr.bf16.mxu1 %v20143_v53  ;;  %v20349_v53 = vcombine.high %v743_v48, %v751_v49 }
 0x15a   :  { %5274 = vmatpush1.bf16.msra.mxu0 %v20236_v59  ;;  %v672_v59 = vld [vmem:[%s33257_s1 + $0x13d8] sm:$0xff] }
 0x15b   :  { %5275 = vmatprep.subr.bf16.mxu0 %v20253_v62  ;;  %v20254_v62 = vcombine.low %v648_v50, %v656_v25  ;;  %v20271_v0 = vcombine.high %v664_v57, %v672_v59  ;;  %v97_v50 = vld [vmem:[%s33257_s1 + $0x1e0] sm:$0xff]  ;;  %v760_v25 = vld [vmem:[%s33257_s1 + $0x1698] sm:$0xff] }
 0x15c   :  { %5417 = vmatpush1.bf16.msra.mxu1 %v20142_v60  ;;  %v20348_v60 = vcombine.low %v743_v48, %v751_v49  ;;  %v89_v49 = vld [vmem:[%s33257_s1 + $0x1a0] sm:$0xff] }
 0x15d   :  { %5427 = vmatprep.subr.bf16.mxu1 %v20159_v63  ;;  %v20365_v63 = vcombine.high %v759_v55, %v767_v56 }
 0x15e   :  { %5276 = vmatpush1.bf16.msra.mxu0 %v20252_v5  ;;  %v688_v5 = vld [vmem:[%s33257_s1 + $0x1458] sm:$0xff] }
 0x15f   :  { %5419 = vmatmul.mubr.bf16.vlgmr.msra.gmra.mrb[12].mxu1 %v25721_v29  ;;  %5277 = vmatprep.subr.bf16.mxu0 %v20269_v7  ;;  %v20270_v7 = vcombine.low %v664_v57, %v672_v59  ;;  %v20287_v9 = vcombine.high %v680_v4, %v688_v5  ;;  %v105_v57 = vld [vmem:[%s33257_s1 + $0x220] sm:$0xff] }
 0x160   :  { %5428 = vmatpush1.bf16.msra.mxu1 %v20158_v6  ;;  %5459 = vmatprep.mubr.bf16.mxu1 %v25731_v33  ;;  %v20364_v6 = vcombine.low %v759_v55, %v767_v56  ;;  %v19697_v55 = vcombine.high %v89_v49, %v97_v50  ;;  %v113_v59 = vld [vmem:[%s33257_s1 + $0x260] sm:$0xff] }
 0x161   :  { %5429 = vmatprep.subr.bf16.mxu1 %v20175_v8  ;;  %v20381_v8 = vcombine.high %v775_v1, %v783_v2 }
 0x162   :  { %5278 = vmatpush1.bf16.msra.mxu0 %v20268_v14  ;;  %v704_v14 = vld [vmem:[%s33257_s1 + $0x14d8] sm:$0xff] }
 0x163   :  { %5279 = vmatprep.subr.bf16.mxu0 %v20285_v16  ;;  %v20286_v16 = vcombine.low %v680_v4, %v688_v5  ;;  %v20303_v19 = vcombine.high %v696_v12, %v704_v14  ;;  %v121_v5 = vld [vmem:[%s33257_s1 + $0x2a0] sm:$0xff] }
 0x164   :  { %5430 = vmatpush1.bf16.msra.mxu1 %v20174_v15  ;;  %v20380_v15 = vcombine.low %v775_v1, %v783_v2  ;;  %v19713_v2 = vcombine.high %v105_v57, %v113_v59 }
 0x165   :  { %5431 = vmatprep.subr.bf16.mxu1 %v20191_v18  ;;  %v20397_v18 = vcombine.high %v791_v10, %v799_v11 }
 0x166   :  { %5280 = vmatpush1.bf16.msra.mxu0 %v20284_v58  ;;  %v720_v58 = vld [vmem:[%s33257_s1 + $0x1558] sm:$0xff] }
 0x167   :  { %5281 = vmatprep.subr.bf16.mxu0 %v20301_v26  ;;  %v20302_v26 = vcombine.low %v696_v12, %v704_v14  ;;  %v20319_v28 = vcombine.high %v712_v23, %v720_v58 }
 0x168   :  { %5432 = vmatpush1.bf16.msra.mxu1 %v20190_v24  ;;  %v20396_v24 = vcombine.low %v791_v10, %v799_v11  ;;  %v19712_v10 = vcombine.low %v105_v57, %v113_v59  ;;  %v821_v11 = vld [vmem:[%s33259_s2] sm:$0xff]  ;;  %v58_v57 = vld [vmem:[%s33257_s1 + $0xa8] sm:$0xff] }
 0x169   :  { %5433 = vmatprep.subr.bf16.mxu1 %v20207_v27  ;;  %v19649_v27 = vcombine.high %v41_v20, %v49_v22  ;;  %v66_v59 = vld [vmem:[%s33257_s1 + $0xe8] sm:$0xff] }
 0x16a   :  { %5282 = vmatpush1.bf16.msra.mxu0 %v20300_v35  ;;  %v736_v35 = vld [vmem:[%s33257_s1 + $0x15d8] sm:$0xff] }
 0x16b   :  { %5283 = vmatprep.subr.bf16.mxu0 %v20317_v37  ;;  %v20318_v37 = vcombine.low %v712_v23, %v720_v58  ;;  %v20335_v39 = vcombine.high %v728_v34, %v736_v35  ;;  %v816_v23 = vld [vmem:[%s33257_s1 + $0x1858] sm:$0xff] }
 0x16c   :  { %5434 = vmatpush1.bf16.msra.mxu1 %v20206_v36  ;;  %v19648_v36 = vcombine.low %v41_v20, %v49_v22  ;;  %v808_v22 = vld [vmem:[%s33257_s1 + $0x1818] sm:$0xff] }
 0x16d   :  { %5435 = vmatprep.subr.bf16.mxu1 %v20223_v38  ;;  %v19665_v38 = vcombine.high %v57_v30, %v65_v31 }
 0x16e   :  { %5284 = vmatpush1.bf16.msra.mxu0 %v20316_v43  ;;  %v752_v43 = vld [vmem:[%s33257_s1 + $0x1658] sm:$0xff] }
 0x16f   :  { %5285 = vmatprep.subr.bf16.mxu0 %v20333_v46  ;;  %v20334_v46 = vcombine.low %v728_v34, %v736_v35  ;;  %v20351_v48 = vcombine.high %v744_v42, %v752_v43  ;;  %v161_v34 = vld [vmem:[%s33257_s1 + $0x3e0] sm:$0xff] }
 0x170   :  { %5436 = vmatpush1.bf16.msra.mxu1 %v20222_v45  ;;  %v19664_v45 = vcombine.low %v57_v30, %v65_v31  ;;  %v20415_v30 = vcombine.high %v808_v22, %v816_v23  ;;  %v153_v31 = vld [vmem:[%s33257_s1 + $0x3a0] sm:$0xff] }
 0x171   :  { %5437 = vmatprep.subr.bf16.mxu1 %v20239_v47  ;;  %v19681_v47 = vcombine.high %v73_v40, %v81_v41 }
 0x172   :  { %5286 = vmatpush1.bf16.msra.mxu0 %v20332_v51  ;;  %v768_v51 = vld [vmem:[%s33257_s1 + $0x16d8] sm:$0xff] }
 0x173   :  { %5287 = vmatprep.subr.bf16.mxu0 %v20349_v53  ;;  %v19680_v53 = vcombine.low %v73_v40, %v81_v41  ;;  %v20367_v56 = vcombine.high %v760_v25, %v768_v51  ;;  %v20366_v1 = vcombine.low %v760_v25, %v768_v51  ;;  %v193_v51 = vld [vmem:[%s33257_s1 + $0x4e0] sm:$0xff] }
 0x174   :  { %5438 = vmatpush1.bf16.msra.mxu1 %v20238_v52  ;;  %v825_v52 = vlaneseq }
 0x175   :  { %5439 = vmatprep.subr.bf16.mxu1 %v20255_v54  ;;  %v20350_v54 = vcombine.low %v744_v42, %v752_v43 }
 0x176   :  { %5288 = vmatpush1.bf16.msra.mxu0 %v20348_v60  ;;  %v776_v60 = vld [vmem:[%s33257_s1 + $0x1718] sm:$0xff] }
 0x177   :  { %5289 = vmatprep.subr.bf16.mxu0 %v20365_v63  ;;  %v26553_v63 = vshrl.u32 %v825_v52, 7 }
 0x178   :  { %5440 = vmatpush1.bf16.msra.mxu1 %v20254_v62  ;;  %v784_v62 = vld [vmem:[%s33257_s1 + $0x1758] sm:$0xff] }
 0x179   :  { %5441 = vmatprep.subr.bf16.mxu1 %v20271_v0  ;;  %v19696_v0 = vcombine.low %v89_v49, %v97_v50  ;;  %v20383_v4 = vcombine.high %v776_v60, %v784_v62  ;;  %v26574_v12 = vsub.s32 1, %v26553_v63  ;;  %v20382_v14 = vcombine.low %v776_v60, %v784_v62  ;;  %v177_v49 = vld [vmem:[%s33257_s1 + $0x460] sm:$0xff] }
 0x17a   :  { %5290 = vmatpush1.bf16.msra.mxu0 %v20364_v6  ;;  %v129_v6 = vld [vmem:[%s33257_s1 + $0x2e0] sm:$0xff] }
 0x17b   :  { %5291 = vmatprep.subr.bf16.mxu0 %v20381_v8  ;;  %v792_v8 = vld [vmem:[%s33257_s1 + $0x1798] sm:$0xff]  ;;  %v832_v58 = vrot.slane %v821_v11, %v26574_v12 }
 0x17c   :  { %5442 = vmatpush1.bf16.msra.mxu1 %v20270_v7  ;;  %v26562_v7 = vsub.s32 0, %v26553_v63 }
 0x17d   :  { %5443 = vmatprep.subr.bf16.mxu1 %v20287_v9  ;;  %v800_v9 = vld [vmem:[%s33257_s1 + $0x17d8] sm:$0xff] }
 0x17e   :  { %5292 = vmatpush1.bf16.msra.mxu0 %v20380_v15  ;;  %v19729_v15 = vcombine.high %v121_v5, %v129_v6  ;;  %v828_v20 = vrot.slane %v821_v11, %v26562_v7 }
 0x17f   :  { %5293 = vmatprep.subr.bf16.mxu0 %v20397_v18  ;;  %v137_v18 = vld [vmem:[%s33257_s1 + $0x320] sm:$0xff] }
 0x180   :  { %5444 = vmatpush1.bf16.msra.mxu1 %v20286_v16  ;;  %v20399_v16 = vcombine.high %v792_v8, %v800_v9 }
 0x181   :  { %5445 = vmatprep.subr.bf16.mxu1 %v20303_v19  ;;  %v145_v19 = vld [vmem:[%s33257_s1 + $0x360] sm:$0xff] }
 0x182   :  { %5294 = vmatpush1.bf16.msra.mxu0 %v20396_v24  ;;  %v19728_v24 = vcombine.low %v121_v5, %v129_v6  ;;  %v19744_v41 = vcombine.low %v137_v18, %v145_v19  ;;  %v74_v6 = vld [vmem:[%s33257_s1 + $0x128] sm:$0xff] }
 0x183   :  { %5509 = vmatprep.subr.bf16.mxu0 %v19649_v27  ;;  %v19745_v27 = vcombine.high %v137_v18, %v145_v19 }
 0x184   :  { %5446 = vmatpush1.bf16.msra.mxu1 %v20302_v26  ;;  %v20398_v26 = vcombine.low %v792_v8, %v800_v9  ;;  %v82_v8 = vld [vmem:[%s33257_s1 + $0x168] sm:$0xff]  ;;  %v26651_v9 = vld [vmem:[%s33258_s0 + $0x18] ss:$0 sps:$4 sm:$0xff]  }
 0x185   :  { %5447 = vmatprep.subr.bf16.mxu1 %v20319_v28  ;;  %5296 = vmatmul.mubr.bf16.vlgmr.msra.gmra.mrb[4].mxu0 %v25925_v44  ;;  %v19683_v19 = vcombine.high %v74_v6, %v82_v8 }
 0x186   :  { %5510 = vmatpush1.bf16.msra.mxu0 %v19648_v36  ;;  %5541 = vmatprep.mubr.bf16.mxu0 %v25387_v61 }
 0x187   :  { %5511 = vmatprep.subr.bf16.mxu0 %v19665_v38  ;;  %v50_v38 = vld [vmem:[%s33257_s1 + $0x68] sm:$0xff] }
 0x188   :  { %5448 = vmatpush1.bf16.msra.mxu1 %v20318_v37  ;;  %v42_v37 = vld [vmem:[%s33257_s1 + $0x28] sm:$0xff] }
 0x189   :  { %5449 = vmatprep.subr.bf16.mxu1 %v20335_v39  ;;  %v19651_v50 = vcombine.high %v42_v37, %v50_v38  ;;  %v19650_v62 = vcombine.low %v42_v37, %v50_v38 }
 0x18a   :  { %5512 = vmatpush1.bf16.msra.mxu0 %v19664_v45  ;;  %v20414_v45 = vcombine.low %v808_v22, %v816_v23  ;;  %v241_v22 = vld [vmem:[%s33257_s1 + $0x660] sm:$0xff]  ;;  %v90_v23 = vld [vmem:[%s33257_s1 + $0x1a8] sm:$0xff] }
 0x18b   :  { %5513 = vmatprep.subr.bf16.mxu0 %v19681_v47 }
 0x18c   :  { %5450 = vmatpush1.bf16.msra.mxu1 %v20334_v46  ;;  %v19761_v46 = vcombine.high %v153_v31, %v161_v34 }
 0x18d   :  { %5451 = vmatprep.subr.bf16.mxu1 %v20351_v48  ;;  %v169_v48 = vld [vmem:[%s33257_s1 + $0x420] sm:$0xff] }
 0x18e   :  { %5514 = vmatpush1.bf16.msra.mxu0 %v19680_v53  ;;  %v19777_v25 = vcombine.high %v169_v48, %v177_v49  ;;  %v19776_v53 = vcombine.low %v169_v48, %v177_v49  ;;  %v273_v48 = vld [vmem:[%s33257_s1 + $0x760] sm:$0xff]  ;;  %v122_v49 = vld [vmem:[%s33257_s1 + $0x2a8] sm:$0xff] }
 0x18f   :  { %5515 = vmatprep.subr.bf16.mxu0 %v19697_v55  ;;  %v201_v55 = vld [vmem:[%s33257_s1 + $0x520] sm:$0xff] }
 0x190   :  { %5452 = vmatpush1.bf16.msra.mxu1 %v20350_v54 }
 0x191   :  { %5453 = vmatprep.subr.bf16.mxu1 %v20367_v56  ;;  %v209_v56 = vld [vmem:[%s33257_s1 + $0x560] sm:$0xff] }
 0x192   :  { %5516 = vmatpush1.bf16.msra.mxu0 %v19696_v0  ;;  %v19809_v0 = vcombine.high %v201_v55, %v209_v56  ;;  %v19808_v11 = vcombine.low %v201_v55, %v209_v56  ;;  %v138_v55 = vld [vmem:[%s33257_s1 + $0x328] sm:$0xff] }
 0x193   :  { %5517 = vmatprep.subr.bf16.mxu0 %v19713_v2  ;;  %v217_v2 = vld [vmem:[%s33257_s1 + $0x5a0] sm:$0xff]  ;;  %v146_v56 = vld [vmem:[%s33257_s1 + $0x368] sm:$0xff] }
 0x194   :  { %5454 = vmatpush1.bf16.msra.mxu1 %v20366_v1  ;;  %v19667_v1 = vcombine.high %v58_v57, %v66_v59 }
 0x195   :  { %5455 = vmatprep.subr.bf16.mxu1 %v20383_v4  ;;  %v225_v4 = vld [vmem:[%s33257_s1 + $0x5e0] sm:$0xff] }
 0x196   :  { %5518 = vmatpush1.bf16.msra.mxu0 %v19712_v10 }
 0x197   :  { %5519 = vmatprep.subr.bf16.mxu0 %v19729_v15  ;;  %v19666_v15 = vcombine.low %v58_v57, %v66_v59 }
 0x198   :  { %5456 = vmatpush1.bf16.msra.mxu1 %v20382_v14  ;;  %v4969_v28 = vpop.f32.mrb[0].mxu0 }
 0x199   :  { %5457 = vmatprep.subr.bf16.mxu1 %v20399_v16  ;;  %v22479_v35 = vadd.f32 %v4969_v28, %v828_v20  ;;  %v4971_v36 = vpop.f32.mrb[1].mxu0  ;;  %v19825_v16 = vcombine.high %v217_v2, %v225_v4  ;;  %v233_v20 = vld [vmem:[%s33257_s1 + $0x620] sm:$0xff] }
 0x19a   :  { %v22481_v39 = vadd.f32 %v4971_v36, %v832_v58  ;;  %v4973_v40 = vpop.f32.mrb[2].mxu0  ;;  %5520 = vmatpush1.bf16.msra.mxu0 %v19728_v24  ;;  %v98_v58 = vld [vmem:[%s33257_s1 + $0x1e8] sm:$0xff]  ;;  %v19824_v24 = vcombine.low %v217_v2, %v225_v4  ;;  %v19840_v38 = vcombine.low %v233_v20, %v241_v22 }
 0x19b   :  { %v26603_v42 = vadd.f32 %v22479_v35, %v26002_v32  ;;  %v4974_v43 = vpop.f32.mrb[3].mxu0  ;;  %5521 = vmatprep.subr.bf16.mxu0 %v19745_v27  ;;  %v19760_v32 = vcombine.low %v153_v31, %v161_v34  ;;  %v19841_v27 = vcombine.high %v233_v20, %v241_v22  ;;  %v19699_v28 = vcombine.high %v90_v23, %v98_v58  ;;  %v257_v31 = vld [vmem:[%s33257_s1 + $0x6e0] sm:$0xff]  ;;  %v106_v35 = vld [vmem:[%s33257_s1 + $0x228] sm:$0xff] }
 0x19c   :  { %5458 = vmatpush1.bf16.msra.mxu1 %v20398_v26  ;;  %v26606_v47 = vadd.f32 %v22481_v39, %v26010_v13  ;;  %v185_v13 = vld [vmem:[%s33257_s1 + $0x4a0] sm:$0xff]  ;;  %v19682_v26 = vcombine.low %v74_v6, %v82_v8  ;;  %v114_v36 = vld [vmem:[%s33257_s1 + $0x268] sm:$0xff]  ;;  %v19698_v40 = vcombine.low %v90_v23, %v98_v58  ;;  %v19746_v8 = vcombine.low %v138_v55, %v146_v56 }
 0x19d   :  { %5468 = vmatprep.subr.bf16.mxu1 %v20415_v30  ;;  %v19793_v54 = vcombine.high %v185_v13, %v193_v51  ;;  %v19792_v60 = vcombine.low %v185_v13, %v193_v51  ;;  %v249_v30 = vld [vmem:[%s33257_s1 + $0x6a0] sm:$0xff]  ;;  %v154_v2 = vld [vmem:[%s33257_s1 + $0x3a8] sm:$0xff] }
 0x19e   :  { %5522 = vmatpush1.bf16.msra.mxu0 %v19744_v41  ;;  %v19857_v41 = vcombine.high %v249_v30, %v257_v31  ;;  %v162_v4 = vld [vmem:[%s33257_s1 + $0x3e8] sm:$0xff] }
 0x19f   :  { %5460 = vmatmul.mubr.bf16.vlgmr.msra.gmra.mrb[12].mxu1 %v25925_v44  ;;  %5523 = vmatprep.subr.bf16.mxu0 %v19761_v46  ;;  %v265_v46 = vld [vmem:[%s33257_s1 + $0x720] sm:$0xff]  ;;  %v19762_v22 = vcombine.low %v154_v2, %v162_v4 }
 0x1a0   :  { %5469 = vmatpush1.bf16.msra.mxu1 %v20414_v45  ;;  %5500 = vmatprep.mubr.bf16.mxu1 %v25226_v3  ;;  %v19715_v45 = vcombine.high %v106_v35, %v114_v36  ;;  %v19873_v13 = vcombine.high %v265_v46, %v273_v48  ;;  %v19872_v57 = vcombine.low %v265_v46, %v273_v48 }
 0x1a1   :  { %5673 = vmatprep.subr.bf16.mxu1 %v19651_v50  ;;  %v130_v50 = vld [vmem:[%s33257_s1 + $0x2e8] sm:$0xff] }
 0x1a2   :  { %5524 = vmatpush1.bf16.msra.mxu0 %v19760_v32  ;;  %v19856_v32 = vcombine.low %v249_v30, %v257_v31  ;;  %v19731_v51 = vcombine.high %v122_v49, %v130_v50  ;;  %v19730_v59 = vcombine.low %v122_v49, %v130_v50  ;;  %v361_v49 = vld [vmem:[%s33257_s1 + $0xa20] sm:$0xff] }
 0x1a3   :  { %5525 = vmatprep.subr.bf16.mxu0 %v19777_v25  ;;  %v19714_v25 = vcombine.low %v106_v35, %v114_v36  ;;  %v369_v50 = vld [vmem:[%s33257_s1 + $0xa60] sm:$0xff] }
 0x1a6   :  { %5526 = vmatpush1.bf16.msra.mxu0 %v19776_v53  ;;  %v281_v53 = vld [vmem:[%s33257_s1 + $0x7a0] sm:$0xff] }
 0x1a7   :  { %5527 = vmatprep.subr.bf16.mxu0 %v19793_v54  ;;  %v289_v54 = vld [vmem:[%s33257_s1 + $0x7e0] sm:$0xff] }
 0x1a8   :  { %v19888_v6 = vcombine.low %v281_v53, %v289_v54 }
 0x1aa   :  { %v26640_v5 = vpop.f32.mrb[4].mxu1  ;;  %5528 = vmatpush1.bf16.msra.mxu0 %v19792_v60  ;;  %v19889_v60 = vcombine.high %v281_v53, %v289_v54  ;;  %v19969_v53 = vcombine.high %v361_v49, %v369_v50 }
 0x1ab   :  { %20427 = vmatmul.mubr.msk.bf16.vlgmr.msra.gmra.mrb[12].mxu1 %vm4849_vm0, %v26651_v9  ;;  %v26655_v10 = vpop.f32.mrb[5].mxu1  ;;  %5529 = vmatprep.subr.bf16.mxu0 %v19809_v0  ;;  %v297_v0 = vld [vmem:[%s33257_s1 + $0x820] sm:$0xff] }
 0x1ac   :  { %5674 = vmatpush1.bf16.msra.mxu1 %v19650_v62  ;;  %v5178_v14 = vpop.f32.mrb[6].mxu1  ;;  %5705 = vmatprep.mubr.bf16.mxu1 %v25387_v61  ;;  %v19747_v62 = vcombine.high %v138_v55, %v146_v56  ;;  %v377_v55 = vld [vmem:[%s33257_s1 + $0xaa0] sm:$0xff] }
 0x1ad   :  { %v5179_v18 = vpop.f32.mrb[7].mxu1  ;;  %5675 = vmatprep.subr.bf16.mxu1 %v19667_v1  ;;  %v305_v1 = vld [vmem:[%s33257_s1 + $0x860] sm:$0xff]  ;;  %v19763_v14 = vcombine.high %v154_v2, %v162_v4 }
 0x1ae   :  { %5530 = vmatpush1.bf16.msra.mxu0 %v19808_v11  ;;  %v19905_v11 = vcombine.high %v297_v0, %v305_v1  ;;  %v170_v18 = vld [vmem:[%s33257_s1 + $0x428] sm:$0xff]  ;;  %v19904_v20 = vcombine.low %v297_v0, %v305_v1  ;;  %v385_v56 = vld [vmem:[%s33257_s1 + $0xae0] sm:$0xff] }
 0x1af   :  { %5531 = vmatprep.subr.bf16.mxu0 %v19825_v16  ;;  %v321_v16 = vld [vmem:[%s33257_s1 + $0x8e0] sm:$0xff]  ;;  %v19985_v0 = vcombine.high %v377_v55, %v385_v56 }
 0x1b0   :  { %5676 = vmatpush1.bf16.msra.mxu1 %v19666_v15  ;;  %v313_v15 = vld [vmem:[%s33257_s1 + $0x8a0] sm:$0xff] }
 0x1b1   :  { %5677 = vmatprep.subr.bf16.mxu1 %v19683_v19  ;;  %v178_v19 = vld [vmem:[%s33257_s1 + $0x468] sm:$0xff]  ;;  %v19921_v23 = vcombine.high %v313_v15, %v321_v16  ;;  %v19920_v30 = vcombine.low %v313_v15, %v321_v16  ;;  %v393_v2 = vld [vmem:[%s33257_s1 + $0xb20] sm:$0xff] }
 0x1b2   :  { %v26676_v34 = vpop.f32.mrb[8].mxu1  ;;  %5532 = vmatpush1.bf16.msra.mxu0 %v19824_v24  ;;  %v19779_v58 = vcombine.high %v170_v18, %v178_v19  ;;  %v329_v24 = vld [vmem:[%s33257_s1 + $0x920] sm:$0xff]  ;;  %v19778_v31 = vcombine.low %v170_v18, %v178_v19 }
 0x1b3   :  { %v26684_v37 = vpop.f32.mrb[9].mxu1  ;;  %5533 = vmatprep.subr.bf16.mxu0 %v19841_v27  ;;  %v186_v27 = vld [vmem:[%s33257_s1 + $0x4a8] sm:$0xff]  ;;  %v401_v4 = vld [vmem:[%s33257_s1 + $0xb60] sm:$0xff] }
 0x1b4   :  { %5678 = vmatpush1.bf16.msra.mxu1 %v19682_v26  ;;  %v5342_v39 = vpop.f32.mrb[10].mxu1  ;;  %v337_v26 = vld [vmem:[%s33257_s1 + $0x960] sm:$0xff]  ;;  %v20001_v15 = vcombine.high %v393_v2, %v401_v4 }
 0x1b5   :  { %v5343_v43 = vpop.f32.mrb[11].mxu1  ;;  %5679 = vmatprep.subr.bf16.mxu1 %v19699_v28  ;;  %v194_v28 = vld [vmem:[%s33257_s1 + $0x4e8] sm:$0xff]  ;;  %v19937_v35 = vcombine.high %v329_v24, %v337_v26  ;;  %v353_v39 = vld [vmem:[%s33257_s1 + $0x9e0] sm:$0xff] }
 0x1b6   :  { %5534 = vmatpush1.bf16.msra.mxu0 %v19840_v38  ;;  %v19795_v36 = vcombine.high %v186_v27, %v194_v28  ;;  %v345_v38 = vld [vmem:[%s33257_s1 + $0x9a0] sm:$0xff]  ;;  %v19936_v43 = vcombine.low %v329_v24, %v337_v26 }
 0x1b7   :  { %5535 = vmatprep.subr.bf16.mxu0 %v19857_v41  ;;  %v210_v41 = vld [vmem:[%s33257_s1 + $0x568] sm:$0xff]  ;;  %v19953_v46 = vcombine.high %v345_v38, %v353_v39  ;;  %v409_v18 = vld [vmem:[%s33257_s1 + $0xba0] sm:$0xff] }
 0x1b8   :  { %5680 = vmatpush1.bf16.msra.mxu1 %v19698_v40  ;;  %v202_v40 = vld [vmem:[%s33257_s1 + $0x528] sm:$0xff]  ;;  %v417_v19 = vld [vmem:[%s33257_s1 + $0xbe0] sm:$0xff] }
 0x1b9   :  { %5681 = vmatprep.subr.bf16.mxu1 %v19715_v45  ;;  %v19794_v45 = vcombine.low %v186_v27, %v194_v28  ;;  %v19811_v48 = vcombine.high %v202_v40, %v210_v41  ;;  %v20017_v24 = vcombine.high %v409_v18, %v417_v19  ;;  %v425_v27 = vld [vmem:[%s33257_s1 + $0xc20] sm:$0xff] }
 0x1ba   :  { %5536 = vmatpush1.bf16.msra.mxu0 %v19856_v32  ;;  %v218_v32 = vld [vmem:[%s33257_s1 + $0x5a8] sm:$0xff]  ;;  %v433_v28 = vld [vmem:[%s33257_s1 + $0xc60] sm:$0xff] }
 0x1bb   :  { %5537 = vmatprep.subr.bf16.mxu0 %v19873_v13  ;;  %v19952_v13 = vcombine.low %v345_v38, %v353_v39  ;;  %v20033_v38 = vcombine.high %v425_v27, %v433_v28 }
 0x1bc   :  { %5682 = vmatpush1.bf16.msra.mxu1 %v19714_v25  ;;  %v226_v25 = vld [vmem:[%s33257_s1 + $0x5e8] sm:$0xff] }
 0x1bd   :  { %5683 = vmatprep.subr.bf16.mxu1 %v19731_v51  ;;  %v19810_v51 = vcombine.low %v202_v40, %v210_v41  ;;  %v19827_v54 = vcombine.high %v218_v32, %v226_v25  ;;  %v441_v40 = vld [vmem:[%s33257_s1 + $0xca0] sm:$0xff] }
 0x1be   :  { %5538 = vmatpush1.bf16.msra.mxu0 %v19872_v57  ;;  %v234_v57 = vld [vmem:[%s33257_s1 + $0x628] sm:$0xff]  ;;  %v449_v41 = vld [vmem:[%s33257_s1 + $0xce0] sm:$0xff] }
 0x1bf   :  { %5539 = vmatprep.subr.bf16.mxu0 %v19889_v60  ;;  %v19968_v60 = vcombine.low %v361_v49, %v369_v50  ;;  %v20049_v49 = vcombine.high %v441_v40, %v449_v41 }
 0x1c0   :  { %5684 = vmatpush1.bf16.msra.mxu1 %v19730_v59  ;;  %v242_v59 = vld [vmem:[%s33257_s1 + $0x668] sm:$0xff] }
 0x1c1   :  { %5685 = vmatprep.subr.bf16.mxu1 %v19747_v62  ;;  %v19826_v62 = vcombine.low %v218_v32, %v226_v25  ;;  %v19843_v1 = vcombine.high %v234_v57, %v242_v59  ;;  %v457_v32 = vld [vmem:[%s33257_s1 + $0xd20] sm:$0xff] }
 0x1c2   :  { %5540 = vmatpush1.bf16.msra.mxu0 %v19888_v6  ;;  %v250_v6 = vld [vmem:[%s33257_s1 + $0x6a8] sm:$0xff]  ;;  %v465_v25 = vld [vmem:[%s33257_s1 + $0xd60] sm:$0xff] }
 0x1c3   :  { %5550 = vmatprep.subr.bf16.mxu0 %v19905_v11  ;;  %v19984_v11 = vcombine.low %v377_v55, %v385_v56  ;;  %v20065_v55 = vcombine.high %v457_v32, %v465_v25 }
 0x1c4   :  { %5686 = vmatpush1.bf16.msra.mxu1 %v19746_v8  ;;  %v258_v8 = vld [vmem:[%s33257_s1 + $0x6e8] sm:$0xff] }
 0x1c5   :  { %5687 = vmatprep.subr.bf16.mxu1 %v19763_v14  ;;  %5542 = vmatmul.mubr.bf16.vlgmr.msra.gmra.mrb[8].mxu0 %v25512_v17  ;;  %v19842_v14 = vcombine.low %v234_v57, %v242_v59  ;;  %v19859_v16 = vcombine.high %v250_v6, %v258_v8  ;;  %v473_v57 = vld [vmem:[%s33257_s1 + $0xda0] sm:$0xff] }
 0x1c6   :  { %5551 = vmatpush1.bf16.msra.mxu0 %v19904_v20  ;;  %5582 = vmatprep.mubr.bf16.mxu0 %v25522_v21  ;;  %v266_v20 = vld [vmem:[%s33257_s1 + $0x728] sm:$0xff]  ;;  %v481_v59 = vld [vmem:[%s33257_s1 + $0xde0] sm:$0xff] }
 0x1c7   :  { %5552 = vmatprep.subr.bf16.mxu0 %v19921_v23  ;;  %v20000_v23 = vcombine.low %v393_v2, %v401_v4  ;;  %v20081_v2 = vcombine.high %v473_v57, %v481_v59 }
 0x1c8   :  { %5688 = vmatpush1.bf16.msra.mxu1 %v19762_v22  ;;  %v274_v22 = vld [vmem:[%s33257_s1 + $0x768] sm:$0xff] }
 0x1c9   :  { %5689 = vmatprep.subr.bf16.mxu1 %v19779_v58  ;;  %v19858_v58 = vcombine.low %v250_v6, %v258_v8  ;;  %v19875_v26 = vcombine.high %v266_v20, %v274_v22  ;;  %v489_v6 = vld [vmem:[%s33257_s1 + $0xe20] sm:$0xff] }
 0x1ca   :  { %5553 = vmatpush1.bf16.msra.mxu0 %v19920_v30  ;;  %v282_v30 = vld [vmem:[%s33257_s1 + $0x7a8] sm:$0xff]  ;;  %v497_v8 = vld [vmem:[%s33257_s1 + $0xe60] sm:$0xff] }
 0x1cb   :  { %5554 = vmatprep.subr.bf16.mxu0 %v19937_v35  ;;  %v20016_v35 = vcombine.low %v409_v18, %v417_v19  ;;  %v20097_v18 = vcombine.high %v489_v6, %v497_v8 }
 0x1cc   :  { %5690 = vmatpush1.bf16.msra.mxu1 %v19778_v31  ;;  %v290_v31 = vld [vmem:[%s33257_s1 + $0x7e8] sm:$0xff] }
 0x1cd   :  { %5691 = vmatprep.subr.bf16.mxu1 %v19795_v36  ;;  %v19874_v36 = vcombine.low %v266_v20, %v274_v22  ;;  %v19891_v39 = vcombine.high %v282_v30, %v290_v31  ;;  %v505_v20 = vld [vmem:[%s33257_s1 + $0xea0] sm:$0xff] }
 0x1ce   :  { %5555 = vmatpush1.bf16.msra.mxu0 %v19936_v43  ;;  %v298_v43 = vld [vmem:[%s33257_s1 + $0x828] sm:$0xff]  ;;  %v513_v22 = vld [vmem:[%s33257_s1 + $0xee0] sm:$0xff] }
 0x1cf   :  { %5556 = vmatprep.subr.bf16.mxu0 %v19953_v46  ;;  %v20032_v46 = vcombine.low %v425_v27, %v433_v28  ;;  %v20113_v27 = vcombine.high %v505_v20, %v513_v22 }
 0x1d0   :  { %5692 = vmatpush1.bf16.msra.mxu1 %v19794_v45  ;;  %v306_v45 = vld [vmem:[%s33257_s1 + $0x868] sm:$0xff] }
 0x1d1   :  { %5693 = vmatprep.subr.bf16.mxu1 %v19811_v48  ;;  %v19890_v48 = vcombine.low %v282_v30, %v290_v31  ;;  %v19907_v50 = vcombine.high %v298_v43, %v306_v45  ;;  %v521_v30 = vld [vmem:[%s33257_s1 + $0xf20] sm:$0xff] }
 0x1d2   :  { %5557 = vmatpush1.bf16.msra.mxu0 %v19952_v13  ;;  %v314_v13 = vld [vmem:[%s33257_s1 + $0x8a8] sm:$0xff]  ;;  %v529_v31 = vld [vmem:[%s33257_s1 + $0xf60] sm:$0xff] }
 0x1d3   :  { %5558 = vmatprep.subr.bf16.mxu0 %v19969_v53  ;;  %v20048_v53 = vcombine.low %v441_v40, %v449_v41  ;;  %v20129_v40 = vcombine.high %v521_v30, %v529_v31 }
 0x1d4   :  { %5694 = vmatpush1.bf16.msra.mxu1 %v19810_v51  ;;  %v322_v51 = vld [vmem:[%s33257_s1 + $0x8e8] sm:$0xff] }
 0x1d5   :  { %5695 = vmatprep.subr.bf16.mxu1 %v19827_v54  ;;  %v19906_v54 = vcombine.low %v298_v43, %v306_v45  ;;  %v19923_v56 = vcombine.high %v314_v13, %v322_v51  ;;  %v537_v43 = vld [vmem:[%s33257_s1 + $0xfa0] sm:$0xff] }
 0x1d6   :  { %5559 = vmatpush1.bf16.msra.mxu0 %v19968_v60  ;;  %v330_v60 = vld [vmem:[%s33257_s1 + $0x928] sm:$0xff]  ;;  %v545_v45 = vld [vmem:[%s33257_s1 + $0xfe0] sm:$0xff] }
 0x1d7   :  { %5560 = vmatprep.subr.bf16.mxu0 %v19985_v0  ;;  %v20064_v0 = vcombine.low %v457_v32, %v465_v25  ;;  %v20145_v32 = vcombine.high %v537_v43, %v545_v45 }
 0x1d8   :  { %5696 = vmatpush1.bf16.msra.mxu1 %v19826_v62  ;;  %v338_v62 = vld [vmem:[%s33257_s1 + $0x968] sm:$0xff] }
 0x1d9   :  { %5697 = vmatprep.subr.bf16.mxu1 %v19843_v1  ;;  %v19922_v1 = vcombine.low %v314_v13, %v322_v51  ;;  %v19939_v4 = vcombine.high %v330_v60, %v338_v62  ;;  %v553_v13 = vld [vmem:[%s33257_s1 + $0x1020] sm:$0xff] }
 0x1da   :  { %5561 = vmatpush1.bf16.msra.mxu0 %v19984_v11  ;;  %v346_v11 = vld [vmem:[%s33257_s1 + $0x9a8] sm:$0xff]  ;;  %v561_v51 = vld [vmem:[%s33257_s1 + $0x1060] sm:$0xff] }
 0x1db   :  { %5562 = vmatprep.subr.bf16.mxu0 %v20001_v15  ;;  %v20080_v15 = vcombine.low %v473_v57, %v481_v59  ;;  %v20161_v57 = vcombine.high %v553_v13, %v561_v51 }
 0x1dc   :  { %5698 = vmatpush1.bf16.msra.mxu1 %v19842_v14  ;;  %v354_v14 = vld [vmem:[%s33257_s1 + $0x9e8] sm:$0xff] }
 0x1dd   :  { %5699 = vmatprep.subr.bf16.mxu1 %v19859_v16  ;;  %v19938_v16 = vcombine.low %v330_v60, %v338_v62  ;;  %v19955_v19 = vcombine.high %v346_v11, %v354_v14  ;;  %v569_v60 = vld [vmem:[%s33257_s1 + $0x10a0] sm:$0xff] }
 0x1de   :  { %5563 = vmatpush1.bf16.msra.mxu0 %v20000_v23  ;;  %v362_v23 = vld [vmem:[%s33257_s1 + $0xa28] sm:$0xff]  ;;  %v577_v62 = vld [vmem:[%s33257_s1 + $0x10e0] sm:$0xff] }
 0x1df   :  { %5564 = vmatprep.subr.bf16.mxu0 %v20017_v24  ;;  %v20096_v24 = vcombine.low %v489_v6, %v497_v8  ;;  %v20177_v6 = vcombine.high %v569_v60, %v577_v62 }
 0x1e0   :  { %5700 = vmatpush1.bf16.msra.mxu1 %v19858_v58  ;;  %v370_v58 = vld [vmem:[%s33257_s1 + $0xa68] sm:$0xff] }
 0x1e1   :  { %5701 = vmatprep.subr.bf16.mxu1 %v19875_v26  ;;  %v19954_v26 = vcombine.low %v346_v11, %v354_v14  ;;  %v19971_v28 = vcombine.high %v362_v23, %v370_v58  ;;  %v585_v11 = vld [vmem:[%s33257_s1 + $0x1120] sm:$0xff] }
 0x1e2   :  { %5565 = vmatpush1.bf16.msra.mxu0 %v20016_v35  ;;  %v378_v35 = vld [vmem:[%s33257_s1 + $0xaa8] sm:$0xff]  ;;  %v593_v14 = vld [vmem:[%s33257_s1 + $0x1160] sm:$0xff] }
 0x1e3   :  { %5566 = vmatprep.subr.bf16.mxu0 %v20033_v38  ;;  %v20112_v38 = vcombine.low %v505_v20, %v513_v22  ;;  %v20193_v20 = vcombine.high %v585_v11, %v593_v14 }
 0x1e4   :  { %5702 = vmatpush1.bf16.msra.mxu1 %v19874_v36  ;;  %v386_v36 = vld [vmem:[%s33257_s1 + $0xae8] sm:$0xff] }
 0x1e5   :  { %5703 = vmatprep.subr.bf16.mxu1 %v19891_v39  ;;  %v19970_v39 = vcombine.low %v362_v23, %v370_v58  ;;  %v19987_v41 = vcombine.high %v378_v35, %v386_v36  ;;  %v601_v23 = vld [vmem:[%s33257_s1 + $0x11a0] sm:$0xff] }
 0x1e6   :  { %5567 = vmatpush1.bf16.msra.mxu0 %v20032_v46  ;;  %v394_v46 = vld [vmem:[%s33257_s1 + $0xb28] sm:$0xff]  ;;  %v609_v58 = vld [vmem:[%s33257_s1 + $0x11e0] sm:$0xff] }
 0x1e7   :  { %5568 = vmatprep.subr.bf16.mxu0 %v20049_v49  ;;  %v20128_v49 = vcombine.low %v521_v30, %v529_v31  ;;  %v20209_v30 = vcombine.high %v601_v23, %v609_v58 }
 0x1e8   :  { %5704 = vmatpush1.bf16.msra.mxu1 %v19890_v48  ;;  %v402_v48 = vld [vmem:[%s33257_s1 + $0xb68] sm:$0xff] }
 0x1e9   :  { %5714 = vmatprep.subr.bf16.mxu1 %v19907_v50  ;;  %v19986_v50 = vcombine.low %v378_v35, %v386_v36  ;;  %v20003_v25 = vcombine.high %v394_v46, %v402_v48  ;;  %v617_v35 = vld [vmem:[%s33257_s1 + $0x1220] sm:$0xff] }
 0x1ea   :  { %5569 = vmatpush1.bf16.msra.mxu0 %v20048_v53  ;;  %v410_v53 = vld [vmem:[%s33257_s1 + $0xba8] sm:$0xff]  ;;  %v625_v36 = vld [vmem:[%s33257_s1 + $0x1260] sm:$0xff] }
 0x1eb   :  { %5706 = vmatmul.mubr.bf16.vlgmr.msra.gmra.mrb[16].mxu1 %v25512_v17  ;;  %5570 = vmatprep.subr.bf16.mxu0 %v20065_v55  ;;  %v20144_v55 = vcombine.low %v537_v43, %v545_v45  ;;  %v20225_v43 = vcombine.high %v617_v35, %v625_v36 }
 0x1ec   :  { %5715 = vmatpush1.bf16.msra.mxu1 %v19906_v54  ;;  %5746 = vmatprep.mubr.bf16.mxu1 %v25522_v21  ;;  %v418_v54 = vld [vmem:[%s33257_s1 + $0xbe8] sm:$0xff] }
 0x1ed   :  { %5716 = vmatprep.subr.bf16.mxu1 %v19923_v56  ;;  %v20002_v56 = vcombine.low %v394_v46, %v402_v48  ;;  %v20019_v59 = vcombine.high %v410_v53, %v418_v54  ;;  %v633_v46 = vld [vmem:[%s33257_s1 + $0x12a0] sm:$0xff] }
 0x1ee   :  { %5571 = vmatpush1.bf16.msra.mxu0 %v20064_v0  ;;  %v426_v0 = vld [vmem:[%s33257_s1 + $0xc28] sm:$0xff]  ;;  %v641_v48 = vld [vmem:[%s33257_s1 + $0x12e0] sm:$0xff] }
 0x1ef   :  { %5572 = vmatprep.subr.bf16.mxu0 %v20081_v2  ;;  %v20160_v2 = vcombine.low %v553_v13, %v561_v51  ;;  %v20241_v13 = vcombine.high %v633_v46, %v641_v48 }
 0x1f0   :  { %5717 = vmatpush1.bf16.msra.mxu1 %v19922_v1  ;;  %v434_v1 = vld [vmem:[%s33257_s1 + $0xc68] sm:$0xff] }
 0x1f1   :  { %5718 = vmatprep.subr.bf16.mxu1 %v19939_v4  ;;  %v20018_v4 = vcombine.low %v410_v53, %v418_v54  ;;  %v20035_v8 = vcombine.high %v426_v0, %v434_v1  ;;  %v649_v53 = vld [vmem:[%s33257_s1 + $0x1320] sm:$0xff] }
 0x1f2   :  { %5573 = vmatpush1.bf16.msra.mxu0 %v20080_v15  ;;  %v442_v15 = vld [vmem:[%s33257_s1 + $0xca8] sm:$0xff]  ;;  %v657_v54 = vld [vmem:[%s33257_s1 + $0x1360] sm:$0xff] }
 0x1f3   :  { %5574 = vmatprep.subr.bf16.mxu0 %v20097_v18  ;;  %v20176_v18 = vcombine.low %v569_v60, %v577_v62  ;;  %v20257_v60 = vcombine.high %v649_v53, %v657_v54 }
 0x1f4   :  { %5719 = vmatpush1.bf16.msra.mxu1 %v19938_v16  ;;  %v450_v16 = vld [vmem:[%s33257_s1 + $0xce8] sm:$0xff] }
 0x1f5   :  { %5720 = vmatprep.subr.bf16.mxu1 %v19955_v19  ;;  %v20034_v19 = vcombine.low %v426_v0, %v434_v1  ;;  %v20051_v22 = vcombine.high %v442_v15, %v450_v16  ;;  %v665_v0 = vld [vmem:[%s33257_s1 + $0x13a0] sm:$0xff] }
 0x1f6   :  { %5575 = vmatpush1.bf16.msra.mxu0 %v20096_v24  ;;  %v458_v24 = vld [vmem:[%s33257_s1 + $0xd28] sm:$0xff]  ;;  %v673_v1 = vld [vmem:[%s33257_s1 + $0x13e0] sm:$0xff] }
 0x1f7   :  { %5576 = vmatprep.subr.bf16.mxu0 %v20113_v27  ;;  %v20192_v27 = vcombine.low %v585_v11, %v593_v14  ;;  %v20273_v11 = vcombine.high %v665_v0, %v673_v1 }
 0x1f8   :  { %5721 = vmatpush1.bf16.msra.mxu1 %v19954_v26  ;;  %v466_v26 = vld [vmem:[%s33257_s1 + $0xd68] sm:$0xff] }
 0x1f9   :  { %5722 = vmatprep.subr.bf16.mxu1 %v19971_v28  ;;  %v20050_v28 = vcombine.low %v442_v15, %v450_v16  ;;  %v20067_v31 = vcombine.high %v458_v24, %v466_v26  ;;  %v681_v15 = vld [vmem:[%s33257_s1 + $0x1420] sm:$0xff] }
 0x1fa   :  { %5577 = vmatpush1.bf16.msra.mxu0 %v20112_v38  ;;  %v474_v38 = vld [vmem:[%s33257_s1 + $0xda8] sm:$0xff]  ;;  %v689_v16 = vld [vmem:[%s33257_s1 + $0x1460] sm:$0xff] }
 0x1fb   :  { %5578 = vmatprep.subr.bf16.mxu0 %v20129_v40  ;;  %v20208_v40 = vcombine.low %v601_v23, %v609_v58  ;;  %v20289_v23 = vcombine.high %v681_v15, %v689_v16 }
 0x1fc   :  { %5723 = vmatpush1.bf16.msra.mxu1 %v19970_v39  ;;  %v482_v39 = vld [vmem:[%s33257_s1 + $0xde8] sm:$0xff] }
 0x1fd   :  { %5724 = vmatprep.subr.bf16.mxu1 %v19987_v41  ;;  %v20066_v41 = vcombine.low %v458_v24, %v466_v26  ;;  %v20083_v45 = vcombine.high %v474_v38, %v482_v39  ;;  %v697_v24 = vld [vmem:[%s33257_s1 + $0x14a0] sm:$0xff] }
 0x1fe   :  { %5579 = vmatpush1.bf16.msra.mxu0 %v20128_v49  ;;  %v490_v49 = vld [vmem:[%s33257_s1 + $0xe28] sm:$0xff]  ;;  %v705_v26 = vld [vmem:[%s33257_s1 + $0x14e0] sm:$0xff] }
 0x1ff   :  { %5580 = vmatprep.subr.bf16.mxu0 %v20145_v32  ;;  %v20224_v32 = vcombine.low %v617_v35, %v625_v36  ;;  %v20305_v35 = vcombine.high %v697_v24, %v705_v26 }
 0x200   :  { %5725 = vmatpush1.bf16.msra.mxu1 %v19986_v50  ;;  %v498_v50 = vld [vmem:[%s33257_s1 + $0xe68] sm:$0xff] }
 0x201   :  { %5726 = vmatprep.subr.bf16.mxu1 %v20003_v25  ;;  %v20082_v25 = vcombine.low %v474_v38, %v482_v39  ;;  %v20099_v51 = vcombine.high %v490_v49, %v498_v50  ;;  %v713_v38 = vld [vmem:[%s33257_s1 + $0x1520] sm:$0xff] }
 0x202   :  { %5581 = vmatpush1.bf16.msra.mxu0 %v20144_v55  ;;  %v506_v55 = vld [vmem:[%s33257_s1 + $0xea8] sm:$0xff]  ;;  %v721_v39 = vld [vmem:[%s33257_s1 + $0x1560] sm:$0xff] }
 0x203   :  { %5591 = vmatprep.subr.bf16.mxu0 %v20161_v57  ;;  %v20240_v57 = vcombine.low %v633_v46, %v641_v48  ;;  %v20321_v46 = vcombine.high %v713_v38, %v721_v39 }
 0x204   :  { %5727 = vmatpush1.bf16.msra.mxu1 %v20002_v56  ;;  %v514_v56 = vld [vmem:[%s33257_s1 + $0xee8] sm:$0xff] }
 0x205   :  { %5728 = vmatprep.subr.bf16.mxu1 %v20019_v59  ;;  %5583 = vmatmul.mubr.bf16.vlgmr.msra.gmra.mrb[8].mxu0 %v25721_v29  ;;  %v20098_v59 = vcombine.low %v490_v49, %v498_v50  ;;  %v20115_v62 = vcombine.high %v506_v55, %v514_v56  ;;  %v729_v49 = vld [vmem:[%s33257_s1 + $0x15a0] sm:$0xff] }
 0x206   :  { %5592 = vmatpush1.bf16.msra.mxu0 %v20160_v2  ;;  %5623 = vmatprep.mubr.bf16.mxu0 %v25731_v33  ;;  %v522_v2 = vld [vmem:[%s33257_s1 + $0xf28] sm:$0xff]  ;;  %v737_v50 = vld [vmem:[%s33257_s1 + $0x15e0] sm:$0xff] }
 0x207   :  { %5593 = vmatprep.subr.bf16.mxu0 %v20177_v6  ;;  %v20256_v6 = vcombine.low %v649_v53, %v657_v54  ;;  %v20337_v53 = vcombine.high %v729_v49, %v737_v50 }
 0x208   :  { %5729 = vmatpush1.bf16.msra.mxu1 %v20018_v4  ;;  %v530_v4 = vld [vmem:[%s33257_s1 + $0xf68] sm:$0xff] }
 0x209   :  { %5730 = vmatprep.subr.bf16.mxu1 %v20035_v8  ;;  %v20114_v8 = vcombine.low %v506_v55, %v514_v56  ;;  %v20131_v14 = vcombine.high %v522_v2, %v530_v4  ;;  %v745_v55 = vld [vmem:[%s33257_s1 + $0x1620] sm:$0xff] }
 0x20a   :  { %5594 = vmatpush1.bf16.msra.mxu0 %v20176_v18  ;;  %v538_v18 = vld [vmem:[%s33257_s1 + $0xfa8] sm:$0xff]  ;;  %v753_v56 = vld [vmem:[%s33257_s1 + $0x1660] sm:$0xff] }
 0x20b   :  { %5595 = vmatprep.subr.bf16.mxu0 %v20193_v20  ;;  %v20272_v20 = vcombine.low %v665_v0, %v673_v1  ;;  %v20353_v0 = vcombine.high %v745_v55, %v753_v56 }
 0x20c   :  { %5731 = vmatpush1.bf16.msra.mxu1 %v20034_v19  ;;  %v546_v19 = vld [vmem:[%s33257_s1 + $0xfe8] sm:$0xff] }
 0x20d   :  { %5732 = vmatprep.subr.bf16.mxu1 %v20051_v22  ;;  %v20130_v22 = vcombine.low %v522_v2, %v530_v4  ;;  %v20147_v58 = vcombine.high %v538_v18, %v546_v19  ;;  %v761_v2 = vld [vmem:[%s33257_s1 + $0x16a0] sm:$0xff] }
 0x20e   :  { %5596 = vmatpush1.bf16.msra.mxu0 %v20192_v27  ;;  %v554_v27 = vld [vmem:[%s33257_s1 + $0x1028] sm:$0xff]  ;;  %v769_v4 = vld [vmem:[%s33257_s1 + $0x16e0] sm:$0xff] }
 0x20f   :  { %5597 = vmatprep.subr.bf16.mxu0 %v20209_v30  ;;  %v20288_v30 = vcombine.low %v681_v15, %v689_v16  ;;  %v20369_v15 = vcombine.high %v761_v2, %v769_v4 }
 0x210   :  { %5733 = vmatpush1.bf16.msra.mxu1 %v20050_v28  ;;  %v562_v28 = vld [vmem:[%s33257_s1 + $0x1068] sm:$0xff] }
 0x211   :  { %5734 = vmatprep.subr.bf16.mxu1 %v20067_v31  ;;  %v20146_v31 = vcombine.low %v538_v18, %v546_v19  ;;  %v20163_v36 = vcombine.high %v554_v27, %v562_v28  ;;  %v777_v18 = vld [vmem:[%s33257_s1 + $0x1720] sm:$0xff] }
 0x212   :  { %5598 = vmatpush1.bf16.msra.mxu0 %v20208_v40  ;;  %v570_v40 = vld [vmem:[%s33257_s1 + $0x10a8] sm:$0xff]  ;;  %v785_v19 = vld [vmem:[%s33257_s1 + $0x1760] sm:$0xff] }
 0x213   :  { %5599 = vmatprep.subr.bf16.mxu0 %v20225_v43  ;;  %v20304_v43 = vcombine.low %v697_v24, %v705_v26  ;;  %v20385_v24 = vcombine.high %v777_v18, %v785_v19 }
 0x214   :  { %5735 = vmatpush1.bf16.msra.mxu1 %v20066_v41  ;;  %v578_v41 = vld [vmem:[%s33257_s1 + $0x10e8] sm:$0xff] }
 0x215   :  { %5736 = vmatprep.subr.bf16.mxu1 %v20083_v45  ;;  %v20162_v45 = vcombine.low %v554_v27, %v562_v28  ;;  %v20179_v48 = vcombine.high %v570_v40, %v578_v41  ;;  %v793_v27 = vld [vmem:[%s33257_s1 + $0x17a0] sm:$0xff] }
 0x216   :  { %5600 = vmatpush1.bf16.msra.mxu0 %v20224_v32  ;;  %v586_v32 = vld [vmem:[%s33257_s1 + $0x1128] sm:$0xff]  ;;  %v801_v28 = vld [vmem:[%s33257_s1 + $0x17e0] sm:$0xff] }
 0x217   :  { %5601 = vmatprep.subr.bf16.mxu0 %v20241_v13  ;;  %v20320_v13 = vcombine.low %v713_v38, %v721_v39  ;;  %v20401_v38 = vcombine.high %v793_v27, %v801_v28 }
 0x218   :  { %5737 = vmatpush1.bf16.msra.mxu1 %v20082_v25  ;;  %v594_v25 = vld [vmem:[%s33257_s1 + $0x1168] sm:$0xff] }
 0x219   :  { %5738 = vmatprep.subr.bf16.mxu1 %v20099_v51  ;;  %v20178_v51 = vcombine.low %v570_v40, %v578_v41  ;;  %v20195_v54 = vcombine.high %v586_v32, %v594_v25  ;;  %v809_v40 = vld [vmem:[%s33257_s1 + $0x1820] sm:$0xff] }
 0x21a   :  { %5602 = vmatpush1.bf16.msra.mxu0 %v20240_v57  ;;  %v602_v57 = vld [vmem:[%s33257_s1 + $0x11a8] sm:$0xff]  ;;  %v817_v41 = vld [vmem:[%s33257_s1 + $0x1860] sm:$0xff] }
 0x21b   :  { %5603 = vmatprep.subr.bf16.mxu0 %v20257_v60  ;;  %v20336_v60 = vcombine.low %v729_v49, %v737_v50  ;;  %v20417_v49 = vcombine.high %v809_v40, %v817_v41 }
 0x21c   :  { %5739 = vmatpush1.bf16.msra.mxu1 %v20098_v59  ;;  %v610_v59 = vld [vmem:[%s33257_s1 + $0x11e8] sm:$0xff] }
 0x21d   :  { %5740 = vmatprep.subr.bf16.mxu1 %v20115_v62  ;;  %v20194_v62 = vcombine.low %v586_v32, %v594_v25  ;;  %v20211_v1 = vcombine.high %v602_v57, %v610_v59  ;;  %v43_v32 = vld [vmem:[%s33257_s1 + $0x30] sm:$0xff] }
 0x21e   :  { %5604 = vmatpush1.bf16.msra.mxu0 %v20256_v6  ;;  %v618_v6 = vld [vmem:[%s33257_s1 + $0x1228] sm:$0xff]  ;;  %v51_v25 = vld [vmem:[%s33257_s1 + $0x70] sm:$0xff] }
 0x21f   :  { %5605 = vmatprep.subr.bf16.mxu0 %v20273_v11  ;;  %v20352_v11 = vcombine.low %v745_v55, %v753_v56  ;;  %v19653_v55 = vcombine.high %v43_v32, %v51_v25 }
 0x220   :  { %5741 = vmatpush1.bf16.msra.mxu1 %v20114_v8  ;;  %v626_v8 = vld [vmem:[%s33257_s1 + $0x1268] sm:$0xff] }
 0x221   :  { %5742 = vmatprep.subr.bf16.mxu1 %v20131_v14  ;;  %v20210_v14 = vcombine.low %v602_v57, %v610_v59  ;;  %v20227_v16 = vcombine.high %v618_v6, %v626_v8  ;;  %v698_v57 = vld [vmem:[%s33257_s1 + $0x14a8] sm:$0xff] }
 0x222   :  { %5606 = vmatpush1.bf16.msra.mxu0 %v20272_v20  ;;  %v634_v20 = vld [vmem:[%s33257_s1 + $0x12a8] sm:$0xff] }
 0x223   :  { %5607 = vmatprep.subr.bf16.mxu0 %v20289_v23  ;;  %v20368_v23 = vcombine.low %v761_v2, %v769_v4  ;;  %v706_v59 = vld [vmem:[%s33257_s1 + $0x14e8] sm:$0xff] }
 0x224   :  { %5743 = vmatpush1.bf16.msra.mxu1 %v20130_v22  ;;  %v642_v22 = vld [vmem:[%s33257_s1 + $0x12e8] sm:$0xff]  ;;  %v20306_v2 = vcombine.low %v698_v57, %v706_v59 }
 0x225   :  { %5744 = vmatprep.subr.bf16.mxu1 %v20147_v58  ;;  %v20226_v58 = vcombine.low %v618_v6, %v626_v8  ;;  %v20243_v26 = vcombine.high %v634_v20, %v642_v22  ;;  %v59_v6 = vld [vmem:[%s33257_s1 + $0xb0] sm:$0xff] }
 0x226   :  { %5608 = vmatpush1.bf16.msra.mxu0 %v20288_v30  ;;  %v650_v30 = vld [vmem:[%s33257_s1 + $0x1328] sm:$0xff]  ;;  %v67_v8 = vld [vmem:[%s33257_s1 + $0xf0] sm:$0xff] }
 0x227   :  { %5609 = vmatprep.subr.bf16.mxu0 %v20305_v35  ;;  %v20384_v35 = vcombine.low %v777_v18, %v785_v19  ;;  %v19669_v18 = vcombine.high %v59_v6, %v67_v8 }
 0x228   :  { %5745 = vmatpush1.bf16.msra.mxu1 %v20146_v31  ;;  %v658_v31 = vld [vmem:[%s33257_s1 + $0x1368] sm:$0xff] }
 0x229   :  { %5755 = vmatprep.subr.bf16.mxu1 %v20163_v36  ;;  %v20242_v36 = vcombine.low %v634_v20, %v642_v22  ;;  %v20259_v39 = vcombine.high %v650_v30, %v658_v31  ;;  %v75_v20 = vld [vmem:[%s33257_s1 + $0x130] sm:$0xff] }
 0x22a   :  { %5610 = vmatpush1.bf16.msra.mxu0 %v20304_v43  ;;  %v666_v43 = vld [vmem:[%s33257_s1 + $0x13a8] sm:$0xff]  ;;  %v83_v22 = vld [vmem:[%s33257_s1 + $0x170] sm:$0xff] }
 0x22b   :  { %5747 = vmatmul.mubr.bf16.vlgmr.msra.gmra.mrb[16].mxu1 %v25721_v29  ;;  %5611 = vmatprep.subr.bf16.mxu0 %v20321_v46  ;;  %v20400_v46 = vcombine.low %v793_v27, %v801_v28  ;;  %v27170_v27 = vsub.s32 5, %v26553_v63  ;;  %v19685_v28 = vcombine.high %v75_v20, %v83_v22 }
 0x22c   :  { %5756 = vmatpush1.bf16.msra.mxu1 %v20162_v45  ;;  %5787 = vmatprep.mubr.bf16.mxu1 %v25731_v33  ;;  %v674_v45 = vld [vmem:[%s33257_s1 + $0x13e8] sm:$0xff] }
 0x22d   :  { %5757 = vmatprep.subr.bf16.mxu1 %v20179_v48  ;;  %v20258_v48 = vcombine.low %v650_v30, %v658_v31  ;;  %v20275_v50 = vcombine.high %v666_v43, %v674_v45  ;;  %v91_v31 = vld [vmem:[%s33257_s1 + $0x1b0] sm:$0xff] }
 0x22e   :  { %5612 = vmatpush1.bf16.msra.mxu0 %v20320_v13  ;;  %v682_v13 = vld [vmem:[%s33257_s1 + $0x1428] sm:$0xff] }
 0x22f   :  { %5613 = vmatprep.subr.bf16.mxu0 %v20337_v53  ;;  %v20416_v53 = vcombine.low %v809_v40, %v817_v41  ;;  %v770_v40 = vld [vmem:[%s33257_s1 + $0x16e8] sm:$0xff]  ;;  %v19684_v41 = vcombine.low %v75_v20, %v83_v22 }
 0x230   :  { %5758 = vmatpush1.bf16.msra.mxu1 %v20178_v51  ;;  %v690_v51 = vld [vmem:[%s33257_s1 + $0x1468] sm:$0xff] }
 0x231   :  { %5759 = vmatprep.subr.bf16.mxu1 %v20195_v54  ;;  %v20274_v54 = vcombine.low %v666_v43, %v674_v45  ;;  %v20291_v56 = vcombine.high %v682_v13, %v690_v51 }
 0x232   :  { %5614 = vmatpush1.bf16.msra.mxu0 %v20336_v60  ;;  %v20290_v60 = vcombine.low %v682_v13, %v690_v51  ;;  %v778_v51 = vld [vmem:[%s33257_s1 + $0x1728] sm:$0xff] }
 0x233   :  { %5615 = vmatprep.subr.bf16.mxu0 %v20353_v0  ;;  %v714_v0 = vld [vmem:[%s33257_s1 + $0x1528] sm:$0xff] }
 0x234   :  { %5760 = vmatpush1.bf16.msra.mxu1 %v20194_v62  ;;  %v20307_v62 = vcombine.high %v698_v57, %v706_v59 }
 0x235   :  { %5761 = vmatprep.subr.bf16.mxu1 %v20211_v1  ;;  %v722_v1 = vld [vmem:[%s33257_s1 + $0x1568] sm:$0xff] }
 0x236   :  { %5616 = vmatpush1.bf16.msra.mxu0 %v20352_v11  ;;  %v20323_v4 = vcombine.high %v714_v0, %v722_v1  ;;  %v730_v11 = vld [vmem:[%s33257_s1 + $0x15a8] sm:$0xff] }
 0x237   :  { %5617 = vmatprep.subr.bf16.mxu0 %v20369_v15  ;;  %v19652_v15 = vcombine.low %v43_v32, %v51_v25  ;;  %v115_v32 = vld [vmem:[%s33257_s1 + $0x270] sm:$0xff] }
 0x238   :  { %5762 = vmatpush1.bf16.msra.mxu1 %v20210_v14  ;;  %v738_v14 = vld [vmem:[%s33257_s1 + $0x15e8] sm:$0xff] }
 0x239   :  { %5763 = vmatprep.subr.bf16.mxu1 %v20227_v16  ;;  %v20322_v16 = vcombine.low %v714_v0, %v722_v1  ;;  %v20339_v19 = vcombine.high %v730_v11, %v738_v14 }
 0x23a   :  { %5618 = vmatpush1.bf16.msra.mxu0 %v20368_v23  ;;  %v746_v23 = vld [vmem:[%s33257_s1 + $0x1628] sm:$0xff] }
 0x23b   :  { %5619 = vmatprep.subr.bf16.mxu0 %v20385_v24  ;;  %v27167_v24 = vsub.s32 4, %v26553_v63 }
 0x23c   :  { %5764 = vmatpush1.bf16.msra.mxu1 %v20226_v58  ;;  %v754_v58 = vld [vmem:[%s33257_s1 + $0x1668] sm:$0xff] }
 0x23d   :  { %5765 = vmatprep.subr.bf16.mxu1 %v20243_v26  ;;  %v19668_v26 = vcombine.low %v59_v6, %v67_v8  ;;  %v20355_v30 = vcombine.high %v746_v23, %v754_v58  ;;  %v20354_v45 = vcombine.low %v746_v23, %v754_v58  ;;  %v802_v6 = vld [vmem:[%s33257_s1 + $0x17e8] sm:$0xff] }
 0x23e   :  { %5620 = vmatpush1.bf16.msra.mxu0 %v20384_v35  ;;  %v99_v35 = vld [vmem:[%s33257_s1 + $0x1f0] sm:$0xff] }
 0x23f   :  { %5621 = vmatprep.subr.bf16.mxu0 %v20401_v38 }
 0x240   :  { %5766 = vmatpush1.bf16.msra.mxu1 %v20242_v36  ;;  %v25220_v36 = vld [vmem:[%s33259_s2] sm:$0xff] }
 0x241   :  { %5767 = vmatprep.subr.bf16.mxu1 %v20259_v39  ;;  %v844_v38 = vrot.slane %v25220_v36, %v27167_v24  ;;  %v762_v39 = vld [vmem:[%s33257_s1 + $0x16a8] sm:$0xff]  ;;  %v848_v43 = vrot.slane %v25220_v36, %v27170_v27 }
 0x242   :  { %5622 = vmatpush1.bf16.msra.mxu0 %v20400_v46  ;;  %v19701_v46 = vcombine.high %v91_v31, %v99_v35 }
 0x243   :  { %5632 = vmatprep.subr.bf16.mxu0 %v20417_v49  ;;  %v20371_v49 = vcombine.high %v762_v39, %v770_v40 }
 0x244   :  { %5768 = vmatpush1.bf16.msra.mxu1 %v20258_v48 }
 0x245   :  { %5769 = vmatprep.subr.bf16.mxu1 %v20275_v50  ;;  %5624 = vmatmul.mubr.bf16.vlgmr.msra.gmra.mrb[8].mxu0 %v25925_v44  ;;  %v107_v50 = vld [vmem:[%s33257_s1 + $0x230] sm:$0xff] }
 0x246   :  { %5633 = vmatpush1.bf16.msra.mxu0 %v20416_v53  ;;  %5664 = vmatprep.mubr.bf16.mxu0 %v25226_v3  ;;  %v786_v53 = vld [vmem:[%s33257_s1 + $0x1768] sm:$0xff] }
 0x247   :  { %5837 = vmatprep.subr.bf16.mxu0 %v19653_v55  ;;  %v20387_v1 = vcombine.high %v778_v51, %v786_v53  ;;  %v20386_v8 = vcombine.low %v778_v51, %v786_v53 }
 0x248   :  { %5770 = vmatpush1.bf16.msra.mxu1 %v20274_v54 }
 0x249   :  { %5771 = vmatprep.subr.bf16.mxu1 %v20291_v56  ;;  %v19700_v56 = vcombine.low %v91_v31, %v99_v35 }
 0x24c   :  { %5772 = vmatpush1.bf16.msra.mxu1 %v20290_v60  ;;  %v20370_v60 = vcombine.low %v762_v39, %v770_v40  ;;  %v179_v39 = vld [vmem:[%s33257_s1 + $0x470] sm:$0xff] }
 0x24d   :  { %5773 = vmatprep.subr.bf16.mxu1 %v20307_v62  ;;  %v19717_v62 = vcombine.high %v107_v50, %v115_v32 }
 0x250   :  { %5774 = vmatpush1.bf16.msra.mxu1 %v20306_v2  ;;  %v123_v2 = vld [vmem:[%s33257_s1 + $0x2b0] sm:$0xff] }
 0x251   :  { %5775 = vmatprep.subr.bf16.mxu1 %v20323_v4  ;;  %20428 = vmatmul.mubr.msk.bf16.vlgmr.msra.gmra.mrb[8].mxu0 %vm4849_vm0, %v26651_v9  ;;  %v20338_v9 = vcombine.low %v730_v11, %v738_v14  ;;  %v131_v4 = vld [vmem:[%s33257_s1 + $0x2f0] sm:$0xff] }
 0x252   :  { %5838 = vmatpush1.bf16.msra.mxu0 %v19652_v15  ;;  %5869 = vmatprep.mubr.bf16.mxu0 %v25387_v61  ;;  %v19733_v11 = vcombine.high %v123_v2, %v131_v4  ;;  %v139_v15 = vld [vmem:[%s33257_s1 + $0x330] sm:$0xff]  ;;  %v19732_v20 = vcombine.low %v123_v2, %v131_v4 }
 0x253   :  { %5839 = vmatprep.subr.bf16.mxu0 %v19669_v18  ;;  %v810_v18 = vld [vmem:[%s33257_s1 + $0x1828] sm:$0xff] }
 0x254   :  { %5776 = vmatpush1.bf16.msra.mxu1 %v20322_v16  ;;  %v147_v16 = vld [vmem:[%s33257_s1 + $0x370] sm:$0xff] }
 0x255   :  { %5777 = vmatprep.subr.bf16.mxu1 %v20339_v19  ;;  %v818_v19 = vld [vmem:[%s33257_s1 + $0x1868] sm:$0xff]  ;;  %v19749_v23 = vcombine.high %v139_v15, %v147_v16  ;;  %v19748_v31 = vcombine.low %v139_v15, %v147_v16 }
 0x256   :  { %5840 = vmatpush1.bf16.msra.mxu0 %v19668_v26  ;;  %v20419_v58 = vcombine.high %v810_v18, %v818_v19  ;;  %v155_v26 = vld [vmem:[%s33257_s1 + $0x3b0] sm:$0xff]  ;;  %v20418_v35 = vcombine.low %v810_v18, %v818_v19 }
 0x257   :  { %5841 = vmatprep.subr.bf16.mxu0 %v19685_v28  ;;  %v44_v28 = vld [vmem:[%s33257_s1 + $0x38] sm:$0xff] }
 0x258   :  { %5778 = vmatpush1.bf16.msra.mxu1 %v20338_v9  ;;  %v5297_v48 = vpop.f32.mrb[4].mxu0  ;;  %v163_v9 = vld [vmem:[%s33257_s1 + $0x3f0] sm:$0xff] }
 0x259   :  { %5779 = vmatprep.subr.bf16.mxu1 %v20355_v30  ;;  %v22485_v25 = vadd.f32 %v5297_v48, %v844_v38  ;;  %v5299_v13 = vpop.f32.mrb[5].mxu0  ;;  %v52_v30 = vld [vmem:[%s33257_s1 + $0x78] sm:$0xff]  ;;  %v19765_v36 = vcombine.high %v155_v26, %v163_v9  ;;  %v171_v38 = vld [vmem:[%s33257_s1 + $0x430] sm:$0xff] }
 0x25a   :  { %v22487_v54 = vadd.f32 %v5299_v13, %v848_v43  ;;  %5842 = vmatpush1.bf16.msra.mxu0 %v19684_v41  ;;  %v5301_v55 = vpop.f32.mrb[6].mxu0  ;;  %v19655_v40 = vcombine.high %v44_v28, %v52_v30  ;;  %v19764_v41 = vcombine.low %v155_v26, %v163_v9  ;;  %v19781_v43 = vcombine.high %v171_v38, %v179_v39  ;;  %v68_v13 = vld [vmem:[%s33257_s1 + $0xf8] sm:$0xff] }
 0x25b   :  { %v27203_v57 = vadd.f32 %v22485_v25, %v26676_v34  ;;  %v5302_v59 = vpop.f32.mrb[7].mxu0  ;;  %5843 = vmatprep.subr.bf16.mxu0 %v19701_v46  ;;  %v794_v34 = vld [vmem:[%s33257_s1 + $0x17a8] sm:$0xff]  ;;  %v195_v46 = vld [vmem:[%s33257_s1 + $0x4f0] sm:$0xff]  ;;  %v19780_v48 = vcombine.low %v171_v38, %v179_v39  ;;  %v60_v25 = vld [vmem:[%s33257_s1 + $0xb8] sm:$0xff]  ;;  %v19654_v53 = vcombine.low %v44_v28, %v52_v30 }
 0x25c   :  { %5780 = vmatpush1.bf16.msra.mxu1 %v20354_v45  ;;  %v27206_v0 = vadd.f32 %v22487_v54, %v26684_v37  ;;  %v19716_v37 = vcombine.low %v107_v50, %v115_v32  ;;  %v20403_v14 = vcombine.high %v794_v34, %v802_v6  ;;  %v20402_v22 = vcombine.low %v794_v34, %v802_v6  ;;  %v187_v45 = vld [vmem:[%s33257_s1 + $0x4b0] sm:$0xff] }
 0x25d   :  { %5781 = vmatprep.subr.bf16.mxu1 %v20371_v49  ;;  %v19797_v49 = vcombine.high %v187_v45, %v195_v46  ;;  %v203_v50 = vld [vmem:[%s33257_s1 + $0x530] sm:$0xff]  ;;  %v19796_v51 = vcombine.low %v187_v45, %v195_v46  ;;  %v19671_v55 = vcombine.high %v60_v25, %v68_v13  ;;  %v19670_v4 = vcombine.low %v60_v25, %v68_v13  ;;  %v148_v25 = vld [vmem:[%s33257_s1 + $0x378] sm:$0xff] }
 0x25e   :  { %5844 = vmatpush1.bf16.msra.mxu0 %v19700_v56  ;;  %v211_v32 = vld [vmem:[%s33257_s1 + $0x570] sm:$0xff] }
 0x25f   :  { %5845 = vmatprep.subr.bf16.mxu0 %v19717_v62  ;;  %v19813_v54 = vcombine.high %v203_v50, %v211_v32  ;;  %v219_v56 = vld [vmem:[%s33257_s1 + $0x5b0] sm:$0xff]  ;;  %v84_v62 = vld [vmem:[%s33257_s1 + $0x178] sm:$0xff]  ;;  %v19812_v2 = vcombine.low %v203_v50, %v211_v32 }
 0x260   :  { %5782 = vmatpush1.bf16.msra.mxu1 %v20370_v60  ;;  %v227_v59 = vld [vmem:[%s33257_s1 + $0x5f0] sm:$0xff]  ;;  %v76_v60 = vld [vmem:[%s33257_s1 + $0x138] sm:$0xff] }
 0x261   :  { %5783 = vmatprep.subr.bf16.mxu1 %v20387_v1  ;;  %v25221_v1 = vld [vmem:[%s33258_s0 + $0x18] ss:$0 sps:$4 sm:$0xff]   ;;  %v19829_v34 = vcombine.high %v219_v56, %v227_v59  ;;  %v19687_v6 = vcombine.high %v76_v60, %v84_v62  ;;  %v19828_v15 = vcombine.low %v219_v56, %v227_v59  ;;  %v19686_v16 = vcombine.low %v76_v60, %v84_v62  ;;  %v267_v38 = vld [vmem:[%s33257_s1 + $0x730] sm:$0xff] }
 0x262   :  { %5846 = vmatpush1.bf16.msra.mxu0 %v19716_v37  ;;  %v235_v37 = vld [vmem:[%s33257_s1 + $0x630] sm:$0xff]  ;;  %v140_v32 = vld [vmem:[%s33257_s1 + $0x338] sm:$0xff] }
 0x263   :  { %5847 = vmatprep.subr.bf16.mxu0 %v19733_v11  ;;  %v92_v11 = vld [vmem:[%s33257_s1 + $0x1b8] sm:$0xff]  ;;  %v275_v39 = vld [vmem:[%s33257_s1 + $0x770] sm:$0xff] }
 0x264   :  { %5784 = vmatpush1.bf16.msra.mxu1 %v20386_v8  ;;  %v243_v8 = vld [vmem:[%s33257_s1 + $0x670] sm:$0xff]  ;;  %v19877_v46 = vcombine.high %v267_v38, %v275_v39  ;;  %v19876_v13 = vcombine.low %v267_v38, %v275_v39  ;;  %v156_v59 = vld [vmem:[%s33257_s1 + $0x3b8] sm:$0xff] }
 0x265   :  { %5785 = vmatprep.subr.bf16.mxu1 %v20403_v14  ;;  %v100_v14 = vld [vmem:[%s33257_s1 + $0x1f8] sm:$0xff]  ;;  %v19845_v18 = vcombine.high %v235_v37, %v243_v8  ;;  %v19844_v9 = vcombine.low %v235_v37, %v243_v8  ;;  %v291_v50 = vld [vmem:[%s33257_s1 + $0x7f0] sm:$0xff] }
 0x266   :  { %5848 = vmatpush1.bf16.msra.mxu0 %v19732_v20  ;;  %v19703_v19 = vcombine.high %v92_v11, %v100_v14  ;;  %v259_v20 = vld [vmem:[%s33257_s1 + $0x6f0] sm:$0xff]  ;;  %v19702_v30 = vcombine.low %v92_v11, %v100_v14  ;;  %v164_v60 = vld [vmem:[%s33257_s1 + $0x3f8] sm:$0xff] }
 0x267   :  { %5849 = vmatprep.subr.bf16.mxu0 %v19749_v23  ;;  %v108_v23 = vld [vmem:[%s33257_s1 + $0x238] sm:$0xff]  ;;  %v307_v56 = vld [vmem:[%s33257_s1 + $0x870] sm:$0xff]  ;;  %v19766_v14 = vcombine.low %v156_v59, %v164_v60 }
 0x268   :  { %5786 = vmatpush1.bf16.msra.mxu1 %v20402_v22  ;;  %v172_v37 = vld [vmem:[%s33257_s1 + $0x438] sm:$0xff] }
 0x269   :  { %5796 = vmatprep.subr.bf16.mxu1 %v20419_v58  ;;  %v116_v58 = vld [vmem:[%s33257_s1 + $0x278] sm:$0xff] }
 0x26a   :  { %5850 = vmatpush1.bf16.msra.mxu0 %v19748_v31  ;;  %v19718_v45 = vcombine.low %v108_v23, %v116_v58  ;;  %v180_v8 = vld [vmem:[%s33257_s1 + $0x478] sm:$0xff] }
 0x26b   :  { %5788 = vmatmul.mubr.bf16.vlgmr.msra.gmra.mrb[16].mxu1 %v25925_v44  ;;  %5851 = vmatprep.subr.bf16.mxu0 %v19765_v36  ;;  %v19719_v36 = vcombine.high %v108_v23, %v116_v58  ;;  %v19782_v58 = vcombine.low %v172_v37, %v180_v8 }
 0x26c   :  { %5797 = vmatpush1.bf16.msra.mxu1 %v20418_v35  ;;  %5828 = vmatprep.mubr.bf16.mxu1 %v25226_v3 }
 0x26d   :  { %6001 = vmatprep.subr.bf16.mxu1 %v19655_v40  ;;  %v124_v40 = vld [vmem:[%s33257_s1 + $0x2b8] sm:$0xff] }
 0x26e   :  { %5852 = vmatpush1.bf16.msra.mxu0 %v19764_v41  ;;  %v132_v41 = vld [vmem:[%s33257_s1 + $0x2f8] sm:$0xff] }
 0x26f   :  { %5853 = vmatprep.subr.bf16.mxu0 %v19781_v43 }
 0x272   :  { %5854 = vmatpush1.bf16.msra.mxu0 %v19780_v48  ;;  %v19735_v48 = vcombine.high %v124_v40, %v132_v41 }
 0x273   :  { %5855 = vmatprep.subr.bf16.mxu0 %v19797_v49  ;;  %v283_v49 = vld [vmem:[%s33257_s1 + $0x7b0] sm:$0xff] }
 0x274   :  { %v19892_v62 = vcombine.low %v283_v49, %v291_v50 }
 0x276   :  { %5856 = vmatpush1.bf16.msra.mxu0 %v19796_v51  ;;  %v19734_v51 = vcombine.low %v124_v40, %v132_v41 }
 0x277   :  { %20429 = vmatmul.mubr.msk.bf16.vlgmr.msra.gmra.mrb[16].mxu1 %vm4849_vm0, %v25221_v1  ;;  %5857 = vmatprep.subr.bf16.mxu0 %v19813_v54  ;;  %v19751_v54 = vcombine.high %v140_v32, %v148_v25  ;;  %v19750_v1 = vcombine.low %v140_v32, %v148_v25 }
 0x278   :  { %6002 = vmatpush1.bf16.msra.mxu1 %v19654_v53  ;;  %6033 = vmatprep.mubr.bf16.mxu1 %v25387_v61  ;;  %v251_v61 = vld [vmem:[%s33257_s1 + $0x6b0] sm:$0xff]  ;;  %v19893_v53 = vcombine.high %v283_v49, %v291_v50 }
 0x279   :  { %6003 = vmatprep.subr.bf16.mxu1 %v19671_v55  ;;  %v19861_v31 = vcombine.high %v251_v61, %v259_v20  ;;  %v19860_v43 = vcombine.low %v251_v61, %v259_v20  ;;  %v299_v55 = vld [vmem:[%s33257_s1 + $0x830] sm:$0xff]  ;;  %v188_v61 = vld [vmem:[%s33257_s1 + $0x4b8] sm:$0xff] }
 0x27a   :  { %5858 = vmatpush1.bf16.msra.mxu0 %v19812_v2  ;;  %v19909_v2 = vcombine.high %v299_v55, %v307_v56  ;;  %v19908_v11 = vcombine.low %v299_v55, %v307_v56  ;;  %v196_v20 = vld [vmem:[%s33257_s1 + $0x4f8] sm:$0xff] }
 0x27b   :  { %5859 = vmatprep.subr.bf16.mxu0 %v19829_v34  ;;  %v315_v34 = vld [vmem:[%s33257_s1 + $0x8b0] sm:$0xff]  ;;  %v19798_v39 = vcombine.low %v188_v61, %v196_v20 }
 0x27c   :  { %6004 = vmatpush1.bf16.msra.mxu1 %v19670_v4  ;;  %v19767_v4 = vcombine.high %v156_v59, %v164_v60  ;;  %v252_v60 = vld [vmem:[%s33257_s1 + $0x6b8] sm:$0xff] }
 0x27d   :  { %6005 = vmatprep.subr.bf16.mxu1 %v19687_v6  ;;  %v323_v6 = vld [vmem:[%s33257_s1 + $0x8f0] sm:$0xff] }
 0x27e   :  { %v27305_v22 = vpop.f32.mrb[12].mxu1  ;;  %5860 = vmatpush1.bf16.msra.mxu0 %v19828_v15  ;;  %v19925_v15 = vcombine.high %v315_v34, %v323_v6  ;;  %v19924_v23 = vcombine.low %v315_v34, %v323_v6 }
 0x27f   :  { %v27313_v26 = vpop.f32.mrb[13].mxu1  ;;  %5861 = vmatprep.subr.bf16.mxu0 %v19845_v18  ;;  %v331_v18 = vld [vmem:[%s33257_s1 + $0x930] sm:$0xff] }
 0x280   :  { %6006 = vmatpush1.bf16.msra.mxu1 %v19686_v16  ;;  %v5506_v28 = vpop.f32.mrb[14].mxu1  ;;  %v19783_v16 = vcombine.high %v172_v37, %v180_v8  ;;  %v268_v8 = vld [vmem:[%s33257_s1 + $0x738] sm:$0xff] }
 0x281   :  { %v5507_v35 = vpop.f32.mrb[15].mxu1  ;;  %6007 = vmatprep.subr.bf16.mxu1 %v19703_v19  ;;  %v339_v19 = vld [vmem:[%s33257_s1 + $0x970] sm:$0xff]  ;;  %v19799_v28 = vcombine.high %v188_v61, %v196_v20  ;;  %v284_v20 = vld [vmem:[%s33257_s1 + $0x7b8] sm:$0xff] }
 0x282   :  { %5862 = vmatpush1.bf16.msra.mxu0 %v19844_v9  ;;  %v19941_v9 = vcombine.high %v331_v18, %v339_v19  ;;  %v204_v35 = vld [vmem:[%s33257_s1 + $0x538] sm:$0xff]  ;;  %v19940_v38 = vcombine.low %v331_v18, %v339_v19 }
 0x283   :  { %5863 = vmatprep.subr.bf16.mxu0 %v19861_v31  ;;  %v355_v31 = vld [vmem:[%s33257_s1 + $0x9f0] sm:$0xff] }
 0x284   :  { %6008 = vmatpush1.bf16.msra.mxu1 %v19702_v30  ;;  %v347_v30 = vld [vmem:[%s33257_s1 + $0x9b0] sm:$0xff] }
 0x285   :  { %6009 = vmatprep.subr.bf16.mxu1 %v19719_v36  ;;  %v212_v36 = vld [vmem:[%s33257_s1 + $0x578] sm:$0xff]  ;;  %v19957_v40 = vcombine.high %v347_v30, %v355_v31  ;;  %v19956_v49 = vcombine.low %v347_v30, %v355_v31 }
 0x286   :  { %5864 = vmatpush1.bf16.msra.mxu0 %v19860_v43  ;;  %v19815_v41 = vcombine.high %v204_v35, %v212_v36  ;;  %v363_v43 = vld [vmem:[%s33257_s1 + $0xa30] sm:$0xff]  ;;  %v19814_v50 = vcombine.low %v204_v35, %v212_v36  ;;  %v300_v36 = vld [vmem:[%s33257_s1 + $0x838] sm:$0xff] }
 0x287   :  { %5865 = vmatprep.subr.bf16.mxu0 %v19877_v46  ;;  %v220_v46 = vld [vmem:[%s33257_s1 + $0x5b8] sm:$0xff] }
 0x288   :  { %6010 = vmatpush1.bf16.msra.mxu1 %v19718_v45  ;;  %v371_v45 = vld [vmem:[%s33257_s1 + $0xa70] sm:$0xff] }
 0x289   :  { %6011 = vmatprep.subr.bf16.mxu1 %v19735_v48  ;;  %v228_v48 = vld [vmem:[%s33257_s1 + $0x5f8] sm:$0xff]  ;;  %v19973_v32 = vcombine.high %v363_v43, %v371_v45  ;;  %v19972_v55 = vcombine.low %v363_v43, %v371_v45 }
 0x28a   :  { %5866 = vmatpush1.bf16.msra.mxu0 %v19876_v13  ;;  %v19831_v25 = vcombine.high %v220_v46, %v228_v48  ;;  %v236_v13 = vld [vmem:[%s33257_s1 + $0x638] sm:$0xff]  ;;  %v19830_v56 = vcombine.low %v220_v46, %v228_v48 }
 0x28b   :  { %5867 = vmatprep.subr.bf16.mxu0 %v19893_v53  ;;  %v387_v53 = vld [vmem:[%s33257_s1 + $0xaf0] sm:$0xff]  ;;  %v316_v48 = vld [vmem:[%s33257_s1 + $0x8b8] sm:$0xff] }
 0x28c   :  { %6012 = vmatpush1.bf16.msra.mxu1 %v19734_v51  ;;  %v379_v51 = vld [vmem:[%s33257_s1 + $0xab0] sm:$0xff] }
 0x28d   :  { %6013 = vmatprep.subr.bf16.mxu1 %v19751_v54  ;;  %v244_v54 = vld [vmem:[%s33257_s1 + $0x678] sm:$0xff]  ;;  %v19989_v59 = vcombine.high %v379_v51, %v387_v53  ;;  %v19988_v34 = vcombine.low %v379_v51, %v387_v53  ;;  %v475_v51 = vld [vmem:[%s33257_s1 + $0xdb0] sm:$0xff] }
 0x28e   :  { %5868 = vmatpush1.bf16.msra.mxu0 %v19892_v62  ;;  %v395_v62 = vld [vmem:[%s33257_s1 + $0xb30] sm:$0xff]  ;;  %v19846_v6 = vcombine.low %v236_v13, %v244_v54 }
 0x28f   :  { %5878 = vmatprep.subr.bf16.mxu0 %v19909_v2  ;;  %v19847_v2 = vcombine.high %v236_v13, %v244_v54  ;;  %v483_v53 = vld [vmem:[%s33257_s1 + $0xdf0] sm:$0xff] }
 0x290   :  { %6014 = vmatpush1.bf16.msra.mxu1 %v19750_v1  ;;  %v403_v1 = vld [vmem:[%s33257_s1 + $0xb70] sm:$0xff] }
 0x291   :  { %6015 = vmatprep.subr.bf16.mxu1 %v19767_v4  ;;  %5870 = vmatmul.mubr.bf16.vlgmr.msra.gmra.mrb[12].mxu0 %v25512_v17  ;;  %v260_v4 = vld [vmem:[%s33257_s1 + $0x6f8] sm:$0xff]  ;;  %v20005_v37 = vcombine.high %v395_v62, %v403_v1  ;;  %v20004_v18 = vcombine.low %v395_v62, %v403_v1 }
 0x292   :  { %5879 = vmatpush1.bf16.msra.mxu0 %v19908_v11  ;;  %5910 = vmatprep.mubr.bf16.mxu0 %v25522_v21  ;;  %v411_v11 = vld [vmem:[%s33257_s1 + $0xbb0] sm:$0xff]  ;;  %v19862_v19 = vcombine.low %v252_v60, %v260_v4 }
 0x293   :  { %5880 = vmatprep.subr.bf16.mxu0 %v19925_v15  ;;  %v19863_v15 = vcombine.high %v252_v60, %v260_v4  ;;  %v340_v60 = vld [vmem:[%s33257_s1 + $0x978] sm:$0xff] }
 0x294   :  { %6016 = vmatpush1.bf16.msra.mxu1 %v19766_v14  ;;  %v419_v14 = vld [vmem:[%s33257_s1 + $0xbf0] sm:$0xff]  ;;  %v348_v4 = vld [vmem:[%s33257_s1 + $0x9b8] sm:$0xff] }
 0x295   :  { %6017 = vmatprep.subr.bf16.mxu1 %v19783_v16  ;;  %v276_v16 = vld [vmem:[%s33257_s1 + $0x778] sm:$0xff]  ;;  %v20021_v61 = vcombine.high %v411_v11, %v419_v14  ;;  %v20020_v30 = vcombine.low %v411_v11, %v419_v14  ;;  %v507_v11 = vld [vmem:[%s33257_s1 + $0xeb0] sm:$0xff] }
 0x296   :  { %5881 = vmatpush1.bf16.msra.mxu0 %v19924_v23  ;;  %v427_v23 = vld [vmem:[%s33257_s1 + $0xc30] sm:$0xff]  ;;  %v19878_v31 = vcombine.low %v268_v8, %v276_v16 }
 0x297   :  { %5882 = vmatprep.subr.bf16.mxu0 %v19941_v9  ;;  %v19879_v9 = vcombine.high %v268_v8, %v276_v16  ;;  %v20084_v8 = vcombine.low %v475_v51, %v483_v53  ;;  %v515_v14 = vld [vmem:[%s33257_s1 + $0xef0] sm:$0xff] }
 0x298   :  { %6018 = vmatpush1.bf16.msra.mxu1 %v19782_v58  ;;  %v435_v58 = vld [vmem:[%s33257_s1 + $0xc70] sm:$0xff] }
 0x299   :  { %6019 = vmatprep.subr.bf16.mxu1 %v19799_v28  ;;  %v292_v28 = vld [vmem:[%s33257_s1 + $0x7f8] sm:$0xff]  ;;  %v20037_v35 = vcombine.high %v427_v23, %v435_v58  ;;  %v20036_v43 = vcombine.low %v427_v23, %v435_v58  ;;  %v531_v23 = vld [vmem:[%s33257_s1 + $0xf70] sm:$0xff] }
 0x29a   :  { %5883 = vmatpush1.bf16.msra.mxu0 %v19940_v38  ;;  %v443_v38 = vld [vmem:[%s33257_s1 + $0xcb0] sm:$0xff]  ;;  %v19894_v45 = vcombine.low %v284_v20, %v292_v28 }
 0x29b   :  { %5884 = vmatprep.subr.bf16.mxu0 %v19957_v40  ;;  %v19895_v40 = vcombine.high %v284_v20, %v292_v28  ;;  %v523_v20 = vld [vmem:[%s33257_s1 + $0xf30] sm:$0xff]  ;;  %v380_v28 = vld [vmem:[%s33257_s1 + $0xab8] sm:$0xff] }
 0x29c   :  { %6020 = vmatpush1.bf16.msra.mxu1 %v19798_v39  ;;  %v451_v39 = vld [vmem:[%s33257_s1 + $0xcf0] sm:$0xff] }
 0x29d   :  { %6021 = vmatprep.subr.bf16.mxu1 %v19815_v41  ;;  %v308_v41 = vld [vmem:[%s33257_s1 + $0x878] sm:$0xff]  ;;  %v20053_v46 = vcombine.high %v443_v38, %v451_v39  ;;  %v20052_v13 = vcombine.low %v443_v38, %v451_v39  ;;  %v20133_v38 = vcombine.high %v523_v20, %v531_v23 }
 0x29e   :  { %5885 = vmatpush1.bf16.msra.mxu0 %v19956_v49  ;;  %v459_v49 = vld [vmem:[%s33257_s1 + $0xd30] sm:$0xff]  ;;  %v19910_v54 = vcombine.low %v300_v36, %v308_v41  ;;  %v396_v39 = vld [vmem:[%s33257_s1 + $0xb38] sm:$0xff] }
 0x29f   :  { %5886 = vmatprep.subr.bf16.mxu0 %v19973_v32  ;;  %v19911_v32 = vcombine.high %v300_v36, %v308_v41  ;;  %v539_v41 = vld [vmem:[%s33257_s1 + $0xfb0] sm:$0xff] }
 0x2a0   :  { %6022 = vmatpush1.bf16.msra.mxu1 %v19814_v50  ;;  %v467_v50 = vld [vmem:[%s33257_s1 + $0xd70] sm:$0xff] }
 0x2a1   :  { %6023 = vmatprep.subr.bf16.mxu1 %v19831_v25  ;;  %v324_v25 = vld [vmem:[%s33257_s1 + $0x8f8] sm:$0xff]  ;;  %v20068_v62 = vcombine.low %v459_v49, %v467_v50 }
 0x2a2   :  { %5887 = vmatpush1.bf16.msra.mxu0 %v19972_v55  ;;  %v20069_v55 = vcombine.high %v459_v49, %v467_v50  ;;  %v19926_v1 = vcombine.low %v316_v48, %v324_v25  ;;  %v412_v50 = vld [vmem:[%s33257_s1 + $0xbb8] sm:$0xff] }
 0x2a3   :  { %5888 = vmatprep.subr.bf16.mxu0 %v19989_v59  ;;  %v19927_v59 = vcombine.high %v316_v48, %v324_v25  ;;  %v555_v25 = vld [vmem:[%s33257_s1 + $0x1030] sm:$0xff] }
 0x2a4   :  { %6024 = vmatpush1.bf16.msra.mxu1 %v19830_v56  ;;  %v332_v56 = vld [vmem:[%s33257_s1 + $0x938] sm:$0xff] }
 0x2a5   :  { %6025 = vmatprep.subr.bf16.mxu1 %v19847_v2  ;;  %v20085_v2 = vcombine.high %v475_v51, %v483_v53 }
 0x2a6   :  { %5889 = vmatpush1.bf16.msra.mxu0 %v19988_v34  ;;  %v356_v34 = vld [vmem:[%s33257_s1 + $0x9f8] sm:$0xff] }
 0x2a7   :  { %5890 = vmatprep.subr.bf16.mxu0 %v20005_v37  ;;  %v19943_v37 = vcombine.high %v332_v56, %v340_v60  ;;  %v19958_v58 = vcombine.low %v348_v4, %v356_v34 }
 0x2a8   :  { %6026 = vmatpush1.bf16.msra.mxu1 %v19846_v6  ;;  %v491_v6 = vld [vmem:[%s33257_s1 + $0xe30] sm:$0xff] }
 0x2a9   :  { %6027 = vmatprep.subr.bf16.mxu1 %v19863_v15  ;;  %v19942_v15 = vcombine.low %v332_v56, %v340_v60  ;;  %v428_v56 = vld [vmem:[%s33257_s1 + $0xc38] sm:$0xff] }
 0x2aa   :  { %5891 = vmatpush1.bf16.msra.mxu0 %v20004_v18  ;;  %v364_v18 = vld [vmem:[%s33257_s1 + $0xa38] sm:$0xff] }
 0x2ab   :  { %5892 = vmatprep.subr.bf16.mxu0 %v20021_v61 }
 0x2ac   :  { %6028 = vmatpush1.bf16.msra.mxu1 %v19862_v19  ;;  %v19959_v19 = vcombine.high %v348_v4, %v356_v34 }
 0x2ad   :  { %6029 = vmatprep.subr.bf16.mxu1 %v19879_v9  ;;  %v20117_v9 = vcombine.high %v507_v11, %v515_v14 }
 0x2ae   :  { %5893 = vmatpush1.bf16.msra.mxu0 %v20020_v30  ;;  %v388_v30 = vld [vmem:[%s33257_s1 + $0xaf8] sm:$0xff] }
 0x2af   :  { %5894 = vmatprep.subr.bf16.mxu0 %v20037_v35  ;;  %v20116_v35 = vcombine.low %v507_v11, %v515_v14  ;;  %v19990_v48 = vcombine.low %v380_v28, %v388_v30 }
 0x2b0   :  { %6030 = vmatpush1.bf16.msra.mxu1 %v19878_v31 }
 0x2b1   :  { %6031 = vmatprep.subr.bf16.mxu1 %v19895_v40  ;;  %v404_v40 = vld [vmem:[%s33257_s1 + $0xb78] sm:$0xff] }
 0x2b2   :  { %5895 = vmatpush1.bf16.msra.mxu0 %v20036_v43  ;;  %v547_v43 = vld [vmem:[%s33257_s1 + $0xff0] sm:$0xff]  ;;  %v20007_v51 = vcombine.high %v396_v39, %v404_v40 }
 0x2b3   :  { %5896 = vmatprep.subr.bf16.mxu0 %v20053_v46  ;;  %v20132_v46 = vcombine.low %v523_v20, %v531_v23  ;;  %v20149_v49 = vcombine.high %v539_v41, %v547_v43  ;;  %v20148_v53 = vcombine.low %v539_v41, %v547_v43  ;;  %v492_v41 = vld [vmem:[%s33257_s1 + $0xe38] sm:$0xff] }
 0x2b4   :  { %6032 = vmatpush1.bf16.msra.mxu1 %v19894_v45  ;;  %v19991_v45 = vcombine.high %v380_v28, %v388_v30  ;;  %v476_v28 = vld [vmem:[%s33257_s1 + $0xdb8] sm:$0xff] }
 0x2b5   :  { %6042 = vmatprep.subr.bf16.mxu1 %v19911_v32  ;;  %v420_v32 = vld [vmem:[%s33257_s1 + $0xbf8] sm:$0xff] }
 0x2b6   :  { %5897 = vmatpush1.bf16.msra.mxu0 %v20052_v13  ;;  %v563_v13 = vld [vmem:[%s33257_s1 + $0x1070] sm:$0xff]  ;;  %v20023_v60 = vcombine.high %v412_v50, %v420_v32  ;;  %v20022_v4 = vcombine.low %v412_v50, %v420_v32  ;;  %v484_v30 = vld [vmem:[%s33257_s1 + $0xdf8] sm:$0xff] }
 0x2b7   :  { %6034 = vmatmul.mubr.bf16.vlgmr.msra.gmra.mrb[20].mxu1 %v25512_v17  ;;  %5898 = vmatprep.subr.bf16.mxu0 %v20069_v55  ;;  %v499_v17 = vld [vmem:[%s33257_s1 + $0xe70] sm:$0xff]  ;;  %v20165_v55 = vcombine.high %v555_v25, %v563_v13  ;;  %v500_v43 = vld [vmem:[%s33257_s1 + $0xe78] sm:$0xff]  ;;  %v20086_v50 = vcombine.low %v476_v28, %v484_v30 }
 0x2b8   :  { %6043 = vmatpush1.bf16.msra.mxu1 %v19910_v54  ;;  %6074 = vmatprep.mubr.bf16.mxu1 %v25522_v21  ;;  %v20101_v16 = vcombine.high %v491_v6, %v499_v17  ;;  %v372_v21 = vld [vmem:[%s33257_s1 + $0xa78] sm:$0xff]  ;;  %v20100_v61 = vcombine.low %v491_v6, %v499_v17  ;;  %v20006_v54 = vcombine.low %v396_v39, %v404_v40 }
 0x2b9   :  { %6044 = vmatprep.subr.bf16.mxu1 %v19927_v59  ;;  %v19975_v31 = vcombine.high %v364_v18, %v372_v21  ;;  %v19974_v36 = vcombine.low %v364_v18, %v372_v21  ;;  %v571_v59 = vld [vmem:[%s33257_s1 + $0x10b0] sm:$0xff]  ;;  %v444_v6 = vld [vmem:[%s33257_s1 + $0xcb8] sm:$0xff] }
 0x2ba   :  { %5899 = vmatpush1.bf16.msra.mxu0 %v20068_v62  ;;  %v579_v62 = vld [vmem:[%s33257_s1 + $0x10f0] sm:$0xff]  ;;  %v452_v17 = vld [vmem:[%s33257_s1 + $0xcf8] sm:$0xff] }
 0x2bb   :  { %5900 = vmatprep.subr.bf16.mxu0 %v20085_v2  ;;  %v20164_v2 = vcombine.low %v555_v25, %v563_v13  ;;  %v20181_v34 = vcombine.high %v571_v59, %v579_v62  ;;  %v20180_v14 = vcombine.low %v571_v59, %v579_v62  ;;  %v460_v18 = vld [vmem:[%s33257_s1 + $0xd38] sm:$0xff]  ;;  %v20055_v20 = vcombine.high %v444_v6, %v452_v17 }
 0x2bc   :  { %6045 = vmatpush1.bf16.msra.mxu1 %v19926_v1  ;;  %v436_v1 = vld [vmem:[%s33257_s1 + $0xc78] sm:$0xff] }
 0x2bd   :  { %6046 = vmatprep.subr.bf16.mxu1 %v19943_v37  ;;  %v587_v37 = vld [vmem:[%s33257_s1 + $0x1130] sm:$0xff]  ;;  %v20039_v11 = vcombine.high %v428_v56, %v436_v1  ;;  %v468_v21 = vld [vmem:[%s33257_s1 + $0xd78] sm:$0xff] }
 0x2be   :  { %5901 = vmatpush1.bf16.msra.mxu0 %v20084_v8  ;;  %v595_v8 = vld [vmem:[%s33257_s1 + $0x1170] sm:$0xff]  ;;  %v20070_v39 = vcombine.low %v460_v18, %v468_v21  ;;  %v508_v25 = vld [vmem:[%s33257_s1 + $0xeb8] sm:$0xff] }
 0x2bf   :  { %5902 = vmatprep.subr.bf16.mxu0 %v20101_v16  ;;  %v20197_v16 = vcombine.high %v587_v37, %v595_v8  ;;  %v20196_v23 = vcombine.low %v587_v37, %v595_v8  ;;  %v516_v13 = vld [vmem:[%s33257_s1 + $0xef8] sm:$0xff] }
 0x2c0   :  { %6047 = vmatpush1.bf16.msra.mxu1 %v19942_v15  ;;  %v20038_v15 = vcombine.low %v428_v56, %v436_v1  ;;  %v20102_v56 = vcombine.low %v492_v41, %v500_v43  ;;  %v532_v62 = vld [vmem:[%s33257_s1 + $0xf78] sm:$0xff]  ;;  %v667_v1 = vld [vmem:[%s33257_s1 + $0x13b0] sm:$0xff] }
 0x2c1   :  { %6048 = vmatprep.subr.bf16.mxu1 %v19959_v19  ;;  %v603_v19 = vld [vmem:[%s33257_s1 + $0x11b0] sm:$0xff]  ;;  %v540_v37 = vld [vmem:[%s33257_s1 + $0xfb8] sm:$0xff] }
 0x2c2   :  { %5903 = vmatpush1.bf16.msra.mxu0 %v20100_v61  ;;  %v611_v61 = vld [vmem:[%s33257_s1 + $0x11f0] sm:$0xff]  ;;  %v548_v8 = vld [vmem:[%s33257_s1 + $0xff8] sm:$0xff] }
 0x2c3   :  { %5904 = vmatprep.subr.bf16.mxu0 %v20117_v9  ;;  %v20213_v9 = vcombine.high %v603_v19, %v611_v61 }
 0x2c4   :  { %6049 = vmatpush1.bf16.msra.mxu1 %v19958_v58  ;;  %v20054_v58 = vcombine.low %v444_v6, %v452_v17  ;;  %v20118_v6 = vcombine.low %v508_v25, %v516_v13 }
 0x2c5   :  { %6050 = vmatprep.subr.bf16.mxu1 %v19975_v31  ;;  %v619_v31 = vld [vmem:[%s33257_s1 + $0x1230] sm:$0xff] }
 0x2c6   :  { %5905 = vmatpush1.bf16.msra.mxu0 %v20116_v35  ;;  %v627_v35 = vld [vmem:[%s33257_s1 + $0x1270] sm:$0xff] }
 0x2c7   :  { %5906 = vmatprep.subr.bf16.mxu0 %v20133_v38  ;;  %v20212_v38 = vcombine.low %v603_v19, %v611_v61  ;;  %v20229_v40 = vcombine.high %v619_v31, %v627_v35  ;;  %v556_v19 = vld [vmem:[%s33257_s1 + $0x1038] sm:$0xff] }
 0x2c8   :  { %6051 = vmatpush1.bf16.msra.mxu1 %v19974_v36  ;;  %v20071_v36 = vcombine.high %v460_v18, %v468_v21  ;;  %v564_v61 = vld [vmem:[%s33257_s1 + $0x1078] sm:$0xff] }
 0x2c9   :  { %6052 = vmatprep.subr.bf16.mxu1 %v19991_v45  ;;  %v635_v45 = vld [vmem:[%s33257_s1 + $0x12b0] sm:$0xff] }
 0x2ca   :  { %5907 = vmatpush1.bf16.msra.mxu0 %v20132_v46  ;;  %v643_v46 = vld [vmem:[%s33257_s1 + $0x12f0] sm:$0xff] }
 0x2cb   :  { %5908 = vmatprep.subr.bf16.mxu0 %v20149_v49  ;;  %v20228_v49 = vcombine.low %v619_v31, %v627_v35  ;;  %v20245_v32 = vcombine.high %v635_v45, %v643_v46  ;;  %v572_v31 = vld [vmem:[%s33257_s1 + $0x10b8] sm:$0xff] }
 0x2cc   :  { %6053 = vmatpush1.bf16.msra.mxu1 %v19990_v48  ;;  %v20087_v48 = vcombine.high %v476_v28, %v484_v30  ;;  %v20150_v28 = vcombine.low %v540_v37, %v548_v8  ;;  %v580_v35 = vld [vmem:[%s33257_s1 + $0x10f8] sm:$0xff] }
 0x2cd   :  { %6054 = vmatprep.subr.bf16.mxu1 %v20007_v51  ;;  %v651_v51 = vld [vmem:[%s33257_s1 + $0x1330] sm:$0xff] }
 0x2ce   :  { %5909 = vmatpush1.bf16.msra.mxu0 %v20148_v53  ;;  %v659_v53 = vld [vmem:[%s33257_s1 + $0x1370] sm:$0xff] }
 0x2cf   :  { %5919 = vmatprep.subr.bf16.mxu0 %v20165_v55  ;;  %v20244_v55 = vcombine.low %v635_v45, %v643_v46  ;;  %v20261_v59 = vcombine.high %v651_v51, %v659_v53  ;;  %v588_v45 = vld [vmem:[%s33257_s1 + $0x1138] sm:$0xff] }
 0x2d0   :  { %6055 = vmatpush1.bf16.msra.mxu1 %v20006_v54  ;;  %v20103_v54 = vcombine.high %v492_v41, %v500_v43  ;;  %v20166_v41 = vcombine.low %v556_v19, %v564_v61  ;;  %v596_v46 = vld [vmem:[%s33257_s1 + $0x1178] sm:$0xff] }
 0x2d1   :  { %6056 = vmatprep.subr.bf16.mxu1 %v20023_v60  ;;  %5911 = vmatmul.mubr.bf16.vlgmr.msra.gmra.mrb[12].mxu0 %v25721_v29  ;;  %v524_v60 = vld [vmem:[%s33257_s1 + $0xf38] sm:$0xff] }
 0x2d2   :  { %5920 = vmatpush1.bf16.msra.mxu0 %v20164_v2  ;;  %5951 = vmatprep.mubr.bf16.mxu0 %v25731_v33  ;;  %v675_v2 = vld [vmem:[%s33257_s1 + $0x13f0] sm:$0xff]  ;;  %v20134_v18 = vcombine.low %v524_v60, %v532_v62 }
 0x2d3   :  { %5921 = vmatprep.subr.bf16.mxu0 %v20181_v34  ;;  %v20260_v34 = vcombine.low %v651_v51, %v659_v53  ;;  %v20277_v17 = vcombine.high %v667_v1, %v675_v2  ;;  %v604_v51 = vld [vmem:[%s33257_s1 + $0x11b8] sm:$0xff] }
 0x2d4   :  { %6057 = vmatpush1.bf16.msra.mxu1 %v20022_v4  ;;  %v20119_v4 = vcombine.high %v508_v25, %v516_v13  ;;  %v20182_v25 = vcombine.low %v572_v31, %v580_v35  ;;  %v612_v53 = vld [vmem:[%s33257_s1 + $0x11f8] sm:$0xff] }
 0x2d5   :  { %6058 = vmatprep.subr.bf16.mxu1 %v20039_v11  ;;  %v683_v11 = vld [vmem:[%s33257_s1 + $0x1430] sm:$0xff] }
 0x2d6   :  { %5922 = vmatpush1.bf16.msra.mxu0 %v20180_v14  ;;  %v691_v14 = vld [vmem:[%s33257_s1 + $0x1470] sm:$0xff] }
 0x2d7   :  { %5923 = vmatprep.subr.bf16.mxu0 %v20197_v16  ;;  %v20276_v16 = vcombine.low %v667_v1, %v675_v2  ;;  %v20293_v21 = vcombine.high %v683_v11, %v691_v14  ;;  %v628_v1 = vld [vmem:[%s33257_s1 + $0x1278] sm:$0xff]  ;;  %v763_v2 = vld [vmem:[%s33257_s1 + $0x16b0] sm:$0xff] }
 0x2d8   :  { %6059 = vmatpush1.bf16.msra.mxu1 %v20038_v15  ;;  %v20135_v15 = vcombine.high %v524_v60, %v532_v62  ;;  %v620_v62 = vld [vmem:[%s33257_s1 + $0x1238] sm:$0xff] }
 0x2d9   :  { %6060 = vmatprep.subr.bf16.mxu1 %v20055_v20  ;;  %v699_v20 = vld [vmem:[%s33257_s1 + $0x14b0] sm:$0xff] }
 0x2da   :  { %5924 = vmatpush1.bf16.msra.mxu0 %v20196_v23  ;;  %v707_v23 = vld [vmem:[%s33257_s1 + $0x14f0] sm:$0xff] }
 0x2db   :  { %5925 = vmatprep.subr.bf16.mxu0 %v20213_v9  ;;  %v20292_v9 = vcombine.low %v683_v11, %v691_v14  ;;  %v20309_v30 = vcombine.high %v699_v20, %v707_v23  ;;  %v20231_v11 = vcombine.high %v620_v62, %v628_v1  ;;  %v787_v14 = vld [vmem:[%s33257_s1 + $0x1770] sm:$0xff] }
 0x2dc   :  { %6061 = vmatpush1.bf16.msra.mxu1 %v20054_v58  ;;  %v20151_v58 = vcombine.high %v540_v37, %v548_v8  ;;  %v636_v37 = vld [vmem:[%s33257_s1 + $0x12b8] sm:$0xff]  ;;  %v779_v8 = vld [vmem:[%s33257_s1 + $0x1730] sm:$0xff] }
 0x2dd   :  { %6062 = vmatprep.subr.bf16.mxu1 %v20071_v36  ;;  %v715_v36 = vld [vmem:[%s33257_s1 + $0x1530] sm:$0xff] }
 0x2de   :  { %5926 = vmatpush1.bf16.msra.mxu0 %v20212_v38  ;;  %v723_v38 = vld [vmem:[%s33257_s1 + $0x1570] sm:$0xff] }
 0x2df   :  { %5927 = vmatprep.subr.bf16.mxu0 %v20229_v40  ;;  %v20308_v40 = vcombine.low %v699_v20, %v707_v23  ;;  %v20325_v43 = vcombine.high %v715_v36, %v723_v38  ;;  %v795_v20 = vld [vmem:[%s33257_s1 + $0x17b0] sm:$0xff] }
 0x2e0   :  { %6063 = vmatpush1.bf16.msra.mxu1 %v20070_v39  ;;  %v20167_v39 = vcombine.high %v556_v19, %v564_v61  ;;  %v652_v19 = vld [vmem:[%s33257_s1 + $0x1338] sm:$0xff]  ;;  %v803_v23 = vld [vmem:[%s33257_s1 + $0x17f0] sm:$0xff] }
 0x2e1   :  { %6064 = vmatprep.subr.bf16.mxu1 %v20087_v48  ;;  %v731_v48 = vld [vmem:[%s33257_s1 + $0x15b0] sm:$0xff]  ;;  %v660_v61 = vld [vmem:[%s33257_s1 + $0x1378] sm:$0xff] }
 0x2e2   :  { %5928 = vmatpush1.bf16.msra.mxu0 %v20228_v49  ;;  %v739_v49 = vld [vmem:[%s33257_s1 + $0x15f0] sm:$0xff] }
 0x2e3   :  { %5929 = vmatprep.subr.bf16.mxu0 %v20245_v32  ;;  %v20324_v32 = vcombine.low %v715_v36, %v723_v38  ;;  %v20341_v13 = vcombine.high %v731_v48, %v739_v49  ;;  %v811_v36 = vld [vmem:[%s33257_s1 + $0x1830] sm:$0xff] }
 0x2e4   :  { %6065 = vmatpush1.bf16.msra.mxu1 %v20086_v50  ;;  %v20183_v50 = vcombine.high %v572_v31, %v580_v35  ;;  %v668_v31 = vld [vmem:[%s33257_s1 + $0x13b8] sm:$0xff]  ;;  %v819_v38 = vld [vmem:[%s33257_s1 + $0x1870] sm:$0xff] }
 0x2e5   :  { %6066 = vmatprep.subr.bf16.mxu1 %v20103_v54  ;;  %v747_v54 = vld [vmem:[%s33257_s1 + $0x1630] sm:$0xff]  ;;  %v676_v35 = vld [vmem:[%s33257_s1 + $0x13f8] sm:$0xff] }
 0x2e6   :  { %5930 = vmatpush1.bf16.msra.mxu0 %v20244_v55  ;;  %v20199_v55 = vcombine.high %v588_v45, %v596_v46 }
 0x2e7   :  { %5931 = vmatprep.subr.bf16.mxu0 %v20261_v59  ;;  %v20198_v59 = vcombine.low %v588_v45, %v596_v46  ;;  %v692_v45 = vld [vmem:[%s33257_s1 + $0x1478] sm:$0xff]  ;;  %v20421_v46 = vcombine.high %v811_v36, %v819_v38 }
 0x2e8   :  { %6067 = vmatpush1.bf16.msra.mxu1 %v20102_v56  ;;  %v20340_v56 = vcombine.low %v731_v48, %v739_v49  ;;  %v20279_v48 = vcombine.high %v668_v31, %v676_v35  ;;  %v20420_v49 = vcombine.low %v811_v36, %v819_v38  ;;  %v22791_v38 = vld [vmem:[%s33260_s3 + $0x1a4] ss:$52 sps:$4 sm:$0xff]  }
 0x2e9   :  { %6068 = vmatprep.subr.bf16.mxu1 %v20119_v4  ;;  %v20215_v4 = vcombine.high %v604_v51, %v612_v53 }
 0x2ea   :  { %5932 = vmatpush1.bf16.msra.mxu0 %v20260_v34 }
 0x2eb   :  { %5933 = vmatprep.subr.bf16.mxu0 %v20277_v17 }
 0x2ec   :  { %6069 = vmatpush1.bf16.msra.mxu1 %v20118_v6  ;;  %v20214_v6 = vcombine.low %v604_v51, %v612_v53 }
 0x2ed   :  { %6070 = vmatprep.subr.bf16.mxu1 %v20135_v15  ;;  %v644_v15 = vld [vmem:[%s33257_s1 + $0x12f8] sm:$0xff] }
 0x2ee   :  { %5934 = vmatpush1.bf16.msra.mxu0 %v20276_v16 }
 0x2ef   :  { %5935 = vmatprep.subr.bf16.mxu0 %v20293_v21  ;;  %v20389_v21 = vcombine.high %v779_v8, %v787_v14 }
 0x2f0   :  { %6071 = vmatpush1.bf16.msra.mxu1 %v20134_v18  ;;  %v20230_v18 = vcombine.low %v620_v62, %v628_v1  ;;  %v6166_v62 = vmax.f32 %v26606_v47, 0.0  ;;  %v756_v47 = vld [vmem:[%s33257_s1 + $0x1678] sm:$0xff] }
 0x2f1   :  { %6072 = vmatprep.subr.bf16.mxu1 %v20151_v58  ;;  %v20247_v58 = vcombine.high %v636_v37, %v644_v15 }
 0x2f2   :  { %5936 = vmatpush1.bf16.msra.mxu0 %v20292_v9  ;;  %v20388_v9 = vcombine.low %v779_v8, %v787_v14  ;;  %v22780_v8 = vld [vmem:[%s33260_s3 + $0x68] ss:$52 sps:$4 sm:$0xff]  }
 0x2f3   :  { %5937 = vmatprep.subr.bf16.mxu0 %v20309_v30  ;;  %v20405_v30 = vcombine.high %v795_v20, %v803_v23  ;;  %v22785_v14 = vld [vmem:[%s33260_s3 + $0xd4] ss:$52 sps:$4 sm:$0xff]  }
 0x2f4   :  { %6073 = vmatpush1.bf16.msra.mxu1 %v20150_v28  ;;  %v20246_v28 = vcombine.low %v636_v37, %v644_v15  ;;  %v27790_v37 = vld [vmem:[%s33258_s0 + $0x18] ss:$0 sps:$4 sm:$0xff]  }
 0x2f5   :  { %6083 = vmatprep.subr.bf16.mxu1 %v20167_v39  ;;  %v20263_v39 = vcombine.high %v652_v19, %v660_v61  ;;  %v764_v15 = vld [vmem:[%s33257_s1 + $0x16b8] sm:$0xff] }
 0x2f6   :  { %5938 = vmatpush1.bf16.msra.mxu0 %v20308_v40  ;;  %v20404_v40 = vcombine.low %v795_v20, %v803_v23  ;;  %v780_v20 = vld [vmem:[%s33257_s1 + $0x1738] sm:$0xff] }
 0x2f7   :  { %6075 = vmatmul.mubr.bf16.vlgmr.msra.gmra.mrb[20].mxu1 %v25721_v29  ;;  %5939 = vmatprep.subr.bf16.mxu0 %v20325_v43  ;;  %v755_v29 = vld [vmem:[%s33257_s1 + $0x1670] sm:$0xff]  ;;  %v684_v43 = vld [vmem:[%s33257_s1 + $0x1438] sm:$0xff] }
 0x2f8   :  { %6084 = vmatpush1.bf16.msra.mxu1 %v20166_v41  ;;  %6115 = vmatprep.mubr.bf16.mxu1 %v25731_v33  ;;  %v20357_v60 = vcombine.high %v747_v54, %v755_v29  ;;  %v771_v33 = vld [vmem:[%s33257_s1 + $0x16f0] sm:$0xff]  ;;  %v20356_v34 = vcombine.low %v747_v54, %v755_v29  ;;  %v20262_v41 = vcombine.low %v652_v19, %v660_v61  ;;  %v716_v54 = vld [vmem:[%s33257_s1 + $0x1538] sm:$0xff] }
 0x2f9   :  { %6085 = vmatprep.subr.bf16.mxu1 %v20183_v50  ;;  %v20373_v17 = vcombine.high %v763_v2, %v771_v33  ;;  %v20372_v16 = vcombine.low %v763_v2, %v771_v33  ;;  %v20278_v50 = vcombine.low %v668_v31, %v676_v35  ;;  %v20295_v51 = vcombine.high %v684_v43, %v692_v45  ;;  %v724_v29 = vld [vmem:[%s33257_s1 + $0x1578] sm:$0xff]  ;;  %v22777_v2 = vld [vmem:[%s33260_s3] ss:$52 sps:$4 sm:$0xff]  }
 0x2fa   :  { %5940 = vmatpush1.bf16.msra.mxu0 %v20324_v32  ;;  %v700_v32 = vld [vmem:[%s33257_s1 + $0x14b8] sm:$0xff]  ;;  %v20294_v53 = vcombine.low %v684_v43, %v692_v45  ;;  %v20327_v1 = vcombine.high %v716_v54, %v724_v29  ;;  %v20326_v33 = vcombine.low %v716_v54, %v724_v29  ;;  %v22789_v43 = vld [vmem:[%s33260_s3 + $0x1a0] ss:$52 sps:$4 sm:$0xff]  }
 0x2fb   :  { %5941 = vmatprep.subr.bf16.mxu0 %v20341_v13  ;;  %v22779_v13 = vld [vmem:[%s33260_s3 + $0x4] ss:$52 sps:$4 sm:$0xff]   ;;  %v22788_v61 = vld [vmem:[%s33260_s3 + $0x13c] ss:$52 sps:$4 sm:$0xff]  }
 0x2fc   :  { %6086 = vmatpush1.bf16.msra.mxu1 %v20182_v25  ;;  %v708_v25 = vld [vmem:[%s33257_s1 + $0x14f8] sm:$0xff] }
 0x2fd   :  { %6087 = vmatprep.subr.bf16.mxu1 %v20199_v55  ;;  %v20311_v55 = vcombine.high %v700_v32, %v708_v25  ;;  %v788_v23 = vld [vmem:[%s33257_s1 + $0x1778] sm:$0xff] }
 0x2fe   :  { %5942 = vmatpush1.bf16.msra.mxu0 %v20340_v56  ;;  %v20310_v56 = vcombine.low %v700_v32, %v708_v25  ;;  %v22786_v31 = vld [vmem:[%s33260_s3 + $0x138] ss:$52 sps:$4 sm:$0xff]   ;;  %v20390_v45 = vcombine.low %v780_v20, %v788_v23  ;;  %v22792_v32 = vld [vmem:[%s33260_s3 + $0x208] ss:$52 sps:$4 sm:$0xff]  }
 0x2ff   :  { %5943 = vmatprep.subr.bf16.mxu0 %v20357_v60  ;;  %v740_v60 = vld [vmem:[%s33257_s1 + $0x15f8] sm:$0xff] }
 0x300   :  { %6088 = vmatpush1.bf16.msra.mxu1 %v20198_v59  ;;  %v732_v59 = vld [vmem:[%s33257_s1 + $0x15b8] sm:$0xff] }
 0x301   :  { %6089 = vmatprep.subr.bf16.mxu1 %v20215_v4  ;;  %v22782_v4 = vld [vmem:[%s33260_s3 + $0x6c] ss:$52 sps:$4 sm:$0xff]   ;;  %v22800_v29 = vld [vmem:[%s33260_s3 + $0x2dc] ss:$52 sps:$4 sm:$0xff]  }
 0x302   :  { %5944 = vmatpush1.bf16.msra.mxu0 %v20356_v34  ;;  %v748_v34 = vld [vmem:[%s33257_s1 + $0x1638] sm:$0xff] }
 0x303   :  { %5945 = vmatprep.subr.bf16.mxu0 %v20373_v17  ;;  %v20343_v17 = vcombine.high %v732_v59, %v740_v60  ;;  %v20358_v19 = vcombine.low %v748_v34, %v756_v47 }
 0x304   :  { %6090 = vmatpush1.bf16.msra.mxu1 %v20214_v6  ;;  %v27785_v6 = vpack.c.bf16 %v6166_v62, %v6166_v62  ;;  %v22804_v62 = vld [vmem:[%s33260_s3 + $0x8] ss:$52 sps:$4 sm:$0xff]  }
 0x305   :  { %6091 = vmatprep.subr.bf16.mxu1 %v20231_v11  ;;  %v20342_v11 = vcombine.low %v732_v59, %v740_v60  ;;  %v22803_v59 = vld [vmem:[%s33260_s3 + $0x344] ss:$52 sps:$4 sm:$0xff]   ;;  %v22801_v60 = vld [vmem:[%s33260_s3 + $0x340] ss:$52 sps:$4 sm:$0xff]  }
 0x306   :  { %5946 = vmatpush1.bf16.msra.mxu0 %v20372_v16  ;;  %v772_v16 = vld [vmem:[%s33257_s1 + $0x16f8] sm:$0xff] }
 0x307   :  { %5947 = vmatprep.subr.bf16.mxu0 %v20389_v21  ;;  %v22783_v21 = vld [vmem:[%s33260_s3 + $0xd0] ss:$52 sps:$4 sm:$0xff]   ;;  %v20374_v35 = vcombine.low %v764_v15, %v772_v16 }
 0x308   :  { %6092 = vmatpush1.bf16.msra.mxu1 %v20230_v18  ;;  %v20359_v18 = vcombine.high %v748_v34, %v756_v47  ;;  %v22810_v34 = vld [vmem:[%s33260_s3 + $0x70] ss:$52 sps:$4 sm:$0xff]  }
 0x309   :  { %6093 = vmatprep.subr.bf16.mxu1 %v20247_v58  ;;  %v22818_v47 = vld [vmem:[%s33260_s3 + $0xdc] ss:$52 sps:$4 sm:$0xff]  }
 0x30a   :  { %5948 = vmatpush1.bf16.msra.mxu0 %v20388_v9  ;;  %v20375_v9 = vcombine.high %v764_v15, %v772_v16 }
 0x30b   :  { %5949 = vmatprep.subr.bf16.mxu0 %v20405_v30 }
 0x30c   :  { %6094 = vmatpush1.bf16.msra.mxu1 %v20246_v28 }
 0x30d   :  { %6095 = vmatprep.subr.bf16.mxu1 %v20263_v39  ;;  %v796_v39 = vld [vmem:[%s33257_s1 + $0x17b8] sm:$0xff] }
 0x30e   :  { %5950 = vmatpush1.bf16.msra.mxu0 %v20404_v40  ;;  %v20391_v40 = vcombine.high %v780_v20, %v788_v23  ;;  %v27929_v20 = vsub.s32 3, %v26553_v63 }
 0x30f   :  { %5960 = vmatprep.subr.bf16.mxu0 %v20421_v46  ;;  %v22794_v46 = vld [vmem:[%s33260_s3 + $0x20c] ss:$52 sps:$4 sm:$0xff]  }
 0x310   :  { %6096 = vmatpush1.bf16.msra.mxu1 %v20262_v41  ;;  %v804_v41 = vld [vmem:[%s33257_s1 + $0x17f8] sm:$0xff] }
 0x311   :  { %6097 = vmatprep.subr.bf16.mxu1 %v20279_v48  ;;  %5952 = vmatmul.mubr.bf16.vlgmr.msra.gmra.mrb[12].mxu0 %v25925_v44  ;;  %v812_v48 = vld [vmem:[%s33257_s1 + $0x1838] sm:$0xff]  ;;  %v20406_v25 = vcombine.low %v796_v39, %v804_v41 }
 0x312   :  { %5961 = vmatpush1.bf16.msra.mxu0 %v20420_v49  ;;  %5992 = vmatprep.mubr.bf16.mxu0 %v25226_v3  ;;  %v820_v49 = vld [vmem:[%s33257_s1 + $0x1878] sm:$0xff] }
 0x313   :  { %16110 = vmatprep.subr.bf16.mxu0 %v22779_v13  ;;  %v22797_v13 = vld [vmem:[%s33260_s3 + $0x274] ss:$52 sps:$4 sm:$0xff]   ;;  %v20422_v54 = vcombine.low %v812_v48, %v820_v49 }
 0x314   :  { %6098 = vmatpush1.bf16.msra.mxu1 %v20278_v50  ;;  %v20407_v50 = vcombine.high %v796_v39, %v804_v41  ;;  %v22834_v41 = vld [vmem:[%s33260_s3 + $0x210] ss:$52 sps:$4 sm:$0xff]  }
 0x315   :  { %6099 = vmatprep.subr.bf16.mxu1 %v20295_v51  ;;  %v20423_v51 = vcombine.high %v812_v48, %v820_v49  ;;  %v6165_v48 = vmax.f32 %v26603_v42, 0.0  ;;  %v22843_v49 = vld [vmem:[%s33260_s3 + $0x618] ss:$52 sps:$4 sm:$0xff]  }
 0x318   :  { %6100 = vmatpush1.bf16.msra.mxu1 %v20294_v53  ;;  %v22795_v53 = vld [vmem:[%s33260_s3 + $0x270] ss:$52 sps:$4 sm:$0xff]  }
 0x319   :  { %6101 = vmatprep.subr.bf16.mxu1 %v20311_v55  ;;  %v22806_v55 = vld [vmem:[%s33260_s3 + $0xc] ss:$52 sps:$4 sm:$0xff]  }
 0x31c   :  { %6102 = vmatpush1.bf16.msra.mxu1 %v20310_v56  ;;  %v22798_v56 = vld [vmem:[%s33260_s3 + $0x2d8] ss:$52 sps:$4 sm:$0xff]  }
 0x31d   :  { %6103 = vmatprep.subr.bf16.mxu1 %v20327_v1  ;;  %20430 = vmatmul.mubr.msk.bf16.vlgmr.msra.gmra.mrb[12].mxu0 %vm4849_vm0, %v27790_v37  ;;  %v22807_v1 = vld [vmem:[%s33260_s3 + $0x3a8] ss:$52 sps:$4 sm:$0xff]  }
 0x31e   :  { %16111 = vmatpush1.bf16.msra.mxu0 %v22777_v2  ;;  %16142 = vmatprep.mubr.bf16.mxu0 %v27785_v6  ;;  %v22812_v2 = vld [vmem:[%s33260_s3 + $0x74] ss:$52 sps:$4 sm:$0xff]  }
 0x31f   :  { %16112 = vmatprep.subr.bf16.mxu0 %v22782_v4  ;;  %v22813_v4 = vld [vmem:[%s33260_s3 + $0x410] ss:$52 sps:$4 sm:$0xff]  }
 0x320   :  { %6104 = vmatpush1.bf16.msra.mxu1 %v20326_v33  ;;  %v22815_v33 = vld [vmem:[%s33260_s3 + $0x414] ss:$52 sps:$4 sm:$0xff]  }
 0x321   :  { %6105 = vmatprep.subr.bf16.mxu1 %v20343_v17  ;;  %v22821_v17 = vld [vmem:[%s33260_s3 + $0x47c] ss:$52 sps:$4 sm:$0xff]  }
 0x322   :  { %16113 = vmatpush1.bf16.msra.mxu0 %v22780_v8  ;;  %v22816_v8 = vld [vmem:[%s33260_s3 + $0xd8] ss:$52 sps:$4 sm:$0xff]  }
 0x323   :  { %16114 = vmatprep.subr.bf16.mxu0 %v22785_v14  ;;  %v22827_v14 = vld [vmem:[%s33260_s3 + $0x4e4] ss:$52 sps:$4 sm:$0xff]  }
 0x324   :  { %6106 = vmatpush1.bf16.msra.mxu1 %v20342_v11  ;;  %v27819_v58 = vpop.f32.mrb[8].mxu0  ;;  %v22824_v11 = vld [vmem:[%s33260_s3 + $0x144] ss:$52 sps:$4 sm:$0xff]  }
 0x325   :  { %6107 = vmatprep.subr.bf16.mxu1 %v20359_v18  ;;  %v27821_v28 = vpop.f32.mrb[9].mxu0  ;;  %v22825_v18 = vld [vmem:[%s33260_s3 + $0x4e0] ss:$52 sps:$4 sm:$0xff]  }
 0x326   :  { %16115 = vmatpush1.bf16.msra.mxu0 %v22783_v21  ;;  %v5670_v30 = vpop.f32.mrb[10].mxu0 }
 0x327   :  { %v5671_v36 = vpop.f32.mrb[11].mxu0  ;;  %16116 = vmatprep.subr.bf16.mxu0 %v22788_v61  ;;  %v22833_v61 = vld [vmem:[%s33260_s3 + $0x54c] ss:$52 sps:$4 sm:$0xff]   ;;  %v22831_v30 = vld [vmem:[%s33260_s3 + $0x548] ss:$52 sps:$4 sm:$0xff]  }
 0x328   :  { %6108 = vmatpush1.bf16.msra.mxu1 %v20358_v19  ;;  %v22822_v19 = vld [vmem:[%s33260_s3 + $0x140] ss:$52 sps:$4 sm:$0xff]  }
 0x329   :  { %6109 = vmatprep.subr.bf16.mxu1 %v20375_v9  ;;  %v22830_v9 = vld [vmem:[%s33260_s3 + $0x1ac] ss:$52 sps:$4 sm:$0xff]   ;;  %v22839_v36 = vld [vmem:[%s33260_s3 + $0x5b4] ss:$52 sps:$4 sm:$0xff]  }
 0x32a   :  { %16117 = vmatpush1.bf16.msra.mxu0 %v22786_v31  ;;  %v22828_v31 = vld [vmem:[%s33260_s3 + $0x1a8] ss:$52 sps:$4 sm:$0xff]  }
 0x32b   :  { %16118 = vmatprep.subr.bf16.mxu0 %v22791_v38  ;;  %v27949_v38 = vld [vmem:[%s33259_s2] sm:$0xff] }
 0x32c   :  { %6110 = vmatpush1.bf16.msra.mxu1 %v20374_v35  ;;  %v22836_v35 = vld [vmem:[%s33260_s3 + $0x214] ss:$52 sps:$4 sm:$0xff]   ;;  %v840_v39 = vrot.slane %v27949_v38, %v27929_v20 }
 0x32d   :  { %6111 = vmatprep.subr.bf16.mxu1 %v20391_v40  ;;  %v22837_v40 = vld [vmem:[%s33260_s3 + $0x5b0] ss:$52 sps:$4 sm:$0xff]  }
 0x32e   :  { %16119 = vmatpush1.bf16.msra.mxu0 %v22789_v43  ;;  %v22842_v43 = vld [vmem:[%s33260_s3 + $0x27c] ss:$52 sps:$4 sm:$0xff]  }
 0x32f   :  { %16120 = vmatprep.subr.bf16.mxu0 %v22794_v46  ;;  %v22484_v46 = vadd.f32 %v26655_v10, %v840_v39  ;;  %v22851_v10 = vld [vmem:[%s33260_s3 + $0x684] ss:$52 sps:$4 sm:$0xff]  }
 0x330   :  { %6112 = vmatpush1.bf16.msra.mxu1 %v20390_v45  ;;  %v22845_v45 = vld [vmem:[%s33260_s3 + $0x61c] ss:$52 sps:$4 sm:$0xff]   ;;  %v22899_v39 = vld [vmem:[%s33260_s3 + $0x9c4] ss:$52 sps:$4 sm:$0xff]  }
 0x331   :  { %6113 = vmatprep.subr.bf16.mxu1 %v20407_v50  ;;  %v22840_v50 = vld [vmem:[%s33260_s3 + $0x278] ss:$52 sps:$4 sm:$0xff]   ;;  %v6168_v42 = vmax.f32 %v22484_v46, 0.0  ;;  %v22900_v46 = vld [vmem:[%s33260_s3 + $0x688] ss:$52 sps:$4 sm:$0xff]  }
 0x332   :  { %16121 = vmatpush1.bf16.msra.mxu0 %v22792_v32  ;;  %v22848_v32 = vld [vmem:[%s33260_s3 + $0x2e4] ss:$52 sps:$4 sm:$0xff]  }
 0x333   :  { %16122 = vmatprep.subr.bf16.mxu0 %v22797_v13  ;;  %v27982_v13 = vpack.c.bf16 %v6165_v48, %v6165_v48  ;;  %v22903_v48 = vld [vmem:[%s33260_s3 + $0xa28] ss:$52 sps:$4 sm:$0xff]  }
 0x334   :  { %6114 = vmatpush1.bf16.msra.mxu1 %v20406_v25  ;;  %v22849_v25 = vld [vmem:[%s33260_s3 + $0x680] ss:$52 sps:$4 sm:$0xff]  }
 0x335   :  { %6124 = vmatprep.subr.bf16.mxu1 %v20423_v51  ;;  %v22846_v51 = vld [vmem:[%s33260_s3 + $0x2e0] ss:$52 sps:$4 sm:$0xff]  }
 0x336   :  { %16123 = vmatpush1.bf16.msra.mxu0 %v22795_v53  ;;  %v22854_v53 = vld [vmem:[%s33260_s3 + $0x34c] ss:$52 sps:$4 sm:$0xff]  }
 0x337   :  { %6116 = vmatmul.mubr.bf16.vlgmr.msra.gmra.mrb[20].mxu1 %v25925_v44  ;;  %16124 = vmatprep.subr.bf16.mxu0 %v22800_v29  ;;  %v22809_v44 = vld [vmem:[%s33260_s3 + $0x3ac] ss:$52 sps:$4 sm:$0xff]   ;;  %v27993_v29 = vpack.c.bf16 %v6168_v42, %v6168_v42  ;;  %v22914_v42 = vld [vmem:[%s33260_s3 + $0x75c] ss:$52 sps:$4 sm:$0xff]  }
 0x338   :  { %6125 = vmatpush1.bf16.msra.mxu1 %v20422_v54  ;;  %6156 = vmatprep.mubr.bf16.mxu1 %v25226_v3  ;;  %v22857_v54 = vld [vmem:[%s33260_s3 + $0x6ec] ss:$52 sps:$4 sm:$0xff]  }
 0x339   :  { %16438 = vmatprep.subr.bf16.mxu1 %v22806_v55  ;;  %v22855_v55 = vld [vmem:[%s33260_s3 + $0x6e8] ss:$52 sps:$4 sm:$0xff]  }
 0x33a   :  { %16125 = vmatpush1.bf16.msra.mxu0 %v22798_v56  ;;  %v22852_v56 = vld [vmem:[%s33260_s3 + $0x348] ss:$52 sps:$4 sm:$0xff]  }
 0x33b   :  { %16126 = vmatprep.subr.bf16.mxu0 %v22803_v59  ;;  %v22860_v59 = vld [vmem:[%s33260_s3 + $0x3b4] ss:$52 sps:$4 sm:$0xff]  }
 0x33e   :  { %16127 = vmatpush1.bf16.msra.mxu0 %v22801_v60  ;;  %v22863_v60 = vld [vmem:[%s33260_s3 + $0x754] ss:$52 sps:$4 sm:$0xff]  }
 0x33f   :  { %16128 = vmatprep.subr.bf16.mxu0 %v22809_v44  ;;  %v22861_v44 = vld [vmem:[%s33260_s3 + $0x750] ss:$52 sps:$4 sm:$0xff]  }
 0x342   :  { %16129 = vmatpush1.bf16.msra.mxu0 %v22807_v1  ;;  %v22866_v1 = vld [vmem:[%s33260_s3 + $0x41c] ss:$52 sps:$4 sm:$0xff]  }
 0x343   :  { %20431 = vmatmul.mubr.msk.bf16.vlgmr.msra.gmra.mrb[20].mxu1 %vm4849_vm0, %v27790_v37  ;;  %16130 = vmatprep.subr.bf16.mxu0 %v22815_v33  ;;  %v22819_v37 = vld [vmem:[%s33260_s3 + $0x478] ss:$52 sps:$4 sm:$0xff]  }
 0x344   :  { %16439 = vmatpush1.bf16.msra.mxu1 %v22804_v62  ;;  %16470 = vmatprep.mubr.bf16.mxu1 %v27785_v6  ;;  %v22858_v62 = vld [vmem:[%s33260_s3 + $0x3b0] ss:$52 sps:$4 sm:$0xff]   ;;  %v22867_v33 = vld [vmem:[%s33260_s3 + $0x7b8] ss:$52 sps:$4 sm:$0xff]  }
 0x345   :  { %16440 = vmatprep.subr.bf16.mxu1 %v22812_v2  ;;  %v22869_v2 = vld [vmem:[%s33260_s3 + $0x7bc] ss:$52 sps:$4 sm:$0xff]  }
 0x346   :  { %16131 = vmatpush1.bf16.msra.mxu0 %v22813_v4  ;;  %v22864_v4 = vld [vmem:[%s33260_s3 + $0x418] ss:$52 sps:$4 sm:$0xff]  }
 0x347   :  { %16132 = vmatprep.subr.bf16.mxu0 %v22821_v17  ;;  %v22873_v17 = vld [vmem:[%s33260_s3 + $0x820] ss:$52 sps:$4 sm:$0xff]  }
 0x348   :  { %16441 = vmatpush1.bf16.msra.mxu1 %v22810_v34  ;;  %v22872_v34 = vld [vmem:[%s33260_s3 + $0x484] ss:$52 sps:$4 sm:$0xff]  }
 0x349   :  { %16442 = vmatprep.subr.bf16.mxu1 %v22818_v47  ;;  %v22875_v47 = vld [vmem:[%s33260_s3 + $0x824] ss:$52 sps:$4 sm:$0xff]  }
 0x34a   :  { %v27915_v15 = vpop.f32.mrb[16].mxu1  ;;  %16133 = vmatpush1.bf16.msra.mxu0 %v22819_v37  ;;  %v22870_v37 = vld [vmem:[%s33260_s3 + $0x480] ss:$52 sps:$4 sm:$0xff]  }
 0x34b   :  { %v27917_v16 = vpop.f32.mrb[17].mxu1  ;;  %16134 = vmatprep.subr.bf16.mxu0 %v22827_v14  ;;  %v22879_v14 = vld [vmem:[%s33260_s3 + $0x888] ss:$52 sps:$4 sm:$0xff]  }
 0x34c   :  { %16443 = vmatpush1.bf16.msra.mxu1 %v22816_v8  ;;  %v5834_v21 = vpop.f32.mrb[18].mxu1  ;;  %v22878_v8 = vld [vmem:[%s33260_s3 + $0x4ec] ss:$52 sps:$4 sm:$0xff]  }
 0x34d   :  { %v5835_v23 = vpop.f32.mrb[19].mxu1  ;;  %16444 = vmatprep.subr.bf16.mxu1 %v22824_v11  ;;  %v22881_v11 = vld [vmem:[%s33260_s3 + $0x88c] ss:$52 sps:$4 sm:$0xff]   ;;  %v22884_v21 = vld [vmem:[%s33260_s3 + $0x554] ss:$52 sps:$4 sm:$0xff]  }
 0x34e   :  { %16135 = vmatpush1.bf16.msra.mxu0 %v22825_v18  ;;  %v22876_v18 = vld [vmem:[%s33260_s3 + $0x4e8] ss:$52 sps:$4 sm:$0xff]   ;;  %v22885_v23 = vld [vmem:[%s33260_s3 + $0x8f0] ss:$52 sps:$4 sm:$0xff]  }
 0x34f   :  { %16136 = vmatprep.subr.bf16.mxu0 %v22833_v61  ;;  %v22882_v61 = vld [vmem:[%s33260_s3 + $0x550] ss:$52 sps:$4 sm:$0xff]  }
 0x350   :  { %16445 = vmatpush1.bf16.msra.mxu1 %v22822_v19  ;;  %v22887_v19 = vld [vmem:[%s33260_s3 + $0x8f4] ss:$52 sps:$4 sm:$0xff]  }
 0x351   :  { %16446 = vmatprep.subr.bf16.mxu1 %v22830_v9  ;;  %v22893_v9 = vld [vmem:[%s33260_s3 + $0x95c] ss:$52 sps:$4 sm:$0xff]  }
 0x352   :  { %16137 = vmatpush1.bf16.msra.mxu0 %v22831_v30  ;;  %v22890_v30 = vld [vmem:[%s33260_s3 + $0x5bc] ss:$52 sps:$4 sm:$0xff]  }
 0x353   :  { %16138 = vmatprep.subr.bf16.mxu0 %v22839_v36  ;;  %v22896_v36 = vld [vmem:[%s33260_s3 + $0x624] ss:$52 sps:$4 sm:$0xff]  }
 0x354   :  { %16447 = vmatpush1.bf16.msra.mxu1 %v22828_v31  ;;  %v22891_v31 = vld [vmem:[%s33260_s3 + $0x958] ss:$52 sps:$4 sm:$0xff]  }
 0x355   :  { %16448 = vmatprep.subr.bf16.mxu1 %v22836_v35  ;;  %v22888_v35 = vld [vmem:[%s33260_s3 + $0x5b8] ss:$52 sps:$4 sm:$0xff]  }
 0x356   :  { %16139 = vmatpush1.bf16.msra.mxu0 %v22837_v40  ;;  %v22897_v40 = vld [vmem:[%s33260_s3 + $0x9c0] ss:$52 sps:$4 sm:$0xff]  }
 0x357   :  { %16140 = vmatprep.subr.bf16.mxu0 %v22845_v45  ;;  %v22905_v45 = vld [vmem:[%s33260_s3 + $0xa2c] ss:$52 sps:$4 sm:$0xff]  }
 0x358   :  { %16449 = vmatpush1.bf16.msra.mxu1 %v22834_v41  ;;  %v22894_v41 = vld [vmem:[%s33260_s3 + $0x620] ss:$52 sps:$4 sm:$0xff]  }
 0x359   :  { %16450 = vmatprep.subr.bf16.mxu1 %v22842_v43  ;;  %v22902_v43 = vld [vmem:[%s33260_s3 + $0x68c] ss:$52 sps:$4 sm:$0xff]  }
 0x35a   :  { %16141 = vmatpush1.bf16.msra.mxu0 %v22843_v49  ;;  %v22908_v49 = vld [vmem:[%s33260_s3 + $0x6f4] ss:$52 sps:$4 sm:$0xff]  }
 0x35b   :  { %16151 = vmatprep.subr.bf16.mxu0 %v22851_v10  ;;  %v22906_v10 = vld [vmem:[%s33260_s3 + $0x6f0] ss:$52 sps:$4 sm:$0xff]  }
 0x35c   :  { %16451 = vmatpush1.bf16.msra.mxu1 %v22840_v50  ;;  %v22911_v50 = vld [vmem:[%s33260_s3 + $0xa94] ss:$52 sps:$4 sm:$0xff]  }
 0x35d   :  { %16452 = vmatprep.subr.bf16.mxu1 %v22848_v32  ;;  %16143 = vmatmul.mubr.bf16.vlgmr.msra.gmra.mrb[16].mxu0 %v27982_v13  ;;  %v22909_v32 = vld [vmem:[%s33260_s3 + $0xa90] ss:$52 sps:$4 sm:$0xff]  }
 0x35e   :  { %16152 = vmatpush1.bf16.msra.mxu0 %v22849_v25  ;;  %16183 = vmatprep.mubr.bf16.mxu0 %v27993_v29  ;;  %v22917_v25 = vld [vmem:[%s33260_s3 + $0xafc] ss:$52 sps:$4 sm:$0xff]  }
 0x35f   :  { %16153 = vmatprep.subr.bf16.mxu0 %v22857_v54  ;;  %v22920_v54 = vld [vmem:[%s33260_s3 + $0x7c4] ss:$52 sps:$4 sm:$0xff]  }
 0x360   :  { %16453 = vmatpush1.bf16.msra.mxu1 %v22846_v51  ;;  %v22915_v51 = vld [vmem:[%s33260_s3 + $0xaf8] ss:$52 sps:$4 sm:$0xff]  }
 0x361   :  { %16454 = vmatprep.subr.bf16.mxu1 %v22854_v53  ;;  %v22912_v53 = vld [vmem:[%s33260_s3 + $0x758] ss:$52 sps:$4 sm:$0xff]  }
 0x362   :  { %16154 = vmatpush1.bf16.msra.mxu0 %v22855_v55  ;;  %v22923_v55 = vld [vmem:[%s33260_s3 + $0xb64] ss:$52 sps:$4 sm:$0xff]  }
 0x363   :  { %16155 = vmatprep.subr.bf16.mxu0 %v22863_v60  ;;  %v22918_v60 = vld [vmem:[%s33260_s3 + $0x7c0] ss:$52 sps:$4 sm:$0xff]  }
 0x364   :  { %16455 = vmatpush1.bf16.msra.mxu1 %v22852_v56  ;;  %v28132_v56 = vsub.s32 2, %v26553_v63 }
 0x365   :  { %16456 = vmatprep.subr.bf16.mxu1 %v22860_v59  ;;  %v22921_v59 = vld [vmem:[%s33260_s3 + $0xb60] ss:$52 sps:$4 sm:$0xff]  }
 0x366   :  { %16156 = vmatpush1.bf16.msra.mxu0 %v22861_v44  ;;  %v22926_v44 = vld [vmem:[%s33260_s3 + $0x82c] ss:$52 sps:$4 sm:$0xff]  }
 0x367   :  { %16157 = vmatprep.subr.bf16.mxu0 %v22869_v2  ;;  %v836_v2 = vrot.slane %v27949_v38, %v28132_v56  ;;  %v22933_v38 = vld [vmem:[%s33260_s3 + $0xc30] ss:$52 sps:$4 sm:$0xff]  }
 0x368   :  { %16457 = vmatpush1.bf16.msra.mxu1 %v22858_v62  ;;  %v22929_v62 = vld [vmem:[%s33260_s3 + $0xbcc] ss:$52 sps:$4 sm:$0xff]  }
 0x369   :  { %16458 = vmatprep.subr.bf16.mxu1 %v22866_v1  ;;  %v22927_v1 = vld [vmem:[%s33260_s3 + $0xbc8] ss:$52 sps:$4 sm:$0xff]  }
 0x36a   :  { %16158 = vmatpush1.bf16.msra.mxu0 %v22867_v33  ;;  %v22924_v33 = vld [vmem:[%s33260_s3 + $0x828] ss:$52 sps:$4 sm:$0xff]  }
 0x36b   :  { %16159 = vmatprep.subr.bf16.mxu0 %v22875_v47  ;;  %v22930_v47 = vld [vmem:[%s33260_s3 + $0x890] ss:$52 sps:$4 sm:$0xff]  }
 0x36c   :  { %16459 = vmatpush1.bf16.msra.mxu1 %v22864_v4  ;;  %v22932_v4 = vld [vmem:[%s33260_s3 + $0x894] ss:$52 sps:$4 sm:$0xff]  }
 0x36d   :  { %16460 = vmatprep.subr.bf16.mxu1 %v22872_v34  ;;  %v22935_v34 = vld [vmem:[%s33260_s3 + $0xc34] ss:$52 sps:$4 sm:$0xff]  }
 0x36e   :  { %16160 = vmatpush1.bf16.msra.mxu0 %v22873_v17  ;;  %v22483_v17 = vadd.f32 %v26640_v5, %v836_v2  ;;  %v22939_v5 = vld [vmem:[%s33260_s3 + $0xc98] ss:$52 sps:$4 sm:$0xff]  }
 0x36f   :  { %16161 = vmatprep.subr.bf16.mxu0 %v22881_v11  ;;  %v22936_v11 = vld [vmem:[%s33260_s3 + $0x8f8] ss:$52 sps:$4 sm:$0xff]  }
 0x370   :  { %16461 = vmatpush1.bf16.msra.mxu1 %v22870_v37  ;;  %v22941_v37 = vld [vmem:[%s33260_s3 + $0xc9c] ss:$52 sps:$4 sm:$0xff]   ;;  %v22987_v2 = vld [vmem:[%s33260_s3 + $0xfd8] ss:$52 sps:$4 sm:$0xff]  }
 0x371   :  { %16462 = vmatprep.subr.bf16.mxu1 %v22878_v8  ;;  %v22938_v8 = vld [vmem:[%s33260_s3 + $0x8fc] ss:$52 sps:$4 sm:$0xff]  }
 0x372   :  { %16162 = vmatpush1.bf16.msra.mxu0 %v22879_v14  ;;  %v6167_v14 = vmax.f32 %v22483_v17, 0.0  ;;  %v22998_v17 = vld [vmem:[%s33260_s3 + $0xd0c] ss:$52 sps:$4 sm:$0xff]  }
 0x373   :  { %16163 = vmatprep.subr.bf16.mxu0 %v22887_v19  ;;  %v22944_v19 = vld [vmem:[%s33260_s3 + $0x964] ss:$52 sps:$4 sm:$0xff]  }
 0x374   :  { %16463 = vmatpush1.bf16.msra.mxu1 %v22876_v18  ;;  %v22947_v18 = vld [vmem:[%s33260_s3 + $0xd04] ss:$52 sps:$4 sm:$0xff]  }
 0x375   :  { %16464 = vmatprep.subr.bf16.mxu1 %v22884_v21  ;;  %v6170_v21 = vmax.f32 %v27206_v0, 0.0  ;;  %v22950_v0 = vld [vmem:[%s33260_s3 + $0x9cc] ss:$52 sps:$4 sm:$0xff]  }
 0x376   :  { %16164 = vmatpush1.bf16.msra.mxu0 %v22885_v23  ;;  %v28189_v23 = vpack.c.bf16 %v6167_v14, %v6167_v14  ;;  %v23007_v14 = vld [vmem:[%s33260_s3 + $0x1114] ss:$52 sps:$4 sm:$0xff]  }
 0x377   :  { %16165 = vmatprep.subr.bf16.mxu0 %v22893_v9  ;;  %v22942_v9 = vld [vmem:[%s33260_s3 + $0x960] ss:$52 sps:$4 sm:$0xff]  }
 0x378   :  { %16465 = vmatpush1.bf16.msra.mxu1 %v22882_v61  ;;  %v22945_v61 = vld [vmem:[%s33260_s3 + $0xd00] ss:$52 sps:$4 sm:$0xff]  }
 0x379   :  { %16466 = vmatprep.subr.bf16.mxu1 %v22890_v30  ;;  %v22953_v30 = vld [vmem:[%s33260_s3 + $0xd6c] ss:$52 sps:$4 sm:$0xff]  }
 0x37a   :  { %16166 = vmatpush1.bf16.msra.mxu0 %v22891_v31  ;;  %v28200_v31 = vpack.c.bf16 %v6170_v21, %v6170_v21  ;;  %v23002_v21 = vld [vmem:[%s33260_s3 + $0xd70] ss:$52 sps:$4 sm:$0xff]  }
 0x37b   :  { %16167 = vmatprep.subr.bf16.mxu0 %v22899_v39  ;;  %v22956_v39 = vld [vmem:[%s33260_s3 + $0xa34] ss:$52 sps:$4 sm:$0xff]  }
 0x37c   :  { %16467 = vmatpush1.bf16.msra.mxu1 %v22888_v35  ;;  %v22951_v35 = vld [vmem:[%s33260_s3 + $0xd68] ss:$52 sps:$4 sm:$0xff]  }
 0x37d   :  { %16468 = vmatprep.subr.bf16.mxu1 %v22896_v36  ;;  %v22948_v36 = vld [vmem:[%s33260_s3 + $0x9c8] ss:$52 sps:$4 sm:$0xff]  }
 0x37e   :  { %16168 = vmatpush1.bf16.msra.mxu0 %v22897_v40  ;;  %v22959_v40 = vld [vmem:[%s33260_s3 + $0xdd4] ss:$52 sps:$4 sm:$0xff]  }
 0x37f   :  { %16169 = vmatprep.subr.bf16.mxu0 %v22905_v45  ;;  %v22962_v45 = vld [vmem:[%s33260_s3 + $0xa9c] ss:$52 sps:$4 sm:$0xff]  }
 0x380   :  { %16469 = vmatpush1.bf16.msra.mxu1 %v22894_v41  ;;  %v22957_v41 = vld [vmem:[%s33260_s3 + $0xdd0] ss:$52 sps:$4 sm:$0xff]  }
 0x381   :  { %16479 = vmatprep.subr.bf16.mxu1 %v22902_v43  ;;  %v22954_v43 = vld [vmem:[%s33260_s3 + $0xa30] ss:$52 sps:$4 sm:$0xff]  }
 0x382   :  { %16170 = vmatpush1.bf16.msra.mxu0 %v22903_v48  ;;  %v22963_v48 = vld [vmem:[%s33260_s3 + $0xe38] ss:$52 sps:$4 sm:$0xff]  }
 0x383   :  { %16471 = vmatmul.mubr.bf16.vlgmr.msra.gmra.mrb[24].mxu1 %v27982_v13  ;;  %16171 = vmatprep.subr.bf16.mxu0 %v22911_v50  ;;  %v22968_v50 = vld [vmem:[%s33260_s3 + $0xb04] ss:$52 sps:$4 sm:$0xff]  }
 0x384   :  { %16480 = vmatpush1.bf16.msra.mxu1 %v22900_v46  ;;  %16511 = vmatprep.mubr.bf16.mxu1 %v27993_v29  ;;  %v22965_v46 = vld [vmem:[%s33260_s3 + $0xe3c] ss:$52 sps:$4 sm:$0xff]  }
 0x385   :  { %16481 = vmatprep.subr.bf16.mxu1 %v22908_v49  ;;  %v22960_v49 = vld [vmem:[%s33260_s3 + $0xa98] ss:$52 sps:$4 sm:$0xff]  }
 0x386   :  { %16172 = vmatpush1.bf16.msra.mxu0 %v22909_v32  ;;  %v22971_v32 = vld [vmem:[%s33260_s3 + $0xea4] ss:$52 sps:$4 sm:$0xff]  }
 0x387   :  { %16173 = vmatprep.subr.bf16.mxu0 %v22917_v25  ;;  %v22974_v25 = vld [vmem:[%s33260_s3 + $0xb6c] ss:$52 sps:$4 sm:$0xff]  }
 0x388   :  { %16482 = vmatpush1.bf16.msra.mxu1 %v22906_v10  ;;  %v22969_v10 = vld [vmem:[%s33260_s3 + $0xea0] ss:$52 sps:$4 sm:$0xff]  }
 0x389   :  { %16483 = vmatprep.subr.bf16.mxu1 %v22914_v42  ;;  %v22966_v42 = vld [vmem:[%s33260_s3 + $0xb00] ss:$52 sps:$4 sm:$0xff]  }
 0x38a   :  { %16174 = vmatpush1.bf16.msra.mxu0 %v22915_v51  ;;  %v22977_v51 = vld [vmem:[%s33260_s3 + $0xf0c] ss:$52 sps:$4 sm:$0xff]  }
 0x38b   :  { %16175 = vmatprep.subr.bf16.mxu0 %v22923_v55  ;;  %v22980_v55 = vld [vmem:[%s33260_s3 + $0xbd4] ss:$52 sps:$4 sm:$0xff]  }
 0x38c   :  { %16484 = vmatpush1.bf16.msra.mxu1 %v22912_v53  ;;  %v22975_v53 = vld [vmem:[%s33260_s3 + $0xf08] ss:$52 sps:$4 sm:$0xff]  }
 0x38d   :  { %16485 = vmatprep.subr.bf16.mxu1 %v22920_v54  ;;  %v22972_v54 = vld [vmem:[%s33260_s3 + $0xb68] ss:$52 sps:$4 sm:$0xff]  }
 0x38e   :  { %16176 = vmatpush1.bf16.msra.mxu0 %v22921_v59  ;;  %v22983_v59 = vld [vmem:[%s33260_s3 + $0xf74] ss:$52 sps:$4 sm:$0xff]  }
 0x38f   :  { %16177 = vmatprep.subr.bf16.mxu0 %v22929_v62  ;;  %v22986_v62 = vld [vmem:[%s33260_s3 + $0xc3c] ss:$52 sps:$4 sm:$0xff]  }
 0x390   :  { %16486 = vmatpush1.bf16.msra.mxu1 %v22918_v60  ;;  %v22981_v60 = vld [vmem:[%s33260_s3 + $0xf70] ss:$52 sps:$4 sm:$0xff]  }
 0x391   :  { %16487 = vmatprep.subr.bf16.mxu1 %v22926_v44  ;;  %v22978_v44 = vld [vmem:[%s33260_s3 + $0xbd0] ss:$52 sps:$4 sm:$0xff]  }
 0x392   :  { %16178 = vmatpush1.bf16.msra.mxu0 %v22927_v1  ;;  %v22989_v1 = vld [vmem:[%s33260_s3 + $0xfdc] ss:$52 sps:$4 sm:$0xff]  }
 0x393   :  { %16179 = vmatprep.subr.bf16.mxu0 %v22935_v34  ;;  %v22995_v34 = vld [vmem:[%s33260_s3 + $0x1044] ss:$52 sps:$4 sm:$0xff]  }
 0x394   :  { %16488 = vmatpush1.bf16.msra.mxu1 %v22924_v33  ;;  %v22984_v33 = vld [vmem:[%s33260_s3 + $0xc38] ss:$52 sps:$4 sm:$0xff]  }
 0x395   :  { %16489 = vmatprep.subr.bf16.mxu1 %v22932_v4  ;;  %v22992_v4 = vld [vmem:[%s33260_s3 + $0xca4] ss:$52 sps:$4 sm:$0xff]  }
 0x396   :  { %16180 = vmatpush1.bf16.msra.mxu0 %v22933_v38  ;;  %v22990_v38 = vld [vmem:[%s33260_s3 + $0xca0] ss:$52 sps:$4 sm:$0xff]  }
 0x397   :  { %16181 = vmatprep.subr.bf16.mxu0 %v22941_v37  ;;  %v23001_v37 = vld [vmem:[%s33260_s3 + $0x10ac] ss:$52 sps:$4 sm:$0xff]  }
 0x398   :  { %16490 = vmatpush1.bf16.msra.mxu1 %v22930_v47  ;;  %v22993_v47 = vld [vmem:[%s33260_s3 + $0x1040] ss:$52 sps:$4 sm:$0xff]  }
 0x399   :  { %16491 = vmatprep.subr.bf16.mxu1 %v22938_v8  ;;  %v22996_v8 = vld [vmem:[%s33260_s3 + $0xd08] ss:$52 sps:$4 sm:$0xff]  }
 0x39a   :  { %16182 = vmatpush1.bf16.msra.mxu0 %v22939_v5  ;;  %v23004_v5 = vld [vmem:[%s33260_s3 + $0xd74] ss:$52 sps:$4 sm:$0xff]  }
 0x39b   :  { %16192 = vmatprep.subr.bf16.mxu0 %v22947_v18  ;;  %v23005_v18 = vld [vmem:[%s33260_s3 + $0x1110] ss:$52 sps:$4 sm:$0xff]  }
 0x39c   :  { %16492 = vmatpush1.bf16.msra.mxu1 %v22936_v11  ;;  %v22999_v11 = vld [vmem:[%s33260_s3 + $0x10a8] ss:$52 sps:$4 sm:$0xff]  }
 0x39d   :  { %16493 = vmatprep.subr.bf16.mxu1 %v22944_v19  ;;  %16184 = vmatmul.mubr.bf16.vlgmr.msra.gmra.mrb[16].mxu0 %v28189_v23  ;;  %v23010_v19 = vld [vmem:[%s33260_s3 + $0xddc] ss:$52 sps:$4 sm:$0xff]  }
 0x39e   :  { %16193 = vmatpush1.bf16.msra.mxu0 %v22945_v61  ;;  %16224 = vmatprep.mubr.bf16.mxu0 %v28200_v31  ;;  %v23013_v61 = vld [vmem:[%s33260_s3 + $0x117c] ss:$52 sps:$4 sm:$0xff]  }
 0x39f   :  { %16194 = vmatprep.subr.bf16.mxu0 %v22953_v30  ;;  %v23016_v30 = vld [vmem:[%s33260_s3 + $0xe44] ss:$52 sps:$4 sm:$0xff]  }
 0x3a0   :  { %16494 = vmatpush1.bf16.msra.mxu1 %v22942_v9  ;;  %v23011_v9 = vld [vmem:[%s33260_s3 + $0x1178] ss:$52 sps:$4 sm:$0xff]  }
 0x3a1   :  { %16495 = vmatprep.subr.bf16.mxu1 %v22950_v0  ;;  %v23008_v0 = vld [vmem:[%s33260_s3 + $0xdd8] ss:$52 sps:$4 sm:$0xff]  }
 0x3a2   :  { %16195 = vmatpush1.bf16.msra.mxu0 %v22951_v35  ;;  %v23019_v35 = vld [vmem:[%s33260_s3 + $0x11e4] ss:$52 sps:$4 sm:$0xff]  }
 0x3a3   :  { %16196 = vmatprep.subr.bf16.mxu0 %v22959_v40  ;;  %v23022_v40 = vld [vmem:[%s33260_s3 + $0xeac] ss:$52 sps:$4 sm:$0xff]  }
 0x3a4   :  { %16496 = vmatpush1.bf16.msra.mxu1 %v22948_v36  ;;  %v23017_v36 = vld [vmem:[%s33260_s3 + $0x11e0] ss:$52 sps:$4 sm:$0xff]  }
 0x3a5   :  { %16497 = vmatprep.subr.bf16.mxu1 %v22956_v39  ;;  %v23014_v39 = vld [vmem:[%s33260_s3 + $0xe40] ss:$52 sps:$4 sm:$0xff]  }
 0x3a6   :  { %16197 = vmatpush1.bf16.msra.mxu0 %v22957_v41  ;;  %v23025_v41 = vld [vmem:[%s33260_s3 + $0x124c] ss:$52 sps:$4 sm:$0xff]  }
 0x3a7   :  { %16198 = vmatprep.subr.bf16.mxu0 %v22965_v46  ;;  %v23020_v46 = vld [vmem:[%s33260_s3 + $0xea8] ss:$52 sps:$4 sm:$0xff]  }
 0x3a8   :  { %16498 = vmatpush1.bf16.msra.mxu1 %v22954_v43  ;;  %v28351_v43 = vsub.s32 7, %v26553_v63 }
 0x3a9   :  { %16499 = vmatprep.subr.bf16.mxu1 %v22962_v45  ;;  %v23023_v45 = vld [vmem:[%s33260_s3 + $0x1248] ss:$52 sps:$4 sm:$0xff]  }
 0x3aa   :  { %16199 = vmatpush1.bf16.msra.mxu0 %v22963_v48  ;;  %v23028_v48 = vld [vmem:[%s33260_s3 + $0xf14] ss:$52 sps:$4 sm:$0xff]  }
 0x3ab   :  { %16200 = vmatprep.subr.bf16.mxu0 %v22971_v32 }
 0x3ac   :  { %16500 = vmatpush1.bf16.msra.mxu1 %v22960_v49  ;;  %v23031_v49 = vld [vmem:[%s33260_s3 + $0x12b4] ss:$52 sps:$4 sm:$0xff]  }
 0x3ad   :  { %16501 = vmatprep.subr.bf16.mxu1 %v22968_v50  ;;  %v28368_v50 = vld [vmem:[%s33259_s2] sm:$0xff] }
 0x3ae   :  { %16201 = vmatpush1.bf16.msra.mxu0 %v22969_v10  ;;  %v856_v32 = vrot.slane %v28368_v50, %v28351_v43  ;;  %v23029_v10 = vld [vmem:[%s33260_s3 + $0x12b0] ss:$52 sps:$4 sm:$0xff]  }
 0x3af   :  { %16202 = vmatprep.subr.bf16.mxu0 %v22977_v51  ;;  %v23037_v51 = vld [vmem:[%s33260_s3 + $0x131c] ss:$52 sps:$4 sm:$0xff]  }
 0x3b0   :  { %16502 = vmatpush1.bf16.msra.mxu1 %v22966_v42  ;;  %v23026_v42 = vld [vmem:[%s33260_s3 + $0xf10] ss:$52 sps:$4 sm:$0xff]  }
 0x3b1   :  { %16503 = vmatprep.subr.bf16.mxu1 %v22974_v25  ;;  %v23034_v25 = vld [vmem:[%s33260_s3 + $0xf7c] ss:$52 sps:$4 sm:$0xff]  }
 0x3b2   :  { %16203 = vmatpush1.bf16.msra.mxu0 %v22975_v53  ;;  %v22490_v53 = vadd.f32 %v27313_v26, %v856_v32  ;;  %v23043_v26 = vld [vmem:[%s33260_s3 + $0x1384] ss:$52 sps:$4 sm:$0xff]  }
 0x3b3   :  { %16204 = vmatprep.subr.bf16.mxu0 %v22983_v59  ;;  %v23032_v59 = vld [vmem:[%s33260_s3 + $0xf78] ss:$52 sps:$4 sm:$0xff]  }
 0x3b4   :  { %16504 = vmatpush1.bf16.msra.mxu1 %v22972_v54  ;;  %v6169_v54 = vmax.f32 %v27203_v57, 0.0  ;;  %v6172_v57 = vmax.f32 %v22490_v53, 0.0  ;;  %v23088_v53 = vld [vmem:[%s33260_s3 + $0x1324] ss:$52 sps:$4 sm:$0xff]  }
 0x3b5   :  { %16505 = vmatprep.subr.bf16.mxu1 %v22980_v55  ;;  %v23035_v55 = vld [vmem:[%s33260_s3 + $0x1318] ss:$52 sps:$4 sm:$0xff]  }
 0x3b6   :  { %16205 = vmatpush1.bf16.msra.mxu0 %v22981_v60  ;;  %v23040_v60 = vld [vmem:[%s33260_s3 + $0xfe4] ss:$52 sps:$4 sm:$0xff]  }
 0x3b7   :  { %16206 = vmatprep.subr.bf16.mxu0 %v22989_v1  ;;  %v23038_v1 = vld [vmem:[%s33260_s3 + $0xfe0] ss:$52 sps:$4 sm:$0xff]  }
 0x3b8   :  { %16506 = vmatpush1.bf16.msra.mxu1 %v22978_v44  ;;  %v23041_v44 = vld [vmem:[%s33260_s3 + $0x1380] ss:$52 sps:$4 sm:$0xff]  }
 0x3b9   :  { %16507 = vmatprep.subr.bf16.mxu1 %v22986_v62  ;;  %v28401_v62 = vpack.c.bf16 %v6169_v54, %v6169_v54  ;;  %v23091_v54 = vld [vmem:[%s33260_s3 + $0x16c4] ss:$52 sps:$4 sm:$0xff]  }
 0x3ba   :  { %16207 = vmatpush1.bf16.msra.mxu0 %v22987_v2  ;;  %v23046_v2 = vld [vmem:[%s33260_s3 + $0x104c] ss:$52 sps:$4 sm:$0xff]  }
 0x3bb   :  { %16208 = vmatprep.subr.bf16.mxu0 %v22995_v34  ;;  %v23047_v34 = vld [vmem:[%s33260_s3 + $0x13e8] ss:$52 sps:$4 sm:$0xff]  }
 0x3bc   :  { %16508 = vmatpush1.bf16.msra.mxu1 %v22984_v33  ;;  %v23049_v33 = vld [vmem:[%s33260_s3 + $0x13ec] ss:$52 sps:$4 sm:$0xff]  }
 0x3bd   :  { %16509 = vmatprep.subr.bf16.mxu1 %v22992_v4  ;;  %v28412_v4 = vpack.c.bf16 %v6172_v57, %v6172_v57  ;;  %v23092_v57 = vld [vmem:[%s33260_s3 + $0x1388] ss:$52 sps:$4 sm:$0xff]  }
 0x3be   :  { %16209 = vmatpush1.bf16.msra.mxu0 %v22993_v47  ;;  %v23044_v47 = vld [vmem:[%s33260_s3 + $0x1048] ss:$52 sps:$4 sm:$0xff]  }
 0x3bf   :  { %16210 = vmatprep.subr.bf16.mxu0 %v23001_v37  ;;  %v23053_v37 = vld [vmem:[%s33260_s3 + $0x1450] ss:$52 sps:$4 sm:$0xff]  }
 0x3c0   :  { %16510 = vmatpush1.bf16.msra.mxu1 %v22990_v38  ;;  %v23052_v38 = vld [vmem:[%s33260_s3 + $0x10b4] ss:$52 sps:$4 sm:$0xff]  }
 0x3c1   :  { %16520 = vmatprep.subr.bf16.mxu1 %v22998_v17  ;;  %v23055_v17 = vld [vmem:[%s33260_s3 + $0x1454] ss:$52 sps:$4 sm:$0xff]  }
 0x3c2   :  { %16211 = vmatpush1.bf16.msra.mxu0 %v22999_v11  ;;  %v23058_v11 = vld [vmem:[%s33260_s3 + $0x111c] ss:$52 sps:$4 sm:$0xff]  }
 0x3c3   :  { %16512 = vmatmul.mubr.bf16.vlgmr.msra.gmra.mrb[24].mxu1 %v28189_v23  ;;  %16212 = vmatprep.subr.bf16.mxu0 %v23007_v14  ;;  %v23059_v14 = vld [vmem:[%s33260_s3 + $0x14b8] ss:$52 sps:$4 sm:$0xff]  }
 0x3c4   :  { %16521 = vmatpush1.bf16.msra.mxu1 %v22996_v8  ;;  %16552 = vmatprep.mubr.bf16.mxu1 %v28200_v31  ;;  %v23050_v8 = vld [vmem:[%s33260_s3 + $0x10b0] ss:$52 sps:$4 sm:$0xff]  }
 0x3c5   :  { %16522 = vmatprep.subr.bf16.mxu1 %v23004_v5  ;;  %v23061_v5 = vld [vmem:[%s33260_s3 + $0x14bc] ss:$52 sps:$4 sm:$0xff]  }
 0x3c6   :  { %16213 = vmatpush1.bf16.msra.mxu0 %v23005_v18  ;;  %v23056_v18 = vld [vmem:[%s33260_s3 + $0x1118] ss:$52 sps:$4 sm:$0xff]  }
 0x3c7   :  { %16214 = vmatprep.subr.bf16.mxu0 %v23013_v61  ;;  %v23065_v61 = vld [vmem:[%s33260_s3 + $0x1520] ss:$52 sps:$4 sm:$0xff]  }
 0x3c8   :  { %16523 = vmatpush1.bf16.msra.mxu1 %v23002_v21  ;;  %v23064_v21 = vld [vmem:[%s33260_s3 + $0x1184] ss:$52 sps:$4 sm:$0xff]  }
 0x3c9   :  { %16524 = vmatprep.subr.bf16.mxu1 %v23010_v19  ;;  %v23067_v19 = vld [vmem:[%s33260_s3 + $0x1524] ss:$52 sps:$4 sm:$0xff]  }
 0x3ca   :  { %16215 = vmatpush1.bf16.msra.mxu0 %v23011_v9  ;;  %v23062_v9 = vld [vmem:[%s33260_s3 + $0x1180] ss:$52 sps:$4 sm:$0xff]  }
 0x3cb   :  { %16216 = vmatprep.subr.bf16.mxu0 %v23019_v35  ;;  %v23071_v35 = vld [vmem:[%s33260_s3 + $0x1588] ss:$52 sps:$4 sm:$0xff]  }
 0x3cc   :  { %16525 = vmatpush1.bf16.msra.mxu1 %v23008_v0  ;;  %v23070_v0 = vld [vmem:[%s33260_s3 + $0x11ec] ss:$52 sps:$4 sm:$0xff]  }
 0x3cd   :  { %16526 = vmatprep.subr.bf16.mxu1 %v23016_v30  ;;  %v23073_v30 = vld [vmem:[%s33260_s3 + $0x158c] ss:$52 sps:$4 sm:$0xff]  }
 0x3ce   :  { %16217 = vmatpush1.bf16.msra.mxu0 %v23017_v36  ;;  %v23068_v36 = vld [vmem:[%s33260_s3 + $0x11e8] ss:$52 sps:$4 sm:$0xff]  }
 0x3cf   :  { %16218 = vmatprep.subr.bf16.mxu0 %v23025_v41 }
 0x3d0   :  { %16527 = vmatpush1.bf16.msra.mxu1 %v23014_v39  ;;  %v23076_v39 = vld [vmem:[%s33260_s3 + $0x1254] ss:$52 sps:$4 sm:$0xff]  }
 0x3d1   :  { %16528 = vmatprep.subr.bf16.mxu1 %v23022_v40  ;;  %v23079_v40 = vld [vmem:[%s33260_s3 + $0x15f4] ss:$52 sps:$4 sm:$0xff]  }
 0x3d2   :  { %16219 = vmatpush1.bf16.msra.mxu0 %v23023_v45 }
 0x3d3   :  { %16220 = vmatprep.subr.bf16.mxu0 %v23031_v49  ;;  %v23074_v49 = vld [vmem:[%s33260_s3 + $0x1250] ss:$52 sps:$4 sm:$0xff]  }
 0x3d4   :  { %16529 = vmatpush1.bf16.msra.mxu1 %v23020_v46 }
 0x3d5   :  { %16530 = vmatprep.subr.bf16.mxu1 %v23028_v48  ;;  %v23077_v48 = vld [vmem:[%s33260_s3 + $0x15f0] ss:$52 sps:$4 sm:$0xff]  }
 0x3d6   :  { %16221 = vmatpush1.bf16.msra.mxu0 %v23029_v10  ;;  %v23085_v10 = vld [vmem:[%s33260_s3 + $0x165c] ss:$52 sps:$4 sm:$0xff]  }
 0x3d7   :  { %16222 = vmatprep.subr.bf16.mxu0 %v23037_v51  ;;  %v23080_v51 = vld [vmem:[%s33260_s3 + $0x12b8] ss:$52 sps:$4 sm:$0xff]  }
 0x3d8   :  { %16531 = vmatpush1.bf16.msra.mxu1 %v23026_v42  ;;  %v23082_v42 = vld [vmem:[%s33260_s3 + $0x12bc] ss:$52 sps:$4 sm:$0xff]  }
 0x3d9   :  { %16532 = vmatprep.subr.bf16.mxu1 %v23034_v25  ;;  %v23083_v25 = vld [vmem:[%s33260_s3 + $0x1658] ss:$52 sps:$4 sm:$0xff]  }
 0x3da   :  { %16223 = vmatpush1.bf16.msra.mxu0 %v23035_v55  ;;  %v23089_v55 = vld [vmem:[%s33260_s3 + $0x16c0] ss:$52 sps:$4 sm:$0xff]  }
 0x3db   :  { %16233 = vmatprep.subr.bf16.mxu0 %v23043_v26  ;;  %v23097_v26 = vld [vmem:[%s33260_s3 + $0x172c] ss:$52 sps:$4 sm:$0xff]  }
 0x3dc   :  { %16533 = vmatpush1.bf16.msra.mxu1 %v23032_v59  ;;  %v23086_v59 = vld [vmem:[%s33260_s3 + $0x1320] ss:$52 sps:$4 sm:$0xff]  }
 0x3dd   :  { %16534 = vmatprep.subr.bf16.mxu1 %v23040_v60  ;;  %16225 = vmatmul.mubr.bf16.vlgmr.msra.gmra.mrb[16].mxu0 %v28401_v62  ;;  %v23094_v60 = vld [vmem:[%s33260_s3 + $0x138c] ss:$52 sps:$4 sm:$0xff]  }
 0x3de   :  { %16234 = vmatpush1.bf16.msra.mxu0 %v23041_v44  ;;  %16265 = vmatprep.mubr.bf16.mxu0 %v28412_v4  ;;  %v23095_v44 = vld [vmem:[%s33260_s3 + $0x1728] ss:$52 sps:$4 sm:$0xff]  }
 0x3df   :  { %16235 = vmatprep.subr.bf16.mxu0 %v23049_v33  ;;  %v23101_v33 = vld [vmem:[%s33260_s3 + $0x1790] ss:$52 sps:$4 sm:$0xff]  }
 0x3e0   :  { %16535 = vmatpush1.bf16.msra.mxu1 %v23038_v1  ;;  %v23100_v1 = vld [vmem:[%s33260_s3 + $0x13f4] ss:$52 sps:$4 sm:$0xff]  }
 0x3e1   :  { %16536 = vmatprep.subr.bf16.mxu1 %v23046_v2  ;;  %v23103_v2 = vld [vmem:[%s33260_s3 + $0x1794] ss:$52 sps:$4 sm:$0xff]  }
 0x3e2   :  { %16236 = vmatpush1.bf16.msra.mxu0 %v23047_v34  ;;  %v23098_v34 = vld [vmem:[%s33260_s3 + $0x13f0] ss:$52 sps:$4 sm:$0xff]  }
 0x3e3   :  { %16237 = vmatprep.subr.bf16.mxu0 %v23055_v17  ;;  %v23107_v17 = vld [vmem:[%s33260_s3 + $0x17f8] ss:$52 sps:$4 sm:$0xff]  }
 0x3e4   :  { %16537 = vmatpush1.bf16.msra.mxu1 %v23044_v47  ;;  %v23106_v47 = vld [vmem:[%s33260_s3 + $0x145c] ss:$52 sps:$4 sm:$0xff]  }
 0x3e5   :  { %16538 = vmatprep.subr.bf16.mxu1 %v23052_v38  ;;  %v23109_v38 = vld [vmem:[%s33260_s3 + $0x17fc] ss:$52 sps:$4 sm:$0xff]  }
 0x3e6   :  { %16238 = vmatpush1.bf16.msra.mxu0 %v23053_v37  ;;  %v23104_v37 = vld [vmem:[%s33260_s3 + $0x1458] ss:$52 sps:$4 sm:$0xff]  }
 0x3e7   :  { %16239 = vmatprep.subr.bf16.mxu0 %v23061_v5  ;;  %v28555_v5 = vsub.s32 6, %v26553_v63  ;;  %v23118_v63 = vld [vmem:[%s33260_s3 + $0x152c] ss:$52 sps:$4 sm:$0xff]  }
 0x3e8   :  { %16539 = vmatpush1.bf16.msra.mxu1 %v23050_v8  ;;  %v23112_v8 = vld [vmem:[%s33260_s3 + $0x14c4] ss:$52 sps:$4 sm:$0xff]  }
 0x3e9   :  { %16540 = vmatprep.subr.bf16.mxu1 %v23058_v11  ;;  %v23115_v11 = vld [vmem:[%s33260_s3 + $0x1864] ss:$52 sps:$4 sm:$0xff]  }
 0x3ea   :  { %16240 = vmatpush1.bf16.msra.mxu0 %v23059_v14  ;;  %v23113_v14 = vld [vmem:[%s33260_s3 + $0x1860] ss:$52 sps:$4 sm:$0xff]  }
 0x3eb   :  { %16241 = vmatprep.subr.bf16.mxu0 %v23067_v19  ;;  %v23121_v19 = vld [vmem:[%s33260_s3 + $0x18cc] ss:$52 sps:$4 sm:$0xff]  }
 0x3ec   :  { %16541 = vmatpush1.bf16.msra.mxu1 %v23056_v18  ;;  %v28563_v18 = vld [vmem:[%s33259_s2 + $0x8] sm:$0xff] }
 0x3ed   :  { %16542 = vmatprep.subr.bf16.mxu1 %v23064_v21  ;;  %v23110_v21 = vld [vmem:[%s33260_s3 + $0x14c0] ss:$52 sps:$4 sm:$0xff]  }
 0x3ee   :  { %16242 = vmatpush1.bf16.msra.mxu0 %v23065_v61  ;;  %v852_v61 = vrot.slane %v28368_v50, %v28555_v5  ;;  %v864_v50 = vrot.slane %v28563_v18, %v26574_v12 }
 0x3ef   :  { %16243 = vmatprep.subr.bf16.mxu0 %v23073_v30  ;;  %v23124_v30 = vld [vmem:[%s33260_s3 + $0x1594] ss:$52 sps:$4 sm:$0xff]  }
 0x3f0   :  { %16543 = vmatpush1.bf16.msra.mxu1 %v23062_v9  ;;  %v28476_v41 = vpop.f32.mrb[12].mxu0  ;;  %v23119_v9 = vld [vmem:[%s33260_s3 + $0x18c8] ss:$52 sps:$4 sm:$0xff]  }
 0x3f1   :  { %16544 = vmatprep.subr.bf16.mxu1 %v23070_v0  ;;  %v28478_v45 = vpop.f32.mrb[13].mxu0  ;;  %v23116_v0 = vld [vmem:[%s33260_s3 + $0x1528] ss:$52 sps:$4 sm:$0xff]  }
 0x3f2   :  { %16244 = vmatpush1.bf16.msra.mxu0 %v23071_v35  ;;  %v5998_v46 = vpop.f32.mrb[14].mxu0  ;;  %v23127_v35 = vld [vmem:[%s33260_s3 + $0x1934] ss:$52 sps:$4 sm:$0xff]  }
 0x3f3   :  { %v5999_v32 = vpop.f32.mrb[15].mxu0  ;;  %16245 = vmatprep.subr.bf16.mxu0 %v23079_v40  ;;  %v23122_v40 = vld [vmem:[%s33260_s3 + $0x1590] ss:$52 sps:$4 sm:$0xff]  }
 0x3f4   :  { %16545 = vmatpush1.bf16.msra.mxu1 %v23068_v36  ;;  %v22489_v36 = vadd.f32 %v27305_v22, %v852_v61  ;;  %v23130_v46 = vld [vmem:[%s33260_s3 + $0x15fc] ss:$52 sps:$4 sm:$0xff]   ;;  %v22492_v22 = vadd.f32 %v27821_v28, %v864_v50  ;;  %v23139_v28 = vld [vmem:[%s33260_s3 + $0x1a04] ss:$52 sps:$4 sm:$0xff]   ;;  %v23158_v61 = vld [vmem:[%s33260_s3 + $0x1800] ss:$52 sps:$4 sm:$0xff]  }
 0x3f5   :  { %16546 = vmatprep.subr.bf16.mxu1 %v23076_v39  ;;  %v23125_v39 = vld [vmem:[%s33260_s3 + $0x1930] ss:$52 sps:$4 sm:$0xff]   ;;  %v23172_v50 = vld [vmem:[%s33260_s3 + $0x18d4] ss:$52 sps:$4 sm:$0xff]  }
 0x3f6   :  { %16246 = vmatpush1.bf16.msra.mxu0 %v23077_v48  ;;  %v23133_v48 = vld [vmem:[%s33260_s3 + $0x199c] ss:$52 sps:$4 sm:$0xff]   ;;  %v6171_v32 = vmax.f32 %v22489_v36, 0.0  ;;  %v23175_v36 = vld [vmem:[%s33260_s3 + $0x1c74] ss:$52 sps:$4 sm:$0xff]  }
 0x3f7   :  { %16247 = vmatprep.subr.bf16.mxu0 %v23085_v10 }
 0x3f8   :  { %16547 = vmatpush1.bf16.msra.mxu1 %v23074_v49 }
 0x3f9   :  { %16548 = vmatprep.subr.bf16.mxu1 %v23082_v42  ;;  %v23131_v42 = vld [vmem:[%s33260_s3 + $0x1998] ss:$52 sps:$4 sm:$0xff]  }
 0x3fa   :  { %16248 = vmatpush1.bf16.msra.mxu0 %v23083_v25 }
 0x3fb   :  { %16249 = vmatprep.subr.bf16.mxu0 %v23091_v54 }
 0x3fc   :  { %16549 = vmatpush1.bf16.msra.mxu1 %v23080_v51  ;;  %v23128_v51 = vld [vmem:[%s33260_s3 + $0x15f8] ss:$52 sps:$4 sm:$0xff]  }
 0x3fd   :  { %16550 = vmatprep.subr.bf16.mxu1 %v23088_v53  ;;  %v6174_v53 = vmax.f32 %v22492_v22, 0.0  ;;  %v23179_v22 = vld [vmem:[%s33260_s3 + $0x1cd8] ss:$52 sps:$4 sm:$0xff]  }
 0x3fe   :  { %16250 = vmatpush1.bf16.msra.mxu0 %v23089_v55  ;;  %v23136_v55 = vld [vmem:[%s33260_s3 + $0x1664] ss:$52 sps:$4 sm:$0xff]  }
 0x3ff   :  { %16251 = vmatprep.subr.bf16.mxu0 %v23097_v26  ;;  %v23134_v26 = vld [vmem:[%s33260_s3 + $0x1660] ss:$52 sps:$4 sm:$0xff]  }
 0x400   :  { %16551 = vmatpush1.bf16.msra.mxu1 %v23086_v59  ;;  %v23137_v59 = vld [vmem:[%s33260_s3 + $0x1a00] ss:$52 sps:$4 sm:$0xff]  }
 0x401   :  { %16561 = vmatprep.subr.bf16.mxu1 %v23094_v60  ;;  %v28623_v60 = vpack.c.bf16 %v6171_v32, %v6171_v32  ;;  %v23176_v32 = vld [vmem:[%s33260_s3 + $0x1938] ss:$52 sps:$4 sm:$0xff]  }
 0x402   :  { %16252 = vmatpush1.bf16.msra.mxu0 %v23095_v44  ;;  %v23145_v44 = vld [vmem:[%s33260_s3 + $0x1a6c] ss:$52 sps:$4 sm:$0xff]  }
 0x403   :  { %16553 = vmatmul.mubr.bf16.vlgmr.msra.gmra.mrb[24].mxu1 %v28401_v62  ;;  %16253 = vmatprep.subr.bf16.mxu0 %v23103_v2  ;;  %v23143_v2 = vld [vmem:[%s33260_s3 + $0x1a68] ss:$52 sps:$4 sm:$0xff]  }
 0x404   :  { %16562 = vmatpush1.bf16.msra.mxu1 %v23092_v57  ;;  %16593 = vmatprep.mubr.bf16.mxu1 %v28412_v4  ;;  %v23142_v57 = vld [vmem:[%s33260_s3 + $0x16cc] ss:$52 sps:$4 sm:$0xff]  }
 0x405   :  { %16563 = vmatprep.subr.bf16.mxu1 %v23100_v1  ;;  %v28634_v1 = vpack.c.bf16 %v6174_v53, %v6174_v53  ;;  %v23190_v53 = vld [vmem:[%s33260_s3 + $0x1a0c] ss:$52 sps:$4 sm:$0xff]  }
 0x406   :  { %16254 = vmatpush1.bf16.msra.mxu0 %v23101_v33  ;;  %v23140_v33 = vld [vmem:[%s33260_s3 + $0x16c8] ss:$52 sps:$4 sm:$0xff]  }
 0x407   :  { %16255 = vmatprep.subr.bf16.mxu0 %v23109_v38  ;;  %v23149_v38 = vld [vmem:[%s33260_s3 + $0x1ad0] ss:$52 sps:$4 sm:$0xff]  }
 0x408   :  { %16564 = vmatpush1.bf16.msra.mxu1 %v23098_v34  ;;  %v23148_v34 = vld [vmem:[%s33260_s3 + $0x1734] ss:$52 sps:$4 sm:$0xff]  }
 0x409   :  { %16565 = vmatprep.subr.bf16.mxu1 %v23106_v47  ;;  %v23151_v47 = vld [vmem:[%s33260_s3 + $0x1ad4] ss:$52 sps:$4 sm:$0xff]  }
 0x40a   :  { %16256 = vmatpush1.bf16.msra.mxu0 %v23107_v17  ;;  %v23146_v17 = vld [vmem:[%s33260_s3 + $0x1730] ss:$52 sps:$4 sm:$0xff]  }
 0x40b   :  { %16257 = vmatprep.subr.bf16.mxu0 %v23115_v11  ;;  %v23155_v11 = vld [vmem:[%s33260_s3 + $0x1b38] ss:$52 sps:$4 sm:$0xff]  }
 0x40c   :  { %16566 = vmatpush1.bf16.msra.mxu1 %v23104_v37  ;;  %v23154_v37 = vld [vmem:[%s33260_s3 + $0x179c] ss:$52 sps:$4 sm:$0xff]  }
 0x40d   :  { %16567 = vmatprep.subr.bf16.mxu1 %v23112_v8  ;;  %v23157_v8 = vld [vmem:[%s33260_s3 + $0x1b3c] ss:$52 sps:$4 sm:$0xff]  }
 0x40e   :  { %16258 = vmatpush1.bf16.msra.mxu0 %v23113_v14  ;;  %v23152_v14 = vld [vmem:[%s33260_s3 + $0x1798] ss:$52 sps:$4 sm:$0xff]  }
 0x40f   :  { %16259 = vmatprep.subr.bf16.mxu0 %v23121_v19  ;;  %v23161_v19 = vld [vmem:[%s33260_s3 + $0x1ba0] ss:$52 sps:$4 sm:$0xff]  }
 0x410   :  { %16568 = vmatpush1.bf16.msra.mxu1 %v23110_v21  ;;  %v23160_v21 = vld [vmem:[%s33260_s3 + $0x1804] ss:$52 sps:$4 sm:$0xff]  }
 0x411   :  { %16569 = vmatprep.subr.bf16.mxu1 %v23118_v63  ;;  %v23163_v63 = vld [vmem:[%s33260_s3 + $0x1ba4] ss:$52 sps:$4 sm:$0xff]  }
 0x412   :  { %16260 = vmatpush1.bf16.msra.mxu0 %v23119_v9  ;;  %v23166_v9 = vld [vmem:[%s33260_s3 + $0x186c] ss:$52 sps:$4 sm:$0xff]  }
 0x413   :  { %16261 = vmatprep.subr.bf16.mxu0 %v23127_v35  ;;  %v23164_v35 = vld [vmem:[%s33260_s3 + $0x1868] ss:$52 sps:$4 sm:$0xff]  }
 0x414   :  { %16570 = vmatpush1.bf16.msra.mxu1 %v23116_v0  ;;  %v23169_v0 = vld [vmem:[%s33260_s3 + $0x1c0c] ss:$52 sps:$4 sm:$0xff]  }
 0x415   :  { %16571 = vmatprep.subr.bf16.mxu1 %v23124_v30  ;;  %v23167_v30 = vld [vmem:[%s33260_s3 + $0x1c08] ss:$52 sps:$4 sm:$0xff]  }
 0x416   :  { %v28604_v49 = vpop.f32.mrb[20].mxu1  ;;  %16262 = vmatpush1.bf16.msra.mxu0 %v23125_v39  ;;  %v23173_v39 = vld [vmem:[%s33260_s3 + $0x1c70] ss:$52 sps:$4 sm:$0xff]  }
 0x417   :  { %v28606_v10 = vpop.f32.mrb[21].mxu1  ;;  %16263 = vmatprep.subr.bf16.mxu0 %v23133_v48  ;;  %v23181_v48 = vld [vmem:[%s33260_s3 + $0x1cdc] ss:$52 sps:$4 sm:$0xff]  }
 0x418   :  { %16572 = vmatpush1.bf16.msra.mxu1 %v23122_v40  ;;  %v6162_v25 = vpop.f32.mrb[22].mxu1  ;;  %v23170_v40 = vld [vmem:[%s33260_s3 + $0x18d0] ss:$52 sps:$4 sm:$0xff]  }
 0x419   :  { %v6163_v54 = vpop.f32.mrb[23].mxu1  ;;  %16573 = vmatprep.subr.bf16.mxu1 %v23130_v46  ;;  %v23178_v46 = vld [vmem:[%s33260_s3 + $0x193c] ss:$52 sps:$4 sm:$0xff]   ;;  %v23187_v25 = vld [vmem:[%s33260_s3 + $0x1d44] ss:$52 sps:$4 sm:$0xff]  }
 0x41a   :  { %16264 = vmatpush1.bf16.msra.mxu0 %v23131_v42  ;;  %v23184_v42 = vld [vmem:[%s33260_s3 + $0x19a4] ss:$52 sps:$4 sm:$0xff]   ;;  %v23193_v54 = vld [vmem:[%s33260_s3 + $0x1dac] ss:$52 sps:$4 sm:$0xff]  }
 0x41b   :  { %16274 = vmatprep.subr.bf16.mxu0 %v23139_v28  ;;  %v23182_v28 = vld [vmem:[%s33260_s3 + $0x19a0] ss:$52 sps:$4 sm:$0xff]  }
 0x41c   :  { %16574 = vmatpush1.bf16.msra.mxu1 %v23128_v51  ;;  %v23185_v51 = vld [vmem:[%s33260_s3 + $0x1d40] ss:$52 sps:$4 sm:$0xff]  }
 0x41d   :  { %16575 = vmatprep.subr.bf16.mxu1 %v23136_v55  ;;  %16266 = vmatmul.mubr.bf16.vlgmr.msra.gmra.mrb[16].mxu0 %v28623_v60  ;;  %v23188_v55 = vld [vmem:[%s33260_s3 + $0x1a08] ss:$52 sps:$4 sm:$0xff]  }
 0x41e   :  { %16275 = vmatpush1.bf16.msra.mxu0 %v23137_v59  ;;  %16306 = vmatprep.mubr.bf16.mxu0 %v28634_v1  ;;  %v23191_v59 = vld [vmem:[%s33260_s3 + $0x1da8] ss:$52 sps:$4 sm:$0xff]  }
 0x41f   :  { %16276 = vmatprep.subr.bf16.mxu0 %v23145_v44  ;;  %v23197_v44 = vld [vmem:[%s33260_s3 + $0x1e10] ss:$52 sps:$4 sm:$0xff]  }
 0x420   :  { %16576 = vmatpush1.bf16.msra.mxu1 %v23134_v26  ;;  %v23196_v26 = vld [vmem:[%s33260_s3 + $0x1a74] ss:$52 sps:$4 sm:$0xff]  }
 0x421   :  { %16577 = vmatprep.subr.bf16.mxu1 %v23142_v57  ;;  %v23199_v57 = vld [vmem:[%s33260_s3 + $0x1e14] ss:$52 sps:$4 sm:$0xff]  }
 0x422   :  { %16277 = vmatpush1.bf16.msra.mxu0 %v23143_v2  ;;  %v23194_v2 = vld [vmem:[%s33260_s3 + $0x1a70] ss:$52 sps:$4 sm:$0xff]  }
 0x423   :  { %16278 = vmatprep.subr.bf16.mxu0 %v23151_v47  ;;  %v23203_v47 = vld [vmem:[%s33260_s3 + $0x1e78] ss:$52 sps:$4 sm:$0xff]  }
 0x424   :  { %16578 = vmatpush1.bf16.msra.mxu1 %v23140_v33  ;;  %v23202_v33 = vld [vmem:[%s33260_s3 + $0x1adc] ss:$52 sps:$4 sm:$0xff]  }
 0x425   :  { %16579 = vmatprep.subr.bf16.mxu1 %v23148_v34  ;;  %v23205_v34 = vld [vmem:[%s33260_s3 + $0x1e7c] ss:$52 sps:$4 sm:$0xff]  }
 0x426   :  { %16279 = vmatpush1.bf16.msra.mxu0 %v23149_v38  ;;  %v23200_v38 = vld [vmem:[%s33260_s3 + $0x1ad8] ss:$52 sps:$4 sm:$0xff]  }
 0x427   :  { %16280 = vmatprep.subr.bf16.mxu0 %v23157_v8  ;;  %v23209_v8 = vld [vmem:[%s33260_s3 + $0x1ee0] ss:$52 sps:$4 sm:$0xff]  }
 0x428   :  { %16580 = vmatpush1.bf16.msra.mxu1 %v23146_v17  ;;  %v23208_v17 = vld [vmem:[%s33260_s3 + $0x1b44] ss:$52 sps:$4 sm:$0xff]  }
 0x429   :  { %16581 = vmatprep.subr.bf16.mxu1 %v23154_v37  ;;  %v23211_v37 = vld [vmem:[%s33260_s3 + $0x1ee4] ss:$52 sps:$4 sm:$0xff]  }
 0x42a   :  { %16281 = vmatpush1.bf16.msra.mxu0 %v23155_v11  ;;  %v23206_v11 = vld [vmem:[%s33260_s3 + $0x1b40] ss:$52 sps:$4 sm:$0xff]  }
 0x42b   :  { %16282 = vmatprep.subr.bf16.mxu0 %v23163_v63  ;;  %v860_v63 = vrot.slane %v28563_v18, %v26562_v7 }
 0x42c   :  { %16582 = vmatpush1.bf16.msra.mxu1 %v23152_v14  ;;  %v23214_v14 = vld [vmem:[%s33260_s3 + $0x1bac] ss:$52 sps:$4 sm:$0xff]  }
 0x42d   :  { %16583 = vmatprep.subr.bf16.mxu1 %v23160_v21  ;;  %v23217_v21 = vld [vmem:[%s33260_s3 + $0x1f4c] ss:$52 sps:$4 sm:$0xff]  }
 0x42e   :  { %16283 = vmatpush1.bf16.msra.mxu0 %v23161_v19  ;;  %v23215_v19 = vld [vmem:[%s33260_s3 + $0x1f48] ss:$52 sps:$4 sm:$0xff]  }
 0x42f   :  { %16284 = vmatprep.subr.bf16.mxu0 %v23169_v0  ;;  %v23223_v0 = vld [vmem:[%s33260_s3 + $0x1fb4] ss:$52 sps:$4 sm:$0xff]  }
 0x430   :  { %16584 = vmatpush1.bf16.msra.mxu1 %v23158_v61  ;;  %v23212_v61 = vld [vmem:[%s33260_s3 + $0x1ba8] ss:$52 sps:$4 sm:$0xff]  }
 0x431   :  { %16585 = vmatprep.subr.bf16.mxu1 %v23166_v9  ;;  %v23220_v9 = vld [vmem:[%s33260_s3 + $0x1c14] ss:$52 sps:$4 sm:$0xff]  }
 0x432   :  { %16285 = vmatpush1.bf16.msra.mxu0 %v23167_v30  ;;  %v872_v30 = vrot.slane %v28563_v18, %v27929_v20  ;;  %v23229_v18 = vld [vmem:[%s33260_s3 + $0x201c] ss:$52 sps:$4 sm:$0xff]  }
 0x433   :  { %16286 = vmatprep.subr.bf16.mxu0 %v23175_v36  ;;  %v23218_v36 = vld [vmem:[%s33260_s3 + $0x1c10] ss:$52 sps:$4 sm:$0xff]  }
 0x434   :  { %16586 = vmatpush1.bf16.msra.mxu1 %v23164_v35  ;;  %v22491_v35 = vadd.f32 %v27819_v58, %v860_v63  ;;  %v22494_v58 = vadd.f32 %v27917_v16, %v872_v30  ;;  %v23235_v16 = vld [vmem:[%s33260_s3 + $0x2084] ss:$52 sps:$4 sm:$0xff]   ;;  %v23263_v63 = vld [vmem:[%s33260_s3 + $0x2288] ss:$52 sps:$4 sm:$0xff]  }
 0x435   :  { %16587 = vmatprep.subr.bf16.mxu1 %v23172_v50  ;;  %v23221_v50 = vld [vmem:[%s33260_s3 + $0x1fb0] ss:$52 sps:$4 sm:$0xff]  }
 0x436   :  { %16287 = vmatpush1.bf16.msra.mxu0 %v23173_v39  ;;  %v23226_v39 = vld [vmem:[%s33260_s3 + $0x1c7c] ss:$52 sps:$4 sm:$0xff]  }
 0x437   :  { %16288 = vmatprep.subr.bf16.mxu0 %v23181_v48  ;;  %v23224_v48 = vld [vmem:[%s33260_s3 + $0x1c78] ss:$52 sps:$4 sm:$0xff]   ;;  %v23266_v30 = vld [vmem:[%s33260_s3 + $0x1f50] ss:$52 sps:$4 sm:$0xff]  }
 0x438   :  { %16588 = vmatpush1.bf16.msra.mxu1 %v23170_v40  ;;  %v6173_v40 = vmax.f32 %v22491_v35, 0.0  ;;  %v23274_v35 = vld [vmem:[%s33260_s3 + $0x1fbc] ss:$52 sps:$4 sm:$0xff]  }
 0x439   :  { %16589 = vmatprep.subr.bf16.mxu1 %v23178_v46  ;;  %v23227_v46 = vld [vmem:[%s33260_s3 + $0x2018] ss:$52 sps:$4 sm:$0xff]  }
 0x43a   :  { %16289 = vmatpush1.bf16.msra.mxu0 %v23179_v22  ;;  %v23232_v22 = vld [vmem:[%s33260_s3 + $0x1ce4] ss:$52 sps:$4 sm:$0xff]  }
 0x43b   :  { %16290 = vmatprep.subr.bf16.mxu0 %v23187_v25  ;;  %v28829_v25 = vpack.c.bf16 %v6173_v40, %v6173_v40  ;;  %v23281_v40 = vld [vmem:[%s33260_s3 + $0x23c0] ss:$52 sps:$4 sm:$0xff]  }
 0x43c   :  { %16590 = vmatpush1.bf16.msra.mxu1 %v23176_v32  ;;  %v6176_v32 = vmax.f32 %v22494_v58, 0.0  ;;  %v23283_v58 = vld [vmem:[%s33260_s3 + $0x23c4] ss:$52 sps:$4 sm:$0xff]  }
 0x43d   :  { %16591 = vmatprep.subr.bf16.mxu1 %v23184_v42  ;;  %v23233_v42 = vld [vmem:[%s33260_s3 + $0x2080] ss:$52 sps:$4 sm:$0xff]  }
 0x43e   :  { %16291 = vmatpush1.bf16.msra.mxu0 %v23185_v51  ;;  %v23230_v51 = vld [vmem:[%s33260_s3 + $0x1ce0] ss:$52 sps:$4 sm:$0xff]  }
 0x43f   :  { %16292 = vmatprep.subr.bf16.mxu0 %v23193_v54  ;;  %v28840_v54 = vpack.c.bf16 %v6176_v32, %v6176_v32  ;;  %v23287_v32 = vld [vmem:[%s33260_s3 + $0x2428] ss:$52 sps:$4 sm:$0xff]  }
 0x440   :  { %16592 = vmatpush1.bf16.msra.mxu1 %v23182_v28  ;;  %v23238_v28 = vld [vmem:[%s33260_s3 + $0x1d4c] ss:$52 sps:$4 sm:$0xff]  }
 0x441   :  { %16602 = vmatprep.subr.bf16.mxu1 %v23190_v53  ;;  %v23241_v53 = vld [vmem:[%s33260_s3 + $0x20ec] ss:$52 sps:$4 sm:$0xff]  }
 0x442   :  { %16293 = vmatpush1.bf16.msra.mxu0 %v23191_v59  ;;  %v23236_v59 = vld [vmem:[%s33260_s3 + $0x1d48] ss:$52 sps:$4 sm:$0xff]  }
 0x443   :  { %16594 = vmatmul.mubr.bf16.vlgmr.msra.gmra.mrb[24].mxu1 %v28623_v60  ;;  %16294 = vmatprep.subr.bf16.mxu0 %v23199_v57  ;;  %v23244_v57 = vld [vmem:[%s33260_s3 + $0x1db4] ss:$52 sps:$4 sm:$0xff]  }
 0x444   :  { %16603 = vmatpush1.bf16.msra.mxu1 %v23188_v55  ;;  %16634 = vmatprep.mubr.bf16.mxu1 %v28634_v1  ;;  %v23239_v55 = vld [vmem:[%s33260_s3 + $0x20e8] ss:$52 sps:$4 sm:$0xff]  }
 0x445   :  { %16604 = vmatprep.subr.bf16.mxu1 %v23196_v26  ;;  %v23247_v26 = vld [vmem:[%s33260_s3 + $0x2154] ss:$52 sps:$4 sm:$0xff]  }
 0x446   :  { %16295 = vmatpush1.bf16.msra.mxu0 %v23197_v44  ;;  %v23245_v44 = vld [vmem:[%s33260_s3 + $0x2150] ss:$52 sps:$4 sm:$0xff]  }
 0x447   :  { %16296 = vmatprep.subr.bf16.mxu0 %v23205_v34  ;;  %v23253_v34 = vld [vmem:[%s33260_s3 + $0x21bc] ss:$52 sps:$4 sm:$0xff]  }
 0x448   :  { %16605 = vmatpush1.bf16.msra.mxu1 %v23194_v2  ;;  %v23242_v2 = vld [vmem:[%s33260_s3 + $0x1db0] ss:$52 sps:$4 sm:$0xff]  }
 0x449   :  { %16606 = vmatprep.subr.bf16.mxu1 %v23202_v33  ;;  %v23250_v33 = vld [vmem:[%s33260_s3 + $0x1e1c] ss:$52 sps:$4 sm:$0xff]  }
 0x44a   :  { %16297 = vmatpush1.bf16.msra.mxu0 %v23203_v47  ;;  %v23251_v47 = vld [vmem:[%s33260_s3 + $0x21b8] ss:$52 sps:$4 sm:$0xff]  }
 0x44b   :  { %16298 = vmatprep.subr.bf16.mxu0 %v23211_v37  ;;  %v23259_v37 = vld [vmem:[%s33260_s3 + $0x2224] ss:$52 sps:$4 sm:$0xff]  }
 0x44c   :  { %16607 = vmatpush1.bf16.msra.mxu1 %v23200_v38  ;;  %v23248_v38 = vld [vmem:[%s33260_s3 + $0x1e18] ss:$52 sps:$4 sm:$0xff]  }
 0x44d   :  { %16608 = vmatprep.subr.bf16.mxu1 %v23208_v17  ;;  %v23256_v17 = vld [vmem:[%s33260_s3 + $0x1e84] ss:$52 sps:$4 sm:$0xff]  }
 0x44e   :  { %16299 = vmatpush1.bf16.msra.mxu0 %v23209_v8  ;;  %v23257_v8 = vld [vmem:[%s33260_s3 + $0x2220] ss:$52 sps:$4 sm:$0xff]  }
 0x44f   :  { %16300 = vmatprep.subr.bf16.mxu0 %v23217_v21  ;;  %v23265_v21 = vld [vmem:[%s33260_s3 + $0x228c] ss:$52 sps:$4 sm:$0xff]  }
 0x450   :  { %16609 = vmatpush1.bf16.msra.mxu1 %v23206_v11  ;;  %v23254_v11 = vld [vmem:[%s33260_s3 + $0x1e80] ss:$52 sps:$4 sm:$0xff]  }
 0x451   :  { %16610 = vmatprep.subr.bf16.mxu1 %v23214_v14  ;;  %v23262_v14 = vld [vmem:[%s33260_s3 + $0x1eec] ss:$52 sps:$4 sm:$0xff]  }
 0x452   :  { %16301 = vmatpush1.bf16.msra.mxu0 %v23215_v19  ;;  %v23260_v19 = vld [vmem:[%s33260_s3 + $0x1ee8] ss:$52 sps:$4 sm:$0xff]  }
 0x453   :  { %16302 = vmatprep.subr.bf16.mxu0 %v23223_v0  ;;  %v23269_v0 = vld [vmem:[%s33260_s3 + $0x22f0] ss:$52 sps:$4 sm:$0xff]  }
 0x454   :  { %16611 = vmatpush1.bf16.msra.mxu1 %v23212_v61  ;;  %v23268_v61 = vld [vmem:[%s33260_s3 + $0x1f54] ss:$52 sps:$4 sm:$0xff]  }
 0x455   :  { %16612 = vmatprep.subr.bf16.mxu1 %v23220_v9  ;;  %v23271_v9 = vld [vmem:[%s33260_s3 + $0x22f4] ss:$52 sps:$4 sm:$0xff]  }
 0x456   :  { %16303 = vmatpush1.bf16.msra.mxu0 %v23221_v50  ;;  %v23277_v50 = vld [vmem:[%s33260_s3 + $0x235c] ss:$52 sps:$4 sm:$0xff]  }
 0x457   :  { %16304 = vmatprep.subr.bf16.mxu0 %v23229_v18  ;;  %v23280_v18 = vld [vmem:[%s33260_s3 + $0x2024] ss:$52 sps:$4 sm:$0xff]  }
 0x458   :  { %16613 = vmatpush1.bf16.msra.mxu1 %v23218_v36  ;;  %v23275_v36 = vld [vmem:[%s33260_s3 + $0x2358] ss:$52 sps:$4 sm:$0xff]  }
 0x459   :  { %16614 = vmatprep.subr.bf16.mxu1 %v23226_v39  ;;  %v23272_v39 = vld [vmem:[%s33260_s3 + $0x1fb8] ss:$52 sps:$4 sm:$0xff]  }
 0x45a   :  { %16305 = vmatpush1.bf16.msra.mxu0 %v23227_v46  ;;  %v23278_v46 = vld [vmem:[%s33260_s3 + $0x2020] ss:$52 sps:$4 sm:$0xff]  }
 0x45b   :  { %16315 = vmatprep.subr.bf16.mxu0 %v23235_v16  ;;  %v23284_v16 = vld [vmem:[%s33260_s3 + $0x2088] ss:$52 sps:$4 sm:$0xff]  }
 0x45c   :  { %16615 = vmatpush1.bf16.msra.mxu1 %v23224_v48  ;;  %v23286_v48 = vld [vmem:[%s33260_s3 + $0x208c] ss:$52 sps:$4 sm:$0xff]  }
 0x45d   :  { %16616 = vmatprep.subr.bf16.mxu1 %v23232_v22  ;;  %16307 = vmatmul.mubr.bf16.vlgmr.msra.gmra.mrb[16].mxu0 %v28829_v25  ;;  %v23289_v22 = vld [vmem:[%s33260_s3 + $0x242c] ss:$52 sps:$4 sm:$0xff]  }
 0x45e   :  { %16316 = vmatpush1.bf16.msra.mxu0 %v23233_v42  ;;  %16347 = vmatprep.mubr.bf16.mxu0 %v28840_v54  ;;  %v23292_v42 = vld [vmem:[%s33260_s3 + $0x20f4] ss:$52 sps:$4 sm:$0xff]  }
 0x45f   :  { %16317 = vmatprep.subr.bf16.mxu0 %v23241_v53  ;;  %v23290_v53 = vld [vmem:[%s33260_s3 + $0x20f0] ss:$52 sps:$4 sm:$0xff]  }
 0x460   :  { %16617 = vmatpush1.bf16.msra.mxu1 %v23230_v51  ;;  %v23295_v51 = vld [vmem:[%s33260_s3 + $0x2494] ss:$52 sps:$4 sm:$0xff]  }
 0x461   :  { %16618 = vmatprep.subr.bf16.mxu1 %v23238_v28  ;;  %v23293_v28 = vld [vmem:[%s33260_s3 + $0x2490] ss:$52 sps:$4 sm:$0xff]  }
 0x462   :  { %16318 = vmatpush1.bf16.msra.mxu0 %v23239_v55  ;;  %v23298_v55 = vld [vmem:[%s33260_s3 + $0x215c] ss:$52 sps:$4 sm:$0xff]  }
 0x463   :  { %16319 = vmatprep.subr.bf16.mxu0 %v23247_v26  ;;  %v23296_v26 = vld [vmem:[%s33260_s3 + $0x2158] ss:$52 sps:$4 sm:$0xff]  }
 0x464   :  { %16619 = vmatpush1.bf16.msra.mxu1 %v23236_v59  ;;  %v23301_v59 = vld [vmem:[%s33260_s3 + $0x24fc] ss:$52 sps:$4 sm:$0xff]  }
 0x465   :  { %16620 = vmatprep.subr.bf16.mxu1 %v23244_v57  ;;  %v23299_v57 = vld [vmem:[%s33260_s3 + $0x24f8] ss:$52 sps:$4 sm:$0xff]  }
 0x466   :  { %16320 = vmatpush1.bf16.msra.mxu0 %v23245_v44  ;;  %v23304_v44 = vld [vmem:[%s33260_s3 + $0x21c4] ss:$52 sps:$4 sm:$0xff]  }
 0x467   :  { %16321 = vmatprep.subr.bf16.mxu0 %v23253_v34  ;;  %v23302_v34 = vld [vmem:[%s33260_s3 + $0x21c0] ss:$52 sps:$4 sm:$0xff]  }
 0x468   :  { %16621 = vmatpush1.bf16.msra.mxu1 %v23242_v2  ;;  %v23307_v2 = vld [vmem:[%s33260_s3 + $0x2564] ss:$52 sps:$4 sm:$0xff]  }
 0x469   :  { %16622 = vmatprep.subr.bf16.mxu1 %v23250_v33  ;;  %v23305_v33 = vld [vmem:[%s33260_s3 + $0x2560] ss:$52 sps:$4 sm:$0xff]  }
 0x46a   :  { %16322 = vmatpush1.bf16.msra.mxu0 %v23251_v47  ;;  %v23310_v47 = vld [vmem:[%s33260_s3 + $0x222c] ss:$52 sps:$4 sm:$0xff]  }
 0x46b   :  { %16323 = vmatprep.subr.bf16.mxu0 %v23259_v37 }
 0x46c   :  { %16623 = vmatpush1.bf16.msra.mxu1 %v23248_v38  ;;  %v23313_v38 = vld [vmem:[%s33260_s3 + $0x25cc] ss:$52 sps:$4 sm:$0xff]  }
 0x46d   :  { %16624 = vmatprep.subr.bf16.mxu1 %v23256_v17  ;;  %v28993_v17 = vld [vmem:[%s33259_s2 + $0x8] sm:$0xff] }
 0x46e   :  { %16324 = vmatpush1.bf16.msra.mxu0 %v23257_v8  ;;  %v868_v37 = vrot.slane %v28993_v17, %v28132_v56  ;;  %v23311_v8 = vld [vmem:[%s33260_s3 + $0x25c8] ss:$52 sps:$4 sm:$0xff]  }
 0x46f   :  { %16325 = vmatprep.subr.bf16.mxu0 %v23265_v21  ;;  %v23319_v21 = vld [vmem:[%s33260_s3 + $0x2634] ss:$52 sps:$4 sm:$0xff]  }
 0x470   :  { %16625 = vmatpush1.bf16.msra.mxu1 %v23254_v11  ;;  %v23308_v11 = vld [vmem:[%s33260_s3 + $0x2228] ss:$52 sps:$4 sm:$0xff]  }
 0x471   :  { %16626 = vmatprep.subr.bf16.mxu1 %v23262_v14  ;;  %v23316_v14 = vld [vmem:[%s33260_s3 + $0x2294] ss:$52 sps:$4 sm:$0xff]  }
 0x472   :  { %16326 = vmatpush1.bf16.msra.mxu0 %v23263_v63  ;;  %v880_v63 = vrot.slane %v28993_v17, %v27170_v27 }
 0x473   :  { %16327 = vmatprep.subr.bf16.mxu0 %v23271_v9  ;;  %v23314_v9 = vld [vmem:[%s33260_s3 + $0x2290] ss:$52 sps:$4 sm:$0xff]  }
 0x474   :  { %16627 = vmatpush1.bf16.msra.mxu1 %v23260_v19  ;;  %v22493_v19 = vadd.f32 %v27915_v15, %v868_v37  ;;  %v22496_v15 = vadd.f32 %v28478_v45, %v880_v63  ;;  %v23331_v45 = vld [vmem:[%s33260_s3 + $0x2704] ss:$52 sps:$4 sm:$0xff]   ;;  %v23358_v37 = vld [vmem:[%s33260_s3 + $0x256c] ss:$52 sps:$4 sm:$0xff]  }
 0x475   :  { %16628 = vmatprep.subr.bf16.mxu1 %v23268_v61  ;;  %v23317_v61 = vld [vmem:[%s33260_s3 + $0x2630] ss:$52 sps:$4 sm:$0xff]  }
 0x476   :  { %16328 = vmatpush1.bf16.msra.mxu0 %v23269_v0  ;;  %v23322_v0 = vld [vmem:[%s33260_s3 + $0x22fc] ss:$52 sps:$4 sm:$0xff]  }
 0x477   :  { %16329 = vmatprep.subr.bf16.mxu0 %v23277_v50  ;;  %v23323_v50 = vld [vmem:[%s33260_s3 + $0x2698] ss:$52 sps:$4 sm:$0xff]   ;;  %v23365_v63 = vld [vmem:[%s33260_s3 + $0x2970] ss:$52 sps:$4 sm:$0xff]  }
 0x478   :  { %16629 = vmatpush1.bf16.msra.mxu1 %v23266_v30  ;;  %v23325_v30 = vld [vmem:[%s33260_s3 + $0x269c] ss:$52 sps:$4 sm:$0xff]  }
 0x479   :  { %16630 = vmatprep.subr.bf16.mxu1 %v23274_v35  ;;  %v6175_v35 = vmax.f32 %v22493_v19, 0.0  ;;  %v23362_v19 = vld [vmem:[%s33260_s3 + $0x25d0] ss:$52 sps:$4 sm:$0xff]  }
 0x47a   :  { %16330 = vmatpush1.bf16.msra.mxu0 %v23275_v36  ;;  %v23320_v36 = vld [vmem:[%s33260_s3 + $0x22f8] ss:$52 sps:$4 sm:$0xff]  }
 0x47b   :  { %16331 = vmatprep.subr.bf16.mxu0 %v23283_v58  ;;  %v23329_v58 = vld [vmem:[%s33260_s3 + $0x2700] ss:$52 sps:$4 sm:$0xff]  }
 0x47c   :  { %16631 = vmatpush1.bf16.msra.mxu1 %v23272_v39  ;;  %v23328_v39 = vld [vmem:[%s33260_s3 + $0x2364] ss:$52 sps:$4 sm:$0xff]  }
 0x47d   :  { %16632 = vmatprep.subr.bf16.mxu1 %v23280_v18  ;;  %v6178_v18 = vmax.f32 %v22496_v15, 0.0  ;;  %v23376_v15 = vld [vmem:[%s33260_s3 + $0x26a4] ss:$52 sps:$4 sm:$0xff]  }
 0x47e   :  { %16332 = vmatpush1.bf16.msra.mxu0 %v23281_v40  ;;  %v29040_v40 = vpack.c.bf16 %v6175_v35, %v6175_v35  ;;  %v23379_v35 = vld [vmem:[%s33260_s3 + $0x2a44] ss:$52 sps:$4 sm:$0xff]  }
 0x47f   :  { %16333 = vmatprep.subr.bf16.mxu0 %v23289_v22  ;;  %v23337_v22 = vld [vmem:[%s33260_s3 + $0x276c] ss:$52 sps:$4 sm:$0xff]  }
 0x480   :  { %16633 = vmatpush1.bf16.msra.mxu1 %v23278_v46  ;;  %v23326_v46 = vld [vmem:[%s33260_s3 + $0x2360] ss:$52 sps:$4 sm:$0xff]  }
 0x481   :  { %16643 = vmatprep.subr.bf16.mxu1 %v23286_v48  ;;  %v23334_v48 = vld [vmem:[%s33260_s3 + $0x23cc] ss:$52 sps:$4 sm:$0xff]  }
 0x482   :  { %16334 = vmatpush1.bf16.msra.mxu0 %v23287_v32  ;;  %v23335_v32 = vld [vmem:[%s33260_s3 + $0x2768] ss:$52 sps:$4 sm:$0xff]  }
 0x483   :  { %16635 = vmatmul.mubr.bf16.vlgmr.msra.gmra.mrb[24].mxu1 %v28829_v25  ;;  %16335 = vmatprep.subr.bf16.mxu0 %v23295_v51  ;;  %v23340_v51 = vld [vmem:[%s33260_s3 + $0x2434] ss:$52 sps:$4 sm:$0xff]  }
 0x484   :  { %16644 = vmatpush1.bf16.msra.mxu1 %v23284_v16  ;;  %16675 = vmatprep.mubr.bf16.mxu1 %v28840_v54  ;;  %v29051_v16 = vpack.c.bf16 %v6178_v18, %v6178_v18  ;;  %v23383_v18 = vld [vmem:[%s33260_s3 + $0x2aa8] ss:$52 sps:$4 sm:$0xff]  }
 0x485   :  { %16645 = vmatprep.subr.bf16.mxu1 %v23292_v42  ;;  %v23332_v42 = vld [vmem:[%s33260_s3 + $0x23c8] ss:$52 sps:$4 sm:$0xff]  }
 0x486   :  { %16336 = vmatpush1.bf16.msra.mxu0 %v23293_v28  ;;  %v23343_v28 = vld [vmem:[%s33260_s3 + $0x27d4] ss:$52 sps:$4 sm:$0xff]  }
 0x487   :  { %16337 = vmatprep.subr.bf16.mxu0 %v23301_v59  ;;  %v23346_v59 = vld [vmem:[%s33260_s3 + $0x249c] ss:$52 sps:$4 sm:$0xff]  }
 0x488   :  { %16646 = vmatpush1.bf16.msra.mxu1 %v23290_v53  ;;  %v23341_v53 = vld [vmem:[%s33260_s3 + $0x27d0] ss:$52 sps:$4 sm:$0xff]  }
 0x489   :  { %16647 = vmatprep.subr.bf16.mxu1 %v23298_v55  ;;  %v23338_v55 = vld [vmem:[%s33260_s3 + $0x2430] ss:$52 sps:$4 sm:$0xff]  }
 0x48a   :  { %16338 = vmatpush1.bf16.msra.mxu0 %v23299_v57  ;;  %v23344_v57 = vld [vmem:[%s33260_s3 + $0x2498] ss:$52 sps:$4 sm:$0xff]  }
 0x48b   :  { %16339 = vmatprep.subr.bf16.mxu0 %v23307_v2  ;;  %v23352_v2 = vld [vmem:[%s33260_s3 + $0x2504] ss:$52 sps:$4 sm:$0xff]  }
 0x48c   :  { %16648 = vmatpush1.bf16.msra.mxu1 %v23296_v26  ;;  %v23349_v26 = vld [vmem:[%s33260_s3 + $0x283c] ss:$52 sps:$4 sm:$0xff]  }
 0x48d   :  { %16649 = vmatprep.subr.bf16.mxu1 %v23304_v44  ;;  %v23347_v44 = vld [vmem:[%s33260_s3 + $0x2838] ss:$52 sps:$4 sm:$0xff]  }
 0x48e   :  { %16340 = vmatpush1.bf16.msra.mxu0 %v23305_v33  ;;  %v23355_v33 = vld [vmem:[%s33260_s3 + $0x28a4] ss:$52 sps:$4 sm:$0xff]  }
 0x48f   :  { %16341 = vmatprep.subr.bf16.mxu0 %v23313_v38  ;;  %v23361_v38 = vld [vmem:[%s33260_s3 + $0x290c] ss:$52 sps:$4 sm:$0xff]  }
 0x490   :  { %16650 = vmatpush1.bf16.msra.mxu1 %v23302_v34  ;;  %v23350_v34 = vld [vmem:[%s33260_s3 + $0x2500] ss:$52 sps:$4 sm:$0xff]  }
 0x491   :  { %16651 = vmatprep.subr.bf16.mxu1 %v23310_v47  ;;  %v23353_v47 = vld [vmem:[%s33260_s3 + $0x28a0] ss:$52 sps:$4 sm:$0xff]  }
 0x492   :  { %16342 = vmatpush1.bf16.msra.mxu0 %v23311_v8  ;;  %v23359_v8 = vld [vmem:[%s33260_s3 + $0x2908] ss:$52 sps:$4 sm:$0xff]  }
 0x493   :  { %16343 = vmatprep.subr.bf16.mxu0 %v23319_v21  ;;  %v23367_v21 = vld [vmem:[%s33260_s3 + $0x2974] ss:$52 sps:$4 sm:$0xff]  }
 0x494   :  { %16652 = vmatpush1.bf16.msra.mxu1 %v23308_v11  ;;  %v23356_v11 = vld [vmem:[%s33260_s3 + $0x2568] ss:$52 sps:$4 sm:$0xff]  }
 0x495   :  { %16653 = vmatprep.subr.bf16.mxu1 %v23316_v14  ;;  %v23364_v14 = vld [vmem:[%s33260_s3 + $0x25d4] ss:$52 sps:$4 sm:$0xff]  }
 0x496   :  { %16344 = vmatpush1.bf16.msra.mxu0 %v23317_v61  ;;  %v23370_v61 = vld [vmem:[%s33260_s3 + $0x263c] ss:$52 sps:$4 sm:$0xff]  }
 0x497   :  { %16345 = vmatprep.subr.bf16.mxu0 %v23325_v30  ;;  %v23368_v30 = vld [vmem:[%s33260_s3 + $0x2638] ss:$52 sps:$4 sm:$0xff]  }
 0x498   :  { %16654 = vmatpush1.bf16.msra.mxu1 %v23314_v9  ;;  %v23373_v9 = vld [vmem:[%s33260_s3 + $0x29dc] ss:$52 sps:$4 sm:$0xff]  }
 0x499   :  { %16655 = vmatprep.subr.bf16.mxu1 %v23322_v0  ;;  %v23371_v0 = vld [vmem:[%s33260_s3 + $0x29d8] ss:$52 sps:$4 sm:$0xff]  }
 0x49a   :  { %16346 = vmatpush1.bf16.msra.mxu0 %v23323_v50  ;;  %v23377_v50 = vld [vmem:[%s33260_s3 + $0x2a40] ss:$52 sps:$4 sm:$0xff]  }
 0x49b   :  { %16356 = vmatprep.subr.bf16.mxu0 %v23331_v45  ;;  %v23385_v45 = vld [vmem:[%s33260_s3 + $0x2aac] ss:$52 sps:$4 sm:$0xff]  }
 0x49c   :  { %16656 = vmatpush1.bf16.msra.mxu1 %v23320_v36  ;;  %v23374_v36 = vld [vmem:[%s33260_s3 + $0x26a0] ss:$52 sps:$4 sm:$0xff]  }
 0x49d   :  { %16657 = vmatprep.subr.bf16.mxu1 %v23328_v39  ;;  %16348 = vmatmul.mubr.bf16.vlgmr.msra.gmra.mrb[16].mxu0 %v29040_v40  ;;  %v23382_v39 = vld [vmem:[%s33260_s3 + $0x270c] ss:$52 sps:$4 sm:$0xff]  }
 0x49e   :  { %16357 = vmatpush1.bf16.msra.mxu0 %v23329_v58  ;;  %16388 = vmatprep.mubr.bf16.mxu0 %v29051_v16  ;;  %v23380_v58 = vld [vmem:[%s33260_s3 + $0x2708] ss:$52 sps:$4 sm:$0xff]  }
 0x49f   :  { %16358 = vmatprep.subr.bf16.mxu0 %v23337_v22  ;;  %v23389_v22 = vld [vmem:[%s33260_s3 + $0x2b10] ss:$52 sps:$4 sm:$0xff]  }
 0x4a0   :  { %16658 = vmatpush1.bf16.msra.mxu1 %v23326_v46  ;;  %v23388_v46 = vld [vmem:[%s33260_s3 + $0x2774] ss:$52 sps:$4 sm:$0xff]  }
 0x4a1   :  { %16659 = vmatprep.subr.bf16.mxu1 %v23334_v48  ;;  %v23391_v48 = vld [vmem:[%s33260_s3 + $0x2b14] ss:$52 sps:$4 sm:$0xff]  }
 0x4a2   :  { %16359 = vmatpush1.bf16.msra.mxu0 %v23335_v32  ;;  %v23386_v32 = vld [vmem:[%s33260_s3 + $0x2770] ss:$52 sps:$4 sm:$0xff]  }
 0x4a3   :  { %16360 = vmatprep.subr.bf16.mxu0 %v23343_v28  ;;  %v23395_v28 = vld [vmem:[%s33260_s3 + $0x2b78] ss:$52 sps:$4 sm:$0xff]  }
 0x4a4   :  { %16660 = vmatpush1.bf16.msra.mxu1 %v23332_v42  ;;  %v23394_v42 = vld [vmem:[%s33260_s3 + $0x27dc] ss:$52 sps:$4 sm:$0xff]  }
 0x4a5   :  { %16661 = vmatprep.subr.bf16.mxu1 %v23340_v51  ;;  %v23397_v51 = vld [vmem:[%s33260_s3 + $0x2b7c] ss:$52 sps:$4 sm:$0xff]  }
 0x4a6   :  { %16361 = vmatpush1.bf16.msra.mxu0 %v23341_v53  ;;  %v23392_v53 = vld [vmem:[%s33260_s3 + $0x27d8] ss:$52 sps:$4 sm:$0xff]  }
 0x4a7   :  { %16362 = vmatprep.subr.bf16.mxu0 %v23349_v26  ;;  %v23401_v26 = vld [vmem:[%s33260_s3 + $0x2be0] ss:$52 sps:$4 sm:$0xff]  }
 0x4a8   :  { %16662 = vmatpush1.bf16.msra.mxu1 %v23338_v55  ;;  %v23400_v55 = vld [vmem:[%s33260_s3 + $0x2844] ss:$52 sps:$4 sm:$0xff]  }
 0x4a9   :  { %16663 = vmatprep.subr.bf16.mxu1 %v23346_v59  ;;  %v23403_v59 = vld [vmem:[%s33260_s3 + $0x2be4] ss:$52 sps:$4 sm:$0xff]  }
 0x4aa   :  { %16363 = vmatpush1.bf16.msra.mxu0 %v23347_v44  ;;  %v23406_v44 = vld [vmem:[%s33260_s3 + $0x28ac] ss:$52 sps:$4 sm:$0xff]  }
 0x4ab   :  { %16364 = vmatprep.subr.bf16.mxu0 %v23355_v33  ;;  %v876_v33 = vrot.slane %v28993_v17, %v27167_v24 }
 0x4ac   :  { %16664 = vmatpush1.bf16.msra.mxu1 %v23344_v57  ;;  %v23398_v57 = vld [vmem:[%s33260_s3 + $0x2840] ss:$52 sps:$4 sm:$0xff]  }
 0x4ad   :  { %16665 = vmatprep.subr.bf16.mxu1 %v23352_v2  ;;  %v23409_v2 = vld [vmem:[%s33260_s3 + $0x2c4c] ss:$52 sps:$4 sm:$0xff]  }
 0x4ae   :  { %16365 = vmatpush1.bf16.msra.mxu0 %v23353_v47  ;;  %v23404_v47 = vld [vmem:[%s33260_s3 + $0x28a8] ss:$52 sps:$4 sm:$0xff]  }
 0x4af   :  { %16366 = vmatprep.subr.bf16.mxu0 %v23361_v38  ;;  %v23412_v38 = vld [vmem:[%s33260_s3 + $0x2914] ss:$52 sps:$4 sm:$0xff]  }
 0x4b0   :  { %16666 = vmatpush1.bf16.msra.mxu1 %v23350_v34  ;;  %v23407_v34 = vld [vmem:[%s33260_s3 + $0x2c48] ss:$52 sps:$4 sm:$0xff]  }
 0x4b1   :  { %16667 = vmatprep.subr.bf16.mxu1 %v23358_v37  ;;  %v23415_v37 = vld [vmem:[%s33260_s3 + $0x2cb4] ss:$52 sps:$4 sm:$0xff]  }
 0x4b2   :  { %16367 = vmatpush1.bf16.msra.mxu0 %v23359_v8  ;;  %v888_v8 = vrot.slane %v28993_v17, %v28351_v43 }
 0x4b3   :  { %16368 = vmatprep.subr.bf16.mxu0 %v23367_v21  ;;  %v23410_v21 = vld [vmem:[%s33260_s3 + $0x2910] ss:$52 sps:$4 sm:$0xff]  }
 0x4b4   :  { %16668 = vmatpush1.bf16.msra.mxu1 %v23356_v11  ;;  %v22495_v11 = vadd.f32 %v28476_v41, %v876_v33  ;;  %v22498_v41 = vadd.f32 %v28606_v10, %v888_v8  ;;  %v23427_v10 = vld [vmem:[%s33260_s3 + $0x2d84] ss:$52 sps:$4 sm:$0xff]   ;;  %v23454_v33 = vld [vmem:[%s33260_s3 + $0x2bec] ss:$52 sps:$4 sm:$0xff]  }
 0x4b5   :  { %16669 = vmatprep.subr.bf16.mxu1 %v23364_v14  ;;  %v23413_v14 = vld [vmem:[%s33260_s3 + $0x2cb0] ss:$52 sps:$4 sm:$0xff]  }
 0x4b6   :  { %16369 = vmatpush1.bf16.msra.mxu0 %v23365_v63  ;;  %v23418_v63 = vld [vmem:[%s33260_s3 + $0x297c] ss:$52 sps:$4 sm:$0xff]  }
 0x4b7   :  { %16370 = vmatprep.subr.bf16.mxu0 %v23373_v9  ;;  %v23419_v9 = vld [vmem:[%s33260_s3 + $0x2d18] ss:$52 sps:$4 sm:$0xff]   ;;  %v23461_v8 = vld [vmem:[%s33260_s3 + $0x2ff0] ss:$52 sps:$4 sm:$0xff]  }
 0x4b8   :  { %16670 = vmatpush1.bf16.msra.mxu1 %v23362_v19  ;;  %v23421_v19 = vld [vmem:[%s33260_s3 + $0x2d1c] ss:$52 sps:$4 sm:$0xff]  }
 0x4b9   :  { %16671 = vmatprep.subr.bf16.mxu1 %v23370_v61  ;;  %v6177_v61 = vmax.f32 %v22495_v11, 0.0  ;;  %v23458_v11 = vld [vmem:[%s33260_s3 + $0x2c50] ss:$52 sps:$4 sm:$0xff]  }
 0x4ba   :  { %16371 = vmatpush1.bf16.msra.mxu0 %v23371_v0  ;;  %v23416_v0 = vld [vmem:[%s33260_s3 + $0x2978] ss:$52 sps:$4 sm:$0xff]  }
 0x4bb   :  { %16372 = vmatprep.subr.bf16.mxu0 %v23379_v35  ;;  %v23422_v35 = vld [vmem:[%s33260_s3 + $0x29e0] ss:$52 sps:$4 sm:$0xff]  }
 0x4bc   :  { %16672 = vmatpush1.bf16.msra.mxu1 %v23368_v30  ;;  %v23424_v30 = vld [vmem:[%s33260_s3 + $0x29e4] ss:$52 sps:$4 sm:$0xff]  }
 0x4bd   :  { %16673 = vmatprep.subr.bf16.mxu1 %v23376_v15  ;;  %v6180_v15 = vmax.f32 %v22498_v41, 0.0  ;;  %v23472_v41 = vld [vmem:[%s33260_s3 + $0x2d24] ss:$52 sps:$4 sm:$0xff]  }
 0x4be   :  { %16373 = vmatpush1.bf16.msra.mxu0 %v23377_v50  ;;  %v23425_v50 = vld [vmem:[%s33260_s3 + $0x2d80] ss:$52 sps:$4 sm:$0xff]  }
 0x4bf   :  { %16374 = vmatprep.subr.bf16.mxu0 %v23385_v45  ;;  %v23433_v45 = vld [vmem:[%s33260_s3 + $0x2dec] ss:$52 sps:$4 sm:$0xff]  }
 0x4c0   :  { %16674 = vmatpush1.bf16.msra.mxu1 %v23374_v36  ;;  %v29249_v36 = vpack.c.bf16 %v6177_v61, %v6177_v61  ;;  %v23475_v61 = vld [vmem:[%s33260_s3 + $0x30c4] ss:$52 sps:$4 sm:$0xff]  }
 0x4c1   :  { %16684 = vmatprep.subr.bf16.mxu1 %v23382_v39  ;;  %v23430_v39 = vld [vmem:[%s33260_s3 + $0x2a4c] ss:$52 sps:$4 sm:$0xff]  }
 0x4c2   :  { %16375 = vmatpush1.bf16.msra.mxu0 %v23383_v18  ;;  %v29257_v18 = vpack.c.bf16 %v6180_v15, %v6180_v15  ;;  %v23481_v15 = vld [vmem:[%s33260_s3 + $0x312c] ss:$52 sps:$4 sm:$0xff]  }
 0x4c3   :  { %16676 = vmatmul.mubr.bf16.vlgmr.msra.gmra.mrb[24].mxu1 %v29040_v40  ;;  %16376 = vmatprep.subr.bf16.mxu0 %v23391_v48  ;;  %v23436_v48 = vld [vmem:[%s33260_s3 + $0x2ab4] ss:$52 sps:$4 sm:$0xff]  }
 0x4c4   :  { %16685 = vmatpush1.bf16.msra.mxu1 %v23380_v58  ;;  %16716 = vmatprep.mubr.bf16.mxu1 %v29051_v16  ;;  %v23431_v58 = vld [vmem:[%s33260_s3 + $0x2de8] ss:$52 sps:$4 sm:$0xff]  }
 0x4c5   :  { %16686 = vmatprep.subr.bf16.mxu1 %v23388_v46  ;;  %v23428_v46 = vld [vmem:[%s33260_s3 + $0x2a48] ss:$52 sps:$4 sm:$0xff]  }
 0x4c6   :  { %16377 = vmatpush1.bf16.msra.mxu0 %v23389_v22  ;;  %v23439_v22 = vld [vmem:[%s33260_s3 + $0x2e54] ss:$52 sps:$4 sm:$0xff]  }
 0x4c7   :  { %16378 = vmatprep.subr.bf16.mxu0 %v23397_v51  ;;  %v23442_v51 = vld [vmem:[%s33260_s3 + $0x2b1c] ss:$52 sps:$4 sm:$0xff]  }
 0x4c8   :  { %16687 = vmatpush1.bf16.msra.mxu1 %v23386_v32  ;;  %v23437_v32 = vld [vmem:[%s33260_s3 + $0x2e50] ss:$52 sps:$4 sm:$0xff]  }
 0x4c9   :  { %16688 = vmatprep.subr.bf16.mxu1 %v23394_v42  ;;  %v23434_v42 = vld [vmem:[%s33260_s3 + $0x2ab0] ss:$52 sps:$4 sm:$0xff]  }
 0x4ca   :  { %16379 = vmatpush1.bf16.msra.mxu0 %v23395_v28  ;;  %v23445_v28 = vld [vmem:[%s33260_s3 + $0x2ebc] ss:$52 sps:$4 sm:$0xff]  }
 0x4cb   :  { %16380 = vmatprep.subr.bf16.mxu0 %v23403_v59  ;;  %v23448_v59 = vld [vmem:[%s33260_s3 + $0x2b84] ss:$52 sps:$4 sm:$0xff]  }
 0x4cc   :  { %16689 = vmatpush1.bf16.msra.mxu1 %v23392_v53  ;;  %v23443_v53 = vld [vmem:[%s33260_s3 + $0x2eb8] ss:$52 sps:$4 sm:$0xff]  }
 0x4cd   :  { %16690 = vmatprep.subr.bf16.mxu1 %v23400_v55  ;;  %v23440_v55 = vld [vmem:[%s33260_s3 + $0x2b18] ss:$52 sps:$4 sm:$0xff]  }
 0x4ce   :  { %16381 = vmatpush1.bf16.msra.mxu0 %v23401_v26  ;;  %v23451_v26 = vld [vmem:[%s33260_s3 + $0x2f24] ss:$52 sps:$4 sm:$0xff]  }
 0x4cf   :  { %16382 = vmatprep.subr.bf16.mxu0 %v23409_v2  ;;  %v23457_v2 = vld [vmem:[%s33260_s3 + $0x2f8c] ss:$52 sps:$4 sm:$0xff]  }
 0x4d0   :  { %16691 = vmatpush1.bf16.msra.mxu1 %v23398_v57  ;;  %v23446_v57 = vld [vmem:[%s33260_s3 + $0x2b80] ss:$52 sps:$4 sm:$0xff]  }
 0x4d1   :  { %16692 = vmatprep.subr.bf16.mxu1 %v23406_v44  ;;  %v23449_v44 = vld [vmem:[%s33260_s3 + $0x2f20] ss:$52 sps:$4 sm:$0xff]  }
 0x4d2   :  { %16383 = vmatpush1.bf16.msra.mxu0 %v23407_v34  ;;  %v23455_v34 = vld [vmem:[%s33260_s3 + $0x2f88] ss:$52 sps:$4 sm:$0xff]  }
 0x4d3   :  { %16384 = vmatprep.subr.bf16.mxu0 %v23415_v37  ;;  %v23463_v37 = vld [vmem:[%s33260_s3 + $0x2ff4] ss:$52 sps:$4 sm:$0xff]  }
 0x4d4   :  { %16693 = vmatpush1.bf16.msra.mxu1 %v23404_v47  ;;  %v23452_v47 = vld [vmem:[%s33260_s3 + $0x2be8] ss:$52 sps:$4 sm:$0xff]  }
 0x4d5   :  { %16694 = vmatprep.subr.bf16.mxu1 %v23412_v38  ;;  %v23460_v38 = vld [vmem:[%s33260_s3 + $0x2c54] ss:$52 sps:$4 sm:$0xff]  }
 0x4d6   :  { %16385 = vmatpush1.bf16.msra.mxu0 %v23413_v14  ;;  %v23466_v14 = vld [vmem:[%s33260_s3 + $0x2cbc] ss:$52 sps:$4 sm:$0xff]  }
 0x4d7   :  { %16386 = vmatprep.subr.bf16.mxu0 %v23421_v19  ;;  %v23464_v19 = vld [vmem:[%s33260_s3 + $0x2cb8] ss:$52 sps:$4 sm:$0xff]  }
 0x4d8   :  { %16695 = vmatpush1.bf16.msra.mxu1 %v23410_v21  ;;  %v23469_v21 = vld [vmem:[%s33260_s3 + $0x305c] ss:$52 sps:$4 sm:$0xff]  }
 0x4d9   :  { %16696 = vmatprep.subr.bf16.mxu1 %v23418_v63  ;;  %v23467_v63 = vld [vmem:[%s33260_s3 + $0x3058] ss:$52 sps:$4 sm:$0xff]  }
 0x4da   :  { %16387 = vmatpush1.bf16.msra.mxu0 %v23419_v9  ;;  %v23470_v9 = vld [vmem:[%s33260_s3 + $0x2d20] ss:$52 sps:$4 sm:$0xff]  }
 0x4db   :  { %16397 = vmatprep.subr.bf16.mxu0 %v23427_v10  ;;  %v23478_v10 = vld [vmem:[%s33260_s3 + $0x2d8c] ss:$52 sps:$4 sm:$0xff]  }
 0x4dc   :  { %16697 = vmatpush1.bf16.msra.mxu1 %v23416_v0  ;;  %v23473_v0 = vld [vmem:[%s33260_s3 + $0x30c0] ss:$52 sps:$4 sm:$0xff]  }
 0x4dd   :  { %16698 = vmatprep.subr.bf16.mxu1 %v23424_v30  ;;  %16389 = vmatmul.mubr.bf16.vlgmr.msra.gmra.mrb[16].mxu0 %v29249_v36  ;;  %v884_v30 = vrot.slane %v28993_v17, %v28555_v5  ;;  %v23479_v17 = vld [vmem:[%s33260_s3 + $0x3128] ss:$52 sps:$4 sm:$0xff]  }
 0x4de   :  { %16398 = vmatpush1.bf16.msra.mxu0 %v23425_v50  ;;  %22032 = vmatprep.mubr.msk.bf16.mxu0 %vm16066_vm1, %v29257_v18 }
 0x4df   :  { %16399 = vmatprep.subr.bf16.mxu0 %v23433_v45  ;;  %v22497_v50 = vadd.f32 %v28604_v49, %v884_v30  ;;  %v23484_v45 = vld [vmem:[%s33260_s3 + $0x2df4] ss:$52 sps:$4 sm:$0xff]   ;;  %v23482_v49 = vld [vmem:[%s33260_s3 + $0x2df0] ss:$52 sps:$4 sm:$0xff]  }
 0x4e0   :  { %16699 = vmatpush1.bf16.msra.mxu1 %v23422_v35  ;;  %v7905_v35 = vld [vmem:[%s33260_s3 + $0x3190] sm:$0xff]  ;;  %v23528_v30 = vld [vmem:[%s33260_s3 + $0x284] ss:$52 sps:$4 sm:$0xff]  }
 0x4e1   :  { %16700 = vmatprep.subr.bf16.mxu1 %v23430_v39  ;;  %v23476_v39 = vld [vmem:[%s33260_s3 + $0x2d88] ss:$52 sps:$4 sm:$0xff]  }
 0x4e2   :  { %16400 = vmatpush1.bf16.msra.mxu0 %v23431_v58  ;;  %v22018_v58 = vcombine.low %v7905_v35, %v7905_v35 }
 0x4e3   :  { %16401 = vmatprep.subr.bf16.mxu0 %v23439_v22 }
 0x4e4   :  { %16701 = vmatpush1.bf16.msra.mxu1 %v23428_v46  ;;  %v22019_v46 = vcombine.high %v7905_v35, %v7905_v35  ;;  %v16072_v22 = vsel %vm16070_vm2, %v22018_v58, 0  ;;  %v23531_v35 = vld [vmem:[%s33260_s3 + $0x3134] ss:$52 sps:$4 sm:$0xff]  }
 0x4e5   :  { %16702 = vmatprep.subr.bf16.mxu1 %v23436_v48  ;;  %v6179_v48 = vmax.f32 %v22497_v50, 0.0  ;;  %v7906_v50 = vld [vmem:[%s33260_s3 + $0x3198] sm:$0xff]  ;;  %v23539_v58 = vld [vmem:[%s33260_s3 + $0x354] ss:$52 sps:$4 sm:$0xff]  }
 0x4e6   :  { %16402 = vmatpush1.bf16.msra.mxu0 %v23437_v32  ;;  %v23489_v32 = vld [vmem:[%s33260_s3 + $0x2e5c] ss:$52 sps:$4 sm:$0xff]  }
 0x4e7   :  { %16403 = vmatprep.subr.bf16.mxu0 %v23445_v28  ;;  %v29390_v28 = vpack.c.bf16 %v6179_v48, %v6179_v48  ;;  %v23537_v48 = vld [vmem:[%s33260_s3 + $0x350] ss:$52 sps:$4 sm:$0xff]  }
 0x4e8   :  { %16703 = vmatpush1.bf16.msra.mxu1 %v23434_v42  ;;  %v23492_v42 = vld [vmem:[%s33260_s3 + $0x14] ss:$52 sps:$4 sm:$0xff]  }
 0x4e9   :  { %16704 = vmatprep.subr.bf16.mxu1 %v23442_v51  ;;  %v23490_v51 = vld [vmem:[%s33260_s3 + $0x10] ss:$52 sps:$4 sm:$0xff]  }
 0x4ea   :  { %16404 = vmatpush1.bf16.msra.mxu0 %v23443_v53  ;;  %v23487_v53 = vld [vmem:[%s33260_s3 + $0x2e58] ss:$52 sps:$4 sm:$0xff]  }
 0x4eb   :  { %16405 = vmatprep.subr.bf16.mxu0 %v23451_v26  ;;  %v23496_v26 = vld [vmem:[%s33260_s3 + $0x78] ss:$52 sps:$4 sm:$0xff]  }
 0x4ec   :  { %16705 = vmatpush1.bf16.msra.mxu1 %v23440_v55  ;;  %v23495_v55 = vld [vmem:[%s33260_s3 + $0x2ec4] ss:$52 sps:$4 sm:$0xff]  }
 0x4ed   :  { %16706 = vmatprep.subr.bf16.mxu1 %v23448_v59  ;;  %v23498_v59 = vld [vmem:[%s33260_s3 + $0x7c] ss:$52 sps:$4 sm:$0xff]  }
 0x4ee   :  { %16406 = vmatpush1.bf16.msra.mxu0 %v23449_v44  ;;  %v23501_v44 = vld [vmem:[%s33260_s3 + $0x2f2c] ss:$52 sps:$4 sm:$0xff]  }
 0x4ef   :  { %16407 = vmatprep.subr.bf16.mxu0 %v23457_v2  ;;  %v23504_v2 = vld [vmem:[%s33260_s3 + $0xe4] ss:$52 sps:$4 sm:$0xff]  }
 0x4f0   :  { %16707 = vmatpush1.bf16.msra.mxu1 %v23446_v57  ;;  %v23493_v57 = vld [vmem:[%s33260_s3 + $0x2ec0] ss:$52 sps:$4 sm:$0xff]  }
 0x4f1   :  { %16708 = vmatprep.subr.bf16.mxu1 %v23454_v33  ;;  %v23502_v33 = vld [vmem:[%s33260_s3 + $0xe0] ss:$52 sps:$4 sm:$0xff]  }
 0x4f2   :  { %16408 = vmatpush1.bf16.msra.mxu0 %v23455_v34  ;;  %v23499_v34 = vld [vmem:[%s33260_s3 + $0x2f28] ss:$52 sps:$4 sm:$0xff]  }
 0x4f3   :  { %16409 = vmatprep.subr.bf16.mxu0 %v23463_v37  ;;  %v23508_v37 = vld [vmem:[%s33260_s3 + $0x148] ss:$52 sps:$4 sm:$0xff]  }
 0x4f4   :  { %16709 = vmatpush1.bf16.msra.mxu1 %v23452_v47  ;;  %v23507_v47 = vld [vmem:[%s33260_s3 + $0x2f94] ss:$52 sps:$4 sm:$0xff]  }
 0x4f5   :  { %16710 = vmatprep.subr.bf16.mxu1 %v23460_v38  ;;  %v23510_v38 = vld [vmem:[%s33260_s3 + $0x14c] ss:$52 sps:$4 sm:$0xff]  }
 0x4f6   :  { %16410 = vmatpush1.bf16.msra.mxu0 %v23461_v8  ;;  %v23505_v8 = vld [vmem:[%s33260_s3 + $0x2f90] ss:$52 sps:$4 sm:$0xff]  }
 0x4f7   :  { %16411 = vmatprep.subr.bf16.mxu0 %v23469_v21  ;;  %v23514_v21 = vld [vmem:[%s33260_s3 + $0x1b0] ss:$52 sps:$4 sm:$0xff]  }
 0x4f8   :  { %16711 = vmatpush1.bf16.msra.mxu1 %v23458_v11  ;;  %v23513_v11 = vld [vmem:[%s33260_s3 + $0x2ffc] ss:$52 sps:$4 sm:$0xff]  }
 0x4f9   :  { %16712 = vmatprep.subr.bf16.mxu1 %v23466_v14  ;;  %v23516_v14 = vld [vmem:[%s33260_s3 + $0x1b4] ss:$52 sps:$4 sm:$0xff]  }
 0x4fa   :  { %16412 = vmatpush1.bf16.msra.mxu0 %v23467_v63  ;;  %v23511_v63 = vld [vmem:[%s33260_s3 + $0x2ff8] ss:$52 sps:$4 sm:$0xff]  }
 0x4fb   :  { %16413 = vmatprep.subr.bf16.mxu0 %v23475_v61  ;;  %v23520_v61 = vld [vmem:[%s33260_s3 + $0x218] ss:$52 sps:$4 sm:$0xff]  }
 0x4fc   :  { %16713 = vmatpush1.bf16.msra.mxu1 %v23464_v19  ;;  %v23519_v19 = vld [vmem:[%s33260_s3 + $0x3064] ss:$52 sps:$4 sm:$0xff]  }
 0x4fd   :  { %16714 = vmatprep.subr.bf16.mxu1 %v23472_v41  ;;  %v23522_v41 = vld [vmem:[%s33260_s3 + $0x21c] ss:$52 sps:$4 sm:$0xff]  }
 0x4fe   :  { %16414 = vmatpush1.bf16.msra.mxu0 %v23473_v0  ;;  %v23525_v0 = vld [vmem:[%s33260_s3 + $0x30cc] ss:$52 sps:$4 sm:$0xff]  }
 0x4ff   :  { %16415 = vmatprep.subr.bf16.mxu0 %v23481_v15  ;;  %v23526_v15 = vld [vmem:[%s33260_s3 + $0x280] ss:$52 sps:$4 sm:$0xff]  }
 0x500   :  { %16715 = vmatpush1.bf16.msra.mxu1 %v23470_v9  ;;  %v23517_v9 = vld [vmem:[%s33260_s3 + $0x3060] ss:$52 sps:$4 sm:$0xff]  }
 0x501   :  { %16725 = vmatprep.subr.bf16.mxu1 %v23478_v10  ;;  %v23523_v10 = vld [vmem:[%s33260_s3 + $0x30c8] ss:$52 sps:$4 sm:$0xff]  }
 0x502   :  { %16416 = vmatpush1.bf16.msra.mxu0 %v23479_v17  ;;  %v23534_v17 = vld [vmem:[%s33260_s3 + $0x2ec] ss:$52 sps:$4 sm:$0xff]  }
 0x503   :  { %16717 = vmatmul.mubr.bf16.vlgmr.msra.gmra.mrb[24].mxu1 %v29249_v36  ;;  %22031 = vmatprep.subr.msk.bf16.mxu0 %vm16070_vm2, %v22019_v46  ;;  %v22021_v46 = vcombine.high %v7906_v50, %v7906_v50 }
 0x504   :  { %16726 = vmatpush1.bf16.msra.mxu1 %v23476_v39  ;;  %22034 = vmatprep.mubr.msk.bf16.mxu1 %vm16066_vm1, %v29257_v18  ;;  %v23532_v39 = vld [vmem:[%s33260_s3 + $0x2e8] ss:$52 sps:$4 sm:$0xff]  }
 0x505   :  { %16727 = vmatprep.subr.bf16.mxu1 %v23484_v45  ;;  %v23529_v45 = vld [vmem:[%s33260_s3 + $0x3130] ss:$52 sps:$4 sm:$0xff]  }
 0x506   :  { %16418 = vmatpush1.bf16.msra.mxu0 %v16072_v22  ;;  %v23542_v22 = vld [vmem:[%s33260_s3 + $0x1c] ss:$52 sps:$4 sm:$0xff]  }
 0x507   :  { %16766 = vmatprep.subr.bf16.mxu0 %v23492_v42 }
 0x508   :  { %16728 = vmatpush1.bf16.msra.mxu1 %v23482_v49  ;;  %v22020_v49 = vcombine.low %v7906_v50, %v7906_v50  ;;  %v23585_v50 = vld [vmem:[%s33260_s3 + $0x690] ss:$52 sps:$4 sm:$0xff]  }
 0x509   :  { %16729 = vmatprep.subr.bf16.mxu1 %v23489_v32  ;;  %16430 = vmatmul.mubr.bf16.vlgmr.msra.gmra.mrb[16].mxu0 %v29390_v28  ;;  %v23545_v32 = vld [vmem:[%s33260_s3 + $0x3bc] ss:$52 sps:$4 sm:$0xff]  }
 0x50a   :  { %16767 = vmatpush1.bf16.msra.mxu0 %v23490_v51  ;;  %16798 = vmatprep.mubr.bf16.mxu0 %v27785_v6  ;;  %v16078_v42 = vsel %vm16070_vm2, %v22020_v49, 0  ;;  %v23540_v51 = vld [vmem:[%s33260_s3 + $0x18] ss:$52 sps:$4 sm:$0xff]  }
 0x50b   :  { %16768 = vmatprep.subr.bf16.mxu0 %v23498_v59  ;;  %v23551_v59 = vld [vmem:[%s33260_s3 + $0x424] ss:$52 sps:$4 sm:$0xff]  }
 0x50c   :  { %16730 = vmatpush1.bf16.msra.mxu1 %v23487_v53  ;;  %v23543_v53 = vld [vmem:[%s33260_s3 + $0x3b8] ss:$52 sps:$4 sm:$0xff]  }
 0x50d   :  { %16731 = vmatprep.subr.bf16.mxu1 %v23495_v55  ;;  %v23548_v55 = vld [vmem:[%s33260_s3 + $0x84] ss:$52 sps:$4 sm:$0xff]  }
 0x50e   :  { %16769 = vmatpush1.bf16.msra.mxu0 %v23496_v26  ;;  %v23549_v26 = vld [vmem:[%s33260_s3 + $0x420] ss:$52 sps:$4 sm:$0xff]   ;;  %v23588_v49 = vld [vmem:[%s33260_s3 + $0x358] ss:$52 sps:$4 sm:$0xff]  }
 0x50f   :  { %16770 = vmatprep.subr.bf16.mxu0 %v23504_v2  ;;  %v23557_v2 = vld [vmem:[%s33260_s3 + $0x48c] ss:$52 sps:$4 sm:$0xff]  }
 0x510   :  { %16732 = vmatpush1.bf16.msra.mxu1 %v23493_v57  ;;  %v23546_v57 = vld [vmem:[%s33260_s3 + $0x80] ss:$52 sps:$4 sm:$0xff]  }
 0x511   :  { %16733 = vmatprep.subr.bf16.mxu1 %v23501_v44  ;;  %v23554_v44 = vld [vmem:[%s33260_s3 + $0xec] ss:$52 sps:$4 sm:$0xff]  }
 0x512   :  { %16771 = vmatpush1.bf16.msra.mxu0 %v23502_v33  ;;  %v23555_v33 = vld [vmem:[%s33260_s3 + $0x488] ss:$52 sps:$4 sm:$0xff]  }
 0x513   :  { %16772 = vmatprep.subr.bf16.mxu0 %v23510_v38  ;;  %v23563_v38 = vld [vmem:[%s33260_s3 + $0x4f4] ss:$52 sps:$4 sm:$0xff]  }
 0x514   :  { %16734 = vmatpush1.bf16.msra.mxu1 %v23499_v34  ;;  %v23552_v34 = vld [vmem:[%s33260_s3 + $0xe8] ss:$52 sps:$4 sm:$0xff]  }
 0x515   :  { %16735 = vmatprep.subr.bf16.mxu1 %v23507_v47  ;;  %v23560_v47 = vld [vmem:[%s33260_s3 + $0x154] ss:$52 sps:$4 sm:$0xff]  }
 0x516   :  { %16773 = vmatpush1.bf16.msra.mxu0 %v23508_v37  ;;  %v23561_v37 = vld [vmem:[%s33260_s3 + $0x4f0] ss:$52 sps:$4 sm:$0xff]  }
 0x517   :  { %16774 = vmatprep.subr.bf16.mxu0 %v23516_v14  ;;  %v23569_v14 = vld [vmem:[%s33260_s3 + $0x55c] ss:$52 sps:$4 sm:$0xff]  }
 0x518   :  { %16736 = vmatpush1.bf16.msra.mxu1 %v23505_v8  ;;  %v23558_v8 = vld [vmem:[%s33260_s3 + $0x150] ss:$52 sps:$4 sm:$0xff]  }
 0x519   :  { %16737 = vmatprep.subr.bf16.mxu1 %v23513_v11  ;;  %v23566_v11 = vld [vmem:[%s33260_s3 + $0x1bc] ss:$52 sps:$4 sm:$0xff]  }
 0x51a   :  { %16775 = vmatpush1.bf16.msra.mxu0 %v23514_v21  ;;  %v23567_v21 = vld [vmem:[%s33260_s3 + $0x558] ss:$52 sps:$4 sm:$0xff]  }
 0x51b   :  { %16776 = vmatprep.subr.bf16.mxu0 %v23522_v41  ;;  %v23575_v41 = vld [vmem:[%s33260_s3 + $0x5c4] ss:$52 sps:$4 sm:$0xff]  }
 0x51c   :  { %16738 = vmatpush1.bf16.msra.mxu1 %v23511_v63  ;;  %v23564_v63 = vld [vmem:[%s33260_s3 + $0x1b8] ss:$52 sps:$4 sm:$0xff]  }
 0x51d   :  { %16739 = vmatprep.subr.bf16.mxu1 %v23519_v19  ;;  %v23572_v19 = vld [vmem:[%s33260_s3 + $0x224] ss:$52 sps:$4 sm:$0xff]  }
 0x51e   :  { %16777 = vmatpush1.bf16.msra.mxu0 %v23520_v61  ;;  %v23573_v61 = vld [vmem:[%s33260_s3 + $0x5c0] ss:$52 sps:$4 sm:$0xff]  }
 0x51f   :  { %16778 = vmatprep.subr.bf16.mxu0 %v23528_v30  ;;  %v23581_v30 = vld [vmem:[%s33260_s3 + $0x62c] ss:$52 sps:$4 sm:$0xff]  }
 0x520   :  { %16740 = vmatpush1.bf16.msra.mxu1 %v23517_v9  ;;  %v23570_v9 = vld [vmem:[%s33260_s3 + $0x220] ss:$52 sps:$4 sm:$0xff]  }
 0x521   :  { %16741 = vmatprep.subr.bf16.mxu1 %v23525_v0  ;;  %v23578_v0 = vld [vmem:[%s33260_s3 + $0x28c] ss:$52 sps:$4 sm:$0xff]  }
 0x522   :  { %16779 = vmatpush1.bf16.msra.mxu0 %v23526_v15  ;;  %v23576_v15 = vld [vmem:[%s33260_s3 + $0x288] ss:$52 sps:$4 sm:$0xff]  }
 0x523   :  { %16780 = vmatprep.subr.bf16.mxu0 %v23534_v17  ;;  %v23587_v17 = vld [vmem:[%s33260_s3 + $0x694] ss:$52 sps:$4 sm:$0xff]  }
 0x524   :  { %16742 = vmatpush1.bf16.msra.mxu1 %v23523_v10  ;;  %v23579_v10 = vld [vmem:[%s33260_s3 + $0x628] ss:$52 sps:$4 sm:$0xff]  }
 0x525   :  { %16743 = vmatprep.subr.bf16.mxu1 %v23531_v35  ;;  %v23584_v35 = vld [vmem:[%s33260_s3 + $0x2f4] ss:$52 sps:$4 sm:$0xff]  }
 0x526   :  { %16781 = vmatpush1.bf16.msra.mxu0 %v23532_v39  ;;  %v23582_v39 = vld [vmem:[%s33260_s3 + $0x2f0] ss:$52 sps:$4 sm:$0xff]  }
 0x527   :  { %16782 = vmatprep.subr.bf16.mxu0 %v23539_v58  ;;  %v23593_v58 = vld [vmem:[%s33260_s3 + $0x6fc] ss:$52 sps:$4 sm:$0xff]  }
 0x528   :  { %16744 = vmatpush1.bf16.msra.mxu1 %v23529_v45  ;;  %v23590_v45 = vld [vmem:[%s33260_s3 + $0x35c] ss:$52 sps:$4 sm:$0xff]  }
 0x529   :  { %22033 = vmatprep.subr.msk.bf16.mxu1 %vm16070_vm2, %v22021_v46  ;;  %v23591_v46 = vld [vmem:[%s33260_s3 + $0x6f8] ss:$52 sps:$4 sm:$0xff]  }
 0x52a   :  { %16783 = vmatpush1.bf16.msra.mxu0 %v23537_v48  ;;  %v23596_v48 = vld [vmem:[%s33260_s3 + $0x3c4] ss:$52 sps:$4 sm:$0xff]  }
 0x52b   :  { %16784 = vmatprep.subr.bf16.mxu0 %v23545_v32  ;;  %v23597_v32 = vld [vmem:[%s33260_s3 + $0x760] ss:$52 sps:$4 sm:$0xff]  }
 0x52c   :  { %16746 = vmatpush1.bf16.msra.mxu1 %v16078_v42  ;;  %v23594_v42 = vld [vmem:[%s33260_s3 + $0x3c0] ss:$52 sps:$4 sm:$0xff]  }
 0x52d   :  { %17094 = vmatprep.subr.bf16.mxu1 %v23542_v22  ;;  %v23599_v22 = vld [vmem:[%s33260_s3 + $0x764] ss:$52 sps:$4 sm:$0xff]  }
 0x52e   :  { %16785 = vmatpush1.bf16.msra.mxu0 %v23543_v53  ;;  %v23605_v53 = vld [vmem:[%s33260_s3 + $0x7cc] ss:$52 sps:$4 sm:$0xff]  }
 0x52f   :  { %16758 = vmatmul.mubr.bf16.vlgmr.msra.gmra.mrb[24].mxu1 %v29390_v28  ;;  %16786 = vmatprep.subr.bf16.mxu0 %v23551_v59  ;;  %v23600_v59 = vld [vmem:[%s33260_s3 + $0x428] ss:$52 sps:$4 sm:$0xff]  }
 0x530   :  { %17095 = vmatpush1.bf16.msra.mxu1 %v23540_v51  ;;  %17126 = vmatprep.mubr.bf16.mxu1 %v27785_v6  ;;  %v23602_v51 = vld [vmem:[%s33260_s3 + $0x42c] ss:$52 sps:$4 sm:$0xff]  }
 0x531   :  { %17096 = vmatprep.subr.bf16.mxu1 %v23548_v55  ;;  %v23603_v55 = vld [vmem:[%s33260_s3 + $0x7c8] ss:$52 sps:$4 sm:$0xff]  }
 0x532   :  { %16787 = vmatpush1.bf16.msra.mxu0 %v23549_v26  ;;  %v23608_v26 = vld [vmem:[%s33260_s3 + $0x494] ss:$52 sps:$4 sm:$0xff]  }
 0x533   :  { %16788 = vmatprep.subr.bf16.mxu0 %v23557_v2  ;;  %v23606_v2 = vld [vmem:[%s33260_s3 + $0x490] ss:$52 sps:$4 sm:$0xff]  }
 0x534   :  { %17097 = vmatpush1.bf16.msra.mxu1 %v23546_v57  ;;  %v23611_v57 = vld [vmem:[%s33260_s3 + $0x834] ss:$52 sps:$4 sm:$0xff]  }
 0x535   :  { %17098 = vmatprep.subr.bf16.mxu1 %v23554_v44  ;;  %v23609_v44 = vld [vmem:[%s33260_s3 + $0x830] ss:$52 sps:$4 sm:$0xff]  }
 0x536   :  { %16789 = vmatpush1.bf16.msra.mxu0 %v23555_v33  ;;  %v23614_v33 = vld [vmem:[%s33260_s3 + $0x4fc] ss:$52 sps:$4 sm:$0xff]  }
 0x537   :  { %16790 = vmatprep.subr.bf16.mxu0 %v23563_v38  ;;  %v23612_v38 = vld [vmem:[%s33260_s3 + $0x4f8] ss:$52 sps:$4 sm:$0xff]  }
 0x538   :  { %17099 = vmatpush1.bf16.msra.mxu1 %v23552_v34  ;;  %v23617_v34 = vld [vmem:[%s33260_s3 + $0x89c] ss:$52 sps:$4 sm:$0xff]  }
 0x539   :  { %17100 = vmatprep.subr.bf16.mxu1 %v23560_v47  ;;  %v23615_v47 = vld [vmem:[%s33260_s3 + $0x898] ss:$52 sps:$4 sm:$0xff]  }
 0x53a   :  { %16791 = vmatpush1.bf16.msra.mxu0 %v23561_v37  ;;  %v23620_v37 = vld [vmem:[%s33260_s3 + $0x564] ss:$52 sps:$4 sm:$0xff]  }
 0x53b   :  { %16792 = vmatprep.subr.bf16.mxu0 %v23569_v14  ;;  %v23621_v14 = vld [vmem:[%s33260_s3 + $0x900] ss:$52 sps:$4 sm:$0xff]  }
 0x53c   :  { %17101 = vmatpush1.bf16.msra.mxu1 %v23558_v8  ;;  %v23623_v8 = vld [vmem:[%s33260_s3 + $0x904] ss:$52 sps:$4 sm:$0xff]  }
 0x53d   :  { %17102 = vmatprep.subr.bf16.mxu1 %v23566_v11  ;;  %v23618_v11 = vld [vmem:[%s33260_s3 + $0x560] ss:$52 sps:$4 sm:$0xff]  }
 0x53e   :  { %16793 = vmatpush1.bf16.msra.mxu0 %v23567_v21  ;;  %v23629_v21 = vld [vmem:[%s33260_s3 + $0x96c] ss:$52 sps:$4 sm:$0xff]  }
 0x53f   :  { %16794 = vmatprep.subr.bf16.mxu0 %v23575_v41  ;;  %v23624_v41 = vld [vmem:[%s33260_s3 + $0x5c8] ss:$52 sps:$4 sm:$0xff]  }
 0x540   :  { %17103 = vmatpush1.bf16.msra.mxu1 %v23564_v63  ;;  %v23626_v63 = vld [vmem:[%s33260_s3 + $0x5cc] ss:$52 sps:$4 sm:$0xff]  }
 0x541   :  { %17104 = vmatprep.subr.bf16.mxu1 %v23572_v19  ;;  %v23627_v19 = vld [vmem:[%s33260_s3 + $0x968] ss:$52 sps:$4 sm:$0xff]  }
 0x542   :  { %16795 = vmatpush1.bf16.msra.mxu0 %v23573_v61  ;;  %v23632_v61 = vld [vmem:[%s33260_s3 + $0x634] ss:$52 sps:$4 sm:$0xff]  }
 0x543   :  { %16796 = vmatprep.subr.bf16.mxu0 %v23581_v30  ;;  %v23630_v30 = vld [vmem:[%s33260_s3 + $0x630] ss:$52 sps:$4 sm:$0xff]  }
 0x544   :  { %17105 = vmatpush1.bf16.msra.mxu1 %v23570_v9  ;;  %v23635_v9 = vld [vmem:[%s33260_s3 + $0x9d4] ss:$52 sps:$4 sm:$0xff]  }
 0x545   :  { %17106 = vmatprep.subr.bf16.mxu1 %v23578_v0  ;;  %v23633_v0 = vld [vmem:[%s33260_s3 + $0x9d0] ss:$52 sps:$4 sm:$0xff]  }
 0x546   :  { %16797 = vmatpush1.bf16.msra.mxu0 %v23579_v10  ;;  %v23638_v10 = vld [vmem:[%s33260_s3 + $0x69c] ss:$52 sps:$4 sm:$0xff]  }
 0x547   :  { %16807 = vmatprep.subr.bf16.mxu0 %v23587_v17  ;;  %v23639_v17 = vld [vmem:[%s33260_s3 + $0xa38] ss:$52 sps:$4 sm:$0xff]  }
 0x548   :  { %17107 = vmatpush1.bf16.msra.mxu1 %v23576_v15  ;;  %v23641_v15 = vld [vmem:[%s33260_s3 + $0xa3c] ss:$52 sps:$4 sm:$0xff]  }
 0x549   :  { %17108 = vmatprep.subr.bf16.mxu1 %v23584_v35  ;;  %16799 = vmatmul.mubr.bf16.vlgmr.msra.gmra.mrb[20].mxu0 %v27982_v13  ;;  %v23636_v35 = vld [vmem:[%s33260_s3 + $0x698] ss:$52 sps:$4 sm:$0xff]  }
 0x54a   :  { %16808 = vmatpush1.bf16.msra.mxu0 %v23585_v50  ;;  %16839 = vmatprep.mubr.bf16.mxu0 %v27993_v29  ;;  %v23644_v50 = vld [vmem:[%s33260_s3 + $0x704] ss:$52 sps:$4 sm:$0xff]  }
 0x54b   :  { %16809 = vmatprep.subr.bf16.mxu0 %v23593_v58  ;;  %v23642_v58 = vld [vmem:[%s33260_s3 + $0x700] ss:$52 sps:$4 sm:$0xff]  }
 0x54c   :  { %17109 = vmatpush1.bf16.msra.mxu1 %v23582_v39  ;;  %v23647_v39 = vld [vmem:[%s33260_s3 + $0xaa4] ss:$52 sps:$4 sm:$0xff]  }
 0x54d   :  { %17110 = vmatprep.subr.bf16.mxu1 %v23590_v45  ;;  %v23645_v45 = vld [vmem:[%s33260_s3 + $0xaa0] ss:$52 sps:$4 sm:$0xff]  }
 0x54e   :  { %16810 = vmatpush1.bf16.msra.mxu0 %v23591_v46  ;;  %v23650_v46 = vld [vmem:[%s33260_s3 + $0x76c] ss:$52 sps:$4 sm:$0xff]  }
 0x54f   :  { %16811 = vmatprep.subr.bf16.mxu0 %v23599_v22  ;;  %v23648_v22 = vld [vmem:[%s33260_s3 + $0x768] ss:$52 sps:$4 sm:$0xff]  }
 0x550   :  { %17111 = vmatpush1.bf16.msra.mxu1 %v23588_v49  ;;  %v23653_v49 = vld [vmem:[%s33260_s3 + $0xb0c] ss:$52 sps:$4 sm:$0xff]  }
 0x551   :  { %17112 = vmatprep.subr.bf16.mxu1 %v23596_v48  ;;  %v23651_v48 = vld [vmem:[%s33260_s3 + $0xb08] ss:$52 sps:$4 sm:$0xff]  }
 0x552   :  { %16812 = vmatpush1.bf16.msra.mxu0 %v23597_v32  ;;  %v23656_v32 = vld [vmem:[%s33260_s3 + $0x7d4] ss:$52 sps:$4 sm:$0xff]  }
 0x553   :  { %16813 = vmatprep.subr.bf16.mxu0 %v23605_v53  ;;  %v23654_v53 = vld [vmem:[%s33260_s3 + $0x7d0] ss:$52 sps:$4 sm:$0xff]  }
 0x554   :  { %17113 = vmatpush1.bf16.msra.mxu1 %v23594_v42  ;;  %v23659_v42 = vld [vmem:[%s33260_s3 + $0xb74] ss:$52 sps:$4 sm:$0xff]  }
 0x555   :  { %17114 = vmatprep.subr.bf16.mxu1 %v23602_v51  ;;  %v23657_v51 = vld [vmem:[%s33260_s3 + $0xb70] ss:$52 sps:$4 sm:$0xff]  }
 0x556   :  { %16814 = vmatpush1.bf16.msra.mxu0 %v23603_v55  ;;  %v23662_v55 = vld [vmem:[%s33260_s3 + $0x83c] ss:$52 sps:$4 sm:$0xff]  }
 0x557   :  { %16815 = vmatprep.subr.bf16.mxu0 %v23611_v57  ;;  %v23660_v57 = vld [vmem:[%s33260_s3 + $0x838] ss:$52 sps:$4 sm:$0xff]  }
 0x558   :  { %17115 = vmatpush1.bf16.msra.mxu1 %v23600_v59  ;;  %v23665_v59 = vld [vmem:[%s33260_s3 + $0xbdc] ss:$52 sps:$4 sm:$0xff]  }
 0x559   :  { %17116 = vmatprep.subr.bf16.mxu1 %v23608_v26  ;;  %v23663_v26 = vld [vmem:[%s33260_s3 + $0xbd8] ss:$52 sps:$4 sm:$0xff]  }
 0x55a   :  { %16816 = vmatpush1.bf16.msra.mxu0 %v23609_v44  ;;  %v23668_v44 = vld [vmem:[%s33260_s3 + $0x8a4] ss:$52 sps:$4 sm:$0xff]  }
 0x55b   :  { %16817 = vmatprep.subr.bf16.mxu0 %v23617_v34  ;;  %v23669_v34 = vld [vmem:[%s33260_s3 + $0xc40] ss:$52 sps:$4 sm:$0xff]  }
 0x55c   :  { %17117 = vmatpush1.bf16.msra.mxu1 %v23606_v2  ;;  %v23671_v2 = vld [vmem:[%s33260_s3 + $0xc44] ss:$52 sps:$4 sm:$0xff]  }
 0x55d   :  { %17118 = vmatprep.subr.bf16.mxu1 %v23614_v33  ;;  %v23666_v33 = vld [vmem:[%s33260_s3 + $0x8a0] ss:$52 sps:$4 sm:$0xff]  }
 0x55e   :  { %16818 = vmatpush1.bf16.msra.mxu0 %v23615_v47  ;;  %v23677_v47 = vld [vmem:[%s33260_s3 + $0xcac] ss:$52 sps:$4 sm:$0xff]  }
 0x55f   :  { %16819 = vmatprep.subr.bf16.mxu0 %v23623_v8  ;;  %v23675_v8 = vld [vmem:[%s33260_s3 + $0xca8] ss:$52 sps:$4 sm:$0xff]  }
 0x560   :  { %17119 = vmatpush1.bf16.msra.mxu1 %v23612_v38  ;;  %v23674_v38 = vld [vmem:[%s33260_s3 + $0x90c] ss:$52 sps:$4 sm:$0xff]  }
 0x561   :  { %17120 = vmatprep.subr.bf16.mxu1 %v23620_v37  ;;  %v23672_v37 = vld [vmem:[%s33260_s3 + $0x908] ss:$52 sps:$4 sm:$0xff]  }
 0x562   :  { %16820 = vmatpush1.bf16.msra.mxu0 %v23621_v14  ;;  %v23680_v14 = vld [vmem:[%s33260_s3 + $0x974] ss:$52 sps:$4 sm:$0xff]  }
 0x563   :  { %16821 = vmatprep.subr.bf16.mxu0 %v23629_v21  ;;  %v23681_v21 = vld [vmem:[%s33260_s3 + $0xd10] ss:$52 sps:$4 sm:$0xff]  }
 0x564   :  { %17121 = vmatpush1.bf16.msra.mxu1 %v23618_v11  ;;  %v23683_v11 = vld [vmem:[%s33260_s3 + $0xd14] ss:$52 sps:$4 sm:$0xff]  }
 0x565   :  { %17122 = vmatprep.subr.bf16.mxu1 %v23626_v63  ;;  %v23678_v63 = vld [vmem:[%s33260_s3 + $0x970] ss:$52 sps:$4 sm:$0xff]  }
 0x566   :  { %16822 = vmatpush1.bf16.msra.mxu0 %v23627_v19  ;;  %v23686_v19 = vld [vmem:[%s33260_s3 + $0x9dc] ss:$52 sps:$4 sm:$0xff]  }
 0x567   :  { %16823 = vmatprep.subr.bf16.mxu0 %v23635_v9  ;;  %v23684_v9 = vld [vmem:[%s33260_s3 + $0x9d8] ss:$52 sps:$4 sm:$0xff]  }
 0x568   :  { %17123 = vmatpush1.bf16.msra.mxu1 %v23624_v41  ;;  %v23689_v41 = vld [vmem:[%s33260_s3 + $0xd7c] ss:$52 sps:$4 sm:$0xff]  }
 0x569   :  { %17124 = vmatprep.subr.bf16.mxu1 %v23632_v61  ;;  %v23687_v61 = vld [vmem:[%s33260_s3 + $0xd78] ss:$52 sps:$4 sm:$0xff]  }
 0x56a   :  { %16824 = vmatpush1.bf16.msra.mxu0 %v23633_v0  ;;  %v23692_v0 = vld [vmem:[%s33260_s3 + $0xa44] ss:$52 sps:$4 sm:$0xff]  }
 0x56b   :  { %16825 = vmatprep.subr.bf16.mxu0 %v23641_v15  ;;  %v23690_v15 = vld [vmem:[%s33260_s3 + $0xa40] ss:$52 sps:$4 sm:$0xff]  }
 0x56c   :  { %17125 = vmatpush1.bf16.msra.mxu1 %v23630_v30  ;;  %v23695_v30 = vld [vmem:[%s33260_s3 + $0xde4] ss:$52 sps:$4 sm:$0xff]  }
 0x56d   :  { %17135 = vmatprep.subr.bf16.mxu1 %v23638_v10  ;;  %v23693_v10 = vld [vmem:[%s33260_s3 + $0xde0] ss:$52 sps:$4 sm:$0xff]  }
 0x56e   :  { %16826 = vmatpush1.bf16.msra.mxu0 %v23639_v17  ;;  %v23701_v17 = vld [vmem:[%s33260_s3 + $0xe4c] ss:$52 sps:$4 sm:$0xff]  }
 0x56f   :  { %17127 = vmatmul.mubr.bf16.vlgmr.msra.gmra.mrb[28].mxu1 %v27982_v13  ;;  %16827 = vmatprep.subr.bf16.mxu0 %v23647_v39  ;;  %v23696_v39 = vld [vmem:[%s33260_s3 + $0xaa8] ss:$52 sps:$4 sm:$0xff]  }
 0x570   :  { %17136 = vmatpush1.bf16.msra.mxu1 %v23636_v35  ;;  %17167 = vmatprep.mubr.bf16.mxu1 %v27993_v29  ;;  %v23698_v35 = vld [vmem:[%s33260_s3 + $0xaac] ss:$52 sps:$4 sm:$0xff]  }
 0x571   :  { %17137 = vmatprep.subr.bf16.mxu1 %v23644_v50  ;;  %v23699_v50 = vld [vmem:[%s33260_s3 + $0xe48] ss:$52 sps:$4 sm:$0xff]  }
 0x572   :  { %16828 = vmatpush1.bf16.msra.mxu0 %v23645_v45  ;;  %v23704_v45 = vld [vmem:[%s33260_s3 + $0xb14] ss:$52 sps:$4 sm:$0xff]  }
 0x573   :  { %16829 = vmatprep.subr.bf16.mxu0 %v23653_v49  ;;  %v23702_v49 = vld [vmem:[%s33260_s3 + $0xb10] ss:$52 sps:$4 sm:$0xff]  }
 0x574   :  { %17138 = vmatpush1.bf16.msra.mxu1 %v23642_v58  ;;  %v23707_v58 = vld [vmem:[%s33260_s3 + $0xeb4] ss:$52 sps:$4 sm:$0xff]  }
 0x575   :  { %17139 = vmatprep.subr.bf16.mxu1 %v23650_v46  ;;  %v23705_v46 = vld [vmem:[%s33260_s3 + $0xeb0] ss:$52 sps:$4 sm:$0xff]  }
 0x576   :  { %16830 = vmatpush1.bf16.msra.mxu0 %v23651_v48  ;;  %v23710_v48 = vld [vmem:[%s33260_s3 + $0xb7c] ss:$52 sps:$4 sm:$0xff]  }
 0x577   :  { %16831 = vmatprep.subr.bf16.mxu0 %v23659_v42  ;;  %v23708_v42 = vld [vmem:[%s33260_s3 + $0xb78] ss:$52 sps:$4 sm:$0xff]  }
 0x578   :  { %17140 = vmatpush1.bf16.msra.mxu1 %v23648_v22  ;;  %v23713_v22 = vld [vmem:[%s33260_s3 + $0xf1c] ss:$52 sps:$4 sm:$0xff]  }
 0x579   :  { %17141 = vmatprep.subr.bf16.mxu1 %v23656_v32  ;;  %v23711_v32 = vld [vmem:[%s33260_s3 + $0xf18] ss:$52 sps:$4 sm:$0xff]  }
 0x57a   :  { %16832 = vmatpush1.bf16.msra.mxu0 %v23657_v51  ;;  %v23716_v51 = vld [vmem:[%s33260_s3 + $0xbe4] ss:$52 sps:$4 sm:$0xff]  }
 0x57b   :  { %16833 = vmatprep.subr.bf16.mxu0 %v23665_v59  ;;  %v23714_v59 = vld [vmem:[%s33260_s3 + $0xbe0] ss:$52 sps:$4 sm:$0xff]  }
 0x57c   :  { %17142 = vmatpush1.bf16.msra.mxu1 %v23654_v53  ;;  %v23719_v53 = vld [vmem:[%s33260_s3 + $0xf84] ss:$52 sps:$4 sm:$0xff]  }
 0x57d   :  { %17143 = vmatprep.subr.bf16.mxu1 %v23662_v55  ;;  %v23717_v55 = vld [vmem:[%s33260_s3 + $0xf80] ss:$52 sps:$4 sm:$0xff]  }
 0x57e   :  { %16834 = vmatpush1.bf16.msra.mxu0 %v23663_v26  ;;  %v23722_v26 = vld [vmem:[%s33260_s3 + $0xc4c] ss:$52 sps:$4 sm:$0xff]  }
 0x57f   :  { %16835 = vmatprep.subr.bf16.mxu0 %v23671_v2  ;;  %v23720_v2 = vld [vmem:[%s33260_s3 + $0xc48] ss:$52 sps:$4 sm:$0xff]  }
 0x580   :  { %17144 = vmatpush1.bf16.msra.mxu1 %v23660_v57  ;;  %v23725_v57 = vld [vmem:[%s33260_s3 + $0xfec] ss:$52 sps:$4 sm:$0xff]  }
 0x581   :  { %17145 = vmatprep.subr.bf16.mxu1 %v23668_v44  ;;  %v23723_v44 = vld [vmem:[%s33260_s3 + $0xfe8] ss:$52 sps:$4 sm:$0xff]  }
 0x582   :  { %16836 = vmatpush1.bf16.msra.mxu0 %v23669_v34  ;;  %v23731_v34 = vld [vmem:[%s33260_s3 + $0x1054] ss:$52 sps:$4 sm:$0xff]  }
 0x583   :  { %16837 = vmatprep.subr.bf16.mxu0 %v23677_v47  ;;  %v23729_v47 = vld [vmem:[%s33260_s3 + $0x1050] ss:$52 sps:$4 sm:$0xff]  }
 0x584   :  { %17146 = vmatpush1.bf16.msra.mxu1 %v23666_v33  ;;  %v23728_v33 = vld [vmem:[%s33260_s3 + $0xcb4] ss:$52 sps:$4 sm:$0xff]  }
 0x585   :  { %17147 = vmatprep.subr.bf16.mxu1 %v23674_v38  ;;  %v23726_v38 = vld [vmem:[%s33260_s3 + $0xcb0] ss:$52 sps:$4 sm:$0xff]  }
 0x586   :  { %16838 = vmatpush1.bf16.msra.mxu0 %v23675_v8  ;;  %v23737_v8 = vld [vmem:[%s33260_s3 + $0x10bc] ss:$52 sps:$4 sm:$0xff]  }
 0x587   :  { %16848 = vmatprep.subr.bf16.mxu0 %v23683_v11  ;;  %v23732_v11 = vld [vmem:[%s33260_s3 + $0xd18] ss:$52 sps:$4 sm:$0xff]  }
 0x588   :  { %17148 = vmatpush1.bf16.msra.mxu1 %v23672_v37  ;;  %v23734_v37 = vld [vmem:[%s33260_s3 + $0xd1c] ss:$52 sps:$4 sm:$0xff]  }
 0x589   :  { %17149 = vmatprep.subr.bf16.mxu1 %v23680_v14  ;;  %16840 = vmatmul.mubr.bf16.vlgmr.msra.gmra.mrb[20].mxu0 %v28189_v23  ;;  %v23735_v14 = vld [vmem:[%s33260_s3 + $0x10b8] ss:$52 sps:$4 sm:$0xff]  }
 0x58a   :  { %16849 = vmatpush1.bf16.msra.mxu0 %v23681_v21  ;;  %16880 = vmatprep.mubr.bf16.mxu0 %v28200_v31  ;;  %v23740_v21 = vld [vmem:[%s33260_s3 + $0xd84] ss:$52 sps:$4 sm:$0xff]  }
 0x58b   :  { %16850 = vmatprep.subr.bf16.mxu0 %v23689_v41  ;;  %v23738_v41 = vld [vmem:[%s33260_s3 + $0xd80] ss:$52 sps:$4 sm:$0xff]  }
 0x58c   :  { %17150 = vmatpush1.bf16.msra.mxu1 %v23678_v63  ;;  %v23743_v63 = vld [vmem:[%s33260_s3 + $0x1124] ss:$52 sps:$4 sm:$0xff]  }
 0x58d   :  { %17151 = vmatprep.subr.bf16.mxu1 %v23686_v19  ;;  %v23741_v19 = vld [vmem:[%s33260_s3 + $0x1120] ss:$52 sps:$4 sm:$0xff]  }
 0x58e   :  { %16851 = vmatpush1.bf16.msra.mxu0 %v23687_v61  ;;  %v23746_v61 = vld [vmem:[%s33260_s3 + $0xdec] ss:$52 sps:$4 sm:$0xff]  }
 0x58f   :  { %16852 = vmatprep.subr.bf16.mxu0 %v23695_v30  ;;  %v23744_v30 = vld [vmem:[%s33260_s3 + $0xde8] ss:$52 sps:$4 sm:$0xff]  }
 0x590   :  { %17152 = vmatpush1.bf16.msra.mxu1 %v23684_v9  ;;  %v23749_v9 = vld [vmem:[%s33260_s3 + $0x118c] ss:$52 sps:$4 sm:$0xff]  }
 0x591   :  { %17153 = vmatprep.subr.bf16.mxu1 %v23692_v0  ;;  %v23747_v0 = vld [vmem:[%s33260_s3 + $0x1188] ss:$52 sps:$4 sm:$0xff]  }
 0x592   :  { %16853 = vmatpush1.bf16.msra.mxu0 %v23693_v10  ;;  %v23752_v10 = vld [vmem:[%s33260_s3 + $0xe54] ss:$52 sps:$4 sm:$0xff]  }
 0x593   :  { %16854 = vmatprep.subr.bf16.mxu0 %v23701_v17  ;;  %v23750_v17 = vld [vmem:[%s33260_s3 + $0xe50] ss:$52 sps:$4 sm:$0xff]  }
 0x594   :  { %17154 = vmatpush1.bf16.msra.mxu1 %v23690_v15  ;;  %v23755_v15 = vld [vmem:[%s33260_s3 + $0x11f4] ss:$52 sps:$4 sm:$0xff]  }
 0x595   :  { %17155 = vmatprep.subr.bf16.mxu1 %v23698_v35  ;;  %v23753_v35 = vld [vmem:[%s33260_s3 + $0x11f0] ss:$52 sps:$4 sm:$0xff]  }
 0x596   :  { %16855 = vmatpush1.bf16.msra.mxu0 %v23699_v50  ;;  %v23758_v50 = vld [vmem:[%s33260_s3 + $0xebc] ss:$52 sps:$4 sm:$0xff]  }
 0x597   :  { %16856 = vmatprep.subr.bf16.mxu0 %v23707_v58  ;;  %v23756_v58 = vld [vmem:[%s33260_s3 + $0xeb8] ss:$52 sps:$4 sm:$0xff]  }
 0x598   :  { %17156 = vmatpush1.bf16.msra.mxu1 %v23696_v39  ;;  %v23761_v39 = vld [vmem:[%s33260_s3 + $0x125c] ss:$52 sps:$4 sm:$0xff]  }
 0x599   :  { %17157 = vmatprep.subr.bf16.mxu1 %v23704_v45  ;;  %v23759_v45 = vld [vmem:[%s33260_s3 + $0x1258] ss:$52 sps:$4 sm:$0xff]  }
 0x59a   :  { %16857 = vmatpush1.bf16.msra.mxu0 %v23705_v46  ;;  %v23764_v46 = vld [vmem:[%s33260_s3 + $0xf24] ss:$52 sps:$4 sm:$0xff]  }
 0x59b   :  { %16858 = vmatprep.subr.bf16.mxu0 %v23713_v22  ;;  %v23762_v22 = vld [vmem:[%s33260_s3 + $0xf20] ss:$52 sps:$4 sm:$0xff]  }
 0x59c   :  { %17158 = vmatpush1.bf16.msra.mxu1 %v23702_v49  ;;  %v23767_v49 = vld [vmem:[%s33260_s3 + $0x12c4] ss:$52 sps:$4 sm:$0xff]  }
 0x59d   :  { %17159 = vmatprep.subr.bf16.mxu1 %v23710_v48  ;;  %v23765_v48 = vld [vmem:[%s33260_s3 + $0x12c0] ss:$52 sps:$4 sm:$0xff]  }
 0x59e   :  { %16859 = vmatpush1.bf16.msra.mxu0 %v23711_v32  ;;  %v23770_v32 = vld [vmem:[%s33260_s3 + $0xf8c] ss:$52 sps:$4 sm:$0xff]  }
 0x59f   :  { %16860 = vmatprep.subr.bf16.mxu0 %v23719_v53  ;;  %v23768_v53 = vld [vmem:[%s33260_s3 + $0xf88] ss:$52 sps:$4 sm:$0xff]  }
 0x5a0   :  { %17160 = vmatpush1.bf16.msra.mxu1 %v23708_v42  ;;  %v23773_v42 = vld [vmem:[%s33260_s3 + $0x132c] ss:$52 sps:$4 sm:$0xff]  }
 0x5a1   :  { %17161 = vmatprep.subr.bf16.mxu1 %v23716_v51  ;;  %v23771_v51 = vld [vmem:[%s33260_s3 + $0x1328] ss:$52 sps:$4 sm:$0xff]  }
 0x5a2   :  { %16861 = vmatpush1.bf16.msra.mxu0 %v23717_v55  ;;  %v23776_v55 = vld [vmem:[%s33260_s3 + $0xff4] ss:$52 sps:$4 sm:$0xff]  }
 0x5a3   :  { %16862 = vmatprep.subr.bf16.mxu0 %v23725_v57  ;;  %v23774_v57 = vld [vmem:[%s33260_s3 + $0xff0] ss:$52 sps:$4 sm:$0xff]  }
 0x5a4   :  { %17162 = vmatpush1.bf16.msra.mxu1 %v23714_v59  ;;  %v23779_v59 = vld [vmem:[%s33260_s3 + $0x1394] ss:$52 sps:$4 sm:$0xff]  }
 0x5a5   :  { %17163 = vmatprep.subr.bf16.mxu1 %v23722_v26  ;;  %v23777_v26 = vld [vmem:[%s33260_s3 + $0x1390] ss:$52 sps:$4 sm:$0xff]  }
 0x5a6   :  { %16863 = vmatpush1.bf16.msra.mxu0 %v23723_v44  ;;  %v23782_v44 = vld [vmem:[%s33260_s3 + $0x105c] ss:$52 sps:$4 sm:$0xff]  }
 0x5a7   :  { %16864 = vmatprep.subr.bf16.mxu0 %v23731_v34  ;;  %v23780_v34 = vld [vmem:[%s33260_s3 + $0x1058] ss:$52 sps:$4 sm:$0xff]  }
 0x5a8   :  { %17164 = vmatpush1.bf16.msra.mxu1 %v23720_v2  ;;  %v23785_v2 = vld [vmem:[%s33260_s3 + $0x13fc] ss:$52 sps:$4 sm:$0xff]  }
 0x5a9   :  { %17165 = vmatprep.subr.bf16.mxu1 %v23728_v33  ;;  %v23783_v33 = vld [vmem:[%s33260_s3 + $0x13f8] ss:$52 sps:$4 sm:$0xff]  }
 0x5aa   :  { %16865 = vmatpush1.bf16.msra.mxu0 %v23729_v47  ;;  %v23788_v47 = vld [vmem:[%s33260_s3 + $0x10c4] ss:$52 sps:$4 sm:$0xff]  }
 0x5ab   :  { %16866 = vmatprep.subr.bf16.mxu0 %v23737_v8  ;;  %v23786_v8 = vld [vmem:[%s33260_s3 + $0x10c0] ss:$52 sps:$4 sm:$0xff]  }
 0x5ac   :  { %17166 = vmatpush1.bf16.msra.mxu1 %v23726_v38  ;;  %v23791_v38 = vld [vmem:[%s33260_s3 + $0x1464] ss:$52 sps:$4 sm:$0xff]  }
 0x5ad   :  { %17176 = vmatprep.subr.bf16.mxu1 %v23734_v37  ;;  %v23789_v37 = vld [vmem:[%s33260_s3 + $0x1460] ss:$52 sps:$4 sm:$0xff]  }
 0x5ae   :  { %16867 = vmatpush1.bf16.msra.mxu0 %v23735_v14  ;;  %v23797_v14 = vld [vmem:[%s33260_s3 + $0x14cc] ss:$52 sps:$4 sm:$0xff]  }
 0x5af   :  { %17168 = vmatmul.mubr.bf16.vlgmr.msra.gmra.mrb[28].mxu1 %v28189_v23  ;;  %16868 = vmatprep.subr.bf16.mxu0 %v23743_v63  ;;  %v23792_v63 = vld [vmem:[%s33260_s3 + $0x1128] ss:$52 sps:$4 sm:$0xff]  }
 0x5b0   :  { %17177 = vmatpush1.bf16.msra.mxu1 %v23732_v11  ;;  %17208 = vmatprep.mubr.bf16.mxu1 %v28200_v31  ;;  %v23794_v11 = vld [vmem:[%s33260_s3 + $0x112c] ss:$52 sps:$4 sm:$0xff]  }
 0x5b1   :  { %17178 = vmatprep.subr.bf16.mxu1 %v23740_v21  ;;  %v23795_v21 = vld [vmem:[%s33260_s3 + $0x14c8] ss:$52 sps:$4 sm:$0xff]  }
 0x5b2   :  { %16869 = vmatpush1.bf16.msra.mxu0 %v23741_v19  ;;  %v23800_v19 = vld [vmem:[%s33260_s3 + $0x1194] ss:$52 sps:$4 sm:$0xff]  }
 0x5b3   :  { %16870 = vmatprep.subr.bf16.mxu0 %v23749_v9  ;;  %v23798_v9 = vld [vmem:[%s33260_s3 + $0x1190] ss:$52 sps:$4 sm:$0xff]  }
 0x5b4   :  { %17179 = vmatpush1.bf16.msra.mxu1 %v23738_v41  ;;  %v23803_v41 = vld [vmem:[%s33260_s3 + $0x1534] ss:$52 sps:$4 sm:$0xff]  }
 0x5b5   :  { %17180 = vmatprep.subr.bf16.mxu1 %v23746_v61  ;;  %v23801_v61 = vld [vmem:[%s33260_s3 + $0x1530] ss:$52 sps:$4 sm:$0xff]  }
 0x5b6   :  { %16871 = vmatpush1.bf16.msra.mxu0 %v23747_v0  ;;  %v23806_v0 = vld [vmem:[%s33260_s3 + $0x11fc] ss:$52 sps:$4 sm:$0xff]  }
 0x5b7   :  { %16872 = vmatprep.subr.bf16.mxu0 %v23755_v15  ;;  %v23804_v15 = vld [vmem:[%s33260_s3 + $0x11f8] ss:$52 sps:$4 sm:$0xff]  }
 0x5b8   :  { %17181 = vmatpush1.bf16.msra.mxu1 %v23744_v30  ;;  %v23809_v30 = vld [vmem:[%s33260_s3 + $0x159c] ss:$52 sps:$4 sm:$0xff]  }
 0x5b9   :  { %17182 = vmatprep.subr.bf16.mxu1 %v23752_v10  ;;  %v23807_v10 = vld [vmem:[%s33260_s3 + $0x1598] ss:$52 sps:$4 sm:$0xff]  }
 0x5ba   :  { %16873 = vmatpush1.bf16.msra.mxu0 %v23753_v35  ;;  %v23812_v35 = vld [vmem:[%s33260_s3 + $0x1264] ss:$52 sps:$4 sm:$0xff]  }
 0x5bb   :  { %16874 = vmatprep.subr.bf16.mxu0 %v23761_v39 }
 0x5bc   :  { %17183 = vmatpush1.bf16.msra.mxu1 %v23750_v17  ;;  %v23815_v17 = vld [vmem:[%s33260_s3 + $0x1604] ss:$52 sps:$4 sm:$0xff]  }
 0x5bd   :  { %17184 = vmatprep.subr.bf16.mxu1 %v23758_v50 }
 0x5be   :  { %16875 = vmatpush1.bf16.msra.mxu0 %v23759_v45 }
 0x5bf   :  { %16876 = vmatprep.subr.bf16.mxu0 %v23767_v49  ;;  %v23810_v49 = vld [vmem:[%s33260_s3 + $0x1260] ss:$52 sps:$4 sm:$0xff]  }
 0x5c0   :  { %17185 = vmatpush1.bf16.msra.mxu1 %v23756_v58  ;;  %v23813_v58 = vld [vmem:[%s33260_s3 + $0x1600] ss:$52 sps:$4 sm:$0xff]  }
 0x5c1   :  { %17186 = vmatprep.subr.bf16.mxu1 %v23764_v46 }
 0x5c2   :  { %16877 = vmatpush1.bf16.msra.mxu0 %v23765_v48  ;;  %v23821_v48 = vld [vmem:[%s33260_s3 + $0x166c] ss:$52 sps:$4 sm:$0xff]  }
 0x5c3   :  { %16878 = vmatprep.subr.bf16.mxu0 %v23773_v42  ;;  %v23816_v42 = vld [vmem:[%s33260_s3 + $0x12c8] ss:$52 sps:$4 sm:$0xff]  }
 0x5c4   :  { %17187 = vmatpush1.bf16.msra.mxu1 %v23762_v22  ;;  %v23818_v22 = vld [vmem:[%s33260_s3 + $0x12cc] ss:$52 sps:$4 sm:$0xff]  }
 0x5c5   :  { %17188 = vmatprep.subr.bf16.mxu1 %v23770_v32  ;;  %v23819_v32 = vld [vmem:[%s33260_s3 + $0x1668] ss:$52 sps:$4 sm:$0xff]  }
 0x5c6   :  { %16879 = vmatpush1.bf16.msra.mxu0 %v23771_v51  ;;  %v23824_v51 = vld [vmem:[%s33260_s3 + $0x1334] ss:$52 sps:$4 sm:$0xff]  }
 0x5c7   :  { %16889 = vmatprep.subr.bf16.mxu0 %v23779_v59  ;;  %v23822_v59 = vld [vmem:[%s33260_s3 + $0x1330] ss:$52 sps:$4 sm:$0xff]  }
 0x5c8   :  { %17189 = vmatpush1.bf16.msra.mxu1 %v23768_v53  ;;  %v23827_v53 = vld [vmem:[%s33260_s3 + $0x16d4] ss:$52 sps:$4 sm:$0xff]  }
 0x5c9   :  { %17190 = vmatprep.subr.bf16.mxu1 %v23776_v55  ;;  %16881 = vmatmul.mubr.bf16.vlgmr.msra.gmra.mrb[20].mxu0 %v28401_v62  ;;  %v23825_v55 = vld [vmem:[%s33260_s3 + $0x16d0] ss:$52 sps:$4 sm:$0xff]  }
 0x5ca   :  { %16890 = vmatpush1.bf16.msra.mxu0 %v23777_v26  ;;  %16921 = vmatprep.mubr.bf16.mxu0 %v28412_v4  ;;  %v23830_v26 = vld [vmem:[%s33260_s3 + $0x139c] ss:$52 sps:$4 sm:$0xff]  }
 0x5cb   :  { %16891 = vmatprep.subr.bf16.mxu0 %v23785_v2  ;;  %v23831_v2 = vld [vmem:[%s33260_s3 + $0x1738] ss:$52 sps:$4 sm:$0xff]  }
 0x5cc   :  { %17191 = vmatpush1.bf16.msra.mxu1 %v23774_v57  ;;  %v23833_v57 = vld [vmem:[%s33260_s3 + $0x173c] ss:$52 sps:$4 sm:$0xff]  }
 0x5cd   :  { %17192 = vmatprep.subr.bf16.mxu1 %v23782_v44  ;;  %v23828_v44 = vld [vmem:[%s33260_s3 + $0x1398] ss:$52 sps:$4 sm:$0xff]  }
 0x5ce   :  { %16892 = vmatpush1.bf16.msra.mxu0 %v23783_v33  ;;  %v23836_v33 = vld [vmem:[%s33260_s3 + $0x1404] ss:$52 sps:$4 sm:$0xff]  }
 0x5cf   :  { %16893 = vmatprep.subr.bf16.mxu0 %v23791_v38  ;;  %v23834_v38 = vld [vmem:[%s33260_s3 + $0x1400] ss:$52 sps:$4 sm:$0xff]  }
 0x5d0   :  { %17193 = vmatpush1.bf16.msra.mxu1 %v23780_v34  ;;  %v23839_v34 = vld [vmem:[%s33260_s3 + $0x17a4] ss:$52 sps:$4 sm:$0xff]  }
 0x5d1   :  { %17194 = vmatprep.subr.bf16.mxu1 %v23788_v47  ;;  %v23837_v47 = vld [vmem:[%s33260_s3 + $0x17a0] ss:$52 sps:$4 sm:$0xff]  }
 0x5d2   :  { %16894 = vmatpush1.bf16.msra.mxu0 %v23789_v37  ;;  %v23842_v37 = vld [vmem:[%s33260_s3 + $0x146c] ss:$52 sps:$4 sm:$0xff]  }
 0x5d3   :  { %16895 = vmatprep.subr.bf16.mxu0 %v23797_v14  ;;  %v23840_v14 = vld [vmem:[%s33260_s3 + $0x1468] ss:$52 sps:$4 sm:$0xff]  }
 0x5d4   :  { %17195 = vmatpush1.bf16.msra.mxu1 %v23786_v8  ;;  %v23845_v8 = vld [vmem:[%s33260_s3 + $0x180c] ss:$52 sps:$4 sm:$0xff]  }
 0x5d5   :  { %17196 = vmatprep.subr.bf16.mxu1 %v23794_v11  ;;  %v23843_v11 = vld [vmem:[%s33260_s3 + $0x1808] ss:$52 sps:$4 sm:$0xff]  }
 0x5d6   :  { %16896 = vmatpush1.bf16.msra.mxu0 %v23795_v21  ;;  %v23848_v21 = vld [vmem:[%s33260_s3 + $0x14d4] ss:$52 sps:$4 sm:$0xff]  }
 0x5d7   :  { %16897 = vmatprep.subr.bf16.mxu0 %v23803_v41  ;;  %v23846_v41 = vld [vmem:[%s33260_s3 + $0x14d0] ss:$52 sps:$4 sm:$0xff]  }
 0x5d8   :  { %17197 = vmatpush1.bf16.msra.mxu1 %v23792_v63  ;;  %v23851_v63 = vld [vmem:[%s33260_s3 + $0x1874] ss:$52 sps:$4 sm:$0xff]  }
 0x5d9   :  { %17198 = vmatprep.subr.bf16.mxu1 %v23800_v19  ;;  %v23849_v19 = vld [vmem:[%s33260_s3 + $0x1870] ss:$52 sps:$4 sm:$0xff]  }
 0x5da   :  { %16898 = vmatpush1.bf16.msra.mxu0 %v23801_v61  ;;  %v23857_v61 = vld [vmem:[%s33260_s3 + $0x18dc] ss:$52 sps:$4 sm:$0xff]  }
 0x5db   :  { %16899 = vmatprep.subr.bf16.mxu0 %v23809_v30  ;;  %v23852_v30 = vld [vmem:[%s33260_s3 + $0x1538] ss:$52 sps:$4 sm:$0xff]  }
 0x5dc   :  { %17199 = vmatpush1.bf16.msra.mxu1 %v23798_v9  ;;  %v30050_v50 = vpop.f32.mrb[16].mxu0  ;;  %v23854_v9 = vld [vmem:[%s33260_s3 + $0x153c] ss:$52 sps:$4 sm:$0xff]  }
 0x5dd   :  { %17200 = vmatprep.subr.bf16.mxu1 %v23806_v0  ;;  %v30052_v39 = vpop.f32.mrb[17].mxu0  ;;  %v23855_v0 = vld [vmem:[%s33260_s3 + $0x18d8] ss:$52 sps:$4 sm:$0xff]  }
 0x5de   :  { %v16435_v45 = vpop.f32.mrb[18].mxu0  ;;  %16900 = vmatpush1.bf16.msra.mxu0 %v23807_v10  ;;  %v23863_v10 = vld [vmem:[%s33260_s3 + $0x1944] ss:$52 sps:$4 sm:$0xff]  }
 0x5df   :  { %v16436_v46 = vpop.f32.mrb[19].mxu0  ;;  %16901 = vmatprep.subr.bf16.mxu0 %v23815_v17  ;;  %v23858_v17 = vld [vmem:[%s33260_s3 + $0x15a0] ss:$52 sps:$4 sm:$0xff]  }
 0x5e0   :  { %17201 = vmatpush1.bf16.msra.mxu1 %v23804_v15  ;;  %v23860_v15 = vld [vmem:[%s33260_s3 + $0x15a4] ss:$52 sps:$4 sm:$0xff]   ;;  %v23869_v45 = vld [vmem:[%s33260_s3 + $0x19ac] ss:$52 sps:$4 sm:$0xff]  }
 0x5e1   :  { %17202 = vmatprep.subr.bf16.mxu1 %v23812_v35  ;;  %v23861_v35 = vld [vmem:[%s33260_s3 + $0x1940] ss:$52 sps:$4 sm:$0xff]  }
 0x5e2   :  { %16902 = vmatpush1.bf16.msra.mxu0 %v23813_v58  ;;  %v23866_v58 = vld [vmem:[%s33260_s3 + $0x160c] ss:$52 sps:$4 sm:$0xff]  }
 0x5e3   :  { %16903 = vmatprep.subr.bf16.mxu0 %v23821_v48  ;;  %v23867_v48 = vld [vmem:[%s33260_s3 + $0x19a8] ss:$52 sps:$4 sm:$0xff]  }
 0x5e4   :  { %17203 = vmatpush1.bf16.msra.mxu1 %v23810_v49 }
 0x5e5   :  { %17204 = vmatprep.subr.bf16.mxu1 %v23818_v22 }
 0x5e6   :  { %16904 = vmatpush1.bf16.msra.mxu0 %v23819_v32  ;;  %v23864_v32 = vld [vmem:[%s33260_s3 + $0x1608] ss:$52 sps:$4 sm:$0xff]  }
 0x5e7   :  { %16905 = vmatprep.subr.bf16.mxu0 %v23827_v53  ;;  %v23872_v53 = vld [vmem:[%s33260_s3 + $0x1674] ss:$52 sps:$4 sm:$0xff]  }
 0x5e8   :  { %17205 = vmatpush1.bf16.msra.mxu1 %v23816_v42  ;;  %v23875_v42 = vld [vmem:[%s33260_s3 + $0x1a14] ss:$52 sps:$4 sm:$0xff]  }
 0x5e9   :  { %17206 = vmatprep.subr.bf16.mxu1 %v23824_v51 }
 0x5ea   :  { %16906 = vmatpush1.bf16.msra.mxu0 %v23825_v55  ;;  %v23873_v55 = vld [vmem:[%s33260_s3 + $0x1a10] ss:$52 sps:$4 sm:$0xff]  }
 0x5eb   :  { %16907 = vmatprep.subr.bf16.mxu0 %v23833_v57  ;;  %v23878_v57 = vld [vmem:[%s33260_s3 + $0x16dc] ss:$52 sps:$4 sm:$0xff]  }
 0x5ec   :  { %17207 = vmatpush1.bf16.msra.mxu1 %v23822_v59  ;;  %v23870_v59 = vld [vmem:[%s33260_s3 + $0x1670] ss:$52 sps:$4 sm:$0xff]  }
 0x5ed   :  { %17217 = vmatprep.subr.bf16.mxu1 %v23830_v26  ;;  %v23881_v26 = vld [vmem:[%s33260_s3 + $0x1a7c] ss:$52 sps:$4 sm:$0xff]  }
 0x5ee   :  { %16908 = vmatpush1.bf16.msra.mxu0 %v23831_v2  ;;  %v23876_v2 = vld [vmem:[%s33260_s3 + $0x16d8] ss:$52 sps:$4 sm:$0xff]  }
 0x5ef   :  { %17209 = vmatmul.mubr.bf16.vlgmr.msra.gmra.mrb[28].mxu1 %v28401_v62  ;;  %16909 = vmatprep.subr.bf16.mxu0 %v23839_v34  ;;  %v23884_v34 = vld [vmem:[%s33260_s3 + $0x1744] ss:$52 sps:$4 sm:$0xff]  }
 0x5f0   :  { %17218 = vmatpush1.bf16.msra.mxu1 %v23828_v44  ;;  %17249 = vmatprep.mubr.bf16.mxu1 %v28412_v4  ;;  %v23879_v44 = vld [vmem:[%s33260_s3 + $0x1a78] ss:$52 sps:$4 sm:$0xff]  }
 0x5f1   :  { %17219 = vmatprep.subr.bf16.mxu1 %v23836_v33  ;;  %v23887_v33 = vld [vmem:[%s33260_s3 + $0x1ae4] ss:$52 sps:$4 sm:$0xff]  }
 0x5f2   :  { %16910 = vmatpush1.bf16.msra.mxu0 %v23837_v47  ;;  %v23885_v47 = vld [vmem:[%s33260_s3 + $0x1ae0] ss:$52 sps:$4 sm:$0xff]  }
 0x5f3   :  { %16911 = vmatprep.subr.bf16.mxu0 %v23845_v8  ;;  %v23890_v8 = vld [vmem:[%s33260_s3 + $0x17ac] ss:$52 sps:$4 sm:$0xff]  }
 0x5f4   :  { %17220 = vmatpush1.bf16.msra.mxu1 %v23834_v38  ;;  %v23882_v38 = vld [vmem:[%s33260_s3 + $0x1740] ss:$52 sps:$4 sm:$0xff]  }
 0x5f5   :  { %17221 = vmatprep.subr.bf16.mxu1 %v23842_v37  ;;  %v23893_v37 = vld [vmem:[%s33260_s3 + $0x1b4c] ss:$52 sps:$4 sm:$0xff]  }
 0x5f6   :  { %16912 = vmatpush1.bf16.msra.mxu0 %v23843_v11  ;;  %v23891_v11 = vld [vmem:[%s33260_s3 + $0x1b48] ss:$52 sps:$4 sm:$0xff]  }
 0x5f7   :  { %16913 = vmatprep.subr.bf16.mxu0 %v23851_v63  ;;  %v23896_v63 = vld [vmem:[%s33260_s3 + $0x1814] ss:$52 sps:$4 sm:$0xff]  }
 0x5f8   :  { %17222 = vmatpush1.bf16.msra.mxu1 %v23840_v14  ;;  %v23888_v14 = vld [vmem:[%s33260_s3 + $0x17a8] ss:$52 sps:$4 sm:$0xff]  }
 0x5f9   :  { %17223 = vmatprep.subr.bf16.mxu1 %v23848_v21  ;;  %v23899_v21 = vld [vmem:[%s33260_s3 + $0x1bb4] ss:$52 sps:$4 sm:$0xff]  }
 0x5fa   :  { %16914 = vmatpush1.bf16.msra.mxu0 %v23849_v19  ;;  %v23897_v19 = vld [vmem:[%s33260_s3 + $0x1bb0] ss:$52 sps:$4 sm:$0xff]  }
 0x5fb   :  { %16915 = vmatprep.subr.bf16.mxu0 %v23857_v61  ;;  %v23905_v61 = vld [vmem:[%s33260_s3 + $0x1c1c] ss:$52 sps:$4 sm:$0xff]  }
 0x5fc   :  { %17224 = vmatpush1.bf16.msra.mxu1 %v23846_v41  ;;  %v23894_v41 = vld [vmem:[%s33260_s3 + $0x1810] ss:$52 sps:$4 sm:$0xff]  }
 0x5fd   :  { %17225 = vmatprep.subr.bf16.mxu1 %v23854_v9  ;;  %v23902_v9 = vld [vmem:[%s33260_s3 + $0x187c] ss:$52 sps:$4 sm:$0xff]  }
 0x5fe   :  { %16916 = vmatpush1.bf16.msra.mxu0 %v23855_v0  ;;  %v23903_v0 = vld [vmem:[%s33260_s3 + $0x1c18] ss:$52 sps:$4 sm:$0xff]  }
 0x5ff   :  { %16917 = vmatprep.subr.bf16.mxu0 %v23863_v10  ;;  %v23911_v10 = vld [vmem:[%s33260_s3 + $0x1c84] ss:$52 sps:$4 sm:$0xff]  }
 0x600   :  { %17226 = vmatpush1.bf16.msra.mxu1 %v23852_v30  ;;  %v23900_v30 = vld [vmem:[%s33260_s3 + $0x1878] ss:$52 sps:$4 sm:$0xff]  }
 0x601   :  { %17227 = vmatprep.subr.bf16.mxu1 %v23860_v15  ;;  %v23908_v15 = vld [vmem:[%s33260_s3 + $0x18e4] ss:$52 sps:$4 sm:$0xff]  }
 0x602   :  { %v30164_v46 = vpop.f32.mrb[24].mxu1  ;;  %16918 = vmatpush1.bf16.msra.mxu0 %v23861_v35  ;;  %v23909_v35 = vld [vmem:[%s33260_s3 + $0x1c80] ss:$52 sps:$4 sm:$0xff]  }
 0x603   :  { %v30166_v49 = vpop.f32.mrb[25].mxu1  ;;  %16919 = vmatprep.subr.bf16.mxu0 %v23869_v45  ;;  %v23917_v45 = vld [vmem:[%s33260_s3 + $0x1cec] ss:$52 sps:$4 sm:$0xff]  }
 0x604   :  { %v16763_v22 = vpop.f32.mrb[26].mxu1  ;;  %17228 = vmatpush1.bf16.msra.mxu1 %v23858_v17  ;;  %v23906_v17 = vld [vmem:[%s33260_s3 + $0x18e0] ss:$52 sps:$4 sm:$0xff]  }
 0x605   :  { %v16764_v51 = vpop.f32.mrb[27].mxu1  ;;  %17229 = vmatprep.subr.bf16.mxu1 %v23866_v58  ;;  %v23914_v58 = vld [vmem:[%s33260_s3 + $0x194c] ss:$52 sps:$4 sm:$0xff]   ;;  %v23912_v22 = vld [vmem:[%s33260_s3 + $0x1948] ss:$52 sps:$4 sm:$0xff]  }
 0x606   :  { %16920 = vmatpush1.bf16.msra.mxu0 %v23867_v48  ;;  %v23915_v48 = vld [vmem:[%s33260_s3 + $0x1ce8] ss:$52 sps:$4 sm:$0xff]   ;;  %v23921_v51 = vld [vmem:[%s33260_s3 + $0x1d50] ss:$52 sps:$4 sm:$0xff]  }
 0x607   :  { %16930 = vmatprep.subr.bf16.mxu0 %v23875_v42  ;;  %v23920_v42 = vld [vmem:[%s33260_s3 + $0x19b4] ss:$52 sps:$4 sm:$0xff]  }
 0x608   :  { %17230 = vmatpush1.bf16.msra.mxu1 %v23864_v32  ;;  %v23923_v32 = vld [vmem:[%s33260_s3 + $0x1d54] ss:$52 sps:$4 sm:$0xff]  }
 0x609   :  { %17231 = vmatprep.subr.bf16.mxu1 %v23872_v53  ;;  %16922 = vmatmul.mubr.bf16.vlgmr.msra.gmra.mrb[20].mxu0 %v28623_v60  ;;  %v23918_v53 = vld [vmem:[%s33260_s3 + $0x19b0] ss:$52 sps:$4 sm:$0xff]  }
 0x60a   :  { %16931 = vmatpush1.bf16.msra.mxu0 %v23873_v55  ;;  %16962 = vmatprep.mubr.bf16.mxu0 %v28634_v1  ;;  %v23929_v55 = vld [vmem:[%s33260_s3 + $0x1dbc] ss:$52 sps:$4 sm:$0xff]  }
 0x60b   :  { %16932 = vmatprep.subr.bf16.mxu0 %v23881_v26  ;;  %v23927_v26 = vld [vmem:[%s33260_s3 + $0x1db8] ss:$52 sps:$4 sm:$0xff]  }
 0x60c   :  { %17232 = vmatpush1.bf16.msra.mxu1 %v23870_v59  ;;  %v23926_v59 = vld [vmem:[%s33260_s3 + $0x1a1c] ss:$52 sps:$4 sm:$0xff]  }
 0x60d   :  { %17233 = vmatprep.subr.bf16.mxu1 %v23878_v57  ;;  %v23924_v57 = vld [vmem:[%s33260_s3 + $0x1a18] ss:$52 sps:$4 sm:$0xff]  }
 0x60e   :  { %16933 = vmatpush1.bf16.msra.mxu0 %v23879_v44  ;;  %v23932_v44 = vld [vmem:[%s33260_s3 + $0x1a84] ss:$52 sps:$4 sm:$0xff]  }
 0x60f   :  { %16934 = vmatprep.subr.bf16.mxu0 %v23887_v33  ;;  %v23933_v33 = vld [vmem:[%s33260_s3 + $0x1e20] ss:$52 sps:$4 sm:$0xff]  }
 0x610   :  { %17234 = vmatpush1.bf16.msra.mxu1 %v23876_v2  ;;  %v23935_v2 = vld [vmem:[%s33260_s3 + $0x1e24] ss:$52 sps:$4 sm:$0xff]  }
 0x611   :  { %17235 = vmatprep.subr.bf16.mxu1 %v23884_v34  ;;  %v23930_v34 = vld [vmem:[%s33260_s3 + $0x1a80] ss:$52 sps:$4 sm:$0xff]  }
 0x612   :  { %16935 = vmatpush1.bf16.msra.mxu0 %v23885_v47  ;;  %v23941_v47 = vld [vmem:[%s33260_s3 + $0x1e8c] ss:$52 sps:$4 sm:$0xff]  }
 0x613   :  { %16936 = vmatprep.subr.bf16.mxu0 %v23893_v37  ;;  %v23939_v37 = vld [vmem:[%s33260_s3 + $0x1e88] ss:$52 sps:$4 sm:$0xff]  }
 0x614   :  { %17236 = vmatpush1.bf16.msra.mxu1 %v23882_v38  ;;  %v23938_v38 = vld [vmem:[%s33260_s3 + $0x1aec] ss:$52 sps:$4 sm:$0xff]  }
 0x615   :  { %17237 = vmatprep.subr.bf16.mxu1 %v23890_v8  ;;  %v23936_v8 = vld [vmem:[%s33260_s3 + $0x1ae8] ss:$52 sps:$4 sm:$0xff]  }
 0x616   :  { %16937 = vmatpush1.bf16.msra.mxu0 %v23891_v11  ;;  %v23947_v11 = vld [vmem:[%s33260_s3 + $0x1ef4] ss:$52 sps:$4 sm:$0xff]  }
 0x617   :  { %16938 = vmatprep.subr.bf16.mxu0 %v23899_v21  ;;  %v23945_v21 = vld [vmem:[%s33260_s3 + $0x1ef0] ss:$52 sps:$4 sm:$0xff]  }
 0x618   :  { %17238 = vmatpush1.bf16.msra.mxu1 %v23888_v14  ;;  %v23944_v14 = vld [vmem:[%s33260_s3 + $0x1b54] ss:$52 sps:$4 sm:$0xff]  }
 0x619   :  { %17239 = vmatprep.subr.bf16.mxu1 %v23896_v63  ;;  %v23942_v63 = vld [vmem:[%s33260_s3 + $0x1b50] ss:$52 sps:$4 sm:$0xff]  }
 0x61a   :  { %16939 = vmatpush1.bf16.msra.mxu0 %v23897_v19  ;;  %v23953_v19 = vld [vmem:[%s33260_s3 + $0x1f5c] ss:$52 sps:$4 sm:$0xff]  }
 0x61b   :  { %16940 = vmatprep.subr.bf16.mxu0 %v23905_v61  ;;  %v23951_v61 = vld [vmem:[%s33260_s3 + $0x1f58] ss:$52 sps:$4 sm:$0xff]  }
 0x61c   :  { %17240 = vmatpush1.bf16.msra.mxu1 %v23894_v41  ;;  %v23950_v41 = vld [vmem:[%s33260_s3 + $0x1bbc] ss:$52 sps:$4 sm:$0xff]  }
 0x61d   :  { %17241 = vmatprep.subr.bf16.mxu1 %v23902_v9  ;;  %v23948_v9 = vld [vmem:[%s33260_s3 + $0x1bb8] ss:$52 sps:$4 sm:$0xff]  }
 0x61e   :  { %16941 = vmatpush1.bf16.msra.mxu0 %v23903_v0  ;;  %v23959_v0 = vld [vmem:[%s33260_s3 + $0x1fc4] ss:$52 sps:$4 sm:$0xff]  }
 0x61f   :  { %16942 = vmatprep.subr.bf16.mxu0 %v23911_v10  ;;  %v23957_v10 = vld [vmem:[%s33260_s3 + $0x1fc0] ss:$52 sps:$4 sm:$0xff]  }
 0x620   :  { %17242 = vmatpush1.bf16.msra.mxu1 %v23900_v30  ;;  %v23956_v30 = vld [vmem:[%s33260_s3 + $0x1c24] ss:$52 sps:$4 sm:$0xff]  }
 0x621   :  { %17243 = vmatprep.subr.bf16.mxu1 %v23908_v15  ;;  %v23954_v15 = vld [vmem:[%s33260_s3 + $0x1c20] ss:$52 sps:$4 sm:$0xff]  }
 0x622   :  { %16943 = vmatpush1.bf16.msra.mxu0 %v23909_v35  ;;  %v23965_v35 = vld [vmem:[%s33260_s3 + $0x202c] ss:$52 sps:$4 sm:$0xff]  }
 0x623   :  { %16944 = vmatprep.subr.bf16.mxu0 %v23917_v45  ;;  %v23963_v45 = vld [vmem:[%s33260_s3 + $0x2028] ss:$52 sps:$4 sm:$0xff]  }
 0x624   :  { %17244 = vmatpush1.bf16.msra.mxu1 %v23906_v17  ;;  %v23962_v17 = vld [vmem:[%s33260_s3 + $0x1c8c] ss:$52 sps:$4 sm:$0xff]  }
 0x625   :  { %17245 = vmatprep.subr.bf16.mxu1 %v23914_v58  ;;  %v23960_v58 = vld [vmem:[%s33260_s3 + $0x1c88] ss:$52 sps:$4 sm:$0xff]  }
 0x626   :  { %16945 = vmatpush1.bf16.msra.mxu0 %v23915_v48  ;;  %v23971_v48 = vld [vmem:[%s33260_s3 + $0x2094] ss:$52 sps:$4 sm:$0xff]  }
 0x627   :  { %16946 = vmatprep.subr.bf16.mxu0 %v23923_v32  ;;  %v23969_v32 = vld [vmem:[%s33260_s3 + $0x2090] ss:$52 sps:$4 sm:$0xff]  }
 0x628   :  { %17246 = vmatpush1.bf16.msra.mxu1 %v23912_v22  ;;  %v23968_v22 = vld [vmem:[%s33260_s3 + $0x1cf4] ss:$52 sps:$4 sm:$0xff]  }
 0x629   :  { %17247 = vmatprep.subr.bf16.mxu1 %v23920_v42  ;;  %v23966_v42 = vld [vmem:[%s33260_s3 + $0x1cf0] ss:$52 sps:$4 sm:$0xff]  }
 0x62a   :  { %16947 = vmatpush1.bf16.msra.mxu0 %v23921_v51  ;;  %v23977_v51 = vld [vmem:[%s33260_s3 + $0x20fc] ss:$52 sps:$4 sm:$0xff]  }
 0x62b   :  { %16948 = vmatprep.subr.bf16.mxu0 %v23929_v55  ;;  %v23975_v55 = vld [vmem:[%s33260_s3 + $0x20f8] ss:$52 sps:$4 sm:$0xff]  }
 0x62c   :  { %17248 = vmatpush1.bf16.msra.mxu1 %v23918_v53  ;;  %v23974_v53 = vld [vmem:[%s33260_s3 + $0x1d5c] ss:$52 sps:$4 sm:$0xff]  }
 0x62d   :  { %17258 = vmatprep.subr.bf16.mxu1 %v23926_v59  ;;  %v23972_v59 = vld [vmem:[%s33260_s3 + $0x1d58] ss:$52 sps:$4 sm:$0xff]  }
 0x62e   :  { %16949 = vmatpush1.bf16.msra.mxu0 %v23927_v26  ;;  %v23983_v26 = vld [vmem:[%s33260_s3 + $0x2164] ss:$52 sps:$4 sm:$0xff]  }
 0x62f   :  { %17250 = vmatmul.mubr.bf16.vlgmr.msra.gmra.mrb[28].mxu1 %v28623_v60  ;;  %16950 = vmatprep.subr.bf16.mxu0 %v23935_v2  ;;  %v23978_v2 = vld [vmem:[%s33260_s3 + $0x1dc0] ss:$52 sps:$4 sm:$0xff]  }
 0x630   :  { %17259 = vmatpush1.bf16.msra.mxu1 %v23924_v57  ;;  %17290 = vmatprep.mubr.bf16.mxu1 %v28634_v1  ;;  %v23980_v57 = vld [vmem:[%s33260_s3 + $0x1dc4] ss:$52 sps:$4 sm:$0xff]  }
 0x631   :  { %17260 = vmatprep.subr.bf16.mxu1 %v23932_v44  ;;  %v23981_v44 = vld [vmem:[%s33260_s3 + $0x2160] ss:$52 sps:$4 sm:$0xff]  }
 0x632   :  { %16951 = vmatpush1.bf16.msra.mxu0 %v23933_v33  ;;  %v23989_v33 = vld [vmem:[%s33260_s3 + $0x21cc] ss:$52 sps:$4 sm:$0xff]  }
 0x633   :  { %16952 = vmatprep.subr.bf16.mxu0 %v23941_v47  ;;  %v23987_v47 = vld [vmem:[%s33260_s3 + $0x21c8] ss:$52 sps:$4 sm:$0xff]  }
 0x634   :  { %17261 = vmatpush1.bf16.msra.mxu1 %v23930_v34  ;;  %v23986_v34 = vld [vmem:[%s33260_s3 + $0x1e2c] ss:$52 sps:$4 sm:$0xff]  }
 0x635   :  { %17262 = vmatprep.subr.bf16.mxu1 %v23938_v38  ;;  %v23984_v38 = vld [vmem:[%s33260_s3 + $0x1e28] ss:$52 sps:$4 sm:$0xff]  }
 0x636   :  { %16953 = vmatpush1.bf16.msra.mxu0 %v23939_v37  ;;  %v23995_v37 = vld [vmem:[%s33260_s3 + $0x2234] ss:$52 sps:$4 sm:$0xff]  }
 0x637   :  { %16954 = vmatprep.subr.bf16.mxu0 %v23947_v11  ;;  %v23993_v11 = vld [vmem:[%s33260_s3 + $0x2230] ss:$52 sps:$4 sm:$0xff]  }
 0x638   :  { %17263 = vmatpush1.bf16.msra.mxu1 %v23936_v8  ;;  %v23992_v8 = vld [vmem:[%s33260_s3 + $0x1e94] ss:$52 sps:$4 sm:$0xff]  }
 0x639   :  { %17264 = vmatprep.subr.bf16.mxu1 %v23944_v14  ;;  %v23990_v14 = vld [vmem:[%s33260_s3 + $0x1e90] ss:$52 sps:$4 sm:$0xff]  }
 0x63a   :  { %16955 = vmatpush1.bf16.msra.mxu0 %v23945_v21  ;;  %v24001_v21 = vld [vmem:[%s33260_s3 + $0x229c] ss:$52 sps:$4 sm:$0xff]  }
 0x63b   :  { %16956 = vmatprep.subr.bf16.mxu0 %v23953_v19  ;;  %v23999_v19 = vld [vmem:[%s33260_s3 + $0x2298] ss:$52 sps:$4 sm:$0xff]  }
 0x63c   :  { %17265 = vmatpush1.bf16.msra.mxu1 %v23942_v63  ;;  %v23998_v63 = vld [vmem:[%s33260_s3 + $0x1efc] ss:$52 sps:$4 sm:$0xff]  }
 0x63d   :  { %17266 = vmatprep.subr.bf16.mxu1 %v23950_v41  ;;  %v23996_v41 = vld [vmem:[%s33260_s3 + $0x1ef8] ss:$52 sps:$4 sm:$0xff]  }
 0x63e   :  { %16957 = vmatpush1.bf16.msra.mxu0 %v23951_v61  ;;  %v24007_v61 = vld [vmem:[%s33260_s3 + $0x2304] ss:$52 sps:$4 sm:$0xff]  }
 0x63f   :  { %16958 = vmatprep.subr.bf16.mxu0 %v23959_v0  ;;  %v24005_v0 = vld [vmem:[%s33260_s3 + $0x2300] ss:$52 sps:$4 sm:$0xff]  }
 0x640   :  { %17267 = vmatpush1.bf16.msra.mxu1 %v23948_v9  ;;  %v24004_v9 = vld [vmem:[%s33260_s3 + $0x1f64] ss:$52 sps:$4 sm:$0xff]  }
 0x641   :  { %17268 = vmatprep.subr.bf16.mxu1 %v23956_v30  ;;  %v24002_v30 = vld [vmem:[%s33260_s3 + $0x1f60] ss:$52 sps:$4 sm:$0xff]  }
 0x642   :  { %16959 = vmatpush1.bf16.msra.mxu0 %v23957_v10  ;;  %v24013_v10 = vld [vmem:[%s33260_s3 + $0x236c] ss:$52 sps:$4 sm:$0xff]  }
 0x643   :  { %16960 = vmatprep.subr.bf16.mxu0 %v23965_v35  ;;  %v24011_v35 = vld [vmem:[%s33260_s3 + $0x2368] ss:$52 sps:$4 sm:$0xff]  }
 0x644   :  { %17269 = vmatpush1.bf16.msra.mxu1 %v23954_v15  ;;  %v24010_v15 = vld [vmem:[%s33260_s3 + $0x1fcc] ss:$52 sps:$4 sm:$0xff]  }
 0x645   :  { %17270 = vmatprep.subr.bf16.mxu1 %v23962_v17  ;;  %v24008_v17 = vld [vmem:[%s33260_s3 + $0x1fc8] ss:$52 sps:$4 sm:$0xff]  }
 0x646   :  { %16961 = vmatpush1.bf16.msra.mxu0 %v23963_v45  ;;  %v24019_v45 = vld [vmem:[%s33260_s3 + $0x23d4] ss:$52 sps:$4 sm:$0xff]  }
 0x647   :  { %16971 = vmatprep.subr.bf16.mxu0 %v23971_v48  ;;  %v24017_v48 = vld [vmem:[%s33260_s3 + $0x23d0] ss:$52 sps:$4 sm:$0xff]  }
 0x648   :  { %17271 = vmatpush1.bf16.msra.mxu1 %v23960_v58  ;;  %v24016_v58 = vld [vmem:[%s33260_s3 + $0x2034] ss:$52 sps:$4 sm:$0xff]  }
 0x649   :  { %17272 = vmatprep.subr.bf16.mxu1 %v23968_v22  ;;  %16963 = vmatmul.mubr.bf16.vlgmr.msra.gmra.mrb[20].mxu0 %v28829_v25  ;;  %v24014_v22 = vld [vmem:[%s33260_s3 + $0x2030] ss:$52 sps:$4 sm:$0xff]  }
 0x64a   :  { %16972 = vmatpush1.bf16.msra.mxu0 %v23969_v32  ;;  %17003 = vmatprep.mubr.bf16.mxu0 %v28840_v54  ;;  %v24025_v32 = vld [vmem:[%s33260_s3 + $0x243c] ss:$52 sps:$4 sm:$0xff]  }
 0x64b   :  { %16973 = vmatprep.subr.bf16.mxu0 %v23977_v51  ;;  %v24023_v51 = vld [vmem:[%s33260_s3 + $0x2438] ss:$52 sps:$4 sm:$0xff]  }
 0x64c   :  { %17273 = vmatpush1.bf16.msra.mxu1 %v23966_v42  ;;  %v24022_v42 = vld [vmem:[%s33260_s3 + $0x209c] ss:$52 sps:$4 sm:$0xff]  }
 0x64d   :  { %17274 = vmatprep.subr.bf16.mxu1 %v23974_v53  ;;  %v24020_v53 = vld [vmem:[%s33260_s3 + $0x2098] ss:$52 sps:$4 sm:$0xff]  }
 0x64e   :  { %16974 = vmatpush1.bf16.msra.mxu0 %v23975_v55  ;;  %v24028_v55 = vld [vmem:[%s33260_s3 + $0x2104] ss:$52 sps:$4 sm:$0xff]  }
 0x64f   :  { %16975 = vmatprep.subr.bf16.mxu0 %v23983_v26  ;;  %v24029_v26 = vld [vmem:[%s33260_s3 + $0x24a0] ss:$52 sps:$4 sm:$0xff]  }
 0x650   :  { %17275 = vmatpush1.bf16.msra.mxu1 %v23972_v59  ;;  %v24031_v59 = vld [vmem:[%s33260_s3 + $0x24a4] ss:$52 sps:$4 sm:$0xff]  }
 0x651   :  { %17276 = vmatprep.subr.bf16.mxu1 %v23980_v57  ;;  %v24026_v57 = vld [vmem:[%s33260_s3 + $0x2100] ss:$52 sps:$4 sm:$0xff]  }
 0x652   :  { %16976 = vmatpush1.bf16.msra.mxu0 %v23981_v44  ;;  %v24037_v44 = vld [vmem:[%s33260_s3 + $0x250c] ss:$52 sps:$4 sm:$0xff]  }
 0x653   :  { %16977 = vmatprep.subr.bf16.mxu0 %v23989_v33  ;;  %v24035_v33 = vld [vmem:[%s33260_s3 + $0x2508] ss:$52 sps:$4 sm:$0xff]  }
 0x654   :  { %17277 = vmatpush1.bf16.msra.mxu1 %v23978_v2  ;;  %v24034_v2 = vld [vmem:[%s33260_s3 + $0x216c] ss:$52 sps:$4 sm:$0xff]  }
 0x655   :  { %17278 = vmatprep.subr.bf16.mxu1 %v23986_v34  ;;  %v24032_v34 = vld [vmem:[%s33260_s3 + $0x2168] ss:$52 sps:$4 sm:$0xff]  }
 0x656   :  { %16978 = vmatpush1.bf16.msra.mxu0 %v23987_v47  ;;  %v24043_v47 = vld [vmem:[%s33260_s3 + $0x2574] ss:$52 sps:$4 sm:$0xff]  }
 0x657   :  { %16979 = vmatprep.subr.bf16.mxu0 %v23995_v37  ;;  %v24041_v37 = vld [vmem:[%s33260_s3 + $0x2570] ss:$52 sps:$4 sm:$0xff]  }
 0x658   :  { %17279 = vmatpush1.bf16.msra.mxu1 %v23984_v38  ;;  %v24040_v38 = vld [vmem:[%s33260_s3 + $0x21d4] ss:$52 sps:$4 sm:$0xff]  }
 0x659   :  { %17280 = vmatprep.subr.bf16.mxu1 %v23992_v8  ;;  %v24038_v8 = vld [vmem:[%s33260_s3 + $0x21d0] ss:$52 sps:$4 sm:$0xff]  }
 0x65a   :  { %16980 = vmatpush1.bf16.msra.mxu0 %v23993_v11  ;;  %v24049_v11 = vld [vmem:[%s33260_s3 + $0x25dc] ss:$52 sps:$4 sm:$0xff]  }
 0x65b   :  { %16981 = vmatprep.subr.bf16.mxu0 %v24001_v21  ;;  %v24047_v21 = vld [vmem:[%s33260_s3 + $0x25d8] ss:$52 sps:$4 sm:$0xff]  }
 0x65c   :  { %17281 = vmatpush1.bf16.msra.mxu1 %v23990_v14  ;;  %v24046_v14 = vld [vmem:[%s33260_s3 + $0x223c] ss:$52 sps:$4 sm:$0xff]  }
 0x65d   :  { %17282 = vmatprep.subr.bf16.mxu1 %v23998_v63  ;;  %v24044_v63 = vld [vmem:[%s33260_s3 + $0x2238] ss:$52 sps:$4 sm:$0xff]  }
 0x65e   :  { %16982 = vmatpush1.bf16.msra.mxu0 %v23999_v19  ;;  %v24055_v19 = vld [vmem:[%s33260_s3 + $0x2644] ss:$52 sps:$4 sm:$0xff]  }
 0x65f   :  { %16983 = vmatprep.subr.bf16.mxu0 %v24007_v61  ;;  %v24053_v61 = vld [vmem:[%s33260_s3 + $0x2640] ss:$52 sps:$4 sm:$0xff]  }
 0x660   :  { %17283 = vmatpush1.bf16.msra.mxu1 %v23996_v41  ;;  %v24052_v41 = vld [vmem:[%s33260_s3 + $0x22a4] ss:$52 sps:$4 sm:$0xff]  }
 0x661   :  { %17284 = vmatprep.subr.bf16.mxu1 %v24004_v9  ;;  %v24050_v9 = vld [vmem:[%s33260_s3 + $0x22a0] ss:$52 sps:$4 sm:$0xff]  }
 0x662   :  { %16984 = vmatpush1.bf16.msra.mxu0 %v24005_v0  ;;  %v24061_v0 = vld [vmem:[%s33260_s3 + $0x26ac] ss:$52 sps:$4 sm:$0xff]  }
 0x663   :  { %16985 = vmatprep.subr.bf16.mxu0 %v24013_v10  ;;  %v24059_v10 = vld [vmem:[%s33260_s3 + $0x26a8] ss:$52 sps:$4 sm:$0xff]  }
 0x664   :  { %17285 = vmatpush1.bf16.msra.mxu1 %v24002_v30  ;;  %v24058_v30 = vld [vmem:[%s33260_s3 + $0x230c] ss:$52 sps:$4 sm:$0xff]  }
 0x665   :  { %17286 = vmatprep.subr.bf16.mxu1 %v24010_v15  ;;  %v24056_v15 = vld [vmem:[%s33260_s3 + $0x2308] ss:$52 sps:$4 sm:$0xff]  }
 0x666   :  { %16986 = vmatpush1.bf16.msra.mxu0 %v24011_v35  ;;  %v24067_v35 = vld [vmem:[%s33260_s3 + $0x2714] ss:$52 sps:$4 sm:$0xff]  }
 0x667   :  { %16987 = vmatprep.subr.bf16.mxu0 %v24019_v45  ;;  %v24065_v45 = vld [vmem:[%s33260_s3 + $0x2710] ss:$52 sps:$4 sm:$0xff]  }
 0x668   :  { %17287 = vmatpush1.bf16.msra.mxu1 %v24008_v17  ;;  %v24064_v17 = vld [vmem:[%s33260_s3 + $0x2374] ss:$52 sps:$4 sm:$0xff]  }
 0x669   :  { %17288 = vmatprep.subr.bf16.mxu1 %v24016_v58  ;;  %v24062_v58 = vld [vmem:[%s33260_s3 + $0x2370] ss:$52 sps:$4 sm:$0xff]  }
 0x66a   :  { %16988 = vmatpush1.bf16.msra.mxu0 %v24017_v48  ;;  %v24073_v48 = vld [vmem:[%s33260_s3 + $0x277c] ss:$52 sps:$4 sm:$0xff]  }
 0x66b   :  { %16989 = vmatprep.subr.bf16.mxu0 %v24025_v32  ;;  %v24071_v32 = vld [vmem:[%s33260_s3 + $0x2778] ss:$52 sps:$4 sm:$0xff]  }
 0x66c   :  { %17289 = vmatpush1.bf16.msra.mxu1 %v24014_v22  ;;  %v24070_v22 = vld [vmem:[%s33260_s3 + $0x23dc] ss:$52 sps:$4 sm:$0xff]  }
 0x66d   :  { %17299 = vmatprep.subr.bf16.mxu1 %v24022_v42  ;;  %v24068_v42 = vld [vmem:[%s33260_s3 + $0x23d8] ss:$52 sps:$4 sm:$0xff]  }
 0x66e   :  { %16990 = vmatpush1.bf16.msra.mxu0 %v24023_v51  ;;  %v24079_v51 = vld [vmem:[%s33260_s3 + $0x27e4] ss:$52 sps:$4 sm:$0xff]  }
 0x66f   :  { %17291 = vmatmul.mubr.bf16.vlgmr.msra.gmra.mrb[28].mxu1 %v28829_v25  ;;  %16991 = vmatprep.subr.bf16.mxu0 %v24031_v59  ;;  %v24074_v59 = vld [vmem:[%s33260_s3 + $0x2440] ss:$52 sps:$4 sm:$0xff]  }
 0x670   :  { %17300 = vmatpush1.bf16.msra.mxu1 %v24020_v53  ;;  %17331 = vmatprep.mubr.bf16.mxu1 %v28840_v54  ;;  %v24076_v53 = vld [vmem:[%s33260_s3 + $0x2444] ss:$52 sps:$4 sm:$0xff]  }
 0x671   :  { %17301 = vmatprep.subr.bf16.mxu1 %v24028_v55  ;;  %v24077_v55 = vld [vmem:[%s33260_s3 + $0x27e0] ss:$52 sps:$4 sm:$0xff]  }
 0x672   :  { %16992 = vmatpush1.bf16.msra.mxu0 %v24029_v26  ;;  %v24085_v26 = vld [vmem:[%s33260_s3 + $0x284c] ss:$52 sps:$4 sm:$0xff]  }
 0x673   :  { %16993 = vmatprep.subr.bf16.mxu0 %v24037_v44  ;;  %v24083_v44 = vld [vmem:[%s33260_s3 + $0x2848] ss:$52 sps:$4 sm:$0xff]  }
 0x674   :  { %17302 = vmatpush1.bf16.msra.mxu1 %v24026_v57  ;;  %v24082_v57 = vld [vmem:[%s33260_s3 + $0x24ac] ss:$52 sps:$4 sm:$0xff]  }
 0x675   :  { %17303 = vmatprep.subr.bf16.mxu1 %v24034_v2  ;;  %v24080_v2 = vld [vmem:[%s33260_s3 + $0x24a8] ss:$52 sps:$4 sm:$0xff]  }
 0x676   :  { %16994 = vmatpush1.bf16.msra.mxu0 %v24035_v33  ;;  %v24091_v33 = vld [vmem:[%s33260_s3 + $0x28b4] ss:$52 sps:$4 sm:$0xff]  }
 0x677   :  { %16995 = vmatprep.subr.bf16.mxu0 %v24043_v47  ;;  %v24089_v47 = vld [vmem:[%s33260_s3 + $0x28b0] ss:$52 sps:$4 sm:$0xff]  }
 0x678   :  { %17304 = vmatpush1.bf16.msra.mxu1 %v24032_v34  ;;  %v24088_v34 = vld [vmem:[%s33260_s3 + $0x2514] ss:$52 sps:$4 sm:$0xff]  }
 0x679   :  { %17305 = vmatprep.subr.bf16.mxu1 %v24040_v38  ;;  %v24086_v38 = vld [vmem:[%s33260_s3 + $0x2510] ss:$52 sps:$4 sm:$0xff]  }
 0x67a   :  { %16996 = vmatpush1.bf16.msra.mxu0 %v24041_v37  ;;  %v24097_v37 = vld [vmem:[%s33260_s3 + $0x291c] ss:$52 sps:$4 sm:$0xff]  }
 0x67b   :  { %16997 = vmatprep.subr.bf16.mxu0 %v24049_v11  ;;  %v24095_v11 = vld [vmem:[%s33260_s3 + $0x2918] ss:$52 sps:$4 sm:$0xff]  }
 0x67c   :  { %17306 = vmatpush1.bf16.msra.mxu1 %v24038_v8  ;;  %v24094_v8 = vld [vmem:[%s33260_s3 + $0x257c] ss:$52 sps:$4 sm:$0xff]  }
 0x67d   :  { %17307 = vmatprep.subr.bf16.mxu1 %v24046_v14  ;;  %v24092_v14 = vld [vmem:[%s33260_s3 + $0x2578] ss:$52 sps:$4 sm:$0xff]  }
 0x67e   :  { %16998 = vmatpush1.bf16.msra.mxu0 %v24047_v21  ;;  %v24103_v21 = vld [vmem:[%s33260_s3 + $0x2984] ss:$52 sps:$4 sm:$0xff]  }
 0x67f   :  { %16999 = vmatprep.subr.bf16.mxu0 %v24055_v19  ;;  %v24101_v19 = vld [vmem:[%s33260_s3 + $0x2980] ss:$52 sps:$4 sm:$0xff]  }
 0x680   :  { %17308 = vmatpush1.bf16.msra.mxu1 %v24044_v63  ;;  %v24100_v63 = vld [vmem:[%s33260_s3 + $0x25e4] ss:$52 sps:$4 sm:$0xff]  }
 0x681   :  { %17309 = vmatprep.subr.bf16.mxu1 %v24052_v41  ;;  %v24098_v41 = vld [vmem:[%s33260_s3 + $0x25e0] ss:$52 sps:$4 sm:$0xff]  }
 0x682   :  { %17000 = vmatpush1.bf16.msra.mxu0 %v24053_v61  ;;  %v24109_v61 = vld [vmem:[%s33260_s3 + $0x29ec] ss:$52 sps:$4 sm:$0xff]  }
 0x683   :  { %17001 = vmatprep.subr.bf16.mxu0 %v24061_v0  ;;  %v24107_v0 = vld [vmem:[%s33260_s3 + $0x29e8] ss:$52 sps:$4 sm:$0xff]  }
 0x684   :  { %17310 = vmatpush1.bf16.msra.mxu1 %v24050_v9  ;;  %v24106_v9 = vld [vmem:[%s33260_s3 + $0x264c] ss:$52 sps:$4 sm:$0xff]  }
 0x685   :  { %17311 = vmatprep.subr.bf16.mxu1 %v24058_v30  ;;  %v24104_v30 = vld [vmem:[%s33260_s3 + $0x2648] ss:$52 sps:$4 sm:$0xff]  }
 0x686   :  { %17002 = vmatpush1.bf16.msra.mxu0 %v24059_v10  ;;  %v24115_v10 = vld [vmem:[%s33260_s3 + $0x2a54] ss:$52 sps:$4 sm:$0xff]  }
 0x687   :  { %17012 = vmatprep.subr.bf16.mxu0 %v24067_v35  ;;  %v24113_v35 = vld [vmem:[%s33260_s3 + $0x2a50] ss:$52 sps:$4 sm:$0xff]  }
 0x688   :  { %17312 = vmatpush1.bf16.msra.mxu1 %v24056_v15  ;;  %v24112_v15 = vld [vmem:[%s33260_s3 + $0x26b4] ss:$52 sps:$4 sm:$0xff]  }
 0x689   :  { %17313 = vmatprep.subr.bf16.mxu1 %v24064_v17  ;;  %17004 = vmatmul.mubr.bf16.vlgmr.msra.gmra.mrb[20].mxu0 %v29040_v40  ;;  %v24110_v17 = vld [vmem:[%s33260_s3 + $0x26b0] ss:$52 sps:$4 sm:$0xff]  }
 0x68a   :  { %17013 = vmatpush1.bf16.msra.mxu0 %v24065_v45  ;;  %17044 = vmatprep.mubr.bf16.mxu0 %v29051_v16  ;;  %v24121_v45 = vld [vmem:[%s33260_s3 + $0x2abc] ss:$52 sps:$4 sm:$0xff]  }
 0x68b   :  { %17014 = vmatprep.subr.bf16.mxu0 %v24073_v48  ;;  %v24119_v48 = vld [vmem:[%s33260_s3 + $0x2ab8] ss:$52 sps:$4 sm:$0xff]  }
 0x68c   :  { %17314 = vmatpush1.bf16.msra.mxu1 %v24062_v58  ;;  %v24118_v58 = vld [vmem:[%s33260_s3 + $0x271c] ss:$52 sps:$4 sm:$0xff]  }
 0x68d   :  { %17315 = vmatprep.subr.bf16.mxu1 %v24070_v22  ;;  %v24116_v22 = vld [vmem:[%s33260_s3 + $0x2718] ss:$52 sps:$4 sm:$0xff]  }
 0x68e   :  { %17015 = vmatpush1.bf16.msra.mxu0 %v24071_v32  ;;  %v24124_v32 = vld [vmem:[%s33260_s3 + $0x2784] ss:$52 sps:$4 sm:$0xff]  }
 0x68f   :  { %17016 = vmatprep.subr.bf16.mxu0 %v24079_v51  ;;  %v24125_v51 = vld [vmem:[%s33260_s3 + $0x2b20] ss:$52 sps:$4 sm:$0xff]  }
 0x690   :  { %17316 = vmatpush1.bf16.msra.mxu1 %v24068_v42  ;;  %v24127_v42 = vld [vmem:[%s33260_s3 + $0x2b24] ss:$52 sps:$4 sm:$0xff]  }
 0x691   :  { %17317 = vmatprep.subr.bf16.mxu1 %v24076_v53  ;;  %v24122_v53 = vld [vmem:[%s33260_s3 + $0x2780] ss:$52 sps:$4 sm:$0xff]  }
 0x692   :  { %17017 = vmatpush1.bf16.msra.mxu0 %v24077_v55  ;;  %v24133_v55 = vld [vmem:[%s33260_s3 + $0x2b8c] ss:$52 sps:$4 sm:$0xff]  }
 0x693   :  { %17018 = vmatprep.subr.bf16.mxu0 %v24085_v26  ;;  %v24131_v26 = vld [vmem:[%s33260_s3 + $0x2b88] ss:$52 sps:$4 sm:$0xff]  }
 0x694   :  { %17318 = vmatpush1.bf16.msra.mxu1 %v24074_v59  ;;  %v24130_v59 = vld [vmem:[%s33260_s3 + $0x27ec] ss:$52 sps:$4 sm:$0xff]  }
 0x695   :  { %17319 = vmatprep.subr.bf16.mxu1 %v24082_v57  ;;  %v24128_v57 = vld [vmem:[%s33260_s3 + $0x27e8] ss:$52 sps:$4 sm:$0xff]  }
 0x696   :  { %17019 = vmatpush1.bf16.msra.mxu0 %v24083_v44  ;;  %v24139_v44 = vld [vmem:[%s33260_s3 + $0x2bf4] ss:$52 sps:$4 sm:$0xff]  }
 0x697   :  { %17020 = vmatprep.subr.bf16.mxu0 %v24091_v33  ;;  %v24137_v33 = vld [vmem:[%s33260_s3 + $0x2bf0] ss:$52 sps:$4 sm:$0xff]  }
 0x698   :  { %17320 = vmatpush1.bf16.msra.mxu1 %v24080_v2  ;;  %v24136_v2 = vld [vmem:[%s33260_s3 + $0x2854] ss:$52 sps:$4 sm:$0xff]  }
 0x699   :  { %17321 = vmatprep.subr.bf16.mxu1 %v24088_v34  ;;  %v24134_v34 = vld [vmem:[%s33260_s3 + $0x2850] ss:$52 sps:$4 sm:$0xff]  }
 0x69a   :  { %17021 = vmatpush1.bf16.msra.mxu0 %v24089_v47  ;;  %v24145_v47 = vld [vmem:[%s33260_s3 + $0x2c5c] ss:$52 sps:$4 sm:$0xff]  }
 0x69b   :  { %17022 = vmatprep.subr.bf16.mxu0 %v24097_v37  ;;  %v24143_v37 = vld [vmem:[%s33260_s3 + $0x2c58] ss:$52 sps:$4 sm:$0xff]  }
 0x69c   :  { %17322 = vmatpush1.bf16.msra.mxu1 %v24086_v38  ;;  %v24142_v38 = vld [vmem:[%s33260_s3 + $0x28bc] ss:$52 sps:$4 sm:$0xff]  }
 0x69d   :  { %17323 = vmatprep.subr.bf16.mxu1 %v24094_v8  ;;  %v24140_v8 = vld [vmem:[%s33260_s3 + $0x28b8] ss:$52 sps:$4 sm:$0xff]  }
 0x69e   :  { %17023 = vmatpush1.bf16.msra.mxu0 %v24095_v11  ;;  %v24151_v11 = vld [vmem:[%s33260_s3 + $0x2cc4] ss:$52 sps:$4 sm:$0xff]  }
 0x69f   :  { %17024 = vmatprep.subr.bf16.mxu0 %v24103_v21  ;;  %v24149_v21 = vld [vmem:[%s33260_s3 + $0x2cc0] ss:$52 sps:$4 sm:$0xff]  }
 0x6a0   :  { %17324 = vmatpush1.bf16.msra.mxu1 %v24092_v14  ;;  %v24148_v14 = vld [vmem:[%s33260_s3 + $0x2924] ss:$52 sps:$4 sm:$0xff]  }
 0x6a1   :  { %17325 = vmatprep.subr.bf16.mxu1 %v24100_v63  ;;  %v24146_v63 = vld [vmem:[%s33260_s3 + $0x2920] ss:$52 sps:$4 sm:$0xff]  }
 0x6a2   :  { %17025 = vmatpush1.bf16.msra.mxu0 %v24101_v19  ;;  %v24157_v19 = vld [vmem:[%s33260_s3 + $0x2d2c] ss:$52 sps:$4 sm:$0xff]  }
 0x6a3   :  { %17026 = vmatprep.subr.bf16.mxu0 %v24109_v61  ;;  %v24155_v61 = vld [vmem:[%s33260_s3 + $0x2d28] ss:$52 sps:$4 sm:$0xff]  }
 0x6a4   :  { %17326 = vmatpush1.bf16.msra.mxu1 %v24098_v41  ;;  %v24154_v41 = vld [vmem:[%s33260_s3 + $0x298c] ss:$52 sps:$4 sm:$0xff]  }
 0x6a5   :  { %17327 = vmatprep.subr.bf16.mxu1 %v24106_v9  ;;  %v24152_v9 = vld [vmem:[%s33260_s3 + $0x2988] ss:$52 sps:$4 sm:$0xff]  }
 0x6a6   :  { %17027 = vmatpush1.bf16.msra.mxu0 %v24107_v0  ;;  %v24163_v0 = vld [vmem:[%s33260_s3 + $0x2d94] ss:$52 sps:$4 sm:$0xff]  }
 0x6a7   :  { %17028 = vmatprep.subr.bf16.mxu0 %v24115_v10  ;;  %v24161_v10 = vld [vmem:[%s33260_s3 + $0x2d90] ss:$52 sps:$4 sm:$0xff]  }
 0x6a8   :  { %17328 = vmatpush1.bf16.msra.mxu1 %v24104_v30  ;;  %v24160_v30 = vld [vmem:[%s33260_s3 + $0x29f4] ss:$52 sps:$4 sm:$0xff]  }
 0x6a9   :  { %17329 = vmatprep.subr.bf16.mxu1 %v24112_v15  ;;  %v24158_v15 = vld [vmem:[%s33260_s3 + $0x29f0] ss:$52 sps:$4 sm:$0xff]  }
 0x6aa   :  { %17029 = vmatpush1.bf16.msra.mxu0 %v24113_v35  ;;  %v24169_v35 = vld [vmem:[%s33260_s3 + $0x2dfc] ss:$52 sps:$4 sm:$0xff]  }
 0x6ab   :  { %17030 = vmatprep.subr.bf16.mxu0 %v24121_v45  ;;  %v24167_v45 = vld [vmem:[%s33260_s3 + $0x2df8] ss:$52 sps:$4 sm:$0xff]  }
 0x6ac   :  { %17330 = vmatpush1.bf16.msra.mxu1 %v24110_v17  ;;  %v24166_v17 = vld [vmem:[%s33260_s3 + $0x2a5c] ss:$52 sps:$4 sm:$0xff]  }
 0x6ad   :  { %17340 = vmatprep.subr.bf16.mxu1 %v24118_v58  ;;  %v24164_v58 = vld [vmem:[%s33260_s3 + $0x2a58] ss:$52 sps:$4 sm:$0xff]  }
 0x6ae   :  { %17031 = vmatpush1.bf16.msra.mxu0 %v24119_v48  ;;  %v24175_v48 = vld [vmem:[%s33260_s3 + $0x2e64] ss:$52 sps:$4 sm:$0xff]  }
 0x6af   :  { %17332 = vmatmul.mubr.bf16.vlgmr.msra.gmra.mrb[28].mxu1 %v29040_v40  ;;  %17032 = vmatprep.subr.bf16.mxu0 %v24127_v42  ;;  %v24170_v42 = vld [vmem:[%s33260_s3 + $0x2ac0] ss:$52 sps:$4 sm:$0xff]  }
 0x6b0   :  { %17341 = vmatpush1.bf16.msra.mxu1 %v24116_v22  ;;  %17372 = vmatprep.mubr.bf16.mxu1 %v29051_v16  ;;  %v24172_v22 = vld [vmem:[%s33260_s3 + $0x2ac4] ss:$52 sps:$4 sm:$0xff]  }
 0x6b1   :  { %17342 = vmatprep.subr.bf16.mxu1 %v24124_v32  ;;  %v24173_v32 = vld [vmem:[%s33260_s3 + $0x2e60] ss:$52 sps:$4 sm:$0xff]  }
 0x6b2   :  { %17033 = vmatpush1.bf16.msra.mxu0 %v24125_v51  ;;  %v24181_v51 = vld [vmem:[%s33260_s3 + $0x2ecc] ss:$52 sps:$4 sm:$0xff]  }
 0x6b3   :  { %17034 = vmatprep.subr.bf16.mxu0 %v24133_v55  ;;  %v24179_v55 = vld [vmem:[%s33260_s3 + $0x2ec8] ss:$52 sps:$4 sm:$0xff]  }
 0x6b4   :  { %17343 = vmatpush1.bf16.msra.mxu1 %v24122_v53  ;;  %v24178_v53 = vld [vmem:[%s33260_s3 + $0x2b2c] ss:$52 sps:$4 sm:$0xff]  }
 0x6b5   :  { %17344 = vmatprep.subr.bf16.mxu1 %v24130_v59  ;;  %v24176_v59 = vld [vmem:[%s33260_s3 + $0x2b28] ss:$52 sps:$4 sm:$0xff]  }
 0x6b6   :  { %17035 = vmatpush1.bf16.msra.mxu0 %v24131_v26  ;;  %v24187_v26 = vld [vmem:[%s33260_s3 + $0x2f34] ss:$52 sps:$4 sm:$0xff]  }
 0x6b7   :  { %17036 = vmatprep.subr.bf16.mxu0 %v24139_v44  ;;  %v24185_v44 = vld [vmem:[%s33260_s3 + $0x2f30] ss:$52 sps:$4 sm:$0xff]  }
 0x6b8   :  { %17345 = vmatpush1.bf16.msra.mxu1 %v24128_v57  ;;  %v24184_v57 = vld [vmem:[%s33260_s3 + $0x2b94] ss:$52 sps:$4 sm:$0xff]  }
 0x6b9   :  { %17346 = vmatprep.subr.bf16.mxu1 %v24136_v2  ;;  %v24182_v2 = vld [vmem:[%s33260_s3 + $0x2b90] ss:$52 sps:$4 sm:$0xff]  }
 0x6ba   :  { %17037 = vmatpush1.bf16.msra.mxu0 %v24137_v33  ;;  %v24193_v33 = vld [vmem:[%s33260_s3 + $0x2f9c] ss:$52 sps:$4 sm:$0xff]  }
 0x6bb   :  { %17038 = vmatprep.subr.bf16.mxu0 %v24145_v47  ;;  %v24191_v47 = vld [vmem:[%s33260_s3 + $0x2f98] ss:$52 sps:$4 sm:$0xff]  }
 0x6bc   :  { %17347 = vmatpush1.bf16.msra.mxu1 %v24134_v34  ;;  %v24190_v34 = vld [vmem:[%s33260_s3 + $0x2bfc] ss:$52 sps:$4 sm:$0xff]  }
 0x6bd   :  { %17348 = vmatprep.subr.bf16.mxu1 %v24142_v38  ;;  %v24188_v38 = vld [vmem:[%s33260_s3 + $0x2bf8] ss:$52 sps:$4 sm:$0xff]  }
 0x6be   :  { %17039 = vmatpush1.bf16.msra.mxu0 %v24143_v37  ;;  %v24199_v37 = vld [vmem:[%s33260_s3 + $0x3004] ss:$52 sps:$4 sm:$0xff]  }
 0x6bf   :  { %17040 = vmatprep.subr.bf16.mxu0 %v24151_v11  ;;  %v24197_v11 = vld [vmem:[%s33260_s3 + $0x3000] ss:$52 sps:$4 sm:$0xff]  }
 0x6c0   :  { %17349 = vmatpush1.bf16.msra.mxu1 %v24140_v8  ;;  %v24196_v8 = vld [vmem:[%s33260_s3 + $0x2c64] ss:$52 sps:$4 sm:$0xff]  }
 0x6c1   :  { %17350 = vmatprep.subr.bf16.mxu1 %v24148_v14  ;;  %v24194_v14 = vld [vmem:[%s33260_s3 + $0x2c60] ss:$52 sps:$4 sm:$0xff]  }
 0x6c2   :  { %17041 = vmatpush1.bf16.msra.mxu0 %v24149_v21  ;;  %v24205_v21 = vld [vmem:[%s33260_s3 + $0x306c] ss:$52 sps:$4 sm:$0xff]  }
 0x6c3   :  { %17042 = vmatprep.subr.bf16.mxu0 %v24157_v19  ;;  %v24203_v19 = vld [vmem:[%s33260_s3 + $0x3068] ss:$52 sps:$4 sm:$0xff]  }
 0x6c4   :  { %17351 = vmatpush1.bf16.msra.mxu1 %v24146_v63  ;;  %v24202_v63 = vld [vmem:[%s33260_s3 + $0x2ccc] ss:$52 sps:$4 sm:$0xff]  }
 0x6c5   :  { %17352 = vmatprep.subr.bf16.mxu1 %v24154_v41  ;;  %v24200_v41 = vld [vmem:[%s33260_s3 + $0x2cc8] ss:$52 sps:$4 sm:$0xff]  }
 0x6c6   :  { %17043 = vmatpush1.bf16.msra.mxu0 %v24155_v61  ;;  %v24211_v61 = vld [vmem:[%s33260_s3 + $0x30d4] ss:$52 sps:$4 sm:$0xff]  }
 0x6c7   :  { %17053 = vmatprep.subr.bf16.mxu0 %v24163_v0  ;;  %v24209_v0 = vld [vmem:[%s33260_s3 + $0x30d0] ss:$52 sps:$4 sm:$0xff]  }
 0x6c8   :  { %17353 = vmatpush1.bf16.msra.mxu1 %v24152_v9  ;;  %v24208_v9 = vld [vmem:[%s33260_s3 + $0x2d34] ss:$52 sps:$4 sm:$0xff]  }
 0x6c9   :  { %17354 = vmatprep.subr.bf16.mxu1 %v24160_v30  ;;  %17045 = vmatmul.mubr.bf16.vlgmr.msra.gmra.mrb[20].mxu0 %v29249_v36  ;;  %v24206_v30 = vld [vmem:[%s33260_s3 + $0x2d30] ss:$52 sps:$4 sm:$0xff]  }
 0x6ca   :  { %17054 = vmatpush1.bf16.msra.mxu0 %v24161_v10  ;;  %22036 = vmatprep.mubr.msk.bf16.mxu0 %vm16066_vm1, %v29257_v18  ;;  %v24217_v10 = vld [vmem:[%s33260_s3 + $0x313c] ss:$52 sps:$4 sm:$0xff]  }
 0x6cb   :  { %17055 = vmatprep.subr.bf16.mxu0 %v24169_v35  ;;  %v7907_v35 = vld [vmem:[%s33260_s3 + $0x31a0] sm:$0xff] }
 0x6cc   :  { %17355 = vmatpush1.bf16.msra.mxu1 %v24158_v15  ;;  %v24214_v15 = vld [vmem:[%s33260_s3 + $0x2d9c] ss:$52 sps:$4 sm:$0xff]  }
 0x6cd   :  { %17356 = vmatprep.subr.bf16.mxu1 %v24166_v17  ;;  %v24215_v17 = vld [vmem:[%s33260_s3 + $0x3138] ss:$52 sps:$4 sm:$0xff]  }
 0x6ce   :  { %17056 = vmatpush1.bf16.msra.mxu0 %v24167_v45  ;;  %v24212_v45 = vld [vmem:[%s33260_s3 + $0x2d98] ss:$52 sps:$4 sm:$0xff]  }
 0x6cf   :  { %17057 = vmatprep.subr.bf16.mxu0 %v24175_v48  ;;  %v24220_v48 = vld [vmem:[%s33260_s3 + $0x2e04] ss:$52 sps:$4 sm:$0xff]  }
 0x6d0   :  { %17357 = vmatpush1.bf16.msra.mxu1 %v24164_v58  ;;  %v22022_v58 = vcombine.low %v7907_v35, %v7907_v35 }
 0x6d1   :  { %17358 = vmatprep.subr.bf16.mxu1 %v24172_v22  ;;  %v22023_v22 = vcombine.high %v7907_v35, %v7907_v35  ;;  %v24262_v35 = vld [vmem:[%s33260_s3 + $0x290] ss:$52 sps:$4 sm:$0xff]  }
 0x6d2   :  { %17058 = vmatpush1.bf16.msra.mxu0 %v24173_v32  ;;  %v24218_v32 = vld [vmem:[%s33260_s3 + $0x2e00] ss:$52 sps:$4 sm:$0xff]  }
 0x6d3   :  { %17059 = vmatprep.subr.bf16.mxu0 %v24181_v51  ;;  %v24228_v51 = vld [vmem:[%s33260_s3 + $0x24] ss:$52 sps:$4 sm:$0xff]  }
 0x6d4   :  { %17359 = vmatpush1.bf16.msra.mxu1 %v24170_v42  ;;  %v16084_v42 = vsel %vm16070_vm2, %v22022_v58, 0  ;;  %v24267_v58 = vld [vmem:[%s33260_s3 + $0x3144] ss:$52 sps:$4 sm:$0xff]  }
 0x6d5   :  { %17360 = vmatprep.subr.bf16.mxu1 %v24178_v53  ;;  %v24225_v53 = vld [vmem:[%s33260_s3 + $0x2e6c] ss:$52 sps:$4 sm:$0xff]  }
 0x6d6   :  { %17060 = vmatpush1.bf16.msra.mxu0 %v24179_v55  ;;  %v24226_v55 = vld [vmem:[%s33260_s3 + $0x20] ss:$52 sps:$4 sm:$0xff]  }
 0x6d7   :  { %17061 = vmatprep.subr.bf16.mxu0 %v24187_v26  ;;  %v24234_v26 = vld [vmem:[%s33260_s3 + $0x8c] ss:$52 sps:$4 sm:$0xff]  }
 0x6d8   :  { %17361 = vmatpush1.bf16.msra.mxu1 %v24176_v59  ;;  %v24223_v59 = vld [vmem:[%s33260_s3 + $0x2e68] ss:$52 sps:$4 sm:$0xff]  }
 0x6d9   :  { %17362 = vmatprep.subr.bf16.mxu1 %v24184_v57  ;;  %v24231_v57 = vld [vmem:[%s33260_s3 + $0x2ed4] ss:$52 sps:$4 sm:$0xff]  }
 0x6da   :  { %17062 = vmatpush1.bf16.msra.mxu0 %v24185_v44  ;;  %v24232_v44 = vld [vmem:[%s33260_s3 + $0x88] ss:$52 sps:$4 sm:$0xff]  }
 0x6db   :  { %17063 = vmatprep.subr.bf16.mxu0 %v24193_v33  ;;  %v24240_v33 = vld [vmem:[%s33260_s3 + $0xf4] ss:$52 sps:$4 sm:$0xff]  }
 0x6dc   :  { %17363 = vmatpush1.bf16.msra.mxu1 %v24182_v2  ;;  %v24229_v2 = vld [vmem:[%s33260_s3 + $0x2ed0] ss:$52 sps:$4 sm:$0xff]  }
 0x6dd   :  { %17364 = vmatprep.subr.bf16.mxu1 %v24190_v34  ;;  %v24237_v34 = vld [vmem:[%s33260_s3 + $0x2f3c] ss:$52 sps:$4 sm:$0xff]  }
 0x6de   :  { %17064 = vmatpush1.bf16.msra.mxu0 %v24191_v47  ;;  %v24238_v47 = vld [vmem:[%s33260_s3 + $0xf0] ss:$52 sps:$4 sm:$0xff]  }
 0x6df   :  { %17065 = vmatprep.subr.bf16.mxu0 %v24199_v37  ;;  %v24246_v37 = vld [vmem:[%s33260_s3 + $0x15c] ss:$52 sps:$4 sm:$0xff]  }
 0x6e0   :  { %17365 = vmatpush1.bf16.msra.mxu1 %v24188_v38  ;;  %v24235_v38 = vld [vmem:[%s33260_s3 + $0x2f38] ss:$52 sps:$4 sm:$0xff]  }
 0x6e1   :  { %17366 = vmatprep.subr.bf16.mxu1 %v24196_v8  ;;  %v24243_v8 = vld [vmem:[%s33260_s3 + $0x2fa4] ss:$52 sps:$4 sm:$0xff]  }
 0x6e2   :  { %17066 = vmatpush1.bf16.msra.mxu0 %v24197_v11  ;;  %v24244_v11 = vld [vmem:[%s33260_s3 + $0x158] ss:$52 sps:$4 sm:$0xff]  }
 0x6e3   :  { %17067 = vmatprep.subr.bf16.mxu0 %v24205_v21  ;;  %v24252_v21 = vld [vmem:[%s33260_s3 + $0x1c4] ss:$52 sps:$4 sm:$0xff]  }
 0x6e4   :  { %17367 = vmatpush1.bf16.msra.mxu1 %v24194_v14  ;;  %v24241_v14 = vld [vmem:[%s33260_s3 + $0x2fa0] ss:$52 sps:$4 sm:$0xff]  }
 0x6e5   :  { %17368 = vmatprep.subr.bf16.mxu1 %v24202_v63  ;;  %v24249_v63 = vld [vmem:[%s33260_s3 + $0x300c] ss:$52 sps:$4 sm:$0xff]  }
 0x6e6   :  { %17068 = vmatpush1.bf16.msra.mxu0 %v24203_v19  ;;  %v24250_v19 = vld [vmem:[%s33260_s3 + $0x1c0] ss:$52 sps:$4 sm:$0xff]  }
 0x6e7   :  { %17069 = vmatprep.subr.bf16.mxu0 %v24211_v61  ;;  %v24258_v61 = vld [vmem:[%s33260_s3 + $0x22c] ss:$52 sps:$4 sm:$0xff]  }
 0x6e8   :  { %17369 = vmatpush1.bf16.msra.mxu1 %v24200_v41  ;;  %v24247_v41 = vld [vmem:[%s33260_s3 + $0x3008] ss:$52 sps:$4 sm:$0xff]  }
 0x6e9   :  { %17370 = vmatprep.subr.bf16.mxu1 %v24208_v9  ;;  %v24255_v9 = vld [vmem:[%s33260_s3 + $0x3074] ss:$52 sps:$4 sm:$0xff]  }
 0x6ea   :  { %17070 = vmatpush1.bf16.msra.mxu0 %v24209_v0  ;;  %v24256_v0 = vld [vmem:[%s33260_s3 + $0x228] ss:$52 sps:$4 sm:$0xff]  }
 0x6eb   :  { %17071 = vmatprep.subr.bf16.mxu0 %v24217_v10  ;;  %v24264_v10 = vld [vmem:[%s33260_s3 + $0x294] ss:$52 sps:$4 sm:$0xff]  }
 0x6ec   :  { %17371 = vmatpush1.bf16.msra.mxu1 %v24206_v30  ;;  %v24253_v30 = vld [vmem:[%s33260_s3 + $0x3070] ss:$52 sps:$4 sm:$0xff]  }
 0x6ed   :  { %17381 = vmatprep.subr.bf16.mxu1 %v24214_v15  ;;  %v24261_v15 = vld [vmem:[%s33260_s3 + $0x30dc] ss:$52 sps:$4 sm:$0xff]  }
 0x6ee   :  { %17072 = vmatpush1.bf16.msra.mxu0 %v24215_v17  ;;  %v24259_v17 = vld [vmem:[%s33260_s3 + $0x30d8] ss:$52 sps:$4 sm:$0xff]  }
 0x6ef   :  { %17373 = vmatmul.mubr.bf16.vlgmr.msra.gmra.mrb[28].mxu1 %v29249_v36  ;;  %22035 = vmatprep.subr.msk.bf16.mxu0 %vm16070_vm2, %v22023_v22  ;;  %v24268_v22 = vld [vmem:[%s33260_s3 + $0x2f8] ss:$52 sps:$4 sm:$0xff]  }
 0x6f0   :  { %17382 = vmatpush1.bf16.msra.mxu1 %v24212_v45  ;;  %22038 = vmatprep.mubr.msk.bf16.mxu1 %vm16066_vm1, %v29257_v18  ;;  %v24270_v45 = vld [vmem:[%s33260_s3 + $0x2fc] ss:$52 sps:$4 sm:$0xff]  }
 0x6f1   :  { %17383 = vmatprep.subr.bf16.mxu1 %v24220_v48  ;;  %v7908_v48 = vld [vmem:[%s33260_s3 + $0x31a8] sm:$0xff] }
 0x6f2   :  { %17074 = vmatpush1.bf16.msra.mxu0 %v16084_v42  ;;  %v24275_v42 = vld [vmem:[%s33260_s3 + $0x364] ss:$52 sps:$4 sm:$0xff]  }
 0x6f3   :  { %17422 = vmatprep.subr.bf16.mxu0 %v24228_v51  ;;  %v22025_v51 = vcombine.high %v7908_v48, %v7908_v48 }
 0x6f4   :  { %17384 = vmatpush1.bf16.msra.mxu1 %v24218_v32  ;;  %v24265_v32 = vld [vmem:[%s33260_s3 + $0x3140] ss:$52 sps:$4 sm:$0xff]  }
 0x6f5   :  { %17385 = vmatprep.subr.bf16.mxu1 %v24225_v53  ;;  %17086 = vmatmul.mubr.bf16.vlgmr.msra.gmra.mrb[20].mxu0 %v29390_v28  ;;  %v22024_v53 = vcombine.low %v7908_v48, %v7908_v48  ;;  %v24315_v48 = vld [vmem:[%s33260_s3 + $0x638] ss:$52 sps:$4 sm:$0xff]  }
 0x6f6   :  { %17423 = vmatpush1.bf16.msra.mxu0 %v24226_v55  ;;  %17454 = vmatprep.mubr.bf16.mxu0 %v27785_v6  ;;  %v24273_v55 = vld [vmem:[%s33260_s3 + $0x360] ss:$52 sps:$4 sm:$0xff]  }
 0x6f7   :  { %17424 = vmatprep.subr.bf16.mxu0 %v24234_v26  ;;  %v16090_v26 = vsel %vm16070_vm2, %v22024_v53, 0  ;;  %v24318_v53 = vld [vmem:[%s33260_s3 + $0x300] ss:$52 sps:$4 sm:$0xff]  }
 0x6f8   :  { %17386 = vmatpush1.bf16.msra.mxu1 %v24223_v59  ;;  %v24281_v59 = vld [vmem:[%s33260_s3 + $0x3cc] ss:$52 sps:$4 sm:$0xff]  }
 0x6f9   :  { %17387 = vmatprep.subr.bf16.mxu1 %v24231_v57  ;;  %v24278_v57 = vld [vmem:[%s33260_s3 + $0x2c] ss:$52 sps:$4 sm:$0xff]  }
 0x6fa   :  { %17425 = vmatpush1.bf16.msra.mxu0 %v24232_v44  ;;  %v24279_v44 = vld [vmem:[%s33260_s3 + $0x3c8] ss:$52 sps:$4 sm:$0xff]  }
 0x6fb   :  { %17426 = vmatprep.subr.bf16.mxu0 %v24240_v33  ;;  %v24284_v33 = vld [vmem:[%s33260_s3 + $0x94] ss:$52 sps:$4 sm:$0xff]  }
 0x6fc   :  { %17388 = vmatpush1.bf16.msra.mxu1 %v24229_v2  ;;  %v24276_v2 = vld [vmem:[%s33260_s3 + $0x28] ss:$52 sps:$4 sm:$0xff]  }
 0x6fd   :  { %17389 = vmatprep.subr.bf16.mxu1 %v24237_v34  ;;  %v24287_v34 = vld [vmem:[%s33260_s3 + $0x434] ss:$52 sps:$4 sm:$0xff]  }
 0x6fe   :  { %17427 = vmatpush1.bf16.msra.mxu0 %v24238_v47  ;;  %v24285_v47 = vld [vmem:[%s33260_s3 + $0x430] ss:$52 sps:$4 sm:$0xff]  }
 0x6ff   :  { %17428 = vmatprep.subr.bf16.mxu0 %v24246_v37  ;;  %v24293_v37 = vld [vmem:[%s33260_s3 + $0x49c] ss:$52 sps:$4 sm:$0xff]  }
 0x700   :  { %17390 = vmatpush1.bf16.msra.mxu1 %v24235_v38  ;;  %v24282_v38 = vld [vmem:[%s33260_s3 + $0x90] ss:$52 sps:$4 sm:$0xff]  }
 0x701   :  { %17391 = vmatprep.subr.bf16.mxu1 %v24243_v8  ;;  %v24290_v8 = vld [vmem:[%s33260_s3 + $0xfc] ss:$52 sps:$4 sm:$0xff]  }
 0x702   :  { %17429 = vmatpush1.bf16.msra.mxu0 %v24244_v11  ;;  %v24291_v11 = vld [vmem:[%s33260_s3 + $0x498] ss:$52 sps:$4 sm:$0xff]  }
 0x703   :  { %17430 = vmatprep.subr.bf16.mxu0 %v24252_v21  ;;  %v24299_v21 = vld [vmem:[%s33260_s3 + $0x504] ss:$52 sps:$4 sm:$0xff]  }
 0x704   :  { %17392 = vmatpush1.bf16.msra.mxu1 %v24241_v14  ;;  %v24288_v14 = vld [vmem:[%s33260_s3 + $0xf8] ss:$52 sps:$4 sm:$0xff]  }
 0x705   :  { %17393 = vmatprep.subr.bf16.mxu1 %v24249_v63  ;;  %v24296_v63 = vld [vmem:[%s33260_s3 + $0x164] ss:$52 sps:$4 sm:$0xff]  }
 0x706   :  { %17431 = vmatpush1.bf16.msra.mxu0 %v24250_v19  ;;  %v24297_v19 = vld [vmem:[%s33260_s3 + $0x500] ss:$52 sps:$4 sm:$0xff]  }
 0x707   :  { %17432 = vmatprep.subr.bf16.mxu0 %v24258_v61  ;;  %v24305_v61 = vld [vmem:[%s33260_s3 + $0x56c] ss:$52 sps:$4 sm:$0xff]  }
 0x708   :  { %17394 = vmatpush1.bf16.msra.mxu1 %v24247_v41  ;;  %v24294_v41 = vld [vmem:[%s33260_s3 + $0x160] ss:$52 sps:$4 sm:$0xff]  }
 0x709   :  { %17395 = vmatprep.subr.bf16.mxu1 %v24255_v9  ;;  %v24302_v9 = vld [vmem:[%s33260_s3 + $0x1cc] ss:$52 sps:$4 sm:$0xff]  }
 0x70a   :  { %17433 = vmatpush1.bf16.msra.mxu0 %v24256_v0  ;;  %v24303_v0 = vld [vmem:[%s33260_s3 + $0x568] ss:$52 sps:$4 sm:$0xff]  }
 0x70b   :  { %17434 = vmatprep.subr.bf16.mxu0 %v24264_v10  ;;  %v24311_v10 = vld [vmem:[%s33260_s3 + $0x5d4] ss:$52 sps:$4 sm:$0xff]  }
 0x70c   :  { %17396 = vmatpush1.bf16.msra.mxu1 %v24253_v30  ;;  %v24300_v30 = vld [vmem:[%s33260_s3 + $0x1c8] ss:$52 sps:$4 sm:$0xff]  }
 0x70d   :  { %17397 = vmatprep.subr.bf16.mxu1 %v24261_v15  ;;  %v24308_v15 = vld [vmem:[%s33260_s3 + $0x234] ss:$52 sps:$4 sm:$0xff]  }
 0x70e   :  { %17435 = vmatpush1.bf16.msra.mxu0 %v24262_v35  ;;  %v24309_v35 = vld [vmem:[%s33260_s3 + $0x5d0] ss:$52 sps:$4 sm:$0xff]  }
 0x70f   :  { %17436 = vmatprep.subr.bf16.mxu0 %v24270_v45  ;;  %v24317_v45 = vld [vmem:[%s33260_s3 + $0x63c] ss:$52 sps:$4 sm:$0xff]  }
 0x710   :  { %17398 = vmatpush1.bf16.msra.mxu1 %v24259_v17  ;;  %v24306_v17 = vld [vmem:[%s33260_s3 + $0x230] ss:$52 sps:$4 sm:$0xff]  }
 0x711   :  { %17399 = vmatprep.subr.bf16.mxu1 %v24267_v58  ;;  %v24314_v58 = vld [vmem:[%s33260_s3 + $0x29c] ss:$52 sps:$4 sm:$0xff]  }
 0x712   :  { %17437 = vmatpush1.bf16.msra.mxu0 %v24268_v22  ;;  %v24312_v22 = vld [vmem:[%s33260_s3 + $0x298] ss:$52 sps:$4 sm:$0xff]  }
 0x713   :  { %17438 = vmatprep.subr.bf16.mxu0 %v24275_v42  ;;  %v24320_v42 = vld [vmem:[%s33260_s3 + $0x304] ss:$52 sps:$4 sm:$0xff]  }
 0x714   :  { %17400 = vmatpush1.bf16.msra.mxu1 %v24265_v32  ;;  %v24323_v32 = vld [vmem:[%s33260_s3 + $0x6a4] ss:$52 sps:$4 sm:$0xff]  }
 0x715   :  { %22037 = vmatprep.subr.msk.bf16.mxu1 %vm16070_vm2, %v22025_v51  ;;  %v24321_v51 = vld [vmem:[%s33260_s3 + $0x6a0] ss:$52 sps:$4 sm:$0xff]  }
 0x716   :  { %17439 = vmatpush1.bf16.msra.mxu0 %v24273_v55  ;;  %v24329_v55 = vld [vmem:[%s33260_s3 + $0x70c] ss:$52 sps:$4 sm:$0xff]  }
 0x717   :  { %17440 = vmatprep.subr.bf16.mxu0 %v24281_v59  ;;  %v24326_v59 = vld [vmem:[%s33260_s3 + $0x36c] ss:$52 sps:$4 sm:$0xff]  }
 0x718   :  { %17402 = vmatpush1.bf16.msra.mxu1 %v16090_v26  ;;  %v24327_v26 = vld [vmem:[%s33260_s3 + $0x708] ss:$52 sps:$4 sm:$0xff]  }
 0x719   :  { %17750 = vmatprep.subr.bf16.mxu1 %v24278_v57  ;;  %v24324_v57 = vld [vmem:[%s33260_s3 + $0x368] ss:$52 sps:$4 sm:$0xff]  }
 0x71a   :  { %17441 = vmatpush1.bf16.msra.mxu0 %v24279_v44  ;;  %v24335_v44 = vld [vmem:[%s33260_s3 + $0x774] ss:$52 sps:$4 sm:$0xff]  }
 0x71b   :  { %17414 = vmatmul.mubr.bf16.vlgmr.msra.gmra.mrb[28].mxu1 %v29390_v28  ;;  %17442 = vmatprep.subr.bf16.mxu0 %v24287_v34  ;;  %v24330_v34 = vld [vmem:[%s33260_s3 + $0x3d0] ss:$52 sps:$4 sm:$0xff]  }
 0x71c   :  { %17751 = vmatpush1.bf16.msra.mxu1 %v24276_v2  ;;  %17782 = vmatprep.mubr.bf16.mxu1 %v27785_v6  ;;  %v24332_v2 = vld [vmem:[%s33260_s3 + $0x3d4] ss:$52 sps:$4 sm:$0xff]  }
 0x71d   :  { %17752 = vmatprep.subr.bf16.mxu1 %v24284_v33  ;;  %v24333_v33 = vld [vmem:[%s33260_s3 + $0x770] ss:$52 sps:$4 sm:$0xff]  }
 0x71e   :  { %17443 = vmatpush1.bf16.msra.mxu0 %v24285_v47  ;;  %v24341_v47 = vld [vmem:[%s33260_s3 + $0x7dc] ss:$52 sps:$4 sm:$0xff]  }
 0x71f   :  { %17444 = vmatprep.subr.bf16.mxu0 %v24293_v37  ;;  %v24339_v37 = vld [vmem:[%s33260_s3 + $0x7d8] ss:$52 sps:$4 sm:$0xff]  }
 0x720   :  { %17753 = vmatpush1.bf16.msra.mxu1 %v24282_v38  ;;  %v24338_v38 = vld [vmem:[%s33260_s3 + $0x43c] ss:$52 sps:$4 sm:$0xff]  }
 0x721   :  { %17754 = vmatprep.subr.bf16.mxu1 %v24290_v8  ;;  %v24336_v8 = vld [vmem:[%s33260_s3 + $0x438] ss:$52 sps:$4 sm:$0xff]  }
 0x722   :  { %17445 = vmatpush1.bf16.msra.mxu0 %v24291_v11  ;;  %v24347_v11 = vld [vmem:[%s33260_s3 + $0x844] ss:$52 sps:$4 sm:$0xff]  }
 0x723   :  { %17446 = vmatprep.subr.bf16.mxu0 %v24299_v21  ;;  %v24345_v21 = vld [vmem:[%s33260_s3 + $0x840] ss:$52 sps:$4 sm:$0xff]  }
 0x724   :  { %17755 = vmatpush1.bf16.msra.mxu1 %v24288_v14  ;;  %v24344_v14 = vld [vmem:[%s33260_s3 + $0x4a4] ss:$52 sps:$4 sm:$0xff]  }
 0x725   :  { %17756 = vmatprep.subr.bf16.mxu1 %v24296_v63  ;;  %v24342_v63 = vld [vmem:[%s33260_s3 + $0x4a0] ss:$52 sps:$4 sm:$0xff]  }
 0x726   :  { %17447 = vmatpush1.bf16.msra.mxu0 %v24297_v19  ;;  %v24353_v19 = vld [vmem:[%s33260_s3 + $0x8ac] ss:$52 sps:$4 sm:$0xff]  }
 0x727   :  { %17448 = vmatprep.subr.bf16.mxu0 %v24305_v61  ;;  %v24351_v61 = vld [vmem:[%s33260_s3 + $0x8a8] ss:$52 sps:$4 sm:$0xff]  }
 0x728   :  { %17757 = vmatpush1.bf16.msra.mxu1 %v24294_v41  ;;  %v24350_v41 = vld [vmem:[%s33260_s3 + $0x50c] ss:$52 sps:$4 sm:$0xff]  }
 0x729   :  { %17758 = vmatprep.subr.bf16.mxu1 %v24302_v9  ;;  %v24348_v9 = vld [vmem:[%s33260_s3 + $0x508] ss:$52 sps:$4 sm:$0xff]  }
 0x72a   :  { %17449 = vmatpush1.bf16.msra.mxu0 %v24303_v0  ;;  %v24359_v0 = vld [vmem:[%s33260_s3 + $0x914] ss:$52 sps:$4 sm:$0xff]  }
 0x72b   :  { %17450 = vmatprep.subr.bf16.mxu0 %v24311_v10  ;;  %v24357_v10 = vld [vmem:[%s33260_s3 + $0x910] ss:$52 sps:$4 sm:$0xff]  }
 0x72c   :  { %17759 = vmatpush1.bf16.msra.mxu1 %v24300_v30  ;;  %v24356_v30 = vld [vmem:[%s33260_s3 + $0x574] ss:$52 sps:$4 sm:$0xff]  }
 0x72d   :  { %17760 = vmatprep.subr.bf16.mxu1 %v24308_v15  ;;  %v24354_v15 = vld [vmem:[%s33260_s3 + $0x570] ss:$52 sps:$4 sm:$0xff]  }
 0x72e   :  { %17451 = vmatpush1.bf16.msra.mxu0 %v24309_v35  ;;  %v24365_v35 = vld [vmem:[%s33260_s3 + $0x97c] ss:$52 sps:$4 sm:$0xff]  }
 0x72f   :  { %17452 = vmatprep.subr.bf16.mxu0 %v24317_v45  ;;  %v24363_v45 = vld [vmem:[%s33260_s3 + $0x978] ss:$52 sps:$4 sm:$0xff]  }
 0x730   :  { %17761 = vmatpush1.bf16.msra.mxu1 %v24306_v17  ;;  %v24362_v17 = vld [vmem:[%s33260_s3 + $0x5dc] ss:$52 sps:$4 sm:$0xff]  }
 0x731   :  { %17762 = vmatprep.subr.bf16.mxu1 %v24314_v58  ;;  %v24360_v58 = vld [vmem:[%s33260_s3 + $0x5d8] ss:$52 sps:$4 sm:$0xff]  }
 0x732   :  { %17453 = vmatpush1.bf16.msra.mxu0 %v24315_v48  ;;  %v24371_v48 = vld [vmem:[%s33260_s3 + $0x9e4] ss:$52 sps:$4 sm:$0xff]  }
 0x733   :  { %17463 = vmatprep.subr.bf16.mxu0 %v24323_v32  ;;  %v24369_v32 = vld [vmem:[%s33260_s3 + $0x9e0] ss:$52 sps:$4 sm:$0xff]  }
 0x734   :  { %17763 = vmatpush1.bf16.msra.mxu1 %v24312_v22  ;;  %v24368_v22 = vld [vmem:[%s33260_s3 + $0x644] ss:$52 sps:$4 sm:$0xff]  }
 0x735   :  { %17764 = vmatprep.subr.bf16.mxu1 %v24320_v42  ;;  %17455 = vmatmul.mubr.bf16.vlgmr.msra.gmra.mrb[24].mxu0 %v27982_v13  ;;  %v24366_v42 = vld [vmem:[%s33260_s3 + $0x640] ss:$52 sps:$4 sm:$0xff]  }
 0x736   :  { %17464 = vmatpush1.bf16.msra.mxu0 %v24321_v51  ;;  %17495 = vmatprep.mubr.bf16.mxu0 %v27993_v29  ;;  %v24377_v51 = vld [vmem:[%s33260_s3 + $0xa4c] ss:$52 sps:$4 sm:$0xff]  }
 0x737   :  { %17465 = vmatprep.subr.bf16.mxu0 %v24329_v55  ;;  %v24375_v55 = vld [vmem:[%s33260_s3 + $0xa48] ss:$52 sps:$4 sm:$0xff]  }
 0x738   :  { %17765 = vmatpush1.bf16.msra.mxu1 %v24318_v53  ;;  %v24374_v53 = vld [vmem:[%s33260_s3 + $0x6ac] ss:$52 sps:$4 sm:$0xff]  }
 0x739   :  { %17766 = vmatprep.subr.bf16.mxu1 %v24326_v59  ;;  %v24372_v59 = vld [vmem:[%s33260_s3 + $0x6a8] ss:$52 sps:$4 sm:$0xff]  }
 0x73a   :  { %17466 = vmatpush1.bf16.msra.mxu0 %v24327_v26  ;;  %v24380_v26 = vld [vmem:[%s33260_s3 + $0x714] ss:$52 sps:$4 sm:$0xff]  }
 0x73b   :  { %17467 = vmatprep.subr.bf16.mxu0 %v24335_v44  ;;  %v24381_v44 = vld [vmem:[%s33260_s3 + $0xab0] ss:$52 sps:$4 sm:$0xff]  }
 0x73c   :  { %17767 = vmatpush1.bf16.msra.mxu1 %v24324_v57  ;;  %v24383_v57 = vld [vmem:[%s33260_s3 + $0xab4] ss:$52 sps:$4 sm:$0xff]  }
 0x73d   :  { %17768 = vmatprep.subr.bf16.mxu1 %v24332_v2  ;;  %v24378_v2 = vld [vmem:[%s33260_s3 + $0x710] ss:$52 sps:$4 sm:$0xff]  }
 0x73e   :  { %17468 = vmatpush1.bf16.msra.mxu0 %v24333_v33  ;;  %v24389_v33 = vld [vmem:[%s33260_s3 + $0xb1c] ss:$52 sps:$4 sm:$0xff]  }
 0x73f   :  { %17469 = vmatprep.subr.bf16.mxu0 %v24341_v47  ;;  %v24387_v47 = vld [vmem:[%s33260_s3 + $0xb18] ss:$52 sps:$4 sm:$0xff]  }
 0x740   :  { %17769 = vmatpush1.bf16.msra.mxu1 %v24330_v34  ;;  %v24386_v34 = vld [vmem:[%s33260_s3 + $0x77c] ss:$52 sps:$4 sm:$0xff]  }
 0x741   :  { %17770 = vmatprep.subr.bf16.mxu1 %v24338_v38  ;;  %v24384_v38 = vld [vmem:[%s33260_s3 + $0x778] ss:$52 sps:$4 sm:$0xff]  }
 0x742   :  { %17470 = vmatpush1.bf16.msra.mxu0 %v24339_v37  ;;  %v24395_v37 = vld [vmem:[%s33260_s3 + $0xb84] ss:$52 sps:$4 sm:$0xff]  }
 0x743   :  { %17471 = vmatprep.subr.bf16.mxu0 %v24347_v11  ;;  %v24393_v11 = vld [vmem:[%s33260_s3 + $0xb80] ss:$52 sps:$4 sm:$0xff]  }
 0x744   :  { %17771 = vmatpush1.bf16.msra.mxu1 %v24336_v8  ;;  %v24392_v8 = vld [vmem:[%s33260_s3 + $0x7e4] ss:$52 sps:$4 sm:$0xff]  }
 0x745   :  { %17772 = vmatprep.subr.bf16.mxu1 %v24344_v14  ;;  %v24390_v14 = vld [vmem:[%s33260_s3 + $0x7e0] ss:$52 sps:$4 sm:$0xff]  }
 0x746   :  { %17472 = vmatpush1.bf16.msra.mxu0 %v24345_v21  ;;  %v24401_v21 = vld [vmem:[%s33260_s3 + $0xbec] ss:$52 sps:$4 sm:$0xff]  }
 0x747   :  { %17473 = vmatprep.subr.bf16.mxu0 %v24353_v19  ;;  %v24399_v19 = vld [vmem:[%s33260_s3 + $0xbe8] ss:$52 sps:$4 sm:$0xff]  }
 0x748   :  { %17773 = vmatpush1.bf16.msra.mxu1 %v24342_v63  ;;  %v24398_v63 = vld [vmem:[%s33260_s3 + $0x84c] ss:$52 sps:$4 sm:$0xff]  }
 0x749   :  { %17774 = vmatprep.subr.bf16.mxu1 %v24350_v41  ;;  %v24396_v41 = vld [vmem:[%s33260_s3 + $0x848] ss:$52 sps:$4 sm:$0xff]  }
 0x74a   :  { %17474 = vmatpush1.bf16.msra.mxu0 %v24351_v61  ;;  %v24407_v61 = vld [vmem:[%s33260_s3 + $0xc54] ss:$52 sps:$4 sm:$0xff]  }
 0x74b   :  { %17475 = vmatprep.subr.bf16.mxu0 %v24359_v0  ;;  %v24405_v0 = vld [vmem:[%s33260_s3 + $0xc50] ss:$52 sps:$4 sm:$0xff]  }
 0x74c   :  { %17775 = vmatpush1.bf16.msra.mxu1 %v24348_v9  ;;  %v24404_v9 = vld [vmem:[%s33260_s3 + $0x8b4] ss:$52 sps:$4 sm:$0xff]  }
 0x74d   :  { %17776 = vmatprep.subr.bf16.mxu1 %v24356_v30  ;;  %v24402_v30 = vld [vmem:[%s33260_s3 + $0x8b0] ss:$52 sps:$4 sm:$0xff]  }
 0x74e   :  { %17476 = vmatpush1.bf16.msra.mxu0 %v24357_v10  ;;  %v24413_v10 = vld [vmem:[%s33260_s3 + $0xcbc] ss:$52 sps:$4 sm:$0xff]  }
 0x74f   :  { %17477 = vmatprep.subr.bf16.mxu0 %v24365_v35  ;;  %v24411_v35 = vld [vmem:[%s33260_s3 + $0xcb8] ss:$52 sps:$4 sm:$0xff]  }
 0x750   :  { %17777 = vmatpush1.bf16.msra.mxu1 %v24354_v15  ;;  %v24410_v15 = vld [vmem:[%s33260_s3 + $0x91c] ss:$52 sps:$4 sm:$0xff]  }
 0x751   :  { %17778 = vmatprep.subr.bf16.mxu1 %v24362_v17  ;;  %v24408_v17 = vld [vmem:[%s33260_s3 + $0x918] ss:$52 sps:$4 sm:$0xff]  }
 0x752   :  { %17478 = vmatpush1.bf16.msra.mxu0 %v24363_v45  ;;  %v24419_v45 = vld [vmem:[%s33260_s3 + $0xd24] ss:$52 sps:$4 sm:$0xff]  }
 0x753   :  { %17479 = vmatprep.subr.bf16.mxu0 %v24371_v48  ;;  %v24417_v48 = vld [vmem:[%s33260_s3 + $0xd20] ss:$52 sps:$4 sm:$0xff]  }
 0x754   :  { %17779 = vmatpush1.bf16.msra.mxu1 %v24360_v58  ;;  %v24416_v58 = vld [vmem:[%s33260_s3 + $0x984] ss:$52 sps:$4 sm:$0xff]  }
 0x755   :  { %17780 = vmatprep.subr.bf16.mxu1 %v24368_v22  ;;  %v24414_v22 = vld [vmem:[%s33260_s3 + $0x980] ss:$52 sps:$4 sm:$0xff]  }
 0x756   :  { %17480 = vmatpush1.bf16.msra.mxu0 %v24369_v32  ;;  %v24425_v32 = vld [vmem:[%s33260_s3 + $0xd8c] ss:$52 sps:$4 sm:$0xff]  }
 0x757   :  { %17481 = vmatprep.subr.bf16.mxu0 %v24377_v51  ;;  %v24423_v51 = vld [vmem:[%s33260_s3 + $0xd88] ss:$52 sps:$4 sm:$0xff]  }
 0x758   :  { %17781 = vmatpush1.bf16.msra.mxu1 %v24366_v42  ;;  %v24422_v42 = vld [vmem:[%s33260_s3 + $0x9ec] ss:$52 sps:$4 sm:$0xff]  }
 0x759   :  { %17791 = vmatprep.subr.bf16.mxu1 %v24374_v53  ;;  %v24420_v53 = vld [vmem:[%s33260_s3 + $0x9e8] ss:$52 sps:$4 sm:$0xff]  }
 0x75a   :  { %17482 = vmatpush1.bf16.msra.mxu0 %v24375_v55  ;;  %v24431_v55 = vld [vmem:[%s33260_s3 + $0xdf4] ss:$52 sps:$4 sm:$0xff]  }
 0x75b   :  { %17783 = vmatmul.mubr.bf16.vlgmr.msra.gmra.mrb[32].mxu1 %v27982_v13  ;;  %17483 = vmatprep.subr.bf16.mxu0 %v24383_v57  ;;  %v24426_v57 = vld [vmem:[%s33260_s3 + $0xa50] ss:$52 sps:$4 sm:$0xff]  }
 0x75c   :  { %17792 = vmatpush1.bf16.msra.mxu1 %v24372_v59  ;;  %17823 = vmatprep.mubr.bf16.mxu1 %v27993_v29  ;;  %v24428_v59 = vld [vmem:[%s33260_s3 + $0xa54] ss:$52 sps:$4 sm:$0xff]  }
 0x75d   :  { %17793 = vmatprep.subr.bf16.mxu1 %v24380_v26  ;;  %v24429_v26 = vld [vmem:[%s33260_s3 + $0xdf0] ss:$52 sps:$4 sm:$0xff]  }
 0x75e   :  { %17484 = vmatpush1.bf16.msra.mxu0 %v24381_v44  ;;  %v24437_v44 = vld [vmem:[%s33260_s3 + $0xe5c] ss:$52 sps:$4 sm:$0xff]  }
 0x75f   :  { %17485 = vmatprep.subr.bf16.mxu0 %v24389_v33  ;;  %v24435_v33 = vld [vmem:[%s33260_s3 + $0xe58] ss:$52 sps:$4 sm:$0xff]  }
 0x760   :  { %17794 = vmatpush1.bf16.msra.mxu1 %v24378_v2  ;;  %v24434_v2 = vld [vmem:[%s33260_s3 + $0xabc] ss:$52 sps:$4 sm:$0xff]  }
 0x761   :  { %17795 = vmatprep.subr.bf16.mxu1 %v24386_v34  ;;  %v24432_v34 = vld [vmem:[%s33260_s3 + $0xab8] ss:$52 sps:$4 sm:$0xff]  }
 0x762   :  { %17486 = vmatpush1.bf16.msra.mxu0 %v24387_v47  ;;  %v24443_v47 = vld [vmem:[%s33260_s3 + $0xec4] ss:$52 sps:$4 sm:$0xff]  }
 0x763   :  { %17487 = vmatprep.subr.bf16.mxu0 %v24395_v37  ;;  %v24441_v37 = vld [vmem:[%s33260_s3 + $0xec0] ss:$52 sps:$4 sm:$0xff]  }
 0x764   :  { %17796 = vmatpush1.bf16.msra.mxu1 %v24384_v38  ;;  %v24440_v38 = vld [vmem:[%s33260_s3 + $0xb24] ss:$52 sps:$4 sm:$0xff]  }
 0x765   :  { %17797 = vmatprep.subr.bf16.mxu1 %v24392_v8  ;;  %v24438_v8 = vld [vmem:[%s33260_s3 + $0xb20] ss:$52 sps:$4 sm:$0xff]  }
 0x766   :  { %17488 = vmatpush1.bf16.msra.mxu0 %v24393_v11  ;;  %v24449_v11 = vld [vmem:[%s33260_s3 + $0xf2c] ss:$52 sps:$4 sm:$0xff]  }
 0x767   :  { %17489 = vmatprep.subr.bf16.mxu0 %v24401_v21  ;;  %v24447_v21 = vld [vmem:[%s33260_s3 + $0xf28] ss:$52 sps:$4 sm:$0xff]  }
 0x768   :  { %17798 = vmatpush1.bf16.msra.mxu1 %v24390_v14  ;;  %v24446_v14 = vld [vmem:[%s33260_s3 + $0xb8c] ss:$52 sps:$4 sm:$0xff]  }
 0x769   :  { %17799 = vmatprep.subr.bf16.mxu1 %v24398_v63  ;;  %v24444_v63 = vld [vmem:[%s33260_s3 + $0xb88] ss:$52 sps:$4 sm:$0xff]  }
 0x76a   :  { %17490 = vmatpush1.bf16.msra.mxu0 %v24399_v19  ;;  %v24455_v19 = vld [vmem:[%s33260_s3 + $0xf94] ss:$52 sps:$4 sm:$0xff]  }
 0x76b   :  { %17491 = vmatprep.subr.bf16.mxu0 %v24407_v61  ;;  %v24453_v61 = vld [vmem:[%s33260_s3 + $0xf90] ss:$52 sps:$4 sm:$0xff]  }
 0x76c   :  { %17800 = vmatpush1.bf16.msra.mxu1 %v24396_v41  ;;  %v24452_v41 = vld [vmem:[%s33260_s3 + $0xbf4] ss:$52 sps:$4 sm:$0xff]  }
 0x76d   :  { %17801 = vmatprep.subr.bf16.mxu1 %v24404_v9  ;;  %v24450_v9 = vld [vmem:[%s33260_s3 + $0xbf0] ss:$52 sps:$4 sm:$0xff]  }
 0x76e   :  { %17492 = vmatpush1.bf16.msra.mxu0 %v24405_v0  ;;  %v24461_v0 = vld [vmem:[%s33260_s3 + $0xffc] ss:$52 sps:$4 sm:$0xff]  }
 0x76f   :  { %17493 = vmatprep.subr.bf16.mxu0 %v24413_v10  ;;  %v24459_v10 = vld [vmem:[%s33260_s3 + $0xff8] ss:$52 sps:$4 sm:$0xff]  }
 0x770   :  { %17802 = vmatpush1.bf16.msra.mxu1 %v24402_v30  ;;  %v24458_v30 = vld [vmem:[%s33260_s3 + $0xc5c] ss:$52 sps:$4 sm:$0xff]  }
 0x771   :  { %17803 = vmatprep.subr.bf16.mxu1 %v24410_v15  ;;  %v24456_v15 = vld [vmem:[%s33260_s3 + $0xc58] ss:$52 sps:$4 sm:$0xff]  }
 0x772   :  { %17494 = vmatpush1.bf16.msra.mxu0 %v24411_v35  ;;  %v24467_v35 = vld [vmem:[%s33260_s3 + $0x1064] ss:$52 sps:$4 sm:$0xff]  }
 0x773   :  { %17504 = vmatprep.subr.bf16.mxu0 %v24419_v45  ;;  %v24465_v45 = vld [vmem:[%s33260_s3 + $0x1060] ss:$52 sps:$4 sm:$0xff]  }
 0x774   :  { %17804 = vmatpush1.bf16.msra.mxu1 %v24408_v17  ;;  %v24464_v17 = vld [vmem:[%s33260_s3 + $0xcc4] ss:$52 sps:$4 sm:$0xff]  }
 0x775   :  { %17805 = vmatprep.subr.bf16.mxu1 %v24416_v58  ;;  %17496 = vmatmul.mubr.bf16.vlgmr.msra.gmra.mrb[24].mxu0 %v28189_v23  ;;  %v24462_v58 = vld [vmem:[%s33260_s3 + $0xcc0] ss:$52 sps:$4 sm:$0xff]  }
 0x776   :  { %17505 = vmatpush1.bf16.msra.mxu0 %v24417_v48  ;;  %17536 = vmatprep.mubr.bf16.mxu0 %v28200_v31  ;;  %v24473_v48 = vld [vmem:[%s33260_s3 + $0x10cc] ss:$52 sps:$4 sm:$0xff]  }
 0x777   :  { %17506 = vmatprep.subr.bf16.mxu0 %v24425_v32  ;;  %v24471_v32 = vld [vmem:[%s33260_s3 + $0x10c8] ss:$52 sps:$4 sm:$0xff]  }
 0x778   :  { %17806 = vmatpush1.bf16.msra.mxu1 %v24414_v22  ;;  %v24470_v22 = vld [vmem:[%s33260_s3 + $0xd2c] ss:$52 sps:$4 sm:$0xff]  }
 0x779   :  { %17807 = vmatprep.subr.bf16.mxu1 %v24422_v42  ;;  %v24468_v42 = vld [vmem:[%s33260_s3 + $0xd28] ss:$52 sps:$4 sm:$0xff]  }
 0x77a   :  { %17507 = vmatpush1.bf16.msra.mxu0 %v24423_v51  ;;  %v24476_v51 = vld [vmem:[%s33260_s3 + $0xd94] ss:$52 sps:$4 sm:$0xff]  }
 0x77b   :  { %17508 = vmatprep.subr.bf16.mxu0 %v24431_v55  ;;  %v24477_v55 = vld [vmem:[%s33260_s3 + $0x1130] ss:$52 sps:$4 sm:$0xff]  }
 0x77c   :  { %17808 = vmatpush1.bf16.msra.mxu1 %v24420_v53  ;;  %v24479_v53 = vld [vmem:[%s33260_s3 + $0x1134] ss:$52 sps:$4 sm:$0xff]  }
 0x77d   :  { %17809 = vmatprep.subr.bf16.mxu1 %v24428_v59  ;;  %v24474_v59 = vld [vmem:[%s33260_s3 + $0xd90] ss:$52 sps:$4 sm:$0xff]  }
 0x77e   :  { %17509 = vmatpush1.bf16.msra.mxu0 %v24429_v26  ;;  %v24485_v26 = vld [vmem:[%s33260_s3 + $0x119c] ss:$52 sps:$4 sm:$0xff]  }
 0x77f   :  { %17510 = vmatprep.subr.bf16.mxu0 %v24437_v44  ;;  %v24483_v44 = vld [vmem:[%s33260_s3 + $0x1198] ss:$52 sps:$4 sm:$0xff]  }
 0x780   :  { %17810 = vmatpush1.bf16.msra.mxu1 %v24426_v57  ;;  %v24482_v57 = vld [vmem:[%s33260_s3 + $0xdfc] ss:$52 sps:$4 sm:$0xff]  }
 0x781   :  { %17811 = vmatprep.subr.bf16.mxu1 %v24434_v2  ;;  %v24480_v2 = vld [vmem:[%s33260_s3 + $0xdf8] ss:$52 sps:$4 sm:$0xff]  }
 0x782   :  { %17511 = vmatpush1.bf16.msra.mxu0 %v24435_v33  ;;  %v24491_v33 = vld [vmem:[%s33260_s3 + $0x1204] ss:$52 sps:$4 sm:$0xff]  }
 0x783   :  { %17512 = vmatprep.subr.bf16.mxu0 %v24443_v47  ;;  %v24489_v47 = vld [vmem:[%s33260_s3 + $0x1200] ss:$52 sps:$4 sm:$0xff]  }
 0x784   :  { %17812 = vmatpush1.bf16.msra.mxu1 %v24432_v34  ;;  %v24488_v34 = vld [vmem:[%s33260_s3 + $0xe64] ss:$52 sps:$4 sm:$0xff]  }
 0x785   :  { %17813 = vmatprep.subr.bf16.mxu1 %v24440_v38  ;;  %v24486_v38 = vld [vmem:[%s33260_s3 + $0xe60] ss:$52 sps:$4 sm:$0xff]  }
 0x786   :  { %17513 = vmatpush1.bf16.msra.mxu0 %v24441_v37  ;;  %v24497_v37 = vld [vmem:[%s33260_s3 + $0x126c] ss:$52 sps:$4 sm:$0xff]  }
 0x787   :  { %17514 = vmatprep.subr.bf16.mxu0 %v24449_v11  ;;  %v24495_v11 = vld [vmem:[%s33260_s3 + $0x1268] ss:$52 sps:$4 sm:$0xff]  }
 0x788   :  { %17814 = vmatpush1.bf16.msra.mxu1 %v24438_v8  ;;  %v24494_v8 = vld [vmem:[%s33260_s3 + $0xecc] ss:$52 sps:$4 sm:$0xff]  }
 0x789   :  { %17815 = vmatprep.subr.bf16.mxu1 %v24446_v14  ;;  %v24492_v14 = vld [vmem:[%s33260_s3 + $0xec8] ss:$52 sps:$4 sm:$0xff]  }
 0x78a   :  { %17515 = vmatpush1.bf16.msra.mxu0 %v24447_v21  ;;  %v24503_v21 = vld [vmem:[%s33260_s3 + $0x12d4] ss:$52 sps:$4 sm:$0xff]  }
 0x78b   :  { %17516 = vmatprep.subr.bf16.mxu0 %v24455_v19  ;;  %v24501_v19 = vld [vmem:[%s33260_s3 + $0x12d0] ss:$52 sps:$4 sm:$0xff]  }
 0x78c   :  { %17816 = vmatpush1.bf16.msra.mxu1 %v24444_v63  ;;  %v24500_v63 = vld [vmem:[%s33260_s3 + $0xf34] ss:$52 sps:$4 sm:$0xff]  }
 0x78d   :  { %17817 = vmatprep.subr.bf16.mxu1 %v24452_v41  ;;  %v24498_v41 = vld [vmem:[%s33260_s3 + $0xf30] ss:$52 sps:$4 sm:$0xff]  }
 0x78e   :  { %17517 = vmatpush1.bf16.msra.mxu0 %v24453_v61  ;;  %v24509_v61 = vld [vmem:[%s33260_s3 + $0x133c] ss:$52 sps:$4 sm:$0xff]  }
 0x78f   :  { %17518 = vmatprep.subr.bf16.mxu0 %v24461_v0  ;;  %v24507_v0 = vld [vmem:[%s33260_s3 + $0x1338] ss:$52 sps:$4 sm:$0xff]  }
 0x790   :  { %17818 = vmatpush1.bf16.msra.mxu1 %v24450_v9  ;;  %v24506_v9 = vld [vmem:[%s33260_s3 + $0xf9c] ss:$52 sps:$4 sm:$0xff]  }
 0x791   :  { %17819 = vmatprep.subr.bf16.mxu1 %v24458_v30  ;;  %v24504_v30 = vld [vmem:[%s33260_s3 + $0xf98] ss:$52 sps:$4 sm:$0xff]  }
 0x792   :  { %17519 = vmatpush1.bf16.msra.mxu0 %v24459_v10  ;;  %v24515_v10 = vld [vmem:[%s33260_s3 + $0x13a4] ss:$52 sps:$4 sm:$0xff]  }
 0x793   :  { %17520 = vmatprep.subr.bf16.mxu0 %v24467_v35  ;;  %v24513_v35 = vld [vmem:[%s33260_s3 + $0x13a0] ss:$52 sps:$4 sm:$0xff]  }
 0x794   :  { %17820 = vmatpush1.bf16.msra.mxu1 %v24456_v15  ;;  %v24512_v15 = vld [vmem:[%s33260_s3 + $0x1004] ss:$52 sps:$4 sm:$0xff]  }
 0x795   :  { %17821 = vmatprep.subr.bf16.mxu1 %v24464_v17  ;;  %v24510_v17 = vld [vmem:[%s33260_s3 + $0x1000] ss:$52 sps:$4 sm:$0xff]  }
 0x796   :  { %17521 = vmatpush1.bf16.msra.mxu0 %v24465_v45  ;;  %v24521_v45 = vld [vmem:[%s33260_s3 + $0x140c] ss:$52 sps:$4 sm:$0xff]  }
 0x797   :  { %17522 = vmatprep.subr.bf16.mxu0 %v24473_v48  ;;  %v24519_v48 = vld [vmem:[%s33260_s3 + $0x1408] ss:$52 sps:$4 sm:$0xff]  }
 0x798   :  { %17822 = vmatpush1.bf16.msra.mxu1 %v24462_v58  ;;  %v24518_v58 = vld [vmem:[%s33260_s3 + $0x106c] ss:$52 sps:$4 sm:$0xff]  }
 0x799   :  { %17832 = vmatprep.subr.bf16.mxu1 %v24470_v22  ;;  %v24516_v22 = vld [vmem:[%s33260_s3 + $0x1068] ss:$52 sps:$4 sm:$0xff]  }
 0x79a   :  { %17523 = vmatpush1.bf16.msra.mxu0 %v24471_v32  ;;  %v24527_v32 = vld [vmem:[%s33260_s3 + $0x1474] ss:$52 sps:$4 sm:$0xff]  }
 0x79b   :  { %17824 = vmatmul.mubr.bf16.vlgmr.msra.gmra.mrb[32].mxu1 %v28189_v23  ;;  %17524 = vmatprep.subr.bf16.mxu0 %v24479_v53  ;;  %v24522_v53 = vld [vmem:[%s33260_s3 + $0x10d0] ss:$52 sps:$4 sm:$0xff]  }
 0x79c   :  { %17833 = vmatpush1.bf16.msra.mxu1 %v24468_v42  ;;  %17864 = vmatprep.mubr.bf16.mxu1 %v28200_v31  ;;  %v24524_v42 = vld [vmem:[%s33260_s3 + $0x10d4] ss:$52 sps:$4 sm:$0xff]  }
 0x79d   :  { %17834 = vmatprep.subr.bf16.mxu1 %v24476_v51  ;;  %v24525_v51 = vld [vmem:[%s33260_s3 + $0x1470] ss:$52 sps:$4 sm:$0xff]  }
 0x79e   :  { %17525 = vmatpush1.bf16.msra.mxu0 %v24477_v55  ;;  %v24533_v55 = vld [vmem:[%s33260_s3 + $0x14dc] ss:$52 sps:$4 sm:$0xff]  }
 0x79f   :  { %17526 = vmatprep.subr.bf16.mxu0 %v24485_v26  ;;  %v24531_v26 = vld [vmem:[%s33260_s3 + $0x14d8] ss:$52 sps:$4 sm:$0xff]  }
 0x7a0   :  { %17835 = vmatpush1.bf16.msra.mxu1 %v24474_v59  ;;  %v24530_v59 = vld [vmem:[%s33260_s3 + $0x113c] ss:$52 sps:$4 sm:$0xff]  }
 0x7a1   :  { %17836 = vmatprep.subr.bf16.mxu1 %v24482_v57  ;;  %v24528_v57 = vld [vmem:[%s33260_s3 + $0x1138] ss:$52 sps:$4 sm:$0xff]  }
 0x7a2   :  { %17527 = vmatpush1.bf16.msra.mxu0 %v24483_v44  ;;  %v24539_v44 = vld [vmem:[%s33260_s3 + $0x1544] ss:$52 sps:$4 sm:$0xff]  }
 0x7a3   :  { %17528 = vmatprep.subr.bf16.mxu0 %v24491_v33  ;;  %v24537_v33 = vld [vmem:[%s33260_s3 + $0x1540] ss:$52 sps:$4 sm:$0xff]  }
 0x7a4   :  { %17837 = vmatpush1.bf16.msra.mxu1 %v24480_v2  ;;  %v24536_v2 = vld [vmem:[%s33260_s3 + $0x11a4] ss:$52 sps:$4 sm:$0xff]  }
 0x7a5   :  { %17838 = vmatprep.subr.bf16.mxu1 %v24488_v34  ;;  %v24534_v34 = vld [vmem:[%s33260_s3 + $0x11a0] ss:$52 sps:$4 sm:$0xff]  }
 0x7a6   :  { %17529 = vmatpush1.bf16.msra.mxu0 %v24489_v47  ;;  %v24545_v47 = vld [vmem:[%s33260_s3 + $0x15ac] ss:$52 sps:$4 sm:$0xff]  }
 0x7a7   :  { %17530 = vmatprep.subr.bf16.mxu0 %v24497_v37  ;;  %v24543_v37 = vld [vmem:[%s33260_s3 + $0x15a8] ss:$52 sps:$4 sm:$0xff]  }
 0x7a8   :  { %17839 = vmatpush1.bf16.msra.mxu1 %v24486_v38  ;;  %v24542_v38 = vld [vmem:[%s33260_s3 + $0x120c] ss:$52 sps:$4 sm:$0xff]  }
 0x7a9   :  { %17840 = vmatprep.subr.bf16.mxu1 %v24494_v8  ;;  %v24540_v8 = vld [vmem:[%s33260_s3 + $0x1208] ss:$52 sps:$4 sm:$0xff]  }
 0x7aa   :  { %17531 = vmatpush1.bf16.msra.mxu0 %v24495_v11  ;;  %v24551_v11 = vld [vmem:[%s33260_s3 + $0x1614] ss:$52 sps:$4 sm:$0xff]  }
 0x7ab   :  { %17532 = vmatprep.subr.bf16.mxu0 %v24503_v21  ;;  %v24548_v21 = vld [vmem:[%s33260_s3 + $0x1274] ss:$52 sps:$4 sm:$0xff]  }
 0x7ac   :  { %17841 = vmatpush1.bf16.msra.mxu1 %v24492_v14 }
 0x7ad   :  { %17842 = vmatprep.subr.bf16.mxu1 %v24500_v63 }
 0x7ae   :  { %17533 = vmatpush1.bf16.msra.mxu0 %v24501_v19 }
 0x7af   :  { %17534 = vmatprep.subr.bf16.mxu0 %v24509_v61 }
 0x7b0   :  { %17843 = vmatpush1.bf16.msra.mxu1 %v24498_v41  ;;  %v24549_v41 = vld [vmem:[%s33260_s3 + $0x1610] ss:$52 sps:$4 sm:$0xff]  }
 0x7b1   :  { %17844 = vmatprep.subr.bf16.mxu1 %v24506_v9  ;;  %v24546_v9 = vld [vmem:[%s33260_s3 + $0x1270] ss:$52 sps:$4 sm:$0xff]  }
 0x7b2   :  { %17535 = vmatpush1.bf16.msra.mxu0 %v24507_v0  ;;  %v24557_v0 = vld [vmem:[%s33260_s3 + $0x167c] ss:$52 sps:$4 sm:$0xff]  }
 0x7b3   :  { %17545 = vmatprep.subr.bf16.mxu0 %v24515_v10  ;;  %v24555_v10 = vld [vmem:[%s33260_s3 + $0x1678] ss:$52 sps:$4 sm:$0xff]  }
 0x7b4   :  { %17845 = vmatpush1.bf16.msra.mxu1 %v24504_v30  ;;  %v24554_v30 = vld [vmem:[%s33260_s3 + $0x12dc] ss:$52 sps:$4 sm:$0xff]  }
 0x7b5   :  { %17846 = vmatprep.subr.bf16.mxu1 %v24512_v15  ;;  %17537 = vmatmul.mubr.bf16.vlgmr.msra.gmra.mrb[24].mxu0 %v28401_v62  ;;  %v24552_v15 = vld [vmem:[%s33260_s3 + $0x12d8] ss:$52 sps:$4 sm:$0xff]  }
 0x7b6   :  { %17546 = vmatpush1.bf16.msra.mxu0 %v24513_v35  ;;  %17577 = vmatprep.mubr.bf16.mxu0 %v28412_v4  ;;  %v24563_v35 = vld [vmem:[%s33260_s3 + $0x16e4] ss:$52 sps:$4 sm:$0xff]  }
 0x7b7   :  { %17547 = vmatprep.subr.bf16.mxu0 %v24521_v45  ;;  %v24561_v45 = vld [vmem:[%s33260_s3 + $0x16e0] ss:$52 sps:$4 sm:$0xff]  }
 0x7b8   :  { %17847 = vmatpush1.bf16.msra.mxu1 %v24510_v17  ;;  %v24560_v17 = vld [vmem:[%s33260_s3 + $0x1344] ss:$52 sps:$4 sm:$0xff]  }
 0x7b9   :  { %17848 = vmatprep.subr.bf16.mxu1 %v24518_v58  ;;  %v24558_v58 = vld [vmem:[%s33260_s3 + $0x1340] ss:$52 sps:$4 sm:$0xff]  }
 0x7ba   :  { %17548 = vmatpush1.bf16.msra.mxu0 %v24519_v48  ;;  %v24569_v48 = vld [vmem:[%s33260_s3 + $0x174c] ss:$52 sps:$4 sm:$0xff]  }
 0x7bb   :  { %17549 = vmatprep.subr.bf16.mxu0 %v24527_v32  ;;  %v24567_v32 = vld [vmem:[%s33260_s3 + $0x1748] ss:$52 sps:$4 sm:$0xff]  }
 0x7bc   :  { %17849 = vmatpush1.bf16.msra.mxu1 %v24516_v22  ;;  %v24566_v22 = vld [vmem:[%s33260_s3 + $0x13ac] ss:$52 sps:$4 sm:$0xff]  }
 0x7bd   :  { %17850 = vmatprep.subr.bf16.mxu1 %v24524_v42  ;;  %v24564_v42 = vld [vmem:[%s33260_s3 + $0x13a8] ss:$52 sps:$4 sm:$0xff]  }
 0x7be   :  { %17550 = vmatpush1.bf16.msra.mxu0 %v24525_v51  ;;  %v24572_v51 = vld [vmem:[%s33260_s3 + $0x1414] ss:$52 sps:$4 sm:$0xff]  }
 0x7bf   :  { %17551 = vmatprep.subr.bf16.mxu0 %v24533_v55  ;;  %v24573_v55 = vld [vmem:[%s33260_s3 + $0x17b0] ss:$52 sps:$4 sm:$0xff]  }
 0x7c0   :  { %17851 = vmatpush1.bf16.msra.mxu1 %v24522_v53  ;;  %v24575_v53 = vld [vmem:[%s33260_s3 + $0x17b4] ss:$52 sps:$4 sm:$0xff]  }
 0x7c1   :  { %17852 = vmatprep.subr.bf16.mxu1 %v24530_v59  ;;  %v24570_v59 = vld [vmem:[%s33260_s3 + $0x1410] ss:$52 sps:$4 sm:$0xff]  }
 0x7c2   :  { %17552 = vmatpush1.bf16.msra.mxu0 %v24531_v26  ;;  %v24581_v26 = vld [vmem:[%s33260_s3 + $0x181c] ss:$52 sps:$4 sm:$0xff]  }
 0x7c3   :  { %17553 = vmatprep.subr.bf16.mxu0 %v24539_v44  ;;  %v24579_v44 = vld [vmem:[%s33260_s3 + $0x1818] ss:$52 sps:$4 sm:$0xff]  }
 0x7c4   :  { %17853 = vmatpush1.bf16.msra.mxu1 %v24528_v57  ;;  %v24578_v57 = vld [vmem:[%s33260_s3 + $0x147c] ss:$52 sps:$4 sm:$0xff]  }
 0x7c5   :  { %17854 = vmatprep.subr.bf16.mxu1 %v24536_v2  ;;  %v24576_v2 = vld [vmem:[%s33260_s3 + $0x1478] ss:$52 sps:$4 sm:$0xff]  }
 0x7c6   :  { %17554 = vmatpush1.bf16.msra.mxu0 %v24537_v33  ;;  %v24587_v33 = vld [vmem:[%s33260_s3 + $0x1884] ss:$52 sps:$4 sm:$0xff]  }
 0x7c7   :  { %17555 = vmatprep.subr.bf16.mxu0 %v24545_v47  ;;  %v24585_v47 = vld [vmem:[%s33260_s3 + $0x1880] ss:$52 sps:$4 sm:$0xff]  }
 0x7c8   :  { %17855 = vmatpush1.bf16.msra.mxu1 %v24534_v34  ;;  %v31563_v14 = vpop.f32.mrb[20].mxu0  ;;  %v24584_v34 = vld [vmem:[%s33260_s3 + $0x14e4] ss:$52 sps:$4 sm:$0xff]  }
 0x7c9   :  { %17856 = vmatprep.subr.bf16.mxu1 %v24542_v38  ;;  %v31568_v63 = vpop.f32.mrb[21].mxu0  ;;  %v24582_v38 = vld [vmem:[%s33260_s3 + $0x14e0] ss:$52 sps:$4 sm:$0xff]  }
 0x7ca   :  { %v17091_v19 = vpop.f32.mrb[22].mxu0  ;;  %17556 = vmatpush1.bf16.msra.mxu0 %v24543_v37  ;;  %v24593_v37 = vld [vmem:[%s33260_s3 + $0x18ec] ss:$52 sps:$4 sm:$0xff]  }
 0x7cb   :  { %v17092_v61 = vpop.f32.mrb[23].mxu0  ;;  %17557 = vmatprep.subr.bf16.mxu0 %v24551_v11  ;;  %v24591_v11 = vld [vmem:[%s33260_s3 + $0x18e8] ss:$52 sps:$4 sm:$0xff]  }
 0x7cc   :  { %17857 = vmatpush1.bf16.msra.mxu1 %v24540_v8  ;;  %v24590_v8 = vld [vmem:[%s33260_s3 + $0x154c] ss:$52 sps:$4 sm:$0xff]   ;;  %v24599_v19 = vld [vmem:[%s33260_s3 + $0x1954] ss:$52 sps:$4 sm:$0xff]   ;;  %v24597_v61 = vld [vmem:[%s33260_s3 + $0x1950] ss:$52 sps:$4 sm:$0xff]  }
 0x7cd   :  { %17858 = vmatprep.subr.bf16.mxu1 %v24548_v21  ;;  %v24588_v21 = vld [vmem:[%s33260_s3 + $0x1548] ss:$52 sps:$4 sm:$0xff]  }
 0x7ce   :  { %17558 = vmatpush1.bf16.msra.mxu0 %v24549_v41  ;;  %v24596_v41 = vld [vmem:[%s33260_s3 + $0x15b4] ss:$52 sps:$4 sm:$0xff]  }
 0x7cf   :  { %17559 = vmatprep.subr.bf16.mxu0 %v24557_v0  ;;  %v24605_v0 = vld [vmem:[%s33260_s3 + $0x19bc] ss:$52 sps:$4 sm:$0xff]  }
 0x7d0   :  { %17859 = vmatpush1.bf16.msra.mxu1 %v24546_v9  ;;  %v24594_v9 = vld [vmem:[%s33260_s3 + $0x15b0] ss:$52 sps:$4 sm:$0xff]  }
 0x7d1   :  { %17860 = vmatprep.subr.bf16.mxu1 %v24554_v30  ;;  %v24602_v30 = vld [vmem:[%s33260_s3 + $0x161c] ss:$52 sps:$4 sm:$0xff]  }
 0x7d2   :  { %17560 = vmatpush1.bf16.msra.mxu0 %v24555_v10 }
 0x7d3   :  { %17561 = vmatprep.subr.bf16.mxu0 %v24563_v35  ;;  %v24603_v35 = vld [vmem:[%s33260_s3 + $0x19b8] ss:$52 sps:$4 sm:$0xff]  }
 0x7d4   :  { %17861 = vmatpush1.bf16.msra.mxu1 %v24552_v15 }
 0x7d5   :  { %17862 = vmatprep.subr.bf16.mxu1 %v24560_v17 }
 0x7d6   :  { %17562 = vmatpush1.bf16.msra.mxu0 %v24561_v45  ;;  %v24600_v45 = vld [vmem:[%s33260_s3 + $0x1618] ss:$52 sps:$4 sm:$0xff]  }
 0x7d7   :  { %17563 = vmatprep.subr.bf16.mxu0 %v24569_v48 }
 0x7d8   :  { %17863 = vmatpush1.bf16.msra.mxu1 %v24558_v58  ;;  %v24611_v58 = vld [vmem:[%s33260_s3 + $0x1a24] ss:$52 sps:$4 sm:$0xff]  }
 0x7d9   :  { %17873 = vmatprep.subr.bf16.mxu1 %v24566_v22  ;;  %v24608_v22 = vld [vmem:[%s33260_s3 + $0x1684] ss:$52 sps:$4 sm:$0xff]  }
 0x7da   :  { %17564 = vmatpush1.bf16.msra.mxu0 %v24567_v32  ;;  %v24609_v32 = vld [vmem:[%s33260_s3 + $0x1a20] ss:$52 sps:$4 sm:$0xff]  }
 0x7db   :  { %17865 = vmatmul.mubr.bf16.vlgmr.msra.gmra.mrb[32].mxu1 %v28401_v62  ;;  %17565 = vmatprep.subr.bf16.mxu0 %v24575_v53  ;;  %v24614_v53 = vld [vmem:[%s33260_s3 + $0x16ec] ss:$52 sps:$4 sm:$0xff]  }
 0x7dc   :  { %17874 = vmatpush1.bf16.msra.mxu1 %v24564_v42  ;;  %17905 = vmatprep.mubr.bf16.mxu1 %v28412_v4  ;;  %v24606_v42 = vld [vmem:[%s33260_s3 + $0x1680] ss:$52 sps:$4 sm:$0xff]  }
 0x7dd   :  { %17875 = vmatprep.subr.bf16.mxu1 %v24572_v51  ;;  %v24617_v51 = vld [vmem:[%s33260_s3 + $0x1a8c] ss:$52 sps:$4 sm:$0xff]  }
 0x7de   :  { %17566 = vmatpush1.bf16.msra.mxu0 %v24573_v55  ;;  %v24615_v55 = vld [vmem:[%s33260_s3 + $0x1a88] ss:$52 sps:$4 sm:$0xff]  }
 0x7df   :  { %17567 = vmatprep.subr.bf16.mxu0 %v24581_v26  ;;  %v24623_v26 = vld [vmem:[%s33260_s3 + $0x1af4] ss:$52 sps:$4 sm:$0xff]  }
 0x7e0   :  { %17876 = vmatpush1.bf16.msra.mxu1 %v24570_v59  ;;  %v24612_v59 = vld [vmem:[%s33260_s3 + $0x16e8] ss:$52 sps:$4 sm:$0xff]  }
 0x7e1   :  { %17877 = vmatprep.subr.bf16.mxu1 %v24578_v57  ;;  %v24620_v57 = vld [vmem:[%s33260_s3 + $0x1754] ss:$52 sps:$4 sm:$0xff]  }
 0x7e2   :  { %17568 = vmatpush1.bf16.msra.mxu0 %v24579_v44  ;;  %v24621_v44 = vld [vmem:[%s33260_s3 + $0x1af0] ss:$52 sps:$4 sm:$0xff]  }
 0x7e3   :  { %17569 = vmatprep.subr.bf16.mxu0 %v24587_v33  ;;  %v24629_v33 = vld [vmem:[%s33260_s3 + $0x1b5c] ss:$52 sps:$4 sm:$0xff]  }
 0x7e4   :  { %17878 = vmatpush1.bf16.msra.mxu1 %v24576_v2  ;;  %v24618_v2 = vld [vmem:[%s33260_s3 + $0x1750] ss:$52 sps:$4 sm:$0xff]  }
 0x7e5   :  { %17879 = vmatprep.subr.bf16.mxu1 %v24584_v34  ;;  %v24626_v34 = vld [vmem:[%s33260_s3 + $0x17bc] ss:$52 sps:$4 sm:$0xff]  }
 0x7e6   :  { %17570 = vmatpush1.bf16.msra.mxu0 %v24585_v47  ;;  %v24627_v47 = vld [vmem:[%s33260_s3 + $0x1b58] ss:$52 sps:$4 sm:$0xff]  }
 0x7e7   :  { %17571 = vmatprep.subr.bf16.mxu0 %v24593_v37  ;;  %v24635_v37 = vld [vmem:[%s33260_s3 + $0x1bc4] ss:$52 sps:$4 sm:$0xff]  }
 0x7e8   :  { %17880 = vmatpush1.bf16.msra.mxu1 %v24582_v38  ;;  %v24624_v38 = vld [vmem:[%s33260_s3 + $0x17b8] ss:$52 sps:$4 sm:$0xff]  }
 0x7e9   :  { %17881 = vmatprep.subr.bf16.mxu1 %v24590_v8  ;;  %v24632_v8 = vld [vmem:[%s33260_s3 + $0x1824] ss:$52 sps:$4 sm:$0xff]  }
 0x7ea   :  { %17572 = vmatpush1.bf16.msra.mxu0 %v24591_v11  ;;  %v24633_v11 = vld [vmem:[%s33260_s3 + $0x1bc0] ss:$52 sps:$4 sm:$0xff]  }
 0x7eb   :  { %17573 = vmatprep.subr.bf16.mxu0 %v24599_v19  ;;  %v24641_v19 = vld [vmem:[%s33260_s3 + $0x1c2c] ss:$52 sps:$4 sm:$0xff]  }
 0x7ec   :  { %17882 = vmatpush1.bf16.msra.mxu1 %v24588_v21  ;;  %v24630_v21 = vld [vmem:[%s33260_s3 + $0x1820] ss:$52 sps:$4 sm:$0xff]  }
 0x7ed   :  { %17883 = vmatprep.subr.bf16.mxu1 %v24596_v41  ;;  %v24638_v41 = vld [vmem:[%s33260_s3 + $0x188c] ss:$52 sps:$4 sm:$0xff]  }
 0x7ee   :  { %v31680_v10 = vpop.f32.mrb[28].mxu1  ;;  %17574 = vmatpush1.bf16.msra.mxu0 %v24597_v61  ;;  %v24639_v61 = vld [vmem:[%s33260_s3 + $0x1c28] ss:$52 sps:$4 sm:$0xff]  }
 0x7ef   :  { %v31682_v15 = vpop.f32.mrb[29].mxu1  ;;  %17575 = vmatprep.subr.bf16.mxu0 %v24605_v0  ;;  %v24647_v0 = vld [vmem:[%s33260_s3 + $0x1c94] ss:$52 sps:$4 sm:$0xff]  }
 0x7f0   :  { %v17419_v17 = vpop.f32.mrb[30].mxu1  ;;  %17884 = vmatpush1.bf16.msra.mxu1 %v24594_v9  ;;  %v24636_v9 = vld [vmem:[%s33260_s3 + $0x1888] ss:$52 sps:$4 sm:$0xff]  }
 0x7f1   :  { %v17420_v48 = vpop.f32.mrb[31].mxu1  ;;  %17885 = vmatprep.subr.bf16.mxu1 %v24602_v30  ;;  %v24644_v30 = vld [vmem:[%s33260_s3 + $0x18f4] ss:$52 sps:$4 sm:$0xff]   ;;  %v24642_v17 = vld [vmem:[%s33260_s3 + $0x18f0] ss:$52 sps:$4 sm:$0xff]  }
 0x7f2   :  { %17576 = vmatpush1.bf16.msra.mxu0 %v24603_v35  ;;  %v24645_v35 = vld [vmem:[%s33260_s3 + $0x1c90] ss:$52 sps:$4 sm:$0xff]   ;;  %v24651_v48 = vld [vmem:[%s33260_s3 + $0x1cf8] ss:$52 sps:$4 sm:$0xff]  }
 0x7f3   :  { %17586 = vmatprep.subr.bf16.mxu0 %v24611_v58  ;;  %v24650_v58 = vld [vmem:[%s33260_s3 + $0x195c] ss:$52 sps:$4 sm:$0xff]  }
 0x7f4   :  { %17886 = vmatpush1.bf16.msra.mxu1 %v24600_v45  ;;  %v24653_v45 = vld [vmem:[%s33260_s3 + $0x1cfc] ss:$52 sps:$4 sm:$0xff]  }
 0x7f5   :  { %17887 = vmatprep.subr.bf16.mxu1 %v24608_v22  ;;  %17578 = vmatmul.mubr.bf16.vlgmr.msra.gmra.mrb[24].mxu0 %v28623_v60  ;;  %v24648_v22 = vld [vmem:[%s33260_s3 + $0x1958] ss:$52 sps:$4 sm:$0xff]  }
 0x7f6   :  { %17587 = vmatpush1.bf16.msra.mxu0 %v24609_v32  ;;  %17618 = vmatprep.mubr.bf16.mxu0 %v28634_v1  ;;  %v24659_v32 = vld [vmem:[%s33260_s3 + $0x1d64] ss:$52 sps:$4 sm:$0xff]  }
 0x7f7   :  { %17588 = vmatprep.subr.bf16.mxu0 %v24617_v51  ;;  %v24657_v51 = vld [vmem:[%s33260_s3 + $0x1d60] ss:$52 sps:$4 sm:$0xff]  }
 0x7f8   :  { %17888 = vmatpush1.bf16.msra.mxu1 %v24606_v42  ;;  %v24656_v42 = vld [vmem:[%s33260_s3 + $0x19c4] ss:$52 sps:$4 sm:$0xff]  }
 0x7f9   :  { %17889 = vmatprep.subr.bf16.mxu1 %v24614_v53  ;;  %v24654_v53 = vld [vmem:[%s33260_s3 + $0x19c0] ss:$52 sps:$4 sm:$0xff]  }
 0x7fa   :  { %17589 = vmatpush1.bf16.msra.mxu0 %v24615_v55  ;;  %v24665_v55 = vld [vmem:[%s33260_s3 + $0x1dcc] ss:$52 sps:$4 sm:$0xff]  }
 0x7fb   :  { %17590 = vmatprep.subr.bf16.mxu0 %v24623_v26  ;;  %v24663_v26 = vld [vmem:[%s33260_s3 + $0x1dc8] ss:$52 sps:$4 sm:$0xff]  }
 0x7fc   :  { %17890 = vmatpush1.bf16.msra.mxu1 %v24612_v59  ;;  %v24662_v59 = vld [vmem:[%s33260_s3 + $0x1a2c] ss:$52 sps:$4 sm:$0xff]  }
 0x7fd   :  { %17891 = vmatprep.subr.bf16.mxu1 %v24620_v57  ;;  %v24660_v57 = vld [vmem:[%s33260_s3 + $0x1a28] ss:$52 sps:$4 sm:$0xff]  }
 0x7fe   :  { %17591 = vmatpush1.bf16.msra.mxu0 %v24621_v44  ;;  %v24668_v44 = vld [vmem:[%s33260_s3 + $0x1a94] ss:$52 sps:$4 sm:$0xff]  }
 0x7ff   :  { %17592 = vmatprep.subr.bf16.mxu0 %v24629_v33  ;;  %v24669_v33 = vld [vmem:[%s33260_s3 + $0x1e30] ss:$52 sps:$4 sm:$0xff]  }
 0x800   :  { %17892 = vmatpush1.bf16.msra.mxu1 %v24618_v2  ;;  %v24671_v2 = vld [vmem:[%s33260_s3 + $0x1e34] ss:$52 sps:$4 sm:$0xff]  }
 0x801   :  { %17893 = vmatprep.subr.bf16.mxu1 %v24626_v34  ;;  %v24666_v34 = vld [vmem:[%s33260_s3 + $0x1a90] ss:$52 sps:$4 sm:$0xff]  }
 0x802   :  { %17593 = vmatpush1.bf16.msra.mxu0 %v24627_v47  ;;  %v24677_v47 = vld [vmem:[%s33260_s3 + $0x1e9c] ss:$52 sps:$4 sm:$0xff]  }
 0x803   :  { %17594 = vmatprep.subr.bf16.mxu0 %v24635_v37  ;;  %v24675_v37 = vld [vmem:[%s33260_s3 + $0x1e98] ss:$52 sps:$4 sm:$0xff]  }
 0x804   :  { %17894 = vmatpush1.bf16.msra.mxu1 %v24624_v38  ;;  %v24674_v38 = vld [vmem:[%s33260_s3 + $0x1afc] ss:$52 sps:$4 sm:$0xff]  }
 0x805   :  { %17895 = vmatprep.subr.bf16.mxu1 %v24632_v8  ;;  %v24672_v8 = vld [vmem:[%s33260_s3 + $0x1af8] ss:$52 sps:$4 sm:$0xff]  }
 0x806   :  { %17595 = vmatpush1.bf16.msra.mxu0 %v24633_v11  ;;  %v24683_v11 = vld [vmem:[%s33260_s3 + $0x1f04] ss:$52 sps:$4 sm:$0xff]  }
 0x807   :  { %17596 = vmatprep.subr.bf16.mxu0 %v24641_v19  ;;  %v24681_v19 = vld [vmem:[%s33260_s3 + $0x1f00] ss:$52 sps:$4 sm:$0xff]  }
 0x808   :  { %17896 = vmatpush1.bf16.msra.mxu1 %v24630_v21  ;;  %v24680_v21 = vld [vmem:[%s33260_s3 + $0x1b64] ss:$52 sps:$4 sm:$0xff]  }
 0x809   :  { %17897 = vmatprep.subr.bf16.mxu1 %v24638_v41  ;;  %v24678_v41 = vld [vmem:[%s33260_s3 + $0x1b60] ss:$52 sps:$4 sm:$0xff]  }
 0x80a   :  { %17597 = vmatpush1.bf16.msra.mxu0 %v24639_v61  ;;  %v24689_v61 = vld [vmem:[%s33260_s3 + $0x1f6c] ss:$52 sps:$4 sm:$0xff]  }
 0x80b   :  { %17598 = vmatprep.subr.bf16.mxu0 %v24647_v0  ;;  %v24687_v0 = vld [vmem:[%s33260_s3 + $0x1f68] ss:$52 sps:$4 sm:$0xff]  }
 0x80c   :  { %17898 = vmatpush1.bf16.msra.mxu1 %v24636_v9  ;;  %v24686_v9 = vld [vmem:[%s33260_s3 + $0x1bcc] ss:$52 sps:$4 sm:$0xff]  }
 0x80d   :  { %17899 = vmatprep.subr.bf16.mxu1 %v24644_v30  ;;  %v24684_v30 = vld [vmem:[%s33260_s3 + $0x1bc8] ss:$52 sps:$4 sm:$0xff]  }
 0x80e   :  { %17599 = vmatpush1.bf16.msra.mxu0 %v24645_v35  ;;  %v24695_v35 = vld [vmem:[%s33260_s3 + $0x1fd4] ss:$52 sps:$4 sm:$0xff]  }
 0x80f   :  { %17600 = vmatprep.subr.bf16.mxu0 %v24653_v45  ;;  %v24693_v45 = vld [vmem:[%s33260_s3 + $0x1fd0] ss:$52 sps:$4 sm:$0xff]  }
 0x810   :  { %17900 = vmatpush1.bf16.msra.mxu1 %v24642_v17  ;;  %v24692_v17 = vld [vmem:[%s33260_s3 + $0x1c34] ss:$52 sps:$4 sm:$0xff]  }
 0x811   :  { %17901 = vmatprep.subr.bf16.mxu1 %v24650_v58  ;;  %v24690_v58 = vld [vmem:[%s33260_s3 + $0x1c30] ss:$52 sps:$4 sm:$0xff]  }
 0x812   :  { %17601 = vmatpush1.bf16.msra.mxu0 %v24651_v48  ;;  %v24701_v48 = vld [vmem:[%s33260_s3 + $0x203c] ss:$52 sps:$4 sm:$0xff]  }
 0x813   :  { %17602 = vmatprep.subr.bf16.mxu0 %v24659_v32  ;;  %v24699_v32 = vld [vmem:[%s33260_s3 + $0x2038] ss:$52 sps:$4 sm:$0xff]  }
 0x814   :  { %17902 = vmatpush1.bf16.msra.mxu1 %v24648_v22  ;;  %v24698_v22 = vld [vmem:[%s33260_s3 + $0x1c9c] ss:$52 sps:$4 sm:$0xff]  }
 0x815   :  { %17903 = vmatprep.subr.bf16.mxu1 %v24656_v42  ;;  %v24696_v42 = vld [vmem:[%s33260_s3 + $0x1c98] ss:$52 sps:$4 sm:$0xff]  }
 0x816   :  { %17603 = vmatpush1.bf16.msra.mxu0 %v24657_v51  ;;  %v24707_v51 = vld [vmem:[%s33260_s3 + $0x20a4] ss:$52 sps:$4 sm:$0xff]  }
 0x817   :  { %17604 = vmatprep.subr.bf16.mxu0 %v24665_v55  ;;  %v24705_v55 = vld [vmem:[%s33260_s3 + $0x20a0] ss:$52 sps:$4 sm:$0xff]  }
 0x818   :  { %17904 = vmatpush1.bf16.msra.mxu1 %v24654_v53  ;;  %v24704_v53 = vld [vmem:[%s33260_s3 + $0x1d04] ss:$52 sps:$4 sm:$0xff]  }
 0x819   :  { %17914 = vmatprep.subr.bf16.mxu1 %v24662_v59  ;;  %v24702_v59 = vld [vmem:[%s33260_s3 + $0x1d00] ss:$52 sps:$4 sm:$0xff]  }
 0x81a   :  { %17605 = vmatpush1.bf16.msra.mxu0 %v24663_v26  ;;  %v24713_v26 = vld [vmem:[%s33260_s3 + $0x210c] ss:$52 sps:$4 sm:$0xff]  }
 0x81b   :  { %17906 = vmatmul.mubr.bf16.vlgmr.msra.gmra.mrb[32].mxu1 %v28623_v60  ;;  %17606 = vmatprep.subr.bf16.mxu0 %v24671_v2  ;;  %v24708_v2 = vld [vmem:[%s33260_s3 + $0x1d68] ss:$52 sps:$4 sm:$0xff]  }
 0x81c   :  { %17915 = vmatpush1.bf16.msra.mxu1 %v24660_v57  ;;  %17946 = vmatprep.mubr.bf16.mxu1 %v28634_v1  ;;  %v24710_v57 = vld [vmem:[%s33260_s3 + $0x1d6c] ss:$52 sps:$4 sm:$0xff]  }
 0x81d   :  { %17916 = vmatprep.subr.bf16.mxu1 %v24668_v44  ;;  %v24711_v44 = vld [vmem:[%s33260_s3 + $0x2108] ss:$52 sps:$4 sm:$0xff]  }
 0x81e   :  { %17607 = vmatpush1.bf16.msra.mxu0 %v24669_v33  ;;  %v24719_v33 = vld [vmem:[%s33260_s3 + $0x2174] ss:$52 sps:$4 sm:$0xff]  }
 0x81f   :  { %17608 = vmatprep.subr.bf16.mxu0 %v24677_v47  ;;  %v24717_v47 = vld [vmem:[%s33260_s3 + $0x2170] ss:$52 sps:$4 sm:$0xff]  }
 0x820   :  { %17917 = vmatpush1.bf16.msra.mxu1 %v24666_v34  ;;  %v24716_v34 = vld [vmem:[%s33260_s3 + $0x1dd4] ss:$52 sps:$4 sm:$0xff]  }
 0x821   :  { %17918 = vmatprep.subr.bf16.mxu1 %v24674_v38  ;;  %v24714_v38 = vld [vmem:[%s33260_s3 + $0x1dd0] ss:$52 sps:$4 sm:$0xff]  }
 0x822   :  { %17609 = vmatpush1.bf16.msra.mxu0 %v24675_v37  ;;  %v24725_v37 = vld [vmem:[%s33260_s3 + $0x21dc] ss:$52 sps:$4 sm:$0xff]  }
 0x823   :  { %17610 = vmatprep.subr.bf16.mxu0 %v24683_v11  ;;  %v24723_v11 = vld [vmem:[%s33260_s3 + $0x21d8] ss:$52 sps:$4 sm:$0xff]  }
 0x824   :  { %17919 = vmatpush1.bf16.msra.mxu1 %v24672_v8  ;;  %v24722_v8 = vld [vmem:[%s33260_s3 + $0x1e3c] ss:$52 sps:$4 sm:$0xff]  }
 0x825   :  { %17920 = vmatprep.subr.bf16.mxu1 %v24680_v21  ;;  %v24720_v21 = vld [vmem:[%s33260_s3 + $0x1e38] ss:$52 sps:$4 sm:$0xff]  }
 0x826   :  { %17611 = vmatpush1.bf16.msra.mxu0 %v24681_v19  ;;  %v24731_v19 = vld [vmem:[%s33260_s3 + $0x2244] ss:$52 sps:$4 sm:$0xff]  }
 0x827   :  { %17612 = vmatprep.subr.bf16.mxu0 %v24689_v61  ;;  %v24729_v61 = vld [vmem:[%s33260_s3 + $0x2240] ss:$52 sps:$4 sm:$0xff]  }
 0x828   :  { %17921 = vmatpush1.bf16.msra.mxu1 %v24678_v41  ;;  %v24728_v41 = vld [vmem:[%s33260_s3 + $0x1ea4] ss:$52 sps:$4 sm:$0xff]  }
 0x829   :  { %17922 = vmatprep.subr.bf16.mxu1 %v24686_v9  ;;  %v24726_v9 = vld [vmem:[%s33260_s3 + $0x1ea0] ss:$52 sps:$4 sm:$0xff]  }
 0x82a   :  { %17613 = vmatpush1.bf16.msra.mxu0 %v24687_v0  ;;  %v24737_v0 = vld [vmem:[%s33260_s3 + $0x22ac] ss:$52 sps:$4 sm:$0xff]  }
 0x82b   :  { %17614 = vmatprep.subr.bf16.mxu0 %v24695_v35  ;;  %v24735_v35 = vld [vmem:[%s33260_s3 + $0x22a8] ss:$52 sps:$4 sm:$0xff]  }
 0x82c   :  { %17923 = vmatpush1.bf16.msra.mxu1 %v24684_v30  ;;  %v24734_v30 = vld [vmem:[%s33260_s3 + $0x1f0c] ss:$52 sps:$4 sm:$0xff]  }
 0x82d   :  { %17924 = vmatprep.subr.bf16.mxu1 %v24692_v17  ;;  %v24732_v17 = vld [vmem:[%s33260_s3 + $0x1f08] ss:$52 sps:$4 sm:$0xff]  }
 0x82e   :  { %17615 = vmatpush1.bf16.msra.mxu0 %v24693_v45  ;;  %v24743_v45 = vld [vmem:[%s33260_s3 + $0x2314] ss:$52 sps:$4 sm:$0xff]  }
 0x82f   :  { %17616 = vmatprep.subr.bf16.mxu0 %v24701_v48  ;;  %v24741_v48 = vld [vmem:[%s33260_s3 + $0x2310] ss:$52 sps:$4 sm:$0xff]  }
 0x830   :  { %17925 = vmatpush1.bf16.msra.mxu1 %v24690_v58  ;;  %v24740_v58 = vld [vmem:[%s33260_s3 + $0x1f74] ss:$52 sps:$4 sm:$0xff]  }
 0x831   :  { %17926 = vmatprep.subr.bf16.mxu1 %v24698_v22  ;;  %v24738_v22 = vld [vmem:[%s33260_s3 + $0x1f70] ss:$52 sps:$4 sm:$0xff]  }
 0x832   :  { %17617 = vmatpush1.bf16.msra.mxu0 %v24699_v32  ;;  %v24749_v32 = vld [vmem:[%s33260_s3 + $0x237c] ss:$52 sps:$4 sm:$0xff]  }
 0x833   :  { %17627 = vmatprep.subr.bf16.mxu0 %v24707_v51  ;;  %v24747_v51 = vld [vmem:[%s33260_s3 + $0x2378] ss:$52 sps:$4 sm:$0xff]  }
 0x834   :  { %17927 = vmatpush1.bf16.msra.mxu1 %v24696_v42  ;;  %v24746_v42 = vld [vmem:[%s33260_s3 + $0x1fdc] ss:$52 sps:$4 sm:$0xff]  }
 0x835   :  { %17928 = vmatprep.subr.bf16.mxu1 %v24704_v53  ;;  %17619 = vmatmul.mubr.bf16.vlgmr.msra.gmra.mrb[24].mxu0 %v28829_v25  ;;  %v24744_v53 = vld [vmem:[%s33260_s3 + $0x1fd8] ss:$52 sps:$4 sm:$0xff]  }
 0x836   :  { %17628 = vmatpush1.bf16.msra.mxu0 %v24705_v55  ;;  %17659 = vmatprep.mubr.bf16.mxu0 %v28840_v54  ;;  %v24755_v55 = vld [vmem:[%s33260_s3 + $0x23e4] ss:$52 sps:$4 sm:$0xff]  }
 0x837   :  { %17629 = vmatprep.subr.bf16.mxu0 %v24713_v26  ;;  %v24753_v26 = vld [vmem:[%s33260_s3 + $0x23e0] ss:$52 sps:$4 sm:$0xff]  }
 0x838   :  { %17929 = vmatpush1.bf16.msra.mxu1 %v24702_v59  ;;  %v24752_v59 = vld [vmem:[%s33260_s3 + $0x2044] ss:$52 sps:$4 sm:$0xff]  }
 0x839   :  { %17930 = vmatprep.subr.bf16.mxu1 %v24710_v57  ;;  %v24750_v57 = vld [vmem:[%s33260_s3 + $0x2040] ss:$52 sps:$4 sm:$0xff]  }
 0x83a   :  { %17630 = vmatpush1.bf16.msra.mxu0 %v24711_v44  ;;  %v24761_v44 = vld [vmem:[%s33260_s3 + $0x244c] ss:$52 sps:$4 sm:$0xff]  }
 0x83b   :  { %17631 = vmatprep.subr.bf16.mxu0 %v24719_v33  ;;  %v24759_v33 = vld [vmem:[%s33260_s3 + $0x2448] ss:$52 sps:$4 sm:$0xff]  }
 0x83c   :  { %17931 = vmatpush1.bf16.msra.mxu1 %v24708_v2  ;;  %v24758_v2 = vld [vmem:[%s33260_s3 + $0x20ac] ss:$52 sps:$4 sm:$0xff]  }
 0x83d   :  { %17932 = vmatprep.subr.bf16.mxu1 %v24716_v34  ;;  %v24756_v34 = vld [vmem:[%s33260_s3 + $0x20a8] ss:$52 sps:$4 sm:$0xff]  }
 0x83e   :  { %17632 = vmatpush1.bf16.msra.mxu0 %v24717_v47  ;;  %v24764_v47 = vld [vmem:[%s33260_s3 + $0x2114] ss:$52 sps:$4 sm:$0xff]  }
 0x83f   :  { %17633 = vmatprep.subr.bf16.mxu0 %v24725_v37  ;;  %v24765_v37 = vld [vmem:[%s33260_s3 + $0x24b0] ss:$52 sps:$4 sm:$0xff]  }
 0x840   :  { %17933 = vmatpush1.bf16.msra.mxu1 %v24714_v38  ;;  %v24767_v38 = vld [vmem:[%s33260_s3 + $0x24b4] ss:$52 sps:$4 sm:$0xff]  }
 0x841   :  { %17934 = vmatprep.subr.bf16.mxu1 %v24722_v8  ;;  %v24762_v8 = vld [vmem:[%s33260_s3 + $0x2110] ss:$52 sps:$4 sm:$0xff]  }
 0x842   :  { %17634 = vmatpush1.bf16.msra.mxu0 %v24723_v11  ;;  %v24773_v11 = vld [vmem:[%s33260_s3 + $0x251c] ss:$52 sps:$4 sm:$0xff]  }
 0x843   :  { %17635 = vmatprep.subr.bf16.mxu0 %v24731_v19  ;;  %v24771_v19 = vld [vmem:[%s33260_s3 + $0x2518] ss:$52 sps:$4 sm:$0xff]  }
 0x844   :  { %17935 = vmatpush1.bf16.msra.mxu1 %v24720_v21  ;;  %v24770_v21 = vld [vmem:[%s33260_s3 + $0x217c] ss:$52 sps:$4 sm:$0xff]  }
 0x845   :  { %17936 = vmatprep.subr.bf16.mxu1 %v24728_v41  ;;  %v24768_v41 = vld [vmem:[%s33260_s3 + $0x2178] ss:$52 sps:$4 sm:$0xff]  }
 0x846   :  { %17636 = vmatpush1.bf16.msra.mxu0 %v24729_v61  ;;  %v24779_v61 = vld [vmem:[%s33260_s3 + $0x2584] ss:$52 sps:$4 sm:$0xff]  }
 0x847   :  { %17637 = vmatprep.subr.bf16.mxu0 %v24737_v0  ;;  %v24777_v0 = vld [vmem:[%s33260_s3 + $0x2580] ss:$52 sps:$4 sm:$0xff]  }
 0x848   :  { %17937 = vmatpush1.bf16.msra.mxu1 %v24726_v9  ;;  %v24776_v9 = vld [vmem:[%s33260_s3 + $0x21e4] ss:$52 sps:$4 sm:$0xff]  }
 0x849   :  { %17938 = vmatprep.subr.bf16.mxu1 %v24734_v30  ;;  %v24774_v30 = vld [vmem:[%s33260_s3 + $0x21e0] ss:$52 sps:$4 sm:$0xff]  }
 0x84a   :  { %17638 = vmatpush1.bf16.msra.mxu0 %v24735_v35  ;;  %v24785_v35 = vld [vmem:[%s33260_s3 + $0x25ec] ss:$52 sps:$4 sm:$0xff]  }
 0x84b   :  { %17639 = vmatprep.subr.bf16.mxu0 %v24743_v45  ;;  %v24783_v45 = vld [vmem:[%s33260_s3 + $0x25e8] ss:$52 sps:$4 sm:$0xff]  }
 0x84c   :  { %17939 = vmatpush1.bf16.msra.mxu1 %v24732_v17  ;;  %v24782_v17 = vld [vmem:[%s33260_s3 + $0x224c] ss:$52 sps:$4 sm:$0xff]  }
 0x84d   :  { %17940 = vmatprep.subr.bf16.mxu1 %v24740_v58  ;;  %v24780_v58 = vld [vmem:[%s33260_s3 + $0x2248] ss:$52 sps:$4 sm:$0xff]  }
 0x84e   :  { %17640 = vmatpush1.bf16.msra.mxu0 %v24741_v48  ;;  %v24791_v48 = vld [vmem:[%s33260_s3 + $0x2654] ss:$52 sps:$4 sm:$0xff]  }
 0x84f   :  { %17641 = vmatprep.subr.bf16.mxu0 %v24749_v32  ;;  %v24789_v32 = vld [vmem:[%s33260_s3 + $0x2650] ss:$52 sps:$4 sm:$0xff]  }
 0x850   :  { %17941 = vmatpush1.bf16.msra.mxu1 %v24738_v22  ;;  %v24788_v22 = vld [vmem:[%s33260_s3 + $0x22b4] ss:$52 sps:$4 sm:$0xff]  }
 0x851   :  { %17942 = vmatprep.subr.bf16.mxu1 %v24746_v42  ;;  %v24786_v42 = vld [vmem:[%s33260_s3 + $0x22b0] ss:$52 sps:$4 sm:$0xff]  }
 0x852   :  { %17642 = vmatpush1.bf16.msra.mxu0 %v24747_v51  ;;  %v24797_v51 = vld [vmem:[%s33260_s3 + $0x26bc] ss:$52 sps:$4 sm:$0xff]  }
 0x853   :  { %17643 = vmatprep.subr.bf16.mxu0 %v24755_v55  ;;  %v24795_v55 = vld [vmem:[%s33260_s3 + $0x26b8] ss:$52 sps:$4 sm:$0xff]  }
 0x854   :  { %17943 = vmatpush1.bf16.msra.mxu1 %v24744_v53  ;;  %v24794_v53 = vld [vmem:[%s33260_s3 + $0x231c] ss:$52 sps:$4 sm:$0xff]  }
 0x855   :  { %17944 = vmatprep.subr.bf16.mxu1 %v24752_v59  ;;  %v24792_v59 = vld [vmem:[%s33260_s3 + $0x2318] ss:$52 sps:$4 sm:$0xff]  }
 0x856   :  { %17644 = vmatpush1.bf16.msra.mxu0 %v24753_v26  ;;  %v24803_v26 = vld [vmem:[%s33260_s3 + $0x2724] ss:$52 sps:$4 sm:$0xff]  }
 0x857   :  { %17645 = vmatprep.subr.bf16.mxu0 %v24761_v44  ;;  %v24801_v44 = vld [vmem:[%s33260_s3 + $0x2720] ss:$52 sps:$4 sm:$0xff]  }
 0x858   :  { %17945 = vmatpush1.bf16.msra.mxu1 %v24750_v57  ;;  %v24800_v57 = vld [vmem:[%s33260_s3 + $0x2384] ss:$52 sps:$4 sm:$0xff]  }
 0x859   :  { %17955 = vmatprep.subr.bf16.mxu1 %v24758_v2  ;;  %v24798_v2 = vld [vmem:[%s33260_s3 + $0x2380] ss:$52 sps:$4 sm:$0xff]  }
 0x85a   :  { %17646 = vmatpush1.bf16.msra.mxu0 %v24759_v33  ;;  %v24809_v33 = vld [vmem:[%s33260_s3 + $0x278c] ss:$52 sps:$4 sm:$0xff]  }
 0x85b   :  { %17947 = vmatmul.mubr.bf16.vlgmr.msra.gmra.mrb[32].mxu1 %v28829_v25  ;;  %17647 = vmatprep.subr.bf16.mxu0 %v24767_v38  ;;  %v24804_v38 = vld [vmem:[%s33260_s3 + $0x23e8] ss:$52 sps:$4 sm:$0xff]  }
 0x85c   :  { %17956 = vmatpush1.bf16.msra.mxu1 %v24756_v34  ;;  %17987 = vmatprep.mubr.bf16.mxu1 %v28840_v54  ;;  %v24806_v34 = vld [vmem:[%s33260_s3 + $0x23ec] ss:$52 sps:$4 sm:$0xff]  }
 0x85d   :  { %17957 = vmatprep.subr.bf16.mxu1 %v24764_v47  ;;  %v24807_v47 = vld [vmem:[%s33260_s3 + $0x2788] ss:$52 sps:$4 sm:$0xff]  }
 0x85e   :  { %17648 = vmatpush1.bf16.msra.mxu0 %v24765_v37  ;;  %v24815_v37 = vld [vmem:[%s33260_s3 + $0x27f4] ss:$52 sps:$4 sm:$0xff]  }
 0x85f   :  { %17649 = vmatprep.subr.bf16.mxu0 %v24773_v11  ;;  %v24813_v11 = vld [vmem:[%s33260_s3 + $0x27f0] ss:$52 sps:$4 sm:$0xff]  }
 0x860   :  { %17958 = vmatpush1.bf16.msra.mxu1 %v24762_v8  ;;  %v24812_v8 = vld [vmem:[%s33260_s3 + $0x2454] ss:$52 sps:$4 sm:$0xff]  }
 0x861   :  { %17959 = vmatprep.subr.bf16.mxu1 %v24770_v21  ;;  %v24810_v21 = vld [vmem:[%s33260_s3 + $0x2450] ss:$52 sps:$4 sm:$0xff]  }
 0x862   :  { %17650 = vmatpush1.bf16.msra.mxu0 %v24771_v19  ;;  %v24821_v19 = vld [vmem:[%s33260_s3 + $0x285c] ss:$52 sps:$4 sm:$0xff]  }
 0x863   :  { %17651 = vmatprep.subr.bf16.mxu0 %v24779_v61  ;;  %v24819_v61 = vld [vmem:[%s33260_s3 + $0x2858] ss:$52 sps:$4 sm:$0xff]  }
 0x864   :  { %17960 = vmatpush1.bf16.msra.mxu1 %v24768_v41  ;;  %v24818_v41 = vld [vmem:[%s33260_s3 + $0x24bc] ss:$52 sps:$4 sm:$0xff]  }
 0x865   :  { %17961 = vmatprep.subr.bf16.mxu1 %v24776_v9  ;;  %v24816_v9 = vld [vmem:[%s33260_s3 + $0x24b8] ss:$52 sps:$4 sm:$0xff]  }
 0x866   :  { %17652 = vmatpush1.bf16.msra.mxu0 %v24777_v0  ;;  %v24827_v0 = vld [vmem:[%s33260_s3 + $0x28c4] ss:$52 sps:$4 sm:$0xff]  }
 0x867   :  { %17653 = vmatprep.subr.bf16.mxu0 %v24785_v35  ;;  %v24825_v35 = vld [vmem:[%s33260_s3 + $0x28c0] ss:$52 sps:$4 sm:$0xff]  }
 0x868   :  { %17962 = vmatpush1.bf16.msra.mxu1 %v24774_v30  ;;  %v24824_v30 = vld [vmem:[%s33260_s3 + $0x2524] ss:$52 sps:$4 sm:$0xff]  }
 0x869   :  { %17963 = vmatprep.subr.bf16.mxu1 %v24782_v17  ;;  %v24822_v17 = vld [vmem:[%s33260_s3 + $0x2520] ss:$52 sps:$4 sm:$0xff]  }
 0x86a   :  { %17654 = vmatpush1.bf16.msra.mxu0 %v24783_v45  ;;  %v24833_v45 = vld [vmem:[%s33260_s3 + $0x292c] ss:$52 sps:$4 sm:$0xff]  }
 0x86b   :  { %17655 = vmatprep.subr.bf16.mxu0 %v24791_v48  ;;  %v24831_v48 = vld [vmem:[%s33260_s3 + $0x2928] ss:$52 sps:$4 sm:$0xff]  }
 0x86c   :  { %17964 = vmatpush1.bf16.msra.mxu1 %v24780_v58  ;;  %v24830_v58 = vld [vmem:[%s33260_s3 + $0x258c] ss:$52 sps:$4 sm:$0xff]  }
 0x86d   :  { %17965 = vmatprep.subr.bf16.mxu1 %v24788_v22  ;;  %v24828_v22 = vld [vmem:[%s33260_s3 + $0x2588] ss:$52 sps:$4 sm:$0xff]  }
 0x86e   :  { %17656 = vmatpush1.bf16.msra.mxu0 %v24789_v32  ;;  %v24839_v32 = vld [vmem:[%s33260_s3 + $0x2994] ss:$52 sps:$4 sm:$0xff]  }
 0x86f   :  { %17657 = vmatprep.subr.bf16.mxu0 %v24797_v51  ;;  %v24837_v51 = vld [vmem:[%s33260_s3 + $0x2990] ss:$52 sps:$4 sm:$0xff]  }
 0x870   :  { %17966 = vmatpush1.bf16.msra.mxu1 %v24786_v42  ;;  %v24836_v42 = vld [vmem:[%s33260_s3 + $0x25f4] ss:$52 sps:$4 sm:$0xff]  }
 0x871   :  { %17967 = vmatprep.subr.bf16.mxu1 %v24794_v53  ;;  %v24834_v53 = vld [vmem:[%s33260_s3 + $0x25f0] ss:$52 sps:$4 sm:$0xff]  }
 0x872   :  { %17658 = vmatpush1.bf16.msra.mxu0 %v24795_v55  ;;  %v24845_v55 = vld [vmem:[%s33260_s3 + $0x29fc] ss:$52 sps:$4 sm:$0xff]  }
 0x873   :  { %17668 = vmatprep.subr.bf16.mxu0 %v24803_v26  ;;  %v24843_v26 = vld [vmem:[%s33260_s3 + $0x29f8] ss:$52 sps:$4 sm:$0xff]  }
 0x874   :  { %17968 = vmatpush1.bf16.msra.mxu1 %v24792_v59  ;;  %v24842_v59 = vld [vmem:[%s33260_s3 + $0x265c] ss:$52 sps:$4 sm:$0xff]  }
 0x875   :  { %17969 = vmatprep.subr.bf16.mxu1 %v24800_v57  ;;  %17660 = vmatmul.mubr.bf16.vlgmr.msra.gmra.mrb[24].mxu0 %v29040_v40  ;;  %v24840_v57 = vld [vmem:[%s33260_s3 + $0x2658] ss:$52 sps:$4 sm:$0xff]  }
 0x876   :  { %17669 = vmatpush1.bf16.msra.mxu0 %v24801_v44  ;;  %17700 = vmatprep.mubr.bf16.mxu0 %v29051_v16  ;;  %v24851_v44 = vld [vmem:[%s33260_s3 + $0x2a64] ss:$52 sps:$4 sm:$0xff]  }
 0x877   :  { %17670 = vmatprep.subr.bf16.mxu0 %v24809_v33  ;;  %v24849_v33 = vld [vmem:[%s33260_s3 + $0x2a60] ss:$52 sps:$4 sm:$0xff]  }
 0x878   :  { %17970 = vmatpush1.bf16.msra.mxu1 %v24798_v2  ;;  %v24848_v2 = vld [vmem:[%s33260_s3 + $0x26c4] ss:$52 sps:$4 sm:$0xff]  }
 0x879   :  { %17971 = vmatprep.subr.bf16.mxu1 %v24806_v34  ;;  %v24846_v34 = vld [vmem:[%s33260_s3 + $0x26c0] ss:$52 sps:$4 sm:$0xff]  }
 0x87a   :  { %17671 = vmatpush1.bf16.msra.mxu0 %v24807_v47  ;;  %v24857_v47 = vld [vmem:[%s33260_s3 + $0x2acc] ss:$52 sps:$4 sm:$0xff]  }
 0x87b   :  { %17672 = vmatprep.subr.bf16.mxu0 %v24815_v37  ;;  %v24855_v37 = vld [vmem:[%s33260_s3 + $0x2ac8] ss:$52 sps:$4 sm:$0xff]  }
 0x87c   :  { %17972 = vmatpush1.bf16.msra.mxu1 %v24804_v38  ;;  %v24854_v38 = vld [vmem:[%s33260_s3 + $0x272c] ss:$52 sps:$4 sm:$0xff]  }
 0x87d   :  { %17973 = vmatprep.subr.bf16.mxu1 %v24812_v8  ;;  %v24852_v8 = vld [vmem:[%s33260_s3 + $0x2728] ss:$52 sps:$4 sm:$0xff]  }
 0x87e   :  { %17673 = vmatpush1.bf16.msra.mxu0 %v24813_v11  ;;  %v24860_v11 = vld [vmem:[%s33260_s3 + $0x2794] ss:$52 sps:$4 sm:$0xff]  }
 0x87f   :  { %17674 = vmatprep.subr.bf16.mxu0 %v24821_v19  ;;  %v24861_v19 = vld [vmem:[%s33260_s3 + $0x2b30] ss:$52 sps:$4 sm:$0xff]  }
 0x880   :  { %17974 = vmatpush1.bf16.msra.mxu1 %v24810_v21  ;;  %v24863_v21 = vld [vmem:[%s33260_s3 + $0x2b34] ss:$52 sps:$4 sm:$0xff]  }
 0x881   :  { %17975 = vmatprep.subr.bf16.mxu1 %v24818_v41  ;;  %v24858_v41 = vld [vmem:[%s33260_s3 + $0x2790] ss:$52 sps:$4 sm:$0xff]  }
 0x882   :  { %17675 = vmatpush1.bf16.msra.mxu0 %v24819_v61  ;;  %v24869_v61 = vld [vmem:[%s33260_s3 + $0x2b9c] ss:$52 sps:$4 sm:$0xff]  }
 0x883   :  { %17676 = vmatprep.subr.bf16.mxu0 %v24827_v0  ;;  %v24867_v0 = vld [vmem:[%s33260_s3 + $0x2b98] ss:$52 sps:$4 sm:$0xff]  }
 0x884   :  { %17976 = vmatpush1.bf16.msra.mxu1 %v24816_v9  ;;  %v24866_v9 = vld [vmem:[%s33260_s3 + $0x27fc] ss:$52 sps:$4 sm:$0xff]  }
 0x885   :  { %17977 = vmatprep.subr.bf16.mxu1 %v24824_v30  ;;  %v24864_v30 = vld [vmem:[%s33260_s3 + $0x27f8] ss:$52 sps:$4 sm:$0xff]  }
 0x886   :  { %17677 = vmatpush1.bf16.msra.mxu0 %v24825_v35  ;;  %v24875_v35 = vld [vmem:[%s33260_s3 + $0x2c04] ss:$52 sps:$4 sm:$0xff]  }
 0x887   :  { %17678 = vmatprep.subr.bf16.mxu0 %v24833_v45  ;;  %v24873_v45 = vld [vmem:[%s33260_s3 + $0x2c00] ss:$52 sps:$4 sm:$0xff]  }
 0x888   :  { %17978 = vmatpush1.bf16.msra.mxu1 %v24822_v17  ;;  %v24872_v17 = vld [vmem:[%s33260_s3 + $0x2864] ss:$52 sps:$4 sm:$0xff]  }
 0x889   :  { %17979 = vmatprep.subr.bf16.mxu1 %v24830_v58  ;;  %v24870_v58 = vld [vmem:[%s33260_s3 + $0x2860] ss:$52 sps:$4 sm:$0xff]  }
 0x88a   :  { %17679 = vmatpush1.bf16.msra.mxu0 %v24831_v48  ;;  %v24881_v48 = vld [vmem:[%s33260_s3 + $0x2c6c] ss:$52 sps:$4 sm:$0xff]  }
 0x88b   :  { %17680 = vmatprep.subr.bf16.mxu0 %v24839_v32  ;;  %v24879_v32 = vld [vmem:[%s33260_s3 + $0x2c68] ss:$52 sps:$4 sm:$0xff]  }
 0x88c   :  { %17980 = vmatpush1.bf16.msra.mxu1 %v24828_v22  ;;  %v24878_v22 = vld [vmem:[%s33260_s3 + $0x28cc] ss:$52 sps:$4 sm:$0xff]  }
 0x88d   :  { %17981 = vmatprep.subr.bf16.mxu1 %v24836_v42  ;;  %v24876_v42 = vld [vmem:[%s33260_s3 + $0x28c8] ss:$52 sps:$4 sm:$0xff]  }
 0x88e   :  { %17681 = vmatpush1.bf16.msra.mxu0 %v24837_v51  ;;  %v24887_v51 = vld [vmem:[%s33260_s3 + $0x2cd4] ss:$52 sps:$4 sm:$0xff]  }
 0x88f   :  { %17682 = vmatprep.subr.bf16.mxu0 %v24845_v55  ;;  %v24885_v55 = vld [vmem:[%s33260_s3 + $0x2cd0] ss:$52 sps:$4 sm:$0xff]  }
 0x890   :  { %17982 = vmatpush1.bf16.msra.mxu1 %v24834_v53  ;;  %v24884_v53 = vld [vmem:[%s33260_s3 + $0x2934] ss:$52 sps:$4 sm:$0xff]  }
 0x891   :  { %17983 = vmatprep.subr.bf16.mxu1 %v24842_v59  ;;  %v24882_v59 = vld [vmem:[%s33260_s3 + $0x2930] ss:$52 sps:$4 sm:$0xff]  }
 0x892   :  { %17683 = vmatpush1.bf16.msra.mxu0 %v24843_v26  ;;  %v24893_v26 = vld [vmem:[%s33260_s3 + $0x2d3c] ss:$52 sps:$4 sm:$0xff]  }
 0x893   :  { %17684 = vmatprep.subr.bf16.mxu0 %v24851_v44  ;;  %v24891_v44 = vld [vmem:[%s33260_s3 + $0x2d38] ss:$52 sps:$4 sm:$0xff]  }
 0x894   :  { %17984 = vmatpush1.bf16.msra.mxu1 %v24840_v57  ;;  %v24890_v57 = vld [vmem:[%s33260_s3 + $0x299c] ss:$52 sps:$4 sm:$0xff]  }
 0x895   :  { %17985 = vmatprep.subr.bf16.mxu1 %v24848_v2  ;;  %v24888_v2 = vld [vmem:[%s33260_s3 + $0x2998] ss:$52 sps:$4 sm:$0xff]  }
 0x896   :  { %17685 = vmatpush1.bf16.msra.mxu0 %v24849_v33  ;;  %v24899_v33 = vld [vmem:[%s33260_s3 + $0x2da4] ss:$52 sps:$4 sm:$0xff]  }
 0x897   :  { %17686 = vmatprep.subr.bf16.mxu0 %v24857_v47  ;;  %v24897_v47 = vld [vmem:[%s33260_s3 + $0x2da0] ss:$52 sps:$4 sm:$0xff]  }
 0x898   :  { %17986 = vmatpush1.bf16.msra.mxu1 %v24846_v34  ;;  %v24896_v34 = vld [vmem:[%s33260_s3 + $0x2a04] ss:$52 sps:$4 sm:$0xff]  }
 0x899   :  { %17996 = vmatprep.subr.bf16.mxu1 %v24854_v38  ;;  %v24894_v38 = vld [vmem:[%s33260_s3 + $0x2a00] ss:$52 sps:$4 sm:$0xff]  }
 0x89a   :  { %17687 = vmatpush1.bf16.msra.mxu0 %v24855_v37  ;;  %v24905_v37 = vld [vmem:[%s33260_s3 + $0x2e0c] ss:$52 sps:$4 sm:$0xff]  }
 0x89b   :  { %17988 = vmatmul.mubr.bf16.vlgmr.msra.gmra.mrb[32].mxu1 %v29040_v40  ;;  %17688 = vmatprep.subr.bf16.mxu0 %v24863_v21  ;;  %v24900_v21 = vld [vmem:[%s33260_s3 + $0x2a68] ss:$52 sps:$4 sm:$0xff]  }
 0x89c   :  { %17997 = vmatpush1.bf16.msra.mxu1 %v24852_v8  ;;  %18028 = vmatprep.mubr.bf16.mxu1 %v29051_v16  ;;  %v24902_v8 = vld [vmem:[%s33260_s3 + $0x2a6c] ss:$52 sps:$4 sm:$0xff]  }
 0x89d   :  { %17998 = vmatprep.subr.bf16.mxu1 %v24860_v11  ;;  %v24903_v11 = vld [vmem:[%s33260_s3 + $0x2e08] ss:$52 sps:$4 sm:$0xff]  }
 0x89e   :  { %17689 = vmatpush1.bf16.msra.mxu0 %v24861_v19  ;;  %v24911_v19 = vld [vmem:[%s33260_s3 + $0x2e74] ss:$52 sps:$4 sm:$0xff]  }
 0x89f   :  { %17690 = vmatprep.subr.bf16.mxu0 %v24869_v61  ;;  %v24909_v61 = vld [vmem:[%s33260_s3 + $0x2e70] ss:$52 sps:$4 sm:$0xff]  }
 0x8a0   :  { %17999 = vmatpush1.bf16.msra.mxu1 %v24858_v41  ;;  %v24908_v41 = vld [vmem:[%s33260_s3 + $0x2ad4] ss:$52 sps:$4 sm:$0xff]  }
 0x8a1   :  { %18000 = vmatprep.subr.bf16.mxu1 %v24866_v9  ;;  %v24906_v9 = vld [vmem:[%s33260_s3 + $0x2ad0] ss:$52 sps:$4 sm:$0xff]  }
 0x8a2   :  { %17691 = vmatpush1.bf16.msra.mxu0 %v24867_v0  ;;  %v24917_v0 = vld [vmem:[%s33260_s3 + $0x2edc] ss:$52 sps:$4 sm:$0xff]  }
 0x8a3   :  { %17692 = vmatprep.subr.bf16.mxu0 %v24875_v35  ;;  %v24915_v35 = vld [vmem:[%s33260_s3 + $0x2ed8] ss:$52 sps:$4 sm:$0xff]  }
 0x8a4   :  { %18001 = vmatpush1.bf16.msra.mxu1 %v24864_v30  ;;  %v24914_v30 = vld [vmem:[%s33260_s3 + $0x2b3c] ss:$52 sps:$4 sm:$0xff]  }
 0x8a5   :  { %18002 = vmatprep.subr.bf16.mxu1 %v24872_v17  ;;  %v24912_v17 = vld [vmem:[%s33260_s3 + $0x2b38] ss:$52 sps:$4 sm:$0xff]  }
 0x8a6   :  { %17693 = vmatpush1.bf16.msra.mxu0 %v24873_v45  ;;  %v24923_v45 = vld [vmem:[%s33260_s3 + $0x2f44] ss:$52 sps:$4 sm:$0xff]  }
 0x8a7   :  { %17694 = vmatprep.subr.bf16.mxu0 %v24881_v48  ;;  %v24921_v48 = vld [vmem:[%s33260_s3 + $0x2f40] ss:$52 sps:$4 sm:$0xff]  }
 0x8a8   :  { %18003 = vmatpush1.bf16.msra.mxu1 %v24870_v58  ;;  %v24920_v58 = vld [vmem:[%s33260_s3 + $0x2ba4] ss:$52 sps:$4 sm:$0xff]  }
 0x8a9   :  { %18004 = vmatprep.subr.bf16.mxu1 %v24878_v22  ;;  %v24918_v22 = vld [vmem:[%s33260_s3 + $0x2ba0] ss:$52 sps:$4 sm:$0xff]  }
 0x8aa   :  { %17695 = vmatpush1.bf16.msra.mxu0 %v24879_v32  ;;  %v24929_v32 = vld [vmem:[%s33260_s3 + $0x2fac] ss:$52 sps:$4 sm:$0xff]  }
 0x8ab   :  { %17696 = vmatprep.subr.bf16.mxu0 %v24887_v51  ;;  %v24927_v51 = vld [vmem:[%s33260_s3 + $0x2fa8] ss:$52 sps:$4 sm:$0xff]  }
 0x8ac   :  { %18005 = vmatpush1.bf16.msra.mxu1 %v24876_v42  ;;  %v24926_v42 = vld [vmem:[%s33260_s3 + $0x2c0c] ss:$52 sps:$4 sm:$0xff]  }
 0x8ad   :  { %18006 = vmatprep.subr.bf16.mxu1 %v24884_v53  ;;  %v24924_v53 = vld [vmem:[%s33260_s3 + $0x2c08] ss:$52 sps:$4 sm:$0xff]  }
 0x8ae   :  { %17697 = vmatpush1.bf16.msra.mxu0 %v24885_v55  ;;  %v24935_v55 = vld [vmem:[%s33260_s3 + $0x3014] ss:$52 sps:$4 sm:$0xff]  }
 0x8af   :  { %17698 = vmatprep.subr.bf16.mxu0 %v24893_v26  ;;  %v24933_v26 = vld [vmem:[%s33260_s3 + $0x3010] ss:$52 sps:$4 sm:$0xff]  }
 0x8b0   :  { %18007 = vmatpush1.bf16.msra.mxu1 %v24882_v59  ;;  %v24932_v59 = vld [vmem:[%s33260_s3 + $0x2c74] ss:$52 sps:$4 sm:$0xff]  }
 0x8b1   :  { %18008 = vmatprep.subr.bf16.mxu1 %v24890_v57  ;;  %v24930_v57 = vld [vmem:[%s33260_s3 + $0x2c70] ss:$52 sps:$4 sm:$0xff]  }
 0x8b2   :  { %17699 = vmatpush1.bf16.msra.mxu0 %v24891_v44  ;;  %v24941_v44 = vld [vmem:[%s33260_s3 + $0x307c] ss:$52 sps:$4 sm:$0xff]  }
 0x8b3   :  { %17709 = vmatprep.subr.bf16.mxu0 %v24899_v33  ;;  %v24939_v33 = vld [vmem:[%s33260_s3 + $0x3078] ss:$52 sps:$4 sm:$0xff]  }
 0x8b4   :  { %18009 = vmatpush1.bf16.msra.mxu1 %v24888_v2  ;;  %v24938_v2 = vld [vmem:[%s33260_s3 + $0x2cdc] ss:$52 sps:$4 sm:$0xff]  }
 0x8b5   :  { %18010 = vmatprep.subr.bf16.mxu1 %v24896_v34  ;;  %17701 = vmatmul.mubr.bf16.vlgmr.msra.gmra.mrb[24].mxu0 %v29249_v36  ;;  %v24936_v34 = vld [vmem:[%s33260_s3 + $0x2cd8] ss:$52 sps:$4 sm:$0xff]  }
 0x8b6   :  { %17710 = vmatpush1.bf16.msra.mxu0 %v24897_v47  ;;  %22040 = vmatprep.mubr.msk.bf16.mxu0 %vm16066_vm1, %v29257_v18  ;;  %v24947_v47 = vld [vmem:[%s33260_s3 + $0x30e4] ss:$52 sps:$4 sm:$0xff]  }
 0x8b7   :  { %17711 = vmatprep.subr.bf16.mxu0 %v24905_v37  ;;  %v24945_v37 = vld [vmem:[%s33260_s3 + $0x30e0] ss:$52 sps:$4 sm:$0xff]  }
 0x8b8   :  { %18011 = vmatpush1.bf16.msra.mxu1 %v24894_v38  ;;  %v24944_v38 = vld [vmem:[%s33260_s3 + $0x2d44] ss:$52 sps:$4 sm:$0xff]  }
 0x8b9   :  { %18012 = vmatprep.subr.bf16.mxu1 %v24902_v8  ;;  %v24942_v8 = vld [vmem:[%s33260_s3 + $0x2d40] ss:$52 sps:$4 sm:$0xff]  }
 0x8ba   :  { %17712 = vmatpush1.bf16.msra.mxu0 %v24903_v11  ;;  %v24953_v11 = vld [vmem:[%s33260_s3 + $0x314c] ss:$52 sps:$4 sm:$0xff]  }
 0x8bb   :  { %17713 = vmatprep.subr.bf16.mxu0 %v24911_v19  ;;  %v7909_v19 = vld [vmem:[%s33260_s3 + $0x31b0] sm:$0xff] }
 0x8bc   :  { %18013 = vmatpush1.bf16.msra.mxu1 %v24900_v21  ;;  %v24950_v21 = vld [vmem:[%s33260_s3 + $0x2dac] ss:$52 sps:$4 sm:$0xff]  }
 0x8bd   :  { %18014 = vmatprep.subr.bf16.mxu1 %v24908_v41  ;;  %v24951_v41 = vld [vmem:[%s33260_s3 + $0x3148] ss:$52 sps:$4 sm:$0xff]  }
 0x8be   :  { %17714 = vmatpush1.bf16.msra.mxu0 %v24909_v61  ;;  %v24948_v61 = vld [vmem:[%s33260_s3 + $0x2da8] ss:$52 sps:$4 sm:$0xff]  }
 0x8bf   :  { %17715 = vmatprep.subr.bf16.mxu0 %v24917_v0  ;;  %v24956_v0 = vld [vmem:[%s33260_s3 + $0x2e14] ss:$52 sps:$4 sm:$0xff]  }
 0x8c0   :  { %18015 = vmatpush1.bf16.msra.mxu1 %v24906_v9  ;;  %v22026_v9 = vcombine.low %v7909_v19, %v7909_v19 }
 0x8c1   :  { %18016 = vmatprep.subr.bf16.mxu1 %v24914_v30  ;;  %v22027_v30 = vcombine.high %v7909_v19, %v7909_v19  ;;  %v24984_v19 = vld [vmem:[%s33260_s3 + $0x3080] ss:$52 sps:$4 sm:$0xff]  }
 0x8c2   :  { %17716 = vmatpush1.bf16.msra.mxu0 %v24915_v35  ;;  %v24954_v35 = vld [vmem:[%s33260_s3 + $0x2e10] ss:$52 sps:$4 sm:$0xff]  }
 0x8c3   :  { %17717 = vmatprep.subr.bf16.mxu0 %v24923_v45  ;;  %v24962_v45 = vld [vmem:[%s33260_s3 + $0x370] ss:$52 sps:$4 sm:$0xff]  }
 0x8c4   :  { %18017 = vmatpush1.bf16.msra.mxu1 %v24912_v17  ;;  %v16096_v17 = vsel %vm16070_vm2, %v22026_v9, 0  ;;  %v7910_v9 = vld [vmem:[%s33260_s3 + $0x31b8] sm:$0xff] }
 0x8c5   :  { %18018 = vmatprep.subr.bf16.mxu1 %v24920_v58  ;;  %v24961_v58 = vld [vmem:[%s33260_s3 + $0x2e7c] ss:$52 sps:$4 sm:$0xff]  }
 0x8c6   :  { %17718 = vmatpush1.bf16.msra.mxu0 %v24921_v48  ;;  %v24963_v48 = vld [vmem:[%s33260_s3 + $0x30] ss:$52 sps:$4 sm:$0xff]  }
 0x8c7   :  { %17719 = vmatprep.subr.bf16.mxu0 %v24929_v32  ;;  %v24967_v32 = vld [vmem:[%s33260_s3 + $0x3d8] ss:$52 sps:$4 sm:$0xff]  }
 0x8c8   :  { %18019 = vmatpush1.bf16.msra.mxu1 %v24918_v22  ;;  %v24959_v22 = vld [vmem:[%s33260_s3 + $0x2e78] ss:$52 sps:$4 sm:$0xff]  }
 0x8c9   :  { %18020 = vmatprep.subr.bf16.mxu1 %v24926_v42  ;;  %v24966_v42 = vld [vmem:[%s33260_s3 + $0x2ee4] ss:$52 sps:$4 sm:$0xff]  }
 0x8ca   :  { %17720 = vmatpush1.bf16.msra.mxu0 %v24927_v51  ;;  %v24964_v51 = vld [vmem:[%s33260_s3 + $0x2ee0] ss:$52 sps:$4 sm:$0xff]  }
 0x8cb   :  { %17721 = vmatprep.subr.bf16.mxu0 %v24935_v55  ;;  %v24971_v55 = vld [vmem:[%s33260_s3 + $0x2f4c] ss:$52 sps:$4 sm:$0xff]  }
 0x8cc   :  { %18021 = vmatpush1.bf16.msra.mxu1 %v24924_v53  ;;  %v24968_v53 = vld [vmem:[%s33260_s3 + $0x98] ss:$52 sps:$4 sm:$0xff]  }
 0x8cd   :  { %18022 = vmatprep.subr.bf16.mxu1 %v24932_v59  ;;  %v24972_v59 = vld [vmem:[%s33260_s3 + $0x440] ss:$52 sps:$4 sm:$0xff]  }
 0x8ce   :  { %17722 = vmatpush1.bf16.msra.mxu0 %v24933_v26  ;;  %v24969_v26 = vld [vmem:[%s33260_s3 + $0x2f48] ss:$52 sps:$4 sm:$0xff]  }
 0x8cf   :  { %17723 = vmatprep.subr.bf16.mxu0 %v24941_v44  ;;  %v24977_v44 = vld [vmem:[%s33260_s3 + $0x4a8] ss:$52 sps:$4 sm:$0xff]  }
 0x8d0   :  { %18023 = vmatpush1.bf16.msra.mxu1 %v24930_v57  ;;  %v24973_v57 = vld [vmem:[%s33260_s3 + $0x100] ss:$52 sps:$4 sm:$0xff]  }
 0x8d1   :  { %18024 = vmatprep.subr.bf16.mxu1 %v24938_v2  ;;  %v24978_v2 = vld [vmem:[%s33260_s3 + $0x168] ss:$52 sps:$4 sm:$0xff]  }
 0x8d2   :  { %17724 = vmatpush1.bf16.msra.mxu0 %v24939_v33  ;;  %v24974_v33 = vld [vmem:[%s33260_s3 + $0x2fb0] ss:$52 sps:$4 sm:$0xff]  }
 0x8d3   :  { %17725 = vmatprep.subr.bf16.mxu0 %v24947_v47  ;;  %v24982_v47 = vld [vmem:[%s33260_s3 + $0x510] ss:$52 sps:$4 sm:$0xff]  }
 0x8d4   :  { %18025 = vmatpush1.bf16.msra.mxu1 %v24936_v34  ;;  %v24981_v34 = vld [vmem:[%s33260_s3 + $0x301c] ss:$52 sps:$4 sm:$0xff]  }
 0x8d5   :  { %18026 = vmatprep.subr.bf16.mxu1 %v24944_v38  ;;  %v24983_v38 = vld [vmem:[%s33260_s3 + $0x1d0] ss:$52 sps:$4 sm:$0xff]  }
 0x8d6   :  { %17726 = vmatpush1.bf16.msra.mxu0 %v24945_v37  ;;  %v24979_v37 = vld [vmem:[%s33260_s3 + $0x3018] ss:$52 sps:$4 sm:$0xff]  }
 0x8d7   :  { %17727 = vmatprep.subr.bf16.mxu0 %v24953_v11  ;;  %v24987_v11 = vld [vmem:[%s33260_s3 + $0x578] ss:$52 sps:$4 sm:$0xff]  }
 0x8d8   :  { %18027 = vmatpush1.bf16.msra.mxu1 %v24942_v8  ;;  %v24986_v8 = vld [vmem:[%s33260_s3 + $0x3084] ss:$52 sps:$4 sm:$0xff]  }
 0x8d9   :  { %18037 = vmatprep.subr.bf16.mxu1 %v24950_v21  ;;  %v24988_v21 = vld [vmem:[%s33260_s3 + $0x238] ss:$52 sps:$4 sm:$0xff]  }
 0x8da   :  { %17728 = vmatpush1.bf16.msra.mxu0 %v24951_v41  ;;  %v24991_v41 = vld [vmem:[%s33260_s3 + $0x30ec] ss:$52 sps:$4 sm:$0xff]  }
 0x8db   :  { %18029 = vmatmul.mubr.bf16.vlgmr.msra.gmra.mrb[32].mxu1 %v29249_v36  ;;  %22039 = vmatprep.subr.msk.bf16.mxu0 %vm16070_vm2, %v22027_v30  ;;  %v24993_v30 = vld [vmem:[%s33260_s3 + $0x2a0] ss:$52 sps:$4 sm:$0xff]  }
 0x8dc   :  { %18038 = vmatpush1.bf16.msra.mxu1 %v24948_v61  ;;  %22042 = vmatprep.mubr.msk.bf16.mxu1 %vm16066_vm1, %v29257_v18  ;;  %v24992_v61 = vld [vmem:[%s33260_s3 + $0x5e0] ss:$52 sps:$4 sm:$0xff]  }
 0x8dd   :  { %18039 = vmatprep.subr.bf16.mxu1 %v24956_v0  ;;  %v24989_v0 = vld [vmem:[%s33260_s3 + $0x30e8] ss:$52 sps:$4 sm:$0xff]  }
 0x8de   :  { %17730 = vmatpush1.bf16.msra.mxu0 %v16096_v17  ;;  %v24996_v17 = vld [vmem:[%s33260_s3 + $0x3154] ss:$52 sps:$4 sm:$0xff]  }
 0x8df   :  { %22153 = vmatprep.subr.bf16.mxu0 %v24962_v45  ;;  %v22028_v45 = vcombine.low %v7910_v9, %v7910_v9 }
 0x8e0   :  { %18040 = vmatpush1.bf16.msra.mxu1 %v24954_v35  ;;  %v24997_v35 = vld [vmem:[%s33260_s3 + $0x648] ss:$52 sps:$4 sm:$0xff]  }
 0x8e1   :  { %18041 = vmatprep.subr.bf16.mxu1 %v24961_v58  ;;  %17742 = vmatmul.mubr.bf16.vlgmr.msra.gmra.mrb[24].mxu0 %v29390_v28  ;;  %v24994_v58 = vld [vmem:[%s33260_s3 + $0x3150] ss:$52 sps:$4 sm:$0xff]  }
 0x8e2   :  { %22154 = vmatpush3.bf16.msra.mxu0 %v24963_v48  ;;  %18110 = vmatprep.mubr.bf16.mxu0 %v27785_v6  ;;  %v24976_v6 = vld [vmem:[%s33260_s3 + $0x2fb4] ss:$52 sps:$4 sm:$0xff]  }
 0x8e3   :  { %22155 = vmatprep.subr.bf16.mxu0 %v24967_v32  ;;  %v24998_v48 = vld [vmem:[%s33260_s3 + $0x308] ss:$52 sps:$4 sm:$0xff]   ;;  %v22029_v32 = vcombine.high %v7910_v9, %v7910_v9  ;;  %v25026_v9 = vld [vmem:[%s33260_s3 + $0xfa0] ss:$52 sps:$4 sm:$0xff]  }
 0x8e4   :  { %18042 = vmatpush1.bf16.msra.mxu1 %v24959_v22  ;;  %v25001_v22 = vld [vmem:[%s33260_s3 + $0x1070] ss:$52 sps:$4 sm:$0xff]  }
 0x8e5   :  { %18043 = vmatprep.subr.bf16.mxu1 %v24966_v42  ;;  %v16102_v42 = vsel %vm16070_vm2, %v22028_v45, 0  ;;  %v25028_v45 = vld [vmem:[%s33260_s3 + $0x920] ss:$52 sps:$4 sm:$0xff]  }
 0x8e6   :  { %22156 = vmatpush3.bf16.msra.mxu0 %v24968_v53  ;;  %v25005_v53 = vld [vmem:[%s33260_s3 + $0x10d8] ss:$52 sps:$4 sm:$0xff]  }
 0x8e7   :  { %22157 = vmatprep.subr.bf16.mxu0 %v24972_v59  ;;  %v25004_v59 = vld [vmem:[%s33260_s3 + $0x6b0] ss:$52 sps:$4 sm:$0xff]  }
 0x8e8   :  { %18044 = vmatpush1.bf16.msra.mxu1 %v24964_v51  ;;  %v25002_v51 = vld [vmem:[%s33260_s3 + $0xd30] ss:$52 sps:$4 sm:$0xff]  }
 0x8e9   :  { %18045 = vmatprep.subr.bf16.mxu1 %v24971_v55  ;;  %v25003_v55 = vld [vmem:[%s33260_s3 + $0x9f0] ss:$52 sps:$4 sm:$0xff]  }
 0x8ea   :  { %22158 = vmatpush3.bf16.msra.mxu0 %v24973_v57  ;;  %v25007_v57 = vld [vmem:[%s33260_s3 + $0xa58] ss:$52 sps:$4 sm:$0xff]  }
 0x8eb   :  { %22159 = vmatprep.subr.bf16.mxu0 %v24977_v44  ;;  %v25013_v44 = vld [vmem:[%s33260_s3 + $0x11a8] ss:$52 sps:$4 sm:$0xff]  }
 0x8ec   :  { %18046 = vmatpush1.bf16.msra.mxu1 %v24969_v26  ;;  %v25006_v26 = vld [vmem:[%s33260_s3 + $0xd98] ss:$52 sps:$4 sm:$0xff]  }
 0x8ed   :  { %18047 = vmatprep.subr.bf16.mxu1 %v24976_v6  ;;  %v25008_v6 = vld [vmem:[%s33260_s3 + $0x718] ss:$52 sps:$4 sm:$0xff]  }
 0x8ee   :  { %22160 = vmatpush3.bf16.msra.mxu0 %v24978_v2  ;;  %v25011_v2 = vld [vmem:[%s33260_s3 + $0xac0] ss:$52 sps:$4 sm:$0xff]  }
 0x8ef   :  { %22161 = vmatprep.subr.bf16.mxu0 %v24982_v47  ;;  %v25015_v47 = vld [vmem:[%s33260_s3 + $0xb28] ss:$52 sps:$4 sm:$0xff]  }
 0x8f0   :  { %18048 = vmatpush1.bf16.msra.mxu1 %v24974_v33  ;;  %v25012_v33 = vld [vmem:[%s33260_s3 + $0x780] ss:$52 sps:$4 sm:$0xff]  }
 0x8f1   :  { %18049 = vmatprep.subr.bf16.mxu1 %v24981_v34  ;;  %v25014_v34 = vld [vmem:[%s33260_s3 + $0xe68] ss:$52 sps:$4 sm:$0xff]  }
 0x8f2   :  { %22162 = vmatpush3.bf16.msra.mxu0 %v24983_v38  ;;  %v25016_v38 = vld [vmem:[%s33260_s3 + $0x7e8] ss:$52 sps:$4 sm:$0xff]  }
 0x8f3   :  { %22163 = vmatprep.subr.bf16.mxu0 %v24987_v11  ;;  %v25019_v11 = vld [vmem:[%s33260_s3 + $0xb90] ss:$52 sps:$4 sm:$0xff]  }
 0x8f4   :  { %18050 = vmatpush1.bf16.msra.mxu1 %v24979_v37  ;;  %v25018_v37 = vld [vmem:[%s33260_s3 + $0xed0] ss:$52 sps:$4 sm:$0xff]  }
 0x8f5   :  { %18051 = vmatprep.subr.bf16.mxu1 %v24986_v8  ;;  %v25021_v8 = vld [vmem:[%s33260_s3 + $0x1278] ss:$52 sps:$4 sm:$0xff]  }
 0x8f6   :  { %22164 = vmatpush3.bf16.msra.mxu0 %v24988_v21  ;;  %v25022_v21 = vld [vmem:[%s33260_s3 + $0xf38] ss:$52 sps:$4 sm:$0xff]  }
 0x8f7   :  { %22165 = vmatprep.subr.bf16.mxu0 %v24992_v61  ;;  %v25023_v61 = vld [vmem:[%s33260_s3 + $0xbf8] ss:$52 sps:$4 sm:$0xff]  }
 0x8f8   :  { %18052 = vmatpush1.bf16.msra.mxu1 %v24984_v19  ;;  %v25020_v19 = vld [vmem:[%s33260_s3 + $0x850] ss:$52 sps:$4 sm:$0xff]  }
 0x8f9   :  { %18053 = vmatprep.subr.bf16.mxu1 %v24991_v41  ;;  %v25025_v41 = vld [vmem:[%s33260_s3 + $0x12e0] ss:$52 sps:$4 sm:$0xff]  }
 0x8fa   :  { %22166 = vmatpush3.bf16.msra.mxu0 %v24993_v30  ;;  %v25029_v30 = vld [vmem:[%s33260_s3 + $0x1348] ss:$52 sps:$4 sm:$0xff]  }
 0x8fb   :  { %22167 = vmatprep.subr.bf16.mxu0 %v24997_v35  ;;  %v25027_v35 = vld [vmem:[%s33260_s3 + $0xc60] ss:$52 sps:$4 sm:$0xff]  }
 0x8fc   :  { %18054 = vmatpush1.bf16.msra.mxu1 %v24989_v0  ;;  %v25024_v0 = vld [vmem:[%s33260_s3 + $0x8b8] ss:$52 sps:$4 sm:$0xff]  }
 0x8fd   :  { %18055 = vmatprep.subr.bf16.mxu1 %v24996_v17  ;;  %v25030_v17 = vld [vmem:[%s33260_s3 + $0x1008] ss:$52 sps:$4 sm:$0xff]  }
 0x8fe   :  { %22168 = vmatpush3.bf16.msra.mxu0 %v24998_v48  ;;  %v25031_v48 = vld [vmem:[%s33260_s3 + $0xcc8] ss:$52 sps:$4 sm:$0xff]  }
 0x8ff   :  { %22197 = vmatprep.subr.bf16.mxu0 %v25001_v22  ;;  %v25034_v22 = vld [vmem:[%s33260_s3 + $0x1a30] ss:$52 sps:$4 sm:$0xff]  }
 0x900   :  { %18056 = vmatpush1.bf16.msra.mxu1 %v24994_v58  ;;  %v25033_v58 = vld [vmem:[%s33260_s3 + $0x1d70] ss:$52 sps:$4 sm:$0xff]  }
 0x901   :  { %22041 = vmatprep.subr.msk.bf16.mxu1 %vm16070_vm2, %v22029_v32  ;;  %18111 = vmatmul.mubr.bf16.vlgmr.msra.gmra.mrb[28].mxu0 %v27982_v13  ;;  %v25009_v13 = vld [vmem:[%s33260_s3 + $0x1140] ss:$52 sps:$4 sm:$0xff]   ;;  %v25032_v32 = vld [vmem:[%s33260_s3 + $0x988] ss:$52 sps:$4 sm:$0xff]  }
 0x902   :  { %22198 = vmatpush3.bf16.msra.mxu0 %v25002_v51  ;;  %18190 = vmatprep.mubr.bf16.mxu0 %v28200_v31  ;;  %v25010_v31 = vld [vmem:[%s33260_s3 + $0xe00] ss:$52 sps:$4 sm:$0xff]   ;;  %v25035_v51 = vld [vmem:[%s33260_s3 + $0x16f0] ss:$52 sps:$4 sm:$0xff]  }
 0x903   :  { %22199 = vmatprep.subr.bf16.mxu0 %v25005_v53  ;;  %v25038_v53 = vld [vmem:[%s33260_s3 + $0x1a98] ss:$52 sps:$4 sm:$0xff]  }
 0x904   :  { %18058 = vmatpush1.bf16.msra.mxu1 %v16102_v42  ;;  %v25037_v42 = vld [vmem:[%s33260_s3 + $0x1dd8] ss:$52 sps:$4 sm:$0xff]  }
 0x905   :  { %22175 = vmatprep.subr.bf16.mxu1 %v25003_v55  ;;  %v25036_v55 = vld [vmem:[%s33260_s3 + $0x13b0] ss:$52 sps:$4 sm:$0xff]  }
 0x906   :  { %22200 = vmatpush3.bf16.msra.mxu0 %v25006_v26  ;;  %v25040_v26 = vld [vmem:[%s33260_s3 + $0x1418] ss:$52 sps:$4 sm:$0xff]  }
 0x907   :  { %18070 = vmatmul.mubr.bf16.vlgmr.msra.gmra.mrb[32].mxu1 %v29390_v28  ;;  %22201 = vmatprep.subr.bf16.mxu0 %v25009_v13  ;;  %v25046_v13 = vld [vmem:[%s33260_s3 + $0x1b68] ss:$52 sps:$4 sm:$0xff]  }
 0x908   :  { %22176 = vmatpush3.bf16.msra.mxu1 %v25004_v59  ;;  %18150 = vmatprep.mubr.bf16.mxu1 %v27993_v29  ;;  %v25017_v29 = vld [vmem:[%s33260_s3 + $0x1210] ss:$52 sps:$4 sm:$0xff]   ;;  %v25039_v59 = vld [vmem:[%s33260_s3 + $0x1758] ss:$52 sps:$4 sm:$0xff]  }
 0x909   :  { %22177 = vmatprep.subr.bf16.mxu1 %v25007_v57  ;;  %v25045_v57 = vld [vmem:[%s33260_s3 + $0x1ea8] ss:$52 sps:$4 sm:$0xff]  }
 0x90a   :  { %22202 = vmatpush3.bf16.msra.mxu0 %v25010_v31  ;;  %v25047_v31 = vld [vmem:[%s33260_s3 + $0x1828] ss:$52 sps:$4 sm:$0xff]  }
 0x90b   :  { %22203 = vmatprep.subr.bf16.mxu0 %v25013_v44  ;;  %v25048_v44 = vld [vmem:[%s33260_s3 + $0x14e8] ss:$52 sps:$4 sm:$0xff]  }
 0x90c   :  { %22178 = vmatpush3.bf16.msra.mxu1 %v25008_v6  ;;  %v25049_v6 = vld [vmem:[%s33260_s3 + $0x1f10] ss:$52 sps:$4 sm:$0xff]  }
 0x90d   :  { %22179 = vmatprep.subr.bf16.mxu1 %v25011_v2  ;;  %v25050_v2 = vld [vmem:[%s33260_s3 + $0x1bd0] ss:$52 sps:$4 sm:$0xff]  }
 0x90e   :  { %22204 = vmatpush3.bf16.msra.mxu0 %v25014_v34  ;;  %v25051_v34 = vld [vmem:[%s33260_s3 + $0x1890] ss:$52 sps:$4 sm:$0xff]  }
 0x90f   :  { %22205 = vmatprep.subr.bf16.mxu0 %v25017_v29  ;;  %v25054_v29 = vld [vmem:[%s33260_s3 + $0x1c38] ss:$52 sps:$4 sm:$0xff]  }
 0x910   :  { %22180 = vmatpush3.bf16.msra.mxu1 %v25012_v33  ;;  %v25053_v33 = vld [vmem:[%s33260_s3 + $0x1f78] ss:$52 sps:$4 sm:$0xff]  }
 0x911   :  { %22181 = vmatprep.subr.bf16.mxu1 %v25015_v47  ;;  %v25052_v47 = vld [vmem:[%s33260_s3 + $0x1550] ss:$52 sps:$4 sm:$0xff]  }
 0x912   :  { %22206 = vmatpush3.bf16.msra.mxu0 %v25018_v37  ;;  %v25055_v37 = vld [vmem:[%s33260_s3 + $0x18f8] ss:$52 sps:$4 sm:$0xff]  }
 0x913   :  { %22207 = vmatprep.subr.bf16.mxu0 %v25021_v8  ;;  %v25056_v8 = vld [vmem:[%s33260_s3 + $0x15b8] ss:$52 sps:$4 sm:$0xff]  }
 0x914   :  { %22182 = vmatpush3.bf16.msra.mxu1 %v25016_v38  ;;  %v25057_v38 = vld [vmem:[%s33260_s3 + $0x1fe0] ss:$52 sps:$4 sm:$0xff]  }
 0x915   :  { %22183 = vmatprep.subr.bf16.mxu1 %v25019_v11  ;;  %v25058_v11 = vld [vmem:[%s33260_s3 + $0x1ca0] ss:$52 sps:$4 sm:$0xff]  }
 0x916   :  { %22208 = vmatpush3.bf16.msra.mxu0 %v25022_v21  ;;  %v25061_v21 = vld [vmem:[%s33260_s3 + $0x2048] ss:$52 sps:$4 sm:$0xff]  }
 0x917   :  { %22209 = vmatprep.subr.bf16.mxu0 %v25025_v41  ;;  %v25062_v41 = vld [vmem:[%s33260_s3 + $0x1d08] ss:$52 sps:$4 sm:$0xff]  }
 0x918   :  { %22184 = vmatpush3.bf16.msra.mxu1 %v25020_v19  ;;  %v25059_v19 = vld [vmem:[%s33260_s3 + $0x1960] ss:$52 sps:$4 sm:$0xff]  }
 0x919   :  { %22185 = vmatprep.subr.bf16.mxu1 %v25023_v61  ;;  %v25060_v61 = vld [vmem:[%s33260_s3 + $0x1620] ss:$52 sps:$4 sm:$0xff]  }
 0x91a   :  { %22210 = vmatpush3.bf16.msra.mxu0 %v25026_v9  ;;  %v25065_v9 = vld [vmem:[%s33260_s3 + $0x2a70] ss:$52 sps:$4 sm:$0xff]  }
 0x91b   :  { %22211 = vmatprep.subr.bf16.mxu0 %v25029_v30  ;;  %v25066_v30 = vld [vmem:[%s33260_s3 + $0x2730] ss:$52 sps:$4 sm:$0xff]  }
 0x91c   :  { %22186 = vmatpush3.bf16.msra.mxu1 %v25024_v0  ;;  %v25063_v0 = vld [vmem:[%s33260_s3 + $0x19c8] ss:$52 sps:$4 sm:$0xff]  }
 0x91d   :  { %22187 = vmatprep.subr.bf16.mxu1 %v25027_v35  ;;  %v25064_v35 = vld [vmem:[%s33260_s3 + $0x1688] ss:$52 sps:$4 sm:$0xff]  }
 0x91e   :  { %22212 = vmatpush3.bf16.msra.mxu0 %v25030_v17  ;;  %v25069_v17 = vld [vmem:[%s33260_s3 + $0x2ad8] ss:$52 sps:$4 sm:$0xff]  }
 0x91f   :  { %22241 = vmatprep.subr.bf16.mxu0 %v25033_v58  ;;  %v25070_v58 = vld [vmem:[%s33260_s3 + $0x2798] ss:$52 sps:$4 sm:$0xff]  }
 0x920   :  { %22188 = vmatpush3.bf16.msra.mxu1 %v25028_v45  ;;  %v25067_v45 = vld [vmem:[%s33260_s3 + $0x23f0] ss:$52 sps:$4 sm:$0xff]  }
 0x921   :  { %22189 = vmatprep.subr.bf16.mxu1 %v25031_v48  ;;  %18191 = vmatmul.mubr.bf16.vlgmr.msra.gmra.mrb[32].mxu0 %v28401_v62  ;;  %v25041_v62 = vld [vmem:[%s33260_s3 + $0x1e40] ss:$52 sps:$4 sm:$0xff]   ;;  %v25068_v48 = vld [vmem:[%s33260_s3 + $0x20b0] ss:$52 sps:$4 sm:$0xff]  }
 0x922   :  { %22242 = vmatpush3.bf16.msra.mxu0 %v25034_v22  ;;  %18270 = vmatprep.mubr.bf16.mxu0 %v28634_v1  ;;  %v25042_v1 = vld [vmem:[%s33260_s3 + $0x1b00] ss:$52 sps:$4 sm:$0xff]   ;;  %v25071_v22 = vld [vmem:[%s33260_s3 + $0x2458] ss:$52 sps:$4 sm:$0xff]  }
 0x923   :  { %22243 = vmatprep.subr.bf16.mxu0 %v25037_v42  ;;  %v25077_v42 = vld [vmem:[%s33260_s3 + $0x2ba8] ss:$52 sps:$4 sm:$0xff]  }
 0x924   :  { %22190 = vmatpush3.bf16.msra.mxu1 %v25032_v32  ;;  %v25072_v32 = vld [vmem:[%s33260_s3 + $0x2118] ss:$52 sps:$4 sm:$0xff]  }
 0x925   :  { %22219 = vmatprep.subr.bf16.mxu1 %v25035_v51  ;;  %v25078_v51 = vld [vmem:[%s33260_s3 + $0x2868] ss:$52 sps:$4 sm:$0xff]  }
 0x926   :  { %22244 = vmatpush3.bf16.msra.mxu0 %v25038_v53  ;;  %v25081_v53 = vld [vmem:[%s33260_s3 + $0x2c10] ss:$52 sps:$4 sm:$0xff]  }
 0x927   :  { %18151 = vmatmul.mubr.bf16.vlgmr.msra.gmra.mrb[36].mxu1 %v28189_v23  ;;  %22245 = vmatprep.subr.bf16.mxu0 %v25041_v62  ;;  %v25043_v23 = vld [vmem:[%s33260_s3 + $0x17c0] ss:$52 sps:$4 sm:$0xff]   ;;  %v25080_v62 = vld [vmem:[%s33260_s3 + $0x21e8] ss:$52 sps:$4 sm:$0xff]  }
 0x928   :  { %22220 = vmatpush3.bf16.msra.mxu1 %v25036_v55  ;;  %18230 = vmatprep.mubr.bf16.mxu1 %v28412_v4  ;;  %v25044_v4 = vld [vmem:[%s33260_s3 + $0x1480] ss:$52 sps:$4 sm:$0xff]   ;;  %v25079_v55 = vld [vmem:[%s33260_s3 + $0x2528] ss:$52 sps:$4 sm:$0xff]  }
 0x929   :  { %22221 = vmatprep.subr.bf16.mxu1 %v25039_v59  ;;  %v25082_v59 = vld [vmem:[%s33260_s3 + $0x28d0] ss:$52 sps:$4 sm:$0xff]  }
 0x92a   :  { %22246 = vmatpush3.bf16.msra.mxu0 %v25042_v1  ;;  %v25085_v1 = vld [vmem:[%s33260_s3 + $0x2c78] ss:$52 sps:$4 sm:$0xff]  }
 0x92b   :  { %22247 = vmatprep.subr.bf16.mxu0 %v25045_v57  ;;  %v32785_v57 = vld [vmem:[%s33262_s4] sm:$0xff] }
 0x92c   :  { %22222 = vmatpush3.bf16.msra.mxu1 %v25040_v26  ;;  %v25083_v26 = vld [vmem:[%s33260_s3 + $0x2590] ss:$52 sps:$4 sm:$0xff]  }
 0x92d   :  { %22223 = vmatprep.subr.bf16.mxu1 %v25043_v23  ;;  %v25086_v23 = vld [vmem:[%s33260_s3 + $0x2938] ss:$52 sps:$4 sm:$0xff]  }
 0x92e   :  { %22248 = vmatpush3.bf16.msra.mxu0 %v25046_v13  ;;  %v25084_v13 = vld [vmem:[%s33260_s3 + $0x2250] ss:$52 sps:$4 sm:$0xff]  }
 0x92f   :  { %22249 = vmatprep.subr.bf16.mxu0 %v25049_v6  ;;  %v7923_v6 = vrot.slane %v32785_v57, %v26574_v12 }
 0x930   :  { %22224 = vmatpush3.bf16.msra.mxu1 %v25044_v4  ;;  %v25089_v4 = vld [vmem:[%s33260_s3 + $0x2ce0] ss:$52 sps:$4 sm:$0xff]  }
 0x931   :  { %22225 = vmatprep.subr.bf16.mxu1 %v25047_v31  ;;  %v25087_v31 = vld [vmem:[%s33260_s3 + $0x25f8] ss:$52 sps:$4 sm:$0xff]  }
 0x932   :  { %22250 = vmatpush3.bf16.msra.mxu0 %v25050_v2  ;;  %v25088_v2 = vld [vmem:[%s33260_s3 + $0x22b8] ss:$52 sps:$4 sm:$0xff]  }
 0x933   :  { %22251 = vmatprep.subr.bf16.mxu0 %v25053_v33  ;;  %v25093_v33 = vld [vmem:[%s33260_s3 + $0x2d48] ss:$52 sps:$4 sm:$0xff]  }
 0x934   :  { %22226 = vmatpush3.bf16.msra.mxu1 %v25048_v44  ;;  %v25090_v44 = vld [vmem:[%s33260_s3 + $0x29a0] ss:$52 sps:$4 sm:$0xff]  }
 0x935   :  { %22227 = vmatprep.subr.bf16.mxu1 %v25051_v34  ;;  %v22500_v34 = vadd.f32 %v30052_v39, %v7923_v6  ;;  %v25097_v39 = vld [vmem:[%s33261_s5 + $0x40] sm:$0xff]   ;;  %v25125_v6 = vld [vmem:[%s33261_s5 + $0x108] sm:$0xff]  }
 0x936   :  { %22252 = vmatpush3.bf16.msra.mxu0 %v25054_v29  ;;  %v25091_v29 = vld [vmem:[%s33260_s3 + $0x2660] ss:$52 sps:$4 sm:$0xff]  }
 0x937   :  { %22253 = vmatprep.subr.bf16.mxu0 %v25057_v38  ;;  %v25092_v38 = vld [vmem:[%s33260_s3 + $0x2320] ss:$52 sps:$4 sm:$0xff]  }
 0x938   :  { %22228 = vmatpush3.bf16.msra.mxu1 %v25052_v47  ;;  %v25094_v47 = vld [vmem:[%s33260_s3 + $0x2a08] ss:$52 sps:$4 sm:$0xff]  }
 0x939   :  { %22229 = vmatprep.subr.bf16.mxu1 %v25055_v37  ;;  %v18399_v37 = vmax.f32 %v22500_v34, 0.0  ;;  %v25126_v34 = vld [vmem:[%s33260_s3 + $0x3158] ss:$52 sps:$4 sm:$0xff]  }
 0x93a   :  { %22254 = vmatpush3.bf16.msra.mxu0 %v25058_v11  ;;  %v25098_v11 = vld [vmem:[%s33261_s5] sm:$0xff]  }
 0x93b   :  { %22255 = vmatprep.subr.bf16.mxu0 %v25061_v21  ;;  %v25096_v21 = vld [vmem:[%s33260_s3 + $0x2388] ss:$52 sps:$4 sm:$0xff]  }
 0x93c   :  { %22230 = vmatpush3.bf16.msra.mxu1 %v25056_v8  ;;  %v25095_v8 = vld [vmem:[%s33260_s3 + $0x26c8] ss:$52 sps:$4 sm:$0xff]  }
 0x93d   :  { %22231 = vmatprep.subr.bf16.mxu1 %v25059_v19  ;;  %v25100_v19 = vld [vmem:[%s33261_s5 + $0x48] sm:$0xff]  }
 0x93e   :  { %22256 = vmatpush3.bf16.msra.mxu0 %v25062_v41  ;;  %v18412_v41 = vpack.c.bf16 %v18399_v37, %v18399_v37  ;;  %v25134_v37 = vld [vmem:[%s33261_s5 + $0x160] sm:$0xff]  }
 0x93f   :  { %22285 = vmatprep.subr.bf16.mxu0 %v25065_v9  ;;  %v25099_v9 = vld [vmem:[%s33260_s3 + $0x2db0] ss:$52 sps:$4 sm:$0xff]  }
 0x940   :  { %22232 = vmatpush3.bf16.msra.mxu1 %v25060_v61  ;;  %v25101_v61 = vld [vmem:[%s33261_s5 + $0x8] sm:$0xff]  }
 0x941   :  { %22233 = vmatprep.subr.bf16.mxu1 %v25063_v0  ;;  %18271 = vmatmul.mubr.bf16.vlgmr.msra.gmra.mrb[36].mxu0 %v28829_v25  ;;  %v25073_v25 = vld [vmem:[%s33260_s3 + $0x2b40] ss:$52 sps:$4 sm:$0xff]  }
 0x942   :  { %22286 = vmatpush3.bf16.msra.mxu0 %v25066_v30  ;;  %18350 = vmatprep.mubr.bf16.mxu0 %v29051_v16  ;;  %v25074_v16 = vld [vmem:[%s33260_s3 + $0x2800] ss:$52 sps:$4 sm:$0xff]   ;;  %v25102_v30 = vld [vmem:[%s33260_s3 + $0x2e18] ss:$52 sps:$4 sm:$0xff]  }
 0x943   :  { %22287 = vmatprep.subr.bf16.mxu0 %v25069_v17  ;;  %v25103_v0 = vld [vmem:[%s33261_s5 + $0x50] sm:$0xff]   ;;  %v25109_v17 = vld [vmem:[%s33261_s5 + $0x60] sm:$0xff]  }
 0x944   :  { %22234 = vmatpush3.bf16.msra.mxu1 %v25064_v35  ;;  %v25106_v35 = vld [vmem:[%s33261_s5 + $0x58] sm:$0xff]  }
 0x945   :  { %22263 = vmatprep.subr.bf16.mxu1 %v25067_v45  ;;  %v25110_v45 = vld [vmem:[%s33261_s5 + $0x20] sm:$0xff]  }
 0x946   :  { %22288 = vmatpush3.bf16.msra.mxu0 %v25070_v58  ;;  %v25108_v58 = vld [vmem:[%s33260_s3 + $0x2ee8] ss:$52 sps:$4 sm:$0xff]  }
 0x947   :  { %18231 = vmatmul.mubr.bf16.vlgmr.msra.gmra.mrb[40].mxu1 %v28623_v60  ;;  %22289 = vmatprep.subr.bf16.mxu0 %v25073_v25  ;;  %v25075_v60 = vld [vmem:[%s33260_s3 + $0x24c0] ss:$52 sps:$4 sm:$0xff]   ;;  %v7919_v25 = vrot.slane %v32785_v57, %v26562_v7 }
 0x948   :  { %22264 = vmatpush3.bf16.msra.mxu1 %v25068_v48  ;;  %18310 = vmatprep.mubr.bf16.mxu1 %v28840_v54  ;;  %v25076_v54 = vld [vmem:[%s33260_s3 + $0x2180] ss:$52 sps:$4 sm:$0xff]   ;;  %v25112_v48 = vld [vmem:[%s33261_s5 + $0x68] sm:$0xff]  }
 0x949   :  { %22265 = vmatprep.subr.bf16.mxu1 %v25071_v22  ;;  %v25113_v22 = vld [vmem:[%s33261_s5 + $0x28] sm:$0xff]  }
 0x94a   :  { %22290 = vmatpush3.bf16.msra.mxu0 %v25074_v16  ;;  %v25111_v16 = vld [vmem:[%s33260_s3 + $0x2f50] ss:$52 sps:$4 sm:$0xff]  }
 0x94b   :  { %22291 = vmatprep.subr.bf16.mxu0 %v25077_v42  ;;  %v7939_v42 = vrot.slane %v32785_v57, %v27170_v27 }
 0x94c   :  { %22266 = vmatpush3.bf16.msra.mxu1 %v25072_v32  ;;  %v25115_v32 = vld [vmem:[%s33261_s5 + $0x70] sm:$0xff]  }
 0x94d   :  { %22267 = vmatprep.subr.bf16.mxu1 %v25075_v60  ;;  %v25116_v60 = vld [vmem:[%s33261_s5 + $0x30] sm:$0xff]   ;;  %v22504_v27 = vadd.f32 %v31568_v63, %v7939_v42  ;;  %v25122_v63 = vld [vmem:[%s33261_s5 + $0x100] sm:$0xff]  }
 0x94e   :  { %22292 = vmatpush3.bf16.msra.mxu0 %v25078_v51  ;;  %v22499_v51 = vadd.f32 %v30050_v50, %v7919_v25  ;;  %v25148_v25 = vld [vmem:[%s33261_s5 + $0xe0] sm:$0xff]  }
 0x94f   :  { %22293 = vmatprep.subr.bf16.mxu0 %v25081_v53  ;;  %v25118_v53 = vld [vmem:[%s33261_s5 + $0x78] sm:$0xff]   ;;  %v25149_v42 = vld [vmem:[%s33261_s5 + $0xa0] sm:$0xff]  }
 0x950   :  { %22268 = vmatpush3.bf16.msra.mxu1 %v25076_v54  ;;  %v25114_v54 = vld [vmem:[%s33260_s3 + $0x2fb8] ss:$52 sps:$4 sm:$0xff]   ;;  %v18398_v50 = vmax.f32 %v22499_v51, 0.0 }
 0x951   :  { %22269 = vmatprep.subr.bf16.mxu1 %v25079_v55  ;;  %v25119_v55 = vld [vmem:[%s33261_s5 + $0x38] sm:$0xff]   ;;  %v25152_v51 = vld [vmem:[%s33261_s5 + $0xe8] sm:$0xff]  }
 0x952   :  { %22294 = vmatpush3.bf16.msra.mxu0 %v25082_v59  ;;  %v25117_v59 = vld [vmem:[%s33260_s3 + $0x3020] ss:$52 sps:$4 sm:$0xff]  }
 0x953   :  { %22295 = vmatprep.subr.bf16.mxu0 %v25085_v1  ;;  %v18403_v1 = vmax.f32 %v22504_v27, 0.0  ;;  %v25158_v27 = vld [vmem:[%s33261_s5 + $0x250] sm:$0xff]  }
 0x954   :  { %22270 = vmatpush3.bf16.msra.mxu1 %v25080_v62  ;;  %v25121_v62 = vld [vmem:[%s33261_s5 + $0x140] sm:$0xff]  }
 0x955   :  { %22271 = vmatprep.subr.bf16.mxu1 %v25083_v26  ;;  %v18411_v26 = vpack.c.bf16 %v18398_v50, %v18398_v50  ;;  %v25156_v50 = vld [vmem:[%s33261_s5 + $0xf0] sm:$0xff]  }
 0x956   :  { %22296 = vmatpush3.bf16.msra.mxu0 %v25086_v23  ;;  %v25120_v23 = vld [vmem:[%s33260_s3 + $0x3088] ss:$52 sps:$4 sm:$0xff]  }
 0x957   :  { %22297 = vmatprep.subr.bf16.mxu0 %v25089_v4  ;;  %v18416_v4 = vpack.c.bf16 %v18403_v1, %v18403_v1  ;;  %v25157_v1 = vld [vmem:[%s33261_s5 + $0xb0] sm:$0xff]  }
 0x958   :  { %22272 = vmatpush3.bf16.msra.mxu1 %v25084_v13  ;;  %v25124_v13 = vld [vmem:[%s33261_s5 + $0x148] sm:$0xff]  }
 0x959   :  { %22273 = vmatprep.subr.bf16.mxu1 %v25087_v31  ;;  %v25123_v31 = vld [vmem:[%s33260_s3 + $0x30f0] ss:$52 sps:$4 sm:$0xff]  }
 0x95a   :  { %22298 = vmatpush3.bf16.msra.mxu0 %v25090_v44  ;;  %v25127_v44 = vld [vmem:[%s33261_s5 + $0x150] sm:$0xff]  }
 0x95b   :  { %22299 = vmatprep.subr.bf16.mxu0 %v25093_v33  ;;  %v25128_v33 = vld [vmem:[%s33261_s5 + $0x110] sm:$0xff]  }
 0x95c   :  { %22274 = vmatpush3.bf16.msra.mxu1 %v25088_v2  ;;  %v7931_v2 = vrot.slane %v32785_v57, %v27929_v20 }
 0x95d   :  { %22275 = vmatprep.subr.bf16.mxu1 %v25091_v29  ;;  %v25130_v29 = vld [vmem:[%s33261_s5 + $0x158] sm:$0xff]  }
 0x95e   :  { %22300 = vmatpush3.bf16.msra.mxu0 %v25094_v47  ;;  %v25129_v47 = vld [vmem:[%s33260_s3 + $0x31c0] ss:$0 sps:$4 sm:$0xff]  }
 0x95f   :  { %22307 = vmatprep.subr.bf16.mxu0 %v25097_v39  ;;  %v25131_v39 = vld [vmem:[%s33261_s5 + $0x118] sm:$0xff]  }
 0x960   :  { %22276 = vmatpush3.bf16.msra.mxu1 %v25092_v38  ;;  %v22502_v38 = vadd.f32 %v30166_v49, %v7931_v2  ;;  %v25165_v2 = vld [vmem:[%s33261_s5 + $0x180] sm:$0xff]  }
 0x961   :  { %22277 = vmatprep.subr.bf16.mxu1 %v25095_v8  ;;  %18351 = vmatmul.mubr.bf16.vlgmr.msra.gmra.mrb[40].mxu0 %v29249_v36  ;;  %v25104_v36 = vld [vmem:[%s33261_s5 + $0x10] sm:$0xff]   ;;  %v16108_v8 = vsel %vm16070_vm2, %v25129_v47, 0  ;;  %v25170_v47 = vld [vmem:[%s33261_s5 + $0x268] sm:$0xff]  }
 0x962   :  { %22308 = vmatpush3.bf16.msra.mxu0 %v25098_v11  ;;  %19251 = vmatprep.mubr.bf16.mxu0 %v18412_v41  ;;  %v25132_v11 = vld [vmem:[%s33261_s5 + $0xc0] sm:$0xff]   ;;  %v18401_v49 = vmax.f32 %v22502_v38, 0.0  ;;  %v25138_v41 = vld [vmem:[%s33261_s5 + $0x168] sm:$0xff]  }
 0x963   :  { %22309 = vmatprep.subr.bf16.mxu0 %v25100_v19  ;;  %v25133_v19 = vld [vmem:[%s33261_s5 + $0x80] sm:$0xff]  }
 0x964   :  { %22278 = vmatpush3.bf16.msra.mxu1 %v25096_v21  ;;  %v25135_v21 = vld [vmem:[%s33261_s5 + $0x120] sm:$0xff]  }
 0x965   :  { %18358 = vmatprep.subr.bf16.mxu1 %v25226_v3 }
 0x966   :  { %22310 = vmatpush3.bf16.msra.mxu0 %v25101_v61  ;;  %v18414_v61 = vpack.c.bf16 %v18401_v49, %v18401_v49  ;;  %v25174_v49 = vld [vmem:[%s33261_s5 + $0x270] sm:$0xff]  }
 0x967   :  { %18311 = vmatmul.mubr.bf16.vlgmr.msra.gmra.mrb[44].mxu1 %v29040_v40  ;;  %22311 = vmatprep.subr.bf16.mxu0 %v25103_v0  ;;  %v25107_v40 = vld [vmem:[%s33261_s5 + $0x18] sm:$0xff]   ;;  %v7935_v0 = vrot.slane %v32785_v57, %v27167_v24 }
 0x968   :  { %18359 = vmatpush1.bf16.msra.mxu1 %v25099_v9  ;;  %22043 = vmatprep.mubr.msk.bf16.mxu1 %vm16066_vm1, %v29257_v18  ;;  %v25105_v18 = vld [vmem:[%s33260_s3 + $0x2e80] ss:$52 sps:$4 sm:$0xff]   ;;  %v25139_v9 = vld [vmem:[%s33261_s5 + $0x128] sm:$0xff]  }
 0x969   :  { %18360 = vmatprep.subr.bf16.mxu1 %v25226_v3 }
 0x96a   :  { %22312 = vmatpush3.bf16.msra.mxu0 %v25104_v36  ;;  %v25137_v36 = vld [vmem:[%s33261_s5 + $0x88] sm:$0xff]  }
 0x96b   :  { %22313 = vmatprep.subr.bf16.mxu0 %v25106_v35  ;;  %v25143_v35 = vld [vmem:[%s33261_s5 + $0x130] sm:$0xff]  }
 0x96c   :  { %18361 = vmatpush1.bf16.msra.mxu1 %v25102_v30  ;;  %v25142_v30 = vld [vmem:[%s33261_s5 + $0x170] sm:$0xff]  }
 0x96d   :  { %18362 = vmatprep.subr.bf16.mxu1 %v25226_v3 }
 0x96e   :  { %22314 = vmatpush3.bf16.msra.mxu0 %v25107_v40  ;;  %v22503_v40 = vadd.f32 %v31563_v14, %v7935_v0  ;;  %v25147_v14 = vld [vmem:[%s33261_s5 + $0x138] sm:$0xff]   ;;  %v25173_v0 = vld [vmem:[%s33261_s5 + $0x190] sm:$0xff]  }
 0x96f   :  { %22315 = vmatprep.subr.bf16.mxu0 %v25109_v17  ;;  %v25146_v17 = vld [vmem:[%s33261_s5 + $0x178] sm:$0xff]  }
 0x970   :  { %18363 = vmatpush1.bf16.msra.mxu1 %v25105_v18  ;;  %v25141_v18 = vld [vmem:[%s33261_s5 + $0x90] sm:$0xff]  }
 0x971   :  { %18364 = vmatprep.subr.bf16.mxu1 %v25226_v3 }
 0x972   :  { %22316 = vmatpush3.bf16.msra.mxu0 %v25110_v45  ;;  %v25144_v45 = vld [vmem:[%s33261_s5 + $0xd8] sm:$0xff]  }
 0x973   :  { %22317 = vmatprep.subr.bf16.mxu0 %v25112_v48  ;;  %v25145_v48 = vld [vmem:[%s33261_s5 + $0x98] sm:$0xff]  }
 0x974   :  { %18365 = vmatpush1.bf16.msra.mxu1 %v25108_v58  ;;  %v18402_v58 = vmax.f32 %v22503_v40, 0.0  ;;  %v25179_v40 = vld [vmem:[%s33261_s5 + $0x238] sm:$0xff]  }
 0x975   :  { %18366 = vmatprep.subr.bf16.mxu1 %v25226_v3 }
 0x976   :  { %22318 = vmatpush3.bf16.msra.mxu0 %v25113_v22  ;;  %v25150_v22 = vld [vmem:[%s33261_s5 + $0x240] sm:$0xff]  }
 0x977   :  { %22319 = vmatprep.subr.bf16.mxu0 %v25115_v32  ;;  %v18415_v32 = vpack.c.bf16 %v18402_v58, %v18402_v58  ;;  %v25181_v58 = vld [vmem:[%s33261_s5 + $0x1a0] sm:$0xff]  }
 0x978   :  { %18367 = vmatpush1.bf16.msra.mxu1 %v25111_v16  ;;  %v25151_v16 = vld [vmem:[%s33261_s5 + $0x200] sm:$0xff]  }
 0x979   :  { %18368 = vmatprep.subr.bf16.mxu1 %v25226_v3 }
 0x97a   :  { %22320 = vmatpush3.bf16.msra.mxu0 %v25116_v60  ;;  %v25154_v60 = vld [vmem:[%s33261_s5 + $0x248] sm:$0xff]  }
 0x97b   :  { %22321 = vmatprep.subr.bf16.mxu0 %v25118_v53  ;;  %v25153_v53 = vld [vmem:[%s33261_s5 + $0xa8] sm:$0xff]  }
 0x97c   :  { %18369 = vmatpush1.bf16.msra.mxu1 %v25114_v54  ;;  %v25155_v54 = vld [vmem:[%s33261_s5 + $0x208] sm:$0xff]  }
 0x97d   :  { %18370 = vmatprep.subr.bf16.mxu1 %v25226_v3 }
 0x97e   :  { %22322 = vmatpush3.bf16.msra.mxu0 %v25119_v55  ;;  %v7927_v55 = vrot.slane %v32785_v57, %v28132_v56 }
 0x97f   :  { %22351 = vmatprep.subr.bf16.mxu0 %v25121_v62  ;;  %v25159_v62 = vld [vmem:[%s33261_s5 + $0x210] sm:$0xff]  }
 0x980   :  { %18371 = vmatpush1.bf16.msra.mxu1 %v25117_v59  ;;  %v7947_v59 = vrot.slane %v32785_v57, %v28351_v43  ;;  %v25160_v43 = vld [vmem:[%s33261_s5 + $0xf8] sm:$0xff]  }
 0x981   :  { %18372 = vmatprep.subr.bf16.mxu1 %v25226_v3  ;;  %19252 = vmatmul.mubr.bf16.vlgmr.msra.gmra.mrb[44].mxu0 %v18411_v26  ;;  %v22501_v26 = vadd.f32 %v30164_v46, %v7927_v55  ;;  %v25166_v46 = vld [vmem:[%s33261_s5 + $0x260] sm:$0xff]  }
 0x982   :  { %22352 = vmatpush3.bf16.msra.mxu0 %v25122_v63  ;;  %19331 = vmatprep.mubr.bf16.mxu0 %v18416_v4  ;;  %v25162_v63 = vld [vmem:[%s33261_s5 + $0x258] sm:$0xff]  }
 0x983   :  { %22353 = vmatprep.subr.bf16.mxu0 %v25124_v13  ;;  %v25163_v13 = vld [vmem:[%s33261_s5 + $0x218] sm:$0xff]  }
 0x984   :  { %18373 = vmatpush1.bf16.msra.mxu1 %v25120_v23  ;;  %v22506_v23 = vadd.f32 %v31682_v15, %v7947_v59  ;;  %v25161_v4 = vld [vmem:[%s33261_s5 + $0xb8] sm:$0xff]   ;;  %v25164_v15 = vld [vmem:[%s33261_s5 + $0x1c0] sm:$0xff]   ;;  %v25192_v59 = vld [vmem:[%s33261_s5 + $0x2d0] sm:$0xff]  }
 0x985   :  { %18374 = vmatprep.subr.bf16.mxu1 %v25226_v3 }
 0x986   :  { %22354 = vmatpush3.bf16.msra.mxu0 %v25125_v6  ;;  %v18400_v6 = vmax.f32 %v22501_v26, 0.0 }
 0x987   :  { %22355 = vmatprep.subr.bf16.mxu0 %v25127_v44  ;;  %v25167_v44 = vld [vmem:[%s33261_s5 + $0x220] sm:$0xff]  }
 0x988   :  { %18375 = vmatpush1.bf16.msra.mxu1 %v25123_v31  ;;  %v18405_v31 = vmax.f32 %v22506_v23, 0.0  ;;  %v25193_v23 = vld [vmem:[%s33261_s5 + $0x290] sm:$0xff]  }
 0x989   :  { %18376 = vmatprep.subr.bf16.mxu1 %v25226_v3 }
 0x98a   :  { %22356 = vmatpush3.bf16.msra.mxu0 %v25128_v33  ;;  %v33077_v33 = vld [vmem:[%s33262_s4 + $0x8] sm:$0x1f]  ;;  %v18418_v38 = vpack.c.bf16 %v18405_v31, %v18405_v31 }
 0x98b   :  { %22357 = vmatprep.subr.bf16.mxu0 %v25130_v29  ;;  %v25168_v29 = vld [vmem:[%s33261_s5 + $0x1c8] sm:$0xff]   ;;  %v7963_v26 = vrot.slane %v33077_v33, %v27929_v20  ;;  %v25195_v20 = vld [vmem:[%s33261_s5 + $0x298] sm:$0xff]  }
 0x98c   :  { %18377 = vmatpush1.bf16.msra.mxu1 %v25126_v34  ;;  %v18413_v34 = vpack.c.bf16 %v18400_v6, %v18400_v6 }
 0x98d   :  { %18378 = vmatprep.subr.bf16.mxu1 %v25226_v3  ;;  %v25136_v3 = vld [vmem:[%s33261_s5 + $0xc8] sm:$0xff]  }
 0x98e   :  { %22358 = vmatpush3.bf16.msra.mxu0 %v25131_v39  ;;  %v7955_v39 = vrot.slane %v33077_v33, %v26574_v12  ;;  %v25172_v12 = vld [vmem:[%s33261_s5 + $0x1d0] sm:$0xff]  }
 0x98f   :  { %22359 = vmatprep.subr.bf16.mxu0 %v25134_v37  ;;  %v25171_v37 = vld [vmem:[%s33261_s5 + $0x228] sm:$0xff]  }
 0x990   :  { %18379 = vmatpush1.bf16.msra.mxu1 %v16108_v8  ;;  %v7951_v8 = vrot.slane %v33077_v33, %v26562_v7  ;;  %v25175_v7 = vld [vmem:[%s33261_s5 + $0x230] sm:$0xff]  }
 0x991   :  { %22329 = vmatprep.subr.bf16.mxu1 %v25132_v11  ;;  %v25169_v11 = vld [vmem:[%s33261_s5 + $0x188] sm:$0xff]  }
 0x992   :  { %22360 = vmatpush3.bf16.msra.mxu0 %v25135_v21 }
 0x993   :  { %18391 = vmatmul.mubr.bf16.vlgmr.msra.gmra.mrb[48].mxu1 %v29390_v28  ;;  %22361 = vmatprep.subr.bf16.mxu0 %v25138_v41  ;;  %v25140_v28 = vld [vmem:[%s33261_s5 + $0xd0] sm:$0xff]  }
 0x994   :  { %22330 = vmatpush3.bf16.msra.mxu1 %v25133_v19  ;;  %19291 = vmatprep.mubr.bf16.mxu1 %v18414_v61 }
 0x995   :  { %22331 = vmatprep.subr.bf16.mxu1 %v25136_v3 }
 0x996   :  { %22362 = vmatpush3.bf16.msra.mxu0 %v25139_v9 }
 0x997   :  { %22363 = vmatprep.subr.bf16.mxu0 %v25142_v30 }
 0x998   :  { %22332 = vmatpush3.bf16.msra.mxu1 %v25137_v36  ;;  %v25178_v36 = vld [vmem:[%s33261_s5 + $0x278] sm:$0xff]  }
 0x999   :  { %22333 = vmatprep.subr.bf16.mxu1 %v25140_v28  ;;  %v25176_v28 = vld [vmem:[%s33261_s5 + $0x1d8] sm:$0xff]  }
 0x99a   :  { %22364 = vmatpush3.bf16.msra.mxu0 %v25143_v35 }
 0x99b   :  { %22365 = vmatprep.subr.bf16.mxu0 %v25146_v17  ;;  %v25177_v17 = vld [vmem:[%s33261_s5 + $0x198] sm:$0xff]  }
 0x99c   :  { %22334 = vmatpush3.bf16.msra.mxu1 %v25141_v18 }
 0x99d   :  { %22335 = vmatprep.subr.bf16.mxu1 %v25144_v45  ;;  %v25180_v45 = vld [vmem:[%s33261_s5 + $0x1e0] sm:$0xff]  }
 0x99e   :  { %22366 = vmatpush3.bf16.msra.mxu0 %v25147_v14 }
 0x99f   :  { %22395 = vmatprep.subr.bf16.mxu0 %v25150_v22  ;;  %v25183_v22 = vld [vmem:[%s33261_s5 + $0x1a8] sm:$0xff]  }
 0x9a0   :  { %22336 = vmatpush3.bf16.msra.mxu1 %v25145_v48  ;;  %v25182_v48 = vld [vmem:[%s33261_s5 + $0x1e8] sm:$0xff]  }
 0x9a1   :  { %22337 = vmatprep.subr.bf16.mxu1 %v25148_v25  ;;  %19332 = vmatmul.mubr.bf16.vlgmr.msra.gmra.mrb[48].mxu0 %v18415_v32  ;;  %v7943_v25 = vrot.slane %v32785_v57, %v28555_v5  ;;  %v25185_v32 = vld [vmem:[%s33261_s5 + $0x1b0] sm:$0xff]   ;;  %v25187_v5 = vld [vmem:[%s33261_s5 + $0x1b8] sm:$0xff]  }
 0x9a2   :  { %22396 = vmatpush3.bf16.msra.mxu0 %v25151_v16  ;;  %v25184_v16 = vld [vmem:[%s33261_s5 + $0x1f0] sm:$0xff]  }
 0x9a3   :  { %22397 = vmatprep.subr.bf16.mxu0 %v25154_v60  ;;  %v25186_v60 = vld [vmem:[%s33261_s5 + $0x1f8] sm:$0xff]  }
 0x9a4   :  { %22338 = vmatpush3.bf16.msra.mxu1 %v25149_v42  ;;  %v22505_v42 = vadd.f32 %v31680_v10, %v7943_v25  ;;  %v25189_v10 = vld [vmem:[%s33261_s5 + $0x280] sm:$0xff]  }
 0x9a5   :  { %22339 = vmatprep.subr.bf16.mxu1 %v25152_v51  ;;  %v25188_v51 = vld [vmem:[%s33261_s5 + $0x2c0] sm:$0xff]  }
 0x9a6   :  { %22398 = vmatpush3.bf16.msra.mxu0 %v25155_v54  ;;  %v18404_v57 = vmax.f32 %v22505_v42, 0.0 }
 0x9a7   :  { %22399 = vmatprep.subr.bf16.mxu0 %v25158_v27  ;;  %v25191_v27 = vld [vmem:[%s33261_s5 + $0x288] sm:$0xff]  }
 0x9a8   :  { %22340 = vmatpush3.bf16.msra.mxu1 %v25153_v53  ;;  %v18417_v54 = vpack.c.bf16 %v18404_v57, %v18404_v57  ;;  %v25190_v53 = vld [vmem:[%s33261_s5 + $0x2c8] sm:$0xff]  }
 0x9a9   :  { %22341 = vmatprep.subr.bf16.mxu1 %v25156_v50  ;;  %v7967_v50 = vrot.slane %v33077_v33, %v27167_v24  ;;  %v25194_v24 = vld [vmem:[%s33261_s5 + $0x2d8] sm:$0xff]  }
 0x9aa   :  { %22400 = vmatpush3.bf16.msra.mxu0 %v25159_v62 }
 0x9ab   :  { %22401 = vmatprep.subr.bf16.mxu0 %v25162_v63 }
 0x9ac   :  { %22342 = vmatpush3.bf16.msra.mxu1 %v25157_v1 }
 0x9ad   :  { %22343 = vmatprep.subr.bf16.mxu1 %v25160_v43 }
 0x9ae   :  { %22402 = vmatpush3.bf16.msra.mxu0 %v25163_v13 }
 0x9af   :  { %22403 = vmatprep.subr.bf16.mxu0 %v25166_v46  ;;  %v25227_v46 = vmov 0.0  }
 0x9b0   :  { %22344 = vmatpush3.bf16.msra.mxu1 %v25161_v4 }
 0x9b1   :  { %22373 = vmatprep.subr.bf16.mxu1 %v25164_v15 }
 0x9b2   :  { %22404 = vmatpush3.bf16.msra.mxu0 %v25167_v44 }
 0x9b3   :  { %19292 = vmatmul.mubr.bf16.vlgmr.msra.gmra.mrb[52].mxu1 %v18413_v34  ;;  %22405 = vmatprep.subr.bf16.mxu0 %v25170_v47  ;;  %v25197_v47 = vld [vmem:[%s33261_s5 + $0x2a0] sm:$0xff]  }
 0x9b4   :  { %22374 = vmatpush3.bf16.msra.mxu1 %v25165_v2  ;;  %19371 = vmatprep.mubr.bf16.mxu1 %v18418_v38  ;;  %v17743_v21 = vpop.f32.mrb[24].mxu0  ;;  %v25196_v2 = vld [vmem:[%s33261_s5 + $0x2e0] sm:$0xff]   ;;  %v25198_v38 = vld [vmem:[%s33261_s5 + $0x2e8] sm:$0xff]  }
 0x9b5   :  { %22375 = vmatprep.subr.bf16.mxu1 %v25168_v29  ;;  %v17745_v19 = vpop.f32.mrb[25].mxu0  ;;  %v22507_v61 = vadd.f32 %v17743_v21, %v7951_v8  ;;  %v7959_v8 = vrot.slane %v33077_v33, %v28132_v56  ;;  %v25205_v21 = vld [vmem:[%s33261_s5 + $0x308] sm:$0xff]   ;;  %v25202_v56 = vld [vmem:[%s33261_s5 + $0x2f8] sm:$0xff]  }
 0x9b6   :  { %v22508_v3 = vadd.f32 %v17745_v19, %v7955_v39  ;;  %v17747_v41 = vpop.f32.mrb[26].mxu0  ;;  %22406 = vmatpush3.bf16.msra.mxu0 %v25171_v37  ;;  %v25199_v39 = vld [vmem:[%s33261_s5 + $0x2a8] sm:$0xff]   ;;  %v25204_v37 = vld [vmem:[%s33261_s5 + $0x300] sm:$0xff]   ;;  %v25203_v33 = vld [vmem:[%s33261_s5 + $0x2b8] sm:$0xff]  }
 0x9b7   :  { %v17748_v9 = vpop.f32.mrb[27].mxu0  ;;  %22407 = vmatprep.subr.bf16.mxu0 %v25174_v49  ;;  %v18406_v18 = vmax.f32 %v22507_v61, 0.0  ;;  %v25201_v49 = vld [vmem:[%s33261_s5 + $0x2b0] sm:$0xff]  }
 0x9b8   :  { %22376 = vmatpush3.bf16.msra.mxu1 %v25169_v11  ;;  %v18407_v30 = vmax.f32 %v22508_v3, 0.0  ;;  %v25200_v11 = vld [vmem:[%s33261_s5 + $0x2f0] sm:$0xff]  }
 0x9b9   :  { %22377 = vmatprep.subr.bf16.mxu1 %v25172_v12  ;;  %v18419_v14 = vpack.c.bf16 %v18406_v18, %v18406_v18 }
 0x9ba   :  { %v18420_v35 = vpack.c.bf16 %v18407_v30, %v18407_v30  ;;  %22408 = vmatpush3.bf16.msra.mxu0 %v25175_v7 }
 0x9bb   :  { %22409 = vmatprep.subr.bf16.mxu0 %v25178_v36 }
 0x9bc   :  { %22378 = vmatpush3.bf16.msra.mxu1 %v25173_v0  ;;  %19411 = vmatprep.mubr.bf16.mxu0 %v18420_v35 }
 0x9bd   :  { %22379 = vmatprep.subr.bf16.mxu1 %v25176_v28 }
 0x9be   :  { %22410 = vmatpush3.bf16.msra.mxu0 %v25179_v40 }
 0x9bf   :  { %22451 = vmatprep.subr.bf16.mxu0 %v25227_v46 }
 0x9c0   :  { %22380 = vmatpush3.bf16.msra.mxu1 %v25177_v17 }
 0x9c1   :  { %22381 = vmatprep.subr.bf16.mxu1 %v25180_v45  ;;  %19412 = vmatmul.mubr.bf16.vlgmr.msra.gmra.mrb[52].mxu0 %v18419_v14 }
 0x9c2   :  { %22452 = vmatpush3.bf16.msra.mxu0 %v25204_v37  ;;  %22455 = vmatprep.mubr.msk.bf16.mxu0 %vm25228_vm3, %v25227_v46 }
 0x9c3   :  { %22453 = vmatprep.subr.bf16.mxu0 %v25227_v46 }
 0x9c4   :  { %22382 = vmatpush3.bf16.msra.mxu1 %v25181_v58 }
 0x9c5   :  { %22383 = vmatprep.subr.bf16.mxu1 %v25182_v48 }
 0x9c6   :  { %22454 = vmatpush3.bf16.msra.mxu0 %v25205_v21 }
 0x9c7   :  { %22459 = vmatprep.subr.bf16.mxu0 %v25227_v46 }
 0x9c8   :  { %22384 = vmatpush3.bf16.msra.mxu1 %v25183_v22 }
 0x9c9   :  { %22385 = vmatprep.subr.bf16.mxu1 %v25184_v16 }
 0x9cc   :  { %22386 = vmatpush3.bf16.msra.mxu1 %v25185_v32 }
 0x9cd   :  { %22387 = vmatprep.subr.bf16.mxu1 %v25186_v60 }
 0x9d0   :  { %22388 = vmatpush3.bf16.msra.mxu1 %v25187_v5 }
 0x9d1   :  { %22417 = vmatprep.subr.bf16.mxu1 %v25188_v51 }
 0x9d3   :  { %19372 = vmatmul.mubr.bf16.vlgmr.msra.gmra.mrb[56].mxu1 %v18417_v54 }
 0x9d4   :  { %22418 = vmatpush3.bf16.msra.mxu1 %v25189_v10  ;;  %v22169_v55 = vpop.f32.mrb[28].mxu0 }
 0x9d5   :  { %22419 = vmatprep.subr.bf16.mxu1 %v25190_v53  ;;  %v22170_v62 = vpop.f32.mrb[29].mxu0 }
 0x9d6   :  { %v22171_v1 = vadd.f32 %v22170_v62, %v22169_v55  ;;  %v22172_v63 = vpop.f32.mrb[30].mxu0 }
 0x9d7   :  { %v22173_v43 = vpop.f32.mrb[31].mxu0 }
 0x9d8   :  { %22420 = vmatpush3.bf16.msra.mxu1 %v25191_v27  ;;  %v18113_v13 = vadd.f32 %v22171_v1, %v7967_v50 }
 0x9d9   :  { %22421 = vmatprep.subr.bf16.mxu1 %v25192_v59 }
 0x9da   :  { %v18071_v4 = vpop.f32.mrb[32].mxu1 }
 0x9db   :  { %v18073_v6 = vpop.f32.mrb[33].mxu1  ;;  %v22509_v12 = vadd.f32 %v18071_v4, %v7959_v8  ;;  %v25209_v8 = vld [vmem:[%s33263_s7 + $0x18] sm:$0xff]  }
 0x9dc   :  { %v22510_v15 = vadd.f32 %v18073_v6, %v7963_v26  ;;  %v18075_v31 = vpop.f32.mrb[34].mxu1  ;;  %22422 = vmatpush3.bf16.msra.mxu1 %v25193_v23 }
 0x9dd   :  { %v18076_v44 = vpop.f32.mrb[35].mxu1  ;;  %22423 = vmatprep.subr.bf16.mxu1 %v25194_v24  ;;  %v18408_v19 = vmax.f32 %v22509_v12, 0.0  ;;  %v25210_v12 = vld [vmem:[%s33263_s7 + $0x20] sm:$0xff]  }
 0x9de   :  { %v18409_v34 = vmax.f32 %v22510_v15, 0.0 }
 0x9df   :  { %v18421_v3 = vpack.c.bf16 %v18408_v19, %v18408_v19 }
 0x9e0   :  { %v18422_v29 = vpack.c.bf16 %v18409_v34, %v18409_v34  ;;  %22424 = vmatpush3.bf16.msra.mxu1 %v25195_v20  ;;  %v25206_v34 = vld [vmem:[%s33263_s7] sm:$0xff]  }
 0x9e1   :  { %22425 = vmatprep.subr.bf16.mxu1 %v25196_v2 }
 0x9e2   :  { %19451 = vmatprep.mubr.bf16.mxu1 %v18422_v29 }
 0x9e4   :  { %22426 = vmatpush3.bf16.msra.mxu1 %v25197_v47  ;;  %v25207_v47 = vld [vmem:[%s33263_s7 + $0x8] sm:$0xff]  }
 0x9e5   :  { %22427 = vmatprep.subr.bf16.mxu1 %v25198_v38  ;;  %v25208_v38 = vld [vmem:[%s33263_s7 + $0x10] sm:$0xff]  }
 0x9e8   :  { %22428 = vmatpush3.bf16.msra.mxu1 %v25199_v39 }
 0x9e9   :  { %22429 = vmatprep.subr.bf16.mxu1 %v25200_v11 }
 0x9ec   :  { %22430 = vmatpush3.bf16.msra.mxu1 %v25201_v49 }
 0x9ed   :  { %22431 = vmatprep.subr.bf16.mxu1 %v25202_v56  ;;  %v25211_v56 = vld [vmem:[%s33263_s7 + $0x28] sm:$0xff]  }
 0x9f0   :  { %22432 = vmatpush3.bf16.msra.mxu1 %v25203_v33  ;;  %v22044_v33 = vld [vmem:[%s33264_s6] ss:$0 sm:$0xff] }
 0x9f3   :  { %19452 = vmatmul.mubr.bf16.vlgmr.msra.gmra.mrb[60].mxu1 %v18421_v3 }
 0x9f4   :  { %v22213_v41 = vpop.f32.mrb[32].mxu0 }
 0x9f5   :  { %v22214_v7 = vpop.f32.mrb[33].mxu0 }
 0x9f6   :  { %v22215_v61 = vadd.f32 %v22214_v7, %v22213_v41  ;;  %v22216_v9 = vpop.f32.mrb[34].mxu0 }
 0x9f7   :  { %v22217_v0 = vpop.f32.mrb[35].mxu0 }
 0x9fa   :  { %v22191_v36 = vpop.f32.mrb[36].mxu1 }
 0x9fb   :  { %v22192_v30 = vpop.f32.mrb[37].mxu1 }
 0x9fc   :  { %v22193_v28 = vadd.f32 %v22192_v30, %v22191_v36  ;;  %v22194_v35 = vpop.f32.mrb[38].mxu1 }
 0x9fd   :  { %v22195_v40 = vpop.f32.mrb[39].mxu1 }
 0x9fe   :  { %v18153_v18 = vadd.f32 %v22193_v28, %v18113_v13 }
 0xa00   :  { %v18193_v17 = vadd.f32 %v22215_v61, %v18153_v18 }
 0xa14   :  { %v22257_v45 = vpop.f32.mrb[36].mxu0 }
 0xa15   :  { %v22258_v14 = vpop.f32.mrb[37].mxu0 }
 0xa16   :  { %v22259_v58 = vadd.f32 %v22258_v14, %v22257_v45  ;;  %v22260_v48 = vpop.f32.mrb[38].mxu0 }
 0xa17   :  { %v22261_v22 = vpop.f32.mrb[39].mxu0 }
 0xa1a   :  { %v22235_v25 = vpop.f32.mrb[40].mxu1 }
 0xa1b   :  { %v22236_v16 = vpop.f32.mrb[41].mxu1 }
 0xa1c   :  { %v22237_v32 = vadd.f32 %v22236_v16, %v22235_v25  ;;  %v22238_v42 = vpop.f32.mrb[42].mxu1  ;;  %v25212_v16 = vld [vmem:[%s33263_s7 + $0x30] sm:$0xff]  }
 0xa1d   :  { %v22239_v60 = vpop.f32.mrb[43].mxu1 }
 0xa1e   :  { %v18233_v5 = vadd.f32 %v22237_v32, %v18193_v17  ;;  %v25213_v32 = vld [vmem:[%s33263_s7 + $0x38] sm:$0xff]  }
 0xa20   :  { %v18273_v57 = vadd.f32 %v22259_v58, %v18233_v5 }
 0xa34   :  { %v22301_v51 = vpop.f32.mrb[40].mxu0 }
 0xa35   :  { %v22302_v10 = vpop.f32.mrb[41].mxu0 }
 0xa36   :  { %v22303_v54 = vadd.f32 %v22302_v10, %v22301_v51  ;;  %v22304_v53 = vpop.f32.mrb[42].mxu0 }
 0xa37   :  { %v22305_v27 = vpop.f32.mrb[43].mxu0 }
 0xa3a   :  { %v22279_v55 = vpop.f32.mrb[44].mxu1 }
 0xa3b   :  { %v22280_v50 = vpop.f32.mrb[45].mxu1 }
 0xa3c   :  { %v22281_v59 = vadd.f32 %v22280_v50, %v22279_v55  ;;  %v22282_v62 = vpop.f32.mrb[46].mxu1 }
 0xa3d   :  { %v22283_v1 = vpop.f32.mrb[47].mxu1 }
 0xa3e   :  { %v18313_v63 = vadd.f32 %v22281_v59, %v18273_v57  ;;  %v22144_v1 = vld [vmem:[%s33265_s8] ss:$0 sm:$0xff] }
 0xa40   :  { %v18353_v26 = vadd.f32 %v22303_v54, %v18313_v63 }
 0xa54   :  { %v22323_v43 = vpop.f32.mrb[44].mxu0 }
 0xa55   :  { %v22324_v23 = vpop.f32.mrb[45].mxu0 }
 0xa56   :  { %v22325_v13 = vadd.f32 %v22324_v23, %v22323_v43  ;;  %v22326_v24 = vpop.f32.mrb[46].mxu0 }
 0xa57   :  { %v22327_v4 = vpop.f32.mrb[47].mxu0 }
 0xa58   :  { %v19254_v41 = vadd.f32 %v22325_v13, %v22044_v33 }
 0xa66   :  { %v18392_v6 = vpop.f32.mrb[48].mxu1 }
 0xa67   :  { %v18393_v15 = vadd.f32 %v18392_v6, %v18353_v26  ;;  %v18394_v31 = vpop.f32.mrb[49].mxu1 }
 0xa68   :  { %v18395_v20 = vpop.f32.mrb[50].mxu1 }
 0xa69   :  { %v18410_v44 = vmax.f32 %v18393_v15, 0.0  ;;  %v18396_v2 = vpop.f32.mrb[51].mxu1 }
 0xa6b   :  { %v18423_v29 = vpack.c.bf16 %v18410_v44, %v18410_v44 }
 0xa6d   :  { %22456 = vmatmul.mubr.msk.bf16.vlgmr.msra.gmra.mrb[56].mxu0 %vm19215_vm4, %v18423_v29 }
 0xa6e   :  { %22460 = vmatpush3.bf16.msra.mxu0 %v25206_v34  ;;  %22475 = vmatprep.mubr.msk.bf16.mxu0 %vm25228_vm3, %v25227_v46 }
 0xa6f   :  { %22461 = vmatprep.subr.bf16.mxu0 %v25227_v46 }
 0xa72   :  { %22462 = vmatpush3.bf16.msra.mxu0 %v25207_v47 }
 0xa73   :  { %22463 = vmatprep.subr.bf16.mxu0 %v25227_v46 }
 0xa74   :  { %v22367_v39 = vpop.f32.mrb[48].mxu0 }
 0xa75   :  { %v22368_v37 = vpop.f32.mrb[49].mxu0 }
 0xa76   :  { %22464 = vmatpush3.bf16.msra.mxu0 %v25208_v38  ;;  %v22369_v11 = vadd.f32 %v22368_v37, %v22367_v39  ;;  %v22370_v49 = vpop.f32.mrb[50].mxu0 }
 0xa77   :  { %22465 = vmatprep.subr.bf16.mxu0 %v25227_v46  ;;  %v22371_v21 = vpop.f32.mrb[51].mxu0 }
 0xa7a   :  { %22466 = vmatpush3.bf16.msra.mxu0 %v25209_v8 }
 0xa7b   :  { %22467 = vmatprep.subr.bf16.mxu0 %v25227_v46 }
 0xa7e   :  { %22468 = vmatpush3.bf16.msra.mxu0 %v25210_v12 }
 0xa7f   :  { %22469 = vmatprep.subr.bf16.mxu0 %v25227_v46 }
 0xa82   :  { %22470 = vmatpush3.bf16.msra.mxu0 %v25211_v56 }
 0xa83   :  { %22471 = vmatprep.subr.bf16.mxu0 %v25227_v46 }
 0xa86   :  { %v22345_v19 = vpop.f32.mrb[52].mxu1  ;;  %22472 = vmatpush3.bf16.msra.mxu0 %v25212_v16 }
 0xa87   :  { %v22346_v3 = vpop.f32.mrb[53].mxu1  ;;  %22473 = vmatprep.subr.bf16.mxu0 %v25227_v46  ;;  %v19613_v46 = vand.u32 127, %v825_v52 }
 0xa88   :  { %v22347_v7 = vadd.f32 %v22346_v3, %v22345_v19  ;;  %v22348_v61 = vpop.f32.mrb[54].mxu1 }
 0xa89   :  { %v22349_v9 = vpop.f32.mrb[55].mxu1  ;;  %vm19614_vm5 = vcmp.lt.s32.totalorder %v19613_v46, 10 }
 0xa8a   :  { %v19294_v0 = vadd.f32 %v22347_v7, %v19254_v41  ;;  %22474 = vmatpush3.bf16.msra.mxu0 %v25213_v32 }
 0xa8c   :  { %v19334_v36 = vadd.f32 %v22369_v11, %v19294_v0 }
 0xa94   :  { %v22411_v30 = vpop.f32.mrb[52].mxu0 }
 0xa95   :  { %v22412_v28 = vpop.f32.mrb[53].mxu0 }
 0xa96   :  { %v22413_v35 = vadd.f32 %v22412_v28, %v22411_v30  ;;  %v22414_v40 = vpop.f32.mrb[54].mxu0 }
 0xa97   :  { %v22415_v18 = vpop.f32.mrb[55].mxu0 }
 0xaa6   :  { %v22389_v17 = vpop.f32.mrb[56].mxu1 }
 0xaa7   :  { %v22390_v45 = vpop.f32.mrb[57].mxu1 }
 0xaa8   :  { %v22391_v14 = vadd.f32 %v22390_v45, %v22389_v17  ;;  %v22392_v58 = vpop.f32.mrb[58].mxu1 }
 0xaa9   :  { %v22393_v48 = vpop.f32.mrb[59].mxu1 }
 0xaaa   :  { %v19374_v22 = vadd.f32 %v22391_v14, %v19334_v36 }
 0xaac   :  { %v19414_v25 = vadd.f32 %v22413_v35, %v19374_v22 }
 0xac6   :  { %v22433_v42 = vpop.f32.mrb[60].mxu1 }
 0xac7   :  { %v22434_v60 = vpop.f32.mrb[61].mxu1 }
 0xac8   :  { %v22435_v5 = vadd.f32 %v22434_v60, %v22433_v42  ;;  %v22436_v57 = vpop.f32.mrb[62].mxu1 }
 0xac9   :  { %v22437_v51 = vpop.f32.mrb[63].mxu1 }
 0xaca   :  { %v19454_v10 = vadd.f32 %v22435_v5, %v19414_v25 }
 0xb40   :  { %v19493_v54 = vpop.f32.mrb[56].mxu0 }
 0xb41   :  { %v19494_v53 = vadd.f32 %v19493_v54, %v19454_v10  ;;  %v22457_v27 = vpop.f32.mrb[57].mxu0 }
 0xb42   :  { %v19496_v55 = vpop.f32.mrb[58].mxu0 }
 0xb43   :  { %v19499_v50 = vmax.f32 %v19494_v53, 0.0  ;;  %v22458_v59 = vpop.f32.mrb[59].mxu0 }
 0xb45   :  { %v19500_v62 = vpack.c.bf16 %v19499_v50, %v19499_v50 }
 0xb47   :  { %22476 = vmatmul.mubr.bf16.vlgmr.msra.gmra.mrb[60].mxu0 %v19500_v62 }
 0xc1a   :  { %v19606_v63 = vpop.f32.mrb[60].mxu0 }
 0xc1b   :  { %v19607_v26 = vadd.f32 %v22144_v1, %v19606_v63  ;;  %v22477_v43 = vpop.f32.mrb[61].mxu0 }
 0xc1c   :  { %v19609_v23 = vpop.f32.mrb[62].mxu0 }
 0xc1d   :  { %v22478_v13 = vpop.f32.mrb[63].mxu0  ;;  %v19615_v24 = vsel %vm19614_vm5, %v19607_v26, -inf }
 0xc1e   :  { %19616 = vmax.xlane.f32.xlu0 %v19615_v24 }
 0xcab   :  { %v19617_v4 = vpop.xlane.xlu0 %19616 }
 0xcac   :  { %v19618_v6 = vsub.f32 %v19607_v26, %v19617_v4 }
 0xcae   :  { %v19619_v15 = vsel %vm19614_vm5, %v19618_v6, -inf }
 0xcaf   :  { %v19620_v31 = vmul.f32 1.442695, %v19619_v15 }
 0xcb1   :  { %25214 = vpow2.f32 %v19620_v31 }
 0xcbb   :  { %v25215_v52 = vpop.eup %25214 }
 0xcbc   :  { %19622 = vadd.xlane.f32.xlu0 %v25215_v52 }
 0xd49   :  { %v19623_v20 = vpop.xlane.xlu0 %19622 }
 0xd4a   :  { %25216 = vlog2.f32 %v19623_v20 }
 0xd54   :  { %v25217_v44 = vpop.eup %25216 }
 0xd55   :  { %v19625_v2 = vmul.f32 0.6931472, %v25217_v44 }
 0xd57   :  { %v19626_v34 = vsub.f32 %v19618_v6, %v19625_v2 }
 0xd59   :  { %v19627_v29 = vsel %vm19614_vm5, %v19626_v34, 0.0 }
 0xd5a   :  { %19628 = vst [vmem:[%s33266_s9] sm:$0xff] %v19627_v29 }

</bundles_post_ra>
